<compile_context>
chip_gen: v5e
topology: v5e:2x2
jax: 0.10.0
libtpu: 0.0.40
codegen_flags: <defaults>
</compile_context>

<pallas_src>
import math

import numpy as np

import jax
import jax.numpy as jnp
from jax.experimental import pallas as pl
from jax.experimental.pallas import tpu as pltpu


COR_PLANES = 4 * (2 * 3 + 1) ** 2     # 196
K1_PAD = 256                          # first-layer K padded to a lane multiple

_COMPILER_PARAMS = pltpu.CompilerParams(
    dimension_semantics=("parallel",),
    vmem_limit_bytes=32 * 1024 * 1024,
)


def _wspec(x):
    """Whole-array BlockSpec (weights / biases, constant across the grid)."""
    return pl.BlockSpec(x.shape, lambda n, _nd=x.ndim: (0,) * _nd)


def _conv3x3(pad_ref, w_ref, oh, ow, cp):
    """3x3 'valid' conv over a zero-padded (oh+2, ow+2, cp) bf16 VMEM scratch.

    kh is folded into K: 3 matmuls with K = 3*cp (instead of 9 with K = cp).
    w_ref: (3, 3*cp, Cout) bf16, row kh*cp + c of slice [kw] holds w[kh, kw, c].
    Returns (oh*ow, Cout) float32.
    """
    stacked = jnp.concatenate(
        [pad_ref[kh:kh + oh, :, :] for kh in range(3)], axis=-1)   # (oh, ow+2, 3cp)
    acc = None
    for kw in range(3):
        win = stacked[:, kw:kw + ow, :].reshape(oh * ow, 3 * cp)
        d = jnp.dot(win, w_ref[kw], preferred_element_type=jnp.float32)
        acc = d if acc is None else acc + d
    return acc


# ----------------------------------------------------------------------------
# Kernel 1: corr encoder (1x1 -> 3x3) and flow encoder (7x7 im2col -> 3x3)
# ----------------------------------------------------------------------------
def _encoders_call(corr_in, flow_patches, w):
    N, H, W, K1 = corr_in.shape
    HW = H * W

    def kernel(corr_ref, flowp_ref, wc1, bc1, wc2, bc2, wf1, bf1, wf2, bf2,
               o_ref, padc, padf):
        # corr encoder: 1x1 conv as a single matmul, relu, then 3x3 conv, relu
        c1 = jnp.dot(corr_ref[0].reshape(HW, K1), wc1[...],
                     preferred_element_type=jnp.float32) + bc1[...]
        c1 = jnp.maximum(c1, 0.0)
        padc[...] = jnp.zeros_like(padc)
        padc[1:H + 1, 1:W + 1, :] = c1.astype(jnp.bfloat16).reshape(H, W, 128)
        c2 = _conv3x3(padc, wc2, H, W, 128) + bc2[...]
        o_ref[0, :, :, 0:128] = jnp.maximum(c2, 0.0).reshape(H, W, 128).astype(o_ref.dtype)

        # flow encoder: 7x7 conv as one im2col matmul (K=196 padded to 256)
        f1 = jnp.dot(flowp_ref[0].reshape(HW, K1), wf1[...],
                     preferred_element_type=jnp.float32) + bf1[...]
        f1 = jnp.maximum(f1, 0.0)
        padf[...] = jnp.zeros_like(padf)
        padf[1:H + 1, 1:W + 1, :] = f1.astype(jnp.bfloat16).reshape(H, W, 128)
        f2 = _conv3x3(padf, wf2, H, W, 128) + bf2[...]
        o_ref[0, :, :, 128:192] = jnp.maximum(f2, 0.0).reshape(H, W, 64).astype(o_ref.dtype)

    return pl.pallas_call(
        kernel,
        out_shape=jax.ShapeDtypeStruct((N, H, W, 192), jnp.bfloat16),
        grid=(N,),
        in_specs=[
            pl.BlockSpec((1, H, W, K1), lambda n: (n, 0, 0, 0)),
            pl.BlockSpec((1, H, W, K1), lambda n: (n, 0, 0, 0)),
            _wspec(w["wc1"]), _wspec(w["bc1"]), _wspec(w["wc2"]), _wspec(w["bc2"]),
            _wspec(w["wf1"]), _wspec(w["bf1"]), _wspec(w["wf2"]), _wspec(w["bf2"]),
        ],
        out_specs=pl.BlockSpec((1, H, W, 192), lambda n: (n, 0, 0, 0)),
        scratch_shapes=[pltpu.VMEM((H + 2, W + 2, 128), jnp.bfloat16),
                        pltpu.VMEM((H + 2, W + 2, 128), jnp.bfloat16)],
        compiler_params=_COMPILER_PARAMS,
    )(corr_in, flow_patches, w["wc1"], w["bc1"], w["wc2"], w["bc2"],
      w["wf1"], w["bf1"], w["wf2"], w["bf2"])


# ----------------------------------------------------------------------------
# Kernel 2: fully fused ConvGRU
# ----------------------------------------------------------------------------
def _gru_call(net_h, inp_cat, w):
    N, H, W, _ = net_h.shape
    HW = H * W
    CP = 512                       # cat([net(128), inp(320)]) padded to 512

    def kernel(net_ref, inpc_ref, wg, bg, wglo, bglo, wzr, bzr, wq, bq,
               o_ref, pad_ref):
        net = net_ref[0].reshape(HW, 128)                    # f32
        net_bf = net.astype(jnp.bfloat16)

        # global context: glo = mean_hw(sigmoid(W1x1 net) * net)
        gate = jax.nn.sigmoid(
            jnp.dot(net_bf, wg[...], preferred_element_type=jnp.float32) + bg[...])
        glo = jnp.sum(gate * net, axis=0, keepdims=True) * (1.0 / HW)      # (1,128)
        glo_zrq = jnp.dot(glo.astype(jnp.bfloat16), wglo[...],
                          preferred_element_type=jnp.float32) + bglo[...]  # (1,384)
        glo_zr = glo_zrq[:, 0:256]
        glo_q = glo_zrq[:, 256:384]

        # zero-padded cat([net, inp]) staged once in a VMEM scratch
        pad_ref[...] = jnp.zeros_like(pad_ref)
        pad_ref[1:H + 1, 1:W + 1, 0:128] = net_bf.reshape(H, W, 128)
        pad_ref[1:H + 1, 1:W + 1, 128:448] = inpc_ref[0]

        # z and r gates fused into one 3x3 conv with Cout=256
        zr = jax.nn.sigmoid(_conv3x3(pad_ref, wzr, H, W, CP) + bzr[...] + glo_zr)
        z = zr[:, 0:128]
        r = zr[:, 128:256]

        # q gate: overwrite first 128 channels with r*net, reuse the rest
        pad_ref[1:H + 1, 1:W + 1, 0:128] = (r * net).astype(jnp.bfloat16).reshape(H, W, 128)
        q = jnp.tanh(_conv3x3(pad_ref, wq, H, W, CP) + bq[...] + glo_q)

        o_ref[0] = ((1.0 - z) * net + z * q).reshape(H, W, 128).astype(o_ref.dtype)

    return pl.pallas_call(
        kernel,
        out_shape=jax.ShapeDtypeStruct((N, H, W, 128), jnp.float32),
        grid=(N,),
        in_specs=[
            pl.BlockSpec((1, H, W, 128), lambda n: (n, 0, 0, 0)),
            pl.BlockSpec((1, H, W, 320), lambda n: (n, 0, 0, 0)),
            _wspec(w["wg"]), _wspec(w["bg"]), _wspec(w["wglo"]), _wspec(w["bglo"]),
            _wspec(w["wzr"]), _wspec(w["bzr"]), _wspec(w["wq"]), _wspec(w["bq"]),
        ],
        out_specs=pl.BlockSpec((1, H, W, 128), lambda n: (n, 0, 0, 0)),
        scratch_shapes=[pltpu.VMEM((H + 2, W + 2, 512), jnp.bfloat16)],
        compiler_params=_COMPILER_PARAMS,
    )(net_h, inp_cat, w["wg"], w["bg"], w["wglo"], w["bglo"],
      w["wzr"], w["bzr"], w["wq"], w["bq"])


# ----------------------------------------------------------------------------
# Kernel 3: fused delta+weight heads (+ GraphAgg conv1)
# ----------------------------------------------------------------------------
def _heads_call(net_new, w, with_agg):
    N, H, W, _ = net_new.shape

    def kernel(*refs):
        if with_agg:
            net_ref, wh1, bh1, wh2, bh2, wa1, ba1, o_head, o_agg, pad1, pad2 = refs
        else:
            net_ref, wh1, bh1, wh2, bh2, o_head, pad1, pad2 = refs

        net_bf = net_ref[0].astype(jnp.bfloat16)
        pad1[...] = jnp.zeros_like(pad1)
        pad1[1:H + 1, 1:W + 1, :] = net_bf

        # dlt1 || wgt1 fused: Cout=256
        h1 = jnp.maximum(_conv3x3(pad1, wh1, H, W, 128) + bh1[...], 0.0)
        pad2[...] = jnp.zeros_like(pad2)
        pad2[1:H + 1, 1:W + 1, :] = h1.astype(jnp.bfloat16).reshape(H, W, 256)

        # block-diagonal dlt2 / wgt2, output padded to 128 lanes (dense store)
        h2 = _conv3x3(pad2, wh2, H, W, 256) + bh2[...]
        ch = jax.lax.broadcasted_iota(jnp.int32, h2.shape, 1)
        h2 = jnp.where((ch >= 2) & (ch < 4), jax.nn.sigmoid(h2), h2)
        o_head[0] = h2.reshape(H, W, 128).astype(o_head.dtype)

        if with_agg:   # GraphAgg conv1 reads the same padded net_new
            a1 = jnp.maximum(_conv3x3(pad1, wa1, H, W, 128) + ba1[...], 0.0)
            o_agg[0] = a1.reshape(H, W, 128).astype(o_agg.dtype)

    in_arrays = [net_new, w["wh1"], w["bh1"], w["wh2"], w["bh2"]]
    in_specs = [pl.BlockSpec((1, H, W, 128), lambda n: (n, 0, 0, 0))]
    in_specs += [_wspec(a) for a in in_arrays[1:]]
    io_spec = pl.BlockSpec((1, H, W, 128), lambda n: (n, 0, 0, 0))
    if with_agg:
        in_arrays += [w["wa1"], w["ba1"]]
        in_specs += [_wspec(w["wa1"]), _wspec(w["ba1"])]
        out_shape = (jax.ShapeDtypeStruct((N, H, W, 128), jnp.float32),
                     jax.ShapeDtypeStruct((N, H, W, 128), jnp.float32))
        out_specs = (io_spec, io_spec)
    else:
        out_shape = jax.ShapeDtypeStruct((N, H, W, 128), jnp.float32)
        out_specs = io_spec

    return pl.pallas_call(
        kernel, out_shape=out_shape, grid=(N,),
        in_specs=in_specs, out_specs=out_specs,
        scratch_shapes=[pltpu.VMEM((H + 2, W + 2, 128), jnp.bfloat16),
                        pltpu.VMEM((H + 2, W + 2, 256), jnp.bfloat16)],
        compiler_params=_COMPILER_PARAMS,
    )(*in_arrays)


# ----------------------------------------------------------------------------
# Kernel 4: GraphAgg tail (conv2 -> relu -> {eta, upmask})
# ----------------------------------------------------------------------------
def _agg_call(agg_mean, w):
    NG, H, W, _ = agg_mean.shape

    def kernel(x_ref, wa2, ba2, weta, beta, wup, bup, o_eta, o_up, padA, padB):
        x_bf = x_ref[0].astype(jnp.bfloat16)
        padA[...] = jnp.zeros_like(padA)
        padA[1:H + 1, 1:W + 1, :] = x_bf
        t = jnp.maximum(_conv3x3(padA, wa2, H, W, 128) + ba2[...], 0.0)   # (HW,128)

        padB[...] = jnp.zeros_like(padB)
        padB[1:H + 1, 1:W + 1, :] = t.astype(jnp.bfloat16).reshape(H, W, 128)
        # eta head: Cout padded 1 -> 128 so matmul / store stay lane-dense.
        eta = 0.01 * jax.nn.softplus(_conv3x3(padB, weta, H, W, 128) + beta[...])
        o_eta[0] = eta.reshape(H, W, 128).astype(o_eta.dtype)

        up = jnp.dot(t.astype(jnp.bfloat16), wup[...],
                     preferred_element_type=jnp.float32) + bup[...]
        o_up[0] = up.reshape(H, W, 576).astype(o_up.dtype)

    return pl.pallas_call(
        kernel,
        out_shape=(jax.ShapeDtypeStruct((NG, H, W, 128), jnp.float32),
                   jax.ShapeDtypeStruct((NG, H, W, 576), jnp.float32)),
        grid=(NG,),
        in_specs=[pl.BlockSpec((1, H, W, 128), lambda n: (n, 0, 0, 0)),
                  _wspec(w["wa2"]), _wspec(w["ba2"]), _wspec(w["weta"]),
                  _wspec(w["beta"]), _wspec(w["wup"]), _wspec(w["bup"])],
        out_specs=(pl.BlockSpec((1, H, W, 128), lambda n: (n, 0, 0, 0)),
                   pl.BlockSpec((1, H, W, 576), lambda n: (n, 0, 0, 0))),
        scratch_shapes=[pltpu.VMEM((H + 2, W + 2, 128), jnp.bfloat16),
                        pltpu.VMEM((H + 2, W + 2, 128), jnp.bfloat16)],
        compiler_params=_COMPILER_PARAMS,
    )(agg_mean, w["wa2"], w["ba2"], w["weta"], w["beta"], w["wup"], w["bup"])


# ----------------------------------------------------------------------------
# Parameters (deterministic, torch-Conv2d-like uniform init; HWIO layout)
# ----------------------------------------------------------------------------
def init_params(key):
    params = {}

    def add(name, kh, kw, cin, cout):
        nonlocal key
        key, k1, k2 = jax.random.split(key, 3)
        bound = 1.0 / math.sqrt(kh * kw * cin)
        params[name + "_w"] = jax.random.uniform(
            k1, (kh, kw, cin, cout), jnp.float32, -bound, bound)
        params[name + "_b"] = jax.random.uniform(
            k2, (cout,), jnp.float32, -bound, bound)

    add("ce1", 1, 1, COR_PLANES, 128); add("ce2", 3, 3, 128, 128)     # corr_encoder
    add("fe1", 7, 7, 4, 128); add("fe2", 3, 3, 128, 64)               # flow_encoder
    add("gru_z", 3, 3, 448, 128); add("gru_r", 3, 3, 448, 128)        # ConvGRU
    add("gru_q", 3, 3, 448, 128); add("gru_w", 1, 1, 128, 128)
    add("gru_z_glo", 1, 1, 128, 128); add("gru_r_glo", 1, 1, 128, 128)
    add("gru_q_glo", 1, 1, 128, 128)
    add("wgt1", 3, 3, 128, 128); add("wgt2", 3, 3, 128, 2)            # weight head
    add("dlt1", 3, 3, 128, 128); add("dlt2", 3, 3, 128, 2)            # delta head
    add("agg1", 3, 3, 128, 128); add("agg2", 3, 3, 128, 128)          # GraphAgg
    add("eta", 3, 3, 128, 1); add("upm", 1, 1, 128, 8 * 8 * 9)
    return params


def pack_params(p):
    """Pre-pack / fuse / bf16-cast weights for the fused kernels."""
    bf = jnp.bfloat16
    pp = {}

    def pk3(w, cin_pad=None):
        kh, kw, cin, cout = w.shape
        cp = cin if cin_pad is None else cin_pad
        if cp != cin:
            w = jnp.pad(w, ((0, 0), (0, 0), (0, cp - cin), (0, 0)))
        return jnp.transpose(w, (1, 0, 2, 3)).reshape(kw, kh * cp, cout).astype(bf)

    def b2(b):
        return b.reshape(1, -1).astype(jnp.float32)

    # encoders (first-layer K padded 196 -> 256)
    pp["wc1"] = jnp.pad(p["ce1_w"].reshape(COR_PLANES, 128),
                        ((0, K1_PAD - COR_PLANES), (0, 0))).astype(bf)
    pp["bc1"] = b2(p["ce1_b"])
    pp["wc2"] = pk3(p["ce2_w"]); pp["bc2"] = b2(p["ce2_b"])
    pp["wf1"] = jnp.pad(p["fe1_w"].reshape(7 * 7 * 4, 128),
                        ((0, K1_PAD - 7 * 7 * 4), (0, 0))).astype(bf)
    pp["bf1"] = b2(p["fe1_b"])
    pp["wf2"] = pk3(p["fe2_w"]); pp["bf2"] = b2(p["fe2_b"])

    # ConvGRU (z & r fused to Cout=256; the three glo 1x1s fused to (128,384))
    pp["wg"] = p["gru_w_w"].reshape(128, 128).astype(bf)
    pp["bg"] = b2(p["gru_w_b"])
    pp["wglo"] = jnp.concatenate(
        [p["gru_z_glo_w"].reshape(128, 128), p["gru_r_glo_w"].reshape(128, 128),
         p["gru_q_glo_w"].reshape(128, 128)], axis=-1).astype(bf)
    pp["bglo"] = b2(jnp.concatenate(
        [p["gru_z_glo_b"], p["gru_r_glo_b"], p["gru_q_glo_b"]]))
    pp["wzr"] = pk3(jnp.concatenate([p["gru_z_w"], p["gru_r_w"]], axis=-1), cin_pad=512)
    pp["bzr"] = b2(jnp.concatenate([p["gru_z_b"], p["gru_r_b"]]))
    pp["wq"] = pk3(p["gru_q_w"], cin_pad=512)
    pp["bq"] = b2(p["gru_q_b"])

    # delta/weight heads (block-diagonal second conv, Cout padded 4 -> 128)
    pp["wh1"] = pk3(jnp.concatenate([p["dlt1_w"], p["wgt1_w"]], axis=-1))
    pp["bh1"] = b2(jnp.concatenate([p["dlt1_b"], p["wgt1_b"]]))
    wh2 = jnp.zeros((3, 3, 256, 128), jnp.float32)
    wh2 = wh2.at[:, :, :128, 0:2].set(p["dlt2_w"]).at[:, :, 128:, 2:4].set(p["wgt2_w"])
    pp["wh2"] = pk3(wh2)
    bh2 = jnp.zeros((128,), jnp.float32).at[0:2].set(p["dlt2_b"]).at[2:4].set(p["wgt2_b"])
    pp["bh2"] = b2(bh2)
    pp["wa1"] = pk3(p["agg1_w"]); pp["ba1"] = b2(p["agg1_b"])

    # GraphAgg tail (eta Cout padded 1 -> 128)
    pp["wa2"] = pk3(p["agg2_w"]); pp["ba2"] = b2(p["agg2_b"])
    weta = jnp.zeros((3, 3, 128, 128), jnp.float32).at[:, :, :, 0:1].set(p["eta_w"])
    pp["weta"] = pk3(weta)
    pp["beta"] = b2(jnp.zeros((128,), jnp.float32).at[0].set(p["eta_b"][0]))
    pp["wup"] = p["upm_w"].reshape(128, 8 * 8 * 9).astype(bf)
    pp["bup"] = b2(p["upm_b"])
    return pp


# ----------------------------------------------------------------------------
# UpdateModule forward
# ----------------------------------------------------------------------------
def update_module_forward(pp, net, inp, corr, flow=None, ii=None):
    B, Nn, C, H, W = net.shape
    assert C == 128
    N = B * Nn
    if flow is None:
        flow = jnp.zeros((B, Nn, 4, H, W), net.dtype)

    def to_nhwc(x):
        x = x.reshape(N, x.shape[2], H, W)
        return jnp.transpose(x, (0, 2, 3, 1))

    net_h = to_nhwc(net).astype(jnp.float32)
    inp_h = to_nhwc(inp)
    corr_h = to_nhwc(corr)
    flow_h = to_nhwc(flow)

    # corr input: channels padded 196 -> 256, bf16 (pure matmul operand)
    corr_in = jnp.pad(corr_h, ((0, 0), (0, 0), (0, 0),
                               (0, K1_PAD - corr_h.shape[-1]))).astype(jnp.bfloat16)
    # flow input: 7x7 im2col built in the wrapper -> (N, H, W, 196) -> pad 256
    fp = jnp.pad(flow_h, ((0, 0), (3, 3), (3, 3), (0, 0)))
    cols = [fp[:, kh:kh + H, kw:kw + W, :] for kh in range(7) for kw in range(7)]
    flow_patches = jnp.concatenate(cols, axis=-1)
    flow_patches = jnp.pad(flow_patches, ((0, 0), (0, 0), (0, 0),
                                          (0, K1_PAD - flow_patches.shape[-1])
                                          )).astype(jnp.bfloat16)

    # --- encoders (one fused kernel) ---
    enc = _encoders_call(corr_in, flow_patches, pp)               # (N,H,W,192) bf16
    inp_cat = jnp.concatenate([inp_h.astype(jnp.bfloat16), enc], axis=-1)  # 320 ch

    # --- ConvGRU (one fused kernel) ---
    net_new = _gru_call(net_h, inp_cat, pp)                       # (N,H,W,128) f32

    # --- delta / weight heads (+ GraphAgg conv1 if ii given) ---
    if ii is None:
        head = _heads_call(net_new, pp, with_agg=False)
        a1 = None
    else:
        head, a1 = _heads_call(net_new, pp, with_agg=True)

    delta = head[..., 0:2].reshape(B, Nn, H, W, 2)
    weight = head[..., 2:4].reshape(B, Nn, H, W, 2)
    net_out = jnp.transpose(net_new, (0, 3, 1, 2)).reshape(B, Nn, 128, H, W)

    if ii is None:
        return net_out, delta, weight

    # --- GraphAgg: scatter_mean over the `num` axis (tiny, plain-JAX glue) ---
    ii_np = np.asarray(ii)
    uniq, ix = np.unique(ii_np, return_inverse=True)    # host-side, static groups
    G = int(uniq.shape[0])
    onehot = jnp.asarray((ix[None, :] == np.arange(G)[:, None]).astype(np.float32))
    counts = jnp.asarray(np.maximum(np.bincount(ix, minlength=G), 1).astype(np.float32))
    a1 = a1.reshape(B, Nn, H, W, 128)
    agg_mean = jnp.einsum("gn,bnhwc->bghwc", onehot, a1) / counts[None, :, None, None, None]
    agg_mean = agg_mean.reshape(B * G, H, W, 128)

    eta_full, up = _agg_call(agg_mean, pp)
    eta = eta_full[..., 0].reshape(B, G, H, W)
    upmask = jnp.transpose(up, (0, 3, 1, 2)).reshape(B, G, 8 * 8 * 9, H, W)
    return net_out, delta, weight, eta, upmask


# ----------------------------------------------------------------------------
if __name__ == "__main__":
    key = jax.random.PRNGKey(0)
    kp, kn, ki, kc = jax.random.split(key, 4)

    B, Nn, H, W = 1, 3, 16, 16
    params = init_params(kp)
    pp = pack_params(params)

    net = jax.random.normal(kn, (B, Nn, 128, H, W), jnp.float32)
    inp = jax.random.normal(ki, (B, Nn, 128, H, W), jnp.float32)
    corr = jax.random.normal(kc, (B, Nn, COR_PLANES, H, W), jnp.float32)
    ii = jnp.array([0, 1, 0], dtype=jnp.int32)

    outs = update_module_forward(pp, net, inp, corr, flow=None, ii=ii)
    jax.block_until_ready(outs)

    net_o, delta_o, weight_o, eta_o, upmask_o = outs
    assert net_o.shape == (B, Nn, 128, H, W)
    assert delta_o.shape == (B, Nn, H, W, 2)
    assert weight_o.shape == (B, Nn, H, W, 2)
    assert eta_o.shape == (B, 2, H, W)
    assert upmask_o.shape == (B, 2, 8 * 8 * 9, H, W)
    assert bool(jnp.all(jnp.isfinite(net_o)))
    print("KERNEL_OK")
</pallas_src>

<mosaic_0001>
module attributes {stable_mosaic.version = 11 : i64} {
  func.func @kernel(%arg0: i32, %arg1: memref<1x16x16x256xbf16, #tpu.memory_space<vmem>>, %arg2: memref<1x16x16x256xbf16, #tpu.memory_space<vmem>>, %arg3: memref<256x128xbf16, #tpu.memory_space<vmem>>, %arg4: memref<1x128xf32, #tpu.memory_space<vmem>>, %arg5: memref<3x384x128xbf16, #tpu.memory_space<vmem>>, %arg6: memref<1x128xf32, #tpu.memory_space<vmem>>, %arg7: memref<256x128xbf16, #tpu.memory_space<vmem>>, %arg8: memref<1x128xf32, #tpu.memory_space<vmem>>, %arg9: memref<3x384x64xbf16, #tpu.memory_space<vmem>>, %arg10: memref<1x64xf32, #tpu.memory_space<vmem>>, %arg11: memref<1x16x16x192xbf16, #tpu.memory_space<vmem>>, %arg12: memref<18x18x128xbf16, #tpu.memory_space<vmem>>, %arg13: memref<18x18x128xbf16, #tpu.memory_space<vmem>>) attributes {dimension_semantics = [#tpu.dimension_semantics<parallel>], iteration_bounds = array<i64: 3>, scalar_prefetch = 0 : i64, scratch_operands = 2 : i64, tpu.core_type = #tpu.core_type<tc>, window_params = [{transform_indices = @transform_0, window_bounds = array<i64: 1, 16, 16, 256>}, {transform_indices = @transform_1, window_bounds = array<i64: 1, 16, 16, 256>}, {pipeline_mode = #tpu.pipeline_mode<synchronous>, transform_indices = @transform_2, window_bounds = array<i64: 256, 128>}, {pipeline_mode = #tpu.pipeline_mode<synchronous>, transform_indices = @transform_3, window_bounds = array<i64: 1, 128>}, {pipeline_mode = #tpu.pipeline_mode<synchronous>, transform_indices = @transform_4, window_bounds = array<i64: 3, 384, 128>}, {pipeline_mode = #tpu.pipeline_mode<synchronous>, transform_indices = @transform_5, window_bounds = array<i64: 1, 128>}, {pipeline_mode = #tpu.pipeline_mode<synchronous>, transform_indices = @transform_6, window_bounds = array<i64: 256, 128>}, {pipeline_mode = #tpu.pipeline_mode<synchronous>, transform_indices = @transform_7, window_bounds = array<i64: 1, 128>}, {pipeline_mode = #tpu.pipeline_mode<synchronous>, transform_indices = @transform_8, window_bounds = array<i64: 3, 384, 64>}, {pipeline_mode = #tpu.pipeline_mode<synchronous>, transform_indices = @transform_9, window_bounds = array<i64: 1, 64>}, {transform_indices = @transform_10, window_bounds = array<i64: 1, 16, 16, 192>}]} {
    %c0 = arith.constant 0 : index
    %c0_0 = arith.constant 0 : index
    %c0_1 = arith.constant 0 : index
    %c0_2 = arith.constant 0 : index
    %0 = vector.load %arg1[%c0, %c0_0, %c0_1, %c0_2] : memref<1x16x16x256xbf16, #tpu.memory_space<vmem>>, vector<1x16x16x256xbf16>
    %1 = vector.shape_cast %0 : vector<1x16x16x256xbf16> to vector<16x16x256xbf16>
    %2 = vector.shape_cast %1 : vector<16x16x256xbf16> to vector<256x256xbf16>
    %c0_3 = arith.constant 0 : index
    %c0_4 = arith.constant 0 : index
    %3 = vector.load %arg3[%c0_3, %c0_4] : memref<256x128xbf16, #tpu.memory_space<vmem>>, vector<256x128xbf16>
    %cst = arith.constant dense<0.000000e+00> : vector<256x128xf32>
    %4 = tpu.matmul %2, %3, %cst {dimension_numbers = #tpu.dot_dimension_numbers<[1], [0], [0], [1], [0, 0, 1, 1], [], []>} : vector<256x256xbf16>, vector<256x128xbf16>, vector<256x128xf32> -> vector<256x128xf32>
    %c0_5 = arith.constant 0 : index
    %c0_6 = arith.constant 0 : index
    %5 = vector.load %arg4[%c0_5, %c0_6] : memref<1x128xf32, #tpu.memory_space<vmem>>, vector<1x128xf32>
    %6 = vector.broadcast %5 : vector<1x128xf32> to vector<256x128xf32>
    %7 = arith.addf %4, %6 : vector<256x128xf32>
    %cst_7 = arith.constant 0.000000e+00 : f32
    %8 = vector.broadcast %cst_7 : f32 to vector<256x128xf32>
    %9 = arith.maximumf %7, %8 : vector<256x128xf32>
    %cst_8 = arith.constant 0.000000e+00 : bf16
    %10 = vector.broadcast %cst_8 : bf16 to vector<18x18x128xbf16>
    %c0_9 = arith.constant 0 : index
    %c0_10 = arith.constant 0 : index
    %c0_11 = arith.constant 0 : index
    %11 = vector.load %arg12[%c0_9, %c0_10, %c0_11] : memref<18x18x128xbf16, #tpu.memory_space<vmem>>, vector<18x18x128xbf16>
    tpu.vector_store %arg12[%c0_9, %c0_10, %c0_11], %10 {strides = array<i32>} : memref<18x18x128xbf16, #tpu.memory_space<vmem>>, vector<18x18x128xbf16>,
    %12 = arith.truncf %9 : vector<256x128xf32> to vector<256x128xbf16>
    %13 = vector.shape_cast %12 : vector<256x128xbf16> to vector<16x16x128xbf16>
    %c1 = arith.constant 1 : index
    %c1_12 = arith.constant 1 : index
    %c0_13 = arith.constant 0 : index
    %14 = vector.load %arg12[%c1, %c1_12, %c0_13] : memref<18x18x128xbf16, #tpu.memory_space<vmem>>, vector<16x16x128xbf16>
    tpu.vector_store %arg12[%c1, %c1_12, %c0_13], %13 {strides = array<i32>} : memref<18x18x128xbf16, #tpu.memory_space<vmem>>, vector<16x16x128xbf16>,
    %c0_14 = arith.constant 0 : index
    %c0_15 = arith.constant 0 : index
    %c0_16 = arith.constant 0 : index
    %15 = vector.load %arg12[%c0_14, %c0_15, %c0_16] : memref<18x18x128xbf16, #tpu.memory_space<vmem>>, vector<16x18x128xbf16>
    %c1_17 = arith.constant 1 : index
    %c0_18 = arith.constant 0 : index
    %c0_19 = arith.constant 0 : index
    %16 = vector.load %arg12[%c1_17, %c0_18, %c0_19] : memref<18x18x128xbf16, #tpu.memory_space<vmem>>, vector<16x18x128xbf16>
    %c2 = arith.constant 2 : index
    %c0_20 = arith.constant 0 : index
    %c0_21 = arith.constant 0 : index
    %17 = vector.load %arg12[%c2, %c0_20, %c0_21] : memref<18x18x128xbf16, #tpu.memory_space<vmem>>, vector<16x18x128xbf16>
    %18 = tpu.concatenate %15, %16, %17 in 2 : vector<16x18x128xbf16>, vector<16x18x128xbf16>, vector<16x18x128xbf16> -> vector<16x18x384xbf16>
    %19 = vector.extract_strided_slice %18 {offsets = [0, 0, 0], sizes = [16, 16, 384], strides = [1, 1, 1]} : vector<16x18x384xbf16> to vector<16x16x384xbf16>
    %20 = vector.shape_cast %19 : vector<16x16x384xbf16> to vector<256x384xbf16>
    %c0_22 = arith.constant 0 : index
    %c0_23 = arith.constant 0 : index
    %c0_24 = arith.constant 0 : index
    %21 = vector.load %arg5[%c0_22, %c0_23, %c0_24] : memref<3x384x128xbf16, #tpu.memory_space<vmem>>, vector<1x384x128xbf16>
    %22 = vector.shape_cast %21 : vector<1x384x128xbf16> to vector<384x128xbf16>
    %cst_25 = arith.constant dense<0.000000e+00> : vector<256x128xf32>
    %23 = tpu.matmul %20, %22, %cst_25 {dimension_numbers = #tpu.dot_dimension_numbers<[1], [0], [0], [1], [0, 0, 1, 1], [], []>} : vector<256x384xbf16>, vector<384x128xbf16>, vector<256x128xf32> -> vector<256x128xf32>
    %24 = vector.extract_strided_slice %18 {offsets = [0, 1, 0], sizes = [16, 16, 384], strides = [1, 1, 1]} : vector<16x18x384xbf16> to vector<16x16x384xbf16>
    %25 = vector.shape_cast %24 : vector<16x16x384xbf16> to vector<256x384xbf16>
    %c1_26 = arith.constant 1 : index
    %c0_27 = arith.constant 0 : index
    %c0_28 = arith.constant 0 : index
    %26 = vector.load %arg5[%c1_26, %c0_27, %c0_28] : memref<3x384x128xbf16, #tpu.memory_space<vmem>>, vector<1x384x128xbf16>
    %27 = vector.shape_cast %26 : vector<1x384x128xbf16> to vector<384x128xbf16>
    %cst_29 = arith.constant dense<0.000000e+00> : vector<256x128xf32>
    %28 = tpu.matmul %25, %27, %cst_29 {dimension_numbers = #tpu.dot_dimension_numbers<[1], [0], [0], [1], [0, 0, 1, 1], [], []>} : vector<256x384xbf16>, vector<384x128xbf16>, vector<256x128xf32> -> vector<256x128xf32>
    %29 = arith.addf %23, %28 : vector<256x128xf32>
    %30 = vector.extract_strided_slice %18 {offsets = [0, 2, 0], sizes = [16, 16, 384], strides = [1, 1, 1]} : vector<16x18x384xbf16> to vector<16x16x384xbf16>
    %31 = vector.shape_cast %30 : vector<16x16x384xbf16> to vector<256x384xbf16>
    %c2_30 = arith.constant 2 : index
    %c0_31 = arith.constant 0 : index
    %c0_32 = arith.constant 0 : index
    %32 = vector.load %arg5[%c2_30, %c0_31, %c0_32] : memref<3x384x128xbf16, #tpu.memory_space<vmem>>, vector<1x384x128xbf16>
    %33 = vector.shape_cast %32 : vector<1x384x128xbf16> to vector<384x128xbf16>
    %cst_33 = arith.constant dense<0.000000e+00> : vector<256x128xf32>
    %34 = tpu.matmul %31, %33, %cst_33 {dimension_numbers = #tpu.dot_dimension_numbers<[1], [0], [0], [1], [0, 0, 1, 1], [], []>} : vector<256x384xbf16>, vector<384x128xbf16>, vector<256x128xf32> -> vector<256x128xf32>
    %35 = arith.addf %29, %34 : vector<256x128xf32>
    %c0_34 = arith.constant 0 : index
    %c0_35 = arith.constant 0 : index
    %36 = vector.load %arg6[%c0_34, %c0_35] : memref<1x128xf32, #tpu.memory_space<vmem>>, vector<1x128xf32>
    %37 = vector.broadcast %36 : vector<1x128xf32> to vector<256x128xf32>
    %38 = arith.addf %35, %37 : vector<256x128xf32>
    %cst_36 = arith.constant 0.000000e+00 : f32
    %39 = vector.broadcast %cst_36 : f32 to vector<256x128xf32>
    %40 = arith.maximumf %38, %39 : vector<256x128xf32>
    %41 = vector.shape_cast %40 : vector<256x128xf32> to vector<16x16x128xf32>
    %42 = arith.truncf %41 : vector<16x16x128xf32> to vector<16x16x128xbf16>
    %c0_37 = arith.constant 0 : index
    %c0_38 = arith.constant 0 : index
    %c0_39 = arith.constant 0 : index
    %c0_40 = arith.constant 0 : index
    %43 = vector.load %arg11[%c0_37, %c0_38, %c0_39, %c0_40] : memref<1x16x16x192xbf16, #tpu.memory_space<vmem>>, vector<1x16x16x128xbf16>
    %44 = vector.shape_cast %43 : vector<1x16x16x128xbf16> to vector<16x16x128xbf16>
    %45 = vector.shape_cast %42 : vector<16x16x128xbf16> to vector<1x16x16x128xbf16>
    tpu.vector_store %arg11[%c0_37, %c0_38, %c0_39, %c0_40], %45 {strides = array<i32>} : memref<1x16x16x192xbf16, #tpu.memory_space<vmem>>, vector<1x16x16x128xbf16>,
    %c0_41 = arith.constant 0 : index
    %c0_42 = arith.constant 0 : index
    %c0_43 = arith.constant 0 : index
    %c0_44 = arith.constant 0 : index
    %46 = vector.load %arg2[%c0_41, %c0_42, %c0_43, %c0_44] : memref<1x16x16x256xbf16, #tpu.memory_space<vmem>>, vector<1x16x16x256xbf16>
    %47 = vector.shape_cast %46 : vector<1x16x16x256xbf16> to vector<16x16x256xbf16>
    %48 = vector.shape_cast %47 : vector<16x16x256xbf16> to vector<256x256xbf16>
    %c0_45 = arith.constant 0 : index
    %c0_46 = arith.constant 0 : index
    %49 = vector.load %arg7[%c0_45, %c0_46] : memref<256x128xbf16, #tpu.memory_space<vmem>>, vector<256x128xbf16>
    %cst_47 = arith.constant dense<0.000000e+00> : vector<256x128xf32>
    %50 = tpu.matmul %48, %49, %cst_47 {dimension_numbers = #tpu.dot_dimension_numbers<[1], [0], [0], [1], [0, 0, 1, 1], [], []>} : vector<256x256xbf16>, vector<256x128xbf16>, vector<256x128xf32> -> vector<256x128xf32>
    %c0_48 = arith.constant 0 : index
    %c0_49 = arith.constant 0 : index
    %51 = vector.load %arg8[%c0_48, %c0_49] : memref<1x128xf32, #tpu.memory_space<vmem>>, vector<1x128xf32>
    %52 = vector.broadcast %51 : vector<1x128xf32> to vector<256x128xf32>
    %53 = arith.addf %50, %52 : vector<256x128xf32>
    %cst_50 = arith.constant 0.000000e+00 : f32
    %54 = vector.broadcast %cst_50 : f32 to vector<256x128xf32>
    %55 = arith.maximumf %53, %54 : vector<256x128xf32>
    %cst_51 = arith.constant 0.000000e+00 : bf16
    %56 = vector.broadcast %cst_51 : bf16 to vector<18x18x128xbf16>
    %c0_52 = arith.constant 0 : index
    %c0_53 = arith.constant 0 : index
    %c0_54 = arith.constant 0 : index
    %57 = vector.load %arg13[%c0_52, %c0_53, %c0_54] : memref<18x18x128xbf16, #tpu.memory_space<vmem>>, vector<18x18x128xbf16>
    tpu.vector_store %arg13[%c0_52, %c0_53, %c0_54], %56 {strides = array<i32>} : memref<18x18x128xbf16, #tpu.memory_space<vmem>>, vector<18x18x128xbf16>,
    %58 = arith.truncf %55 : vector<256x128xf32> to vector<256x128xbf16>
    %59 = vector.shape_cast %58 : vector<256x128xbf16> to vector<16x16x128xbf16>
    %c1_55 = arith.constant 1 : index
    %c1_56 = arith.constant 1 : index
    %c0_57 = arith.constant 0 : index
    %60 = vector.load %arg13[%c1_55, %c1_56, %c0_57] : memref<18x18x128xbf16, #tpu.memory_space<vmem>>, vector<16x16x128xbf16>
    tpu.vector_store %arg13[%c1_55, %c1_56, %c0_57], %59 {strides = array<i32>} : memref<18x18x128xbf16, #tpu.memory_space<vmem>>, vector<16x16x128xbf16>,
    %c0_58 = arith.constant 0 : index
    %c0_59 = arith.constant 0 : index
    %c0_60 = arith.constant 0 : index
    %61 = vector.load %arg13[%c0_58, %c0_59, %c0_60] : memref<18x18x128xbf16, #tpu.memory_space<vmem>>, vector<16x18x128xbf16>
    %c1_61 = arith.constant 1 : index
    %c0_62 = arith.constant 0 : index
    %c0_63 = arith.constant 0 : index
    %62 = vector.load %arg13[%c1_61, %c0_62, %c0_63] : memref<18x18x128xbf16, #tpu.memory_space<vmem>>, vector<16x18x128xbf16>
    %c2_64 = arith.constant 2 : index
    %c0_65 = arith.constant 0 : index
    %c0_66 = arith.constant 0 : index
    %63 = vector.load %arg13[%c2_64, %c0_65, %c0_66] : memref<18x18x128xbf16, #tpu.memory_space<vmem>>, vector<16x18x128xbf16>
    %64 = tpu.concatenate %61, %62, %63 in 2 : vector<16x18x128xbf16>, vector<16x18x128xbf16>, vector<16x18x128xbf16> -> vector<16x18x384xbf16>
    %65 = vector.extract_strided_slice %64 {offsets = [0, 0, 0], sizes = [16, 16, 384], strides = [1, 1, 1]} : vector<16x18x384xbf16> to vector<16x16x384xbf16>
    %66 = vector.shape_cast %65 : vector<16x16x384xbf16> to vector<256x384xbf16>
    %c0_67 = arith.constant 0 : index
    %c0_68 = arith.constant 0 : index
    %c0_69 = arith.constant 0 : index
    %67 = vector.load %arg9[%c0_67, %c0_68, %c0_69] : memref<3x384x64xbf16, #tpu.memory_space<vmem>>, vector<1x384x64xbf16>
    %68 = vector.shape_cast %67 : vector<1x384x64xbf16> to vector<384x64xbf16>
    %cst_70 = arith.constant dense<0.000000e+00> : vector<256x64xf32>
    %69 = tpu.matmul %66, %68, %cst_70 {dimension_numbers = #tpu.dot_dimension_numbers<[1], [0], [0], [1], [0, 0, 1, 1], [], []>} : vector<256x384xbf16>, vector<384x64xbf16>, vector<256x64xf32> -> vector<256x64xf32>
    %70 = vector.extract_strided_slice %64 {offsets = [0, 1, 0], sizes = [16, 16, 384], strides = [1, 1, 1]} : vector<16x18x384xbf16> to vector<16x16x384xbf16>
    %71 = vector.shape_cast %70 : vector<16x16x384xbf16> to vector<256x384xbf16>
    %c1_71 = arith.constant 1 : index
    %c0_72 = arith.constant 0 : index
    %c0_73 = arith.constant 0 : index
    %72 = vector.load %arg9[%c1_71, %c0_72, %c0_73] : memref<3x384x64xbf16, #tpu.memory_space<vmem>>, vector<1x384x64xbf16>
    %73 = vector.shape_cast %72 : vector<1x384x64xbf16> to vector<384x64xbf16>
    %cst_74 = arith.constant dense<0.000000e+00> : vector<256x64xf32>
    %74 = tpu.matmul %71, %73, %cst_74 {dimension_numbers = #tpu.dot_dimension_numbers<[1], [0], [0], [1], [0, 0, 1, 1], [], []>} : vector<256x384xbf16>, vector<384x64xbf16>, vector<256x64xf32> -> vector<256x64xf32>
    %75 = arith.addf %69, %74 : vector<256x64xf32>
    %76 = vector.extract_strided_slice %64 {offsets = [0, 2, 0], sizes = [16, 16, 384], strides = [1, 1, 1]} : vector<16x18x384xbf16> to vector<16x16x384xbf16>
    %77 = vector.shape_cast %76 : vector<16x16x384xbf16> to vector<256x384xbf16>
    %c2_75 = arith.constant 2 : index
    %c0_76 = arith.constant 0 : index
    %c0_77 = arith.constant 0 : index
    %78 = vector.load %arg9[%c2_75, %c0_76, %c0_77] : memref<3x384x64xbf16, #tpu.memory_space<vmem>>, vector<1x384x64xbf16>
    %79 = vector.shape_cast %78 : vector<1x384x64xbf16> to vector<384x64xbf16>
    %cst_78 = arith.constant dense<0.000000e+00> : vector<256x64xf32>
    %80 = tpu.matmul %77, %79, %cst_78 {dimension_numbers = #tpu.dot_dimension_numbers<[1], [0], [0], [1], [0, 0, 1, 1], [], []>} : vector<256x384xbf16>, vector<384x64xbf16>, vector<256x64xf32> -> vector<256x64xf32>
    %81 = arith.addf %75, %80 : vector<256x64xf32>
    %c0_79 = arith.constant 0 : index
    %c0_80 = arith.constant 0 : index
    %82 = vector.load %arg10[%c0_79, %c0_80] : memref<1x64xf32, #tpu.memory_space<vmem>>, vector<1x64xf32>
    %83 = vector.broadcast %82 : vector<1x64xf32> to vector<256x64xf32>
    %84 = arith.addf %81, %83 : vector<256x64xf32>
    %cst_81 = arith.constant 0.000000e+00 : f32
    %85 = vector.broadcast %cst_81 : f32 to vector<256x64xf32>
    %86 = arith.maximumf %84, %85 : vector<256x64xf32>
    %87 = vector.shape_cast %86 : vector<256x64xf32> to vector<16x16x64xf32>
    %88 = arith.truncf %87 : vector<16x16x64xf32> to vector<16x16x64xbf16>
    %c0_82 = arith.constant 0 : index
    %c0_83 = arith.constant 0 : index
    %c0_84 = arith.constant 0 : index
    %c128 = arith.constant 128 : index
    %89 = vector.load %arg11[%c0_82, %c0_83, %c0_84, %c128] : memref<1x16x16x192xbf16, #tpu.memory_space<vmem>>, vector<1x16x16x64xbf16>
    %90 = vector.shape_cast %89 : vector<1x16x16x64xbf16> to vector<16x16x64xbf16>
    %91 = vector.shape_cast %88 : vector<16x16x64xbf16> to vector<1x16x16x64xbf16>
    tpu.vector_store %arg11[%c0_82, %c0_83, %c0_84, %c128], %91 {strides = array<i32>} : memref<1x16x16x192xbf16, #tpu.memory_space<vmem>>, vector<1x16x16x64xbf16>,
    return
  }
  func.func @transform_0(%arg0: i32) -> (i32, i32, i32, i32) {
    %c0_i32 = arith.constant 0 : i32
    %c0_i32_0 = arith.constant 0 : i32
    %c0_i32_1 = arith.constant 0 : i32
    %c0_i32_2 = arith.constant 0 : i32
    return %arg0, %c0_i32, %c0_i32_0, %c0_i32_1 : i32, i32, i32, i32
  }
  func.func @transform_1(%arg0: i32) -> (i32, i32, i32, i32) {
    %c0_i32 = arith.constant 0 : i32
    %c0_i32_0 = arith.constant 0 : i32
    %c0_i32_1 = arith.constant 0 : i32
    %c0_i32_2 = arith.constant 0 : i32
    return %arg0, %c0_i32, %c0_i32_0, %c0_i32_1 : i32, i32, i32, i32
  }
  func.func @transform_2(%arg0: i32) -> (i32, i32) {
    %c0_i32 = arith.constant 0 : i32
    %c0_i32_0 = arith.constant 0 : i32
    %c0_i32_1 = arith.constant 0 : i32
    return %c0_i32, %c0_i32_0 : i32, i32
  }
  func.func @transform_3(%arg0: i32) -> (i32, i32) {
    %c0_i32 = arith.constant 0 : i32
    %c0_i32_0 = arith.constant 0 : i32
    %c0_i32_1 = arith.constant 0 : i32
    return %c0_i32, %c0_i32_0 : i32, i32
  }
  func.func @transform_4(%arg0: i32) -> (i32, i32, i32) {
    %c0_i32 = arith.constant 0 : i32
    %c0_i32_0 = arith.constant 0 : i32
    %c0_i32_1 = arith.constant 0 : i32
    %c0_i32_2 = arith.constant 0 : i32
    return %c0_i32, %c0_i32_0, %c0_i32_1 : i32, i32, i32
  }
  func.func @transform_5(%arg0: i32) -> (i32, i32) {
    %c0_i32 = arith.constant 0 : i32
    %c0_i32_0 = arith.constant 0 : i32
    %c0_i32_1 = arith.constant 0 : i32
    return %c0_i32, %c0_i32_0 : i32, i32
  }
  func.func @transform_6(%arg0: i32) -> (i32, i32) {
    %c0_i32 = arith.constant 0 : i32
    %c0_i32_0 = arith.constant 0 : i32
    %c0_i32_1 = arith.constant 0 : i32
    return %c0_i32, %c0_i32_0 : i32, i32
  }
  func.func @transform_7(%arg0: i32) -> (i32, i32) {
    %c0_i32 = arith.constant 0 : i32
    %c0_i32_0 = arith.constant 0 : i32
    %c0_i32_1 = arith.constant 0 : i32
    return %c0_i32, %c0_i32_0 : i32, i32
  }
  func.func @transform_8(%arg0: i32) -> (i32, i32, i32) {
    %c0_i32 = arith.constant 0 : i32
    %c0_i32_0 = arith.constant 0 : i32
    %c0_i32_1 = arith.constant 0 : i32
    %c0_i32_2 = arith.constant 0 : i32
    return %c0_i32, %c0_i32_0, %c0_i32_1 : i32, i32, i32
  }
  func.func @transform_9(%arg0: i32) -> (i32, i32) {
    %c0_i32 = arith.constant 0 : i32
    %c0_i32_0 = arith.constant 0 : i32
    %c0_i32_1 = arith.constant 0 : i32
    return %c0_i32, %c0_i32_0 : i32, i32
  }
  func.func @transform_10(%arg0: i32) -> (i32, i32, i32, i32) {
    %c0_i32 = arith.constant 0 : i32
    %c0_i32_0 = arith.constant 0 : i32
    %c0_i32_1 = arith.constant 0 : i32
    %c0_i32_2 = arith.constant 0 : i32
    return %arg0, %c0_i32, %c0_i32_0, %c0_i32_1 : i32, i32, i32, i32
  }
}

</mosaic_0001>

<bundles_post_ra>
// kernel: tpu_custom_call.1
= control target key start
LH: loop header
LB: loop body
LE: loop exit
PB: predicated region body
PF: predicated region fallthrough
CT: control target
= control target key end

     0   :  { %s13929_s0 = inlined_call_operand.vmem [shape: bf16[3,16,16,256], index: 0, kind: input, shape index: {}]   ;;  %s13930_s1 = inlined_call_operand.hbm [shape: bf16[3,16,16,256], index: 1, kind: input, shape index: {}]   ;;  %s13931_s2 = inlined_call_operand.hbm [shape: bf16[256,128], index: 2, kind: input, shape index: {}]   ;;  %s13932_s3 = inlined_call_operand.vmem [shape: f32[1,128], index: 3, kind: input, shape index: {}]   ;;  %s13933_s4 = inlined_call_operand.hbm [shape: bf16[3,384,128], index: 4, kind: input, shape index: {}]   ;;  %s13934_s5 = inlined_call_operand.vmem [shape: f32[1,128], index: 5, kind: input, shape index: {}]   ;;  %s13935_s6 = inlined_call_operand.hbm [shape: bf16[256,128], index: 6, kind: input, shape index: {}]   ;;  %s13936_s7 = inlined_call_operand.vmem [shape: f32[1,128], index: 7, kind: input, shape index: {}]   ;;  %s13937_s8 = inlined_call_operand.vmem [shape: bf16[3,384,64], index: 8, kind: input, shape index: {}]   ;;  %s13938_s9 = inlined_call_operand.vmem [shape: f32[1,64], index: 9, kind: input, shape index: {}]   ;;  %s13939_s10 = inlined_call_operand.hbm [shape: bf16[3,16,16,192], index: 10, kind: output, shape index: {}]  }
   0x1   :  { %14034 = sst [smem:[#allocation88_spill]] %s13931_s2 }
   0x2   :  { %14035 = sst [smem:[#allocation89_spill]] %s13933_s4 }
   0x3   :  { %14036 = sst [smem:[#allocation90_spill]] %s13935_s6 }
   0x4   :  { %15 = vsyncpa [#allocation5], 0 }
   0x5   :  { %17 = vsyncpa [#allocation5 + $0x1], 0 }
   0x6   :  { %18 = vsyncpa [#allocation8], 0 }
   0x7   :  { %19 = vsyncpa [#allocation11], 0 }
   0x8   :  { %20 = vsyncpa [#allocation6], 0 }
   0x9   :  { %22 = vsyncpa [#allocation6 + $0x1], 0  ;;  %s10839_s13 = smov 0   ;;  %s10841_s14 = smov 0  }
   0xa   :  { %s10843_s15 = smov 0   ;;  %s10845_s16 = smov 0  }
   0xb LB: > { %s10860_s17 = sadd.s32 4294967295, %s10772_s16   ;;  %s8570_s18 = sadd.s32 4294967294, %s10772_s16   ;;  %s10772_s16 = sphi %s10845_s16, %s14375_s16   ;;  %s10768_s15 = sphi %s10843_s15, %s14374_s15   ;;  %s10764_s14 = sphi %s10841_s14, %s14373_s14   ;;  %s10760_s13 = sphi %s10839_s13, %s14372_s13  }
   0xc   : > { %p74_p0 = scmp.ne.s32.totalorder %s10764_s14, %s10760_s13  ;;  %p75_p1 = scmp.eq.s32.totalorder %s10860_s17, 0 }
   0xd   : > { %p266_p2 = scmp.eq.s32.totalorder %s10860_s17, 2  ;;  %p272_p3 = scmp.eq.s32.totalorder %s8570_s18, 2 }
   0xe   : > { %p10869_p4 = por %p75_p1, %p74_p0  ;;  %p8571_p5 = scmp.ge.s32.totalorder %s10772_s16, 1 }
   0xf   : > { %p10874_p6 = por %p272_p3, %p74_p0  ;;  %p279_p7 = scmp.lt.s32.totalorder %s10772_s16, 4 }
  0x10   : > { %s14039_s2 = sld [smem:[#allocation88_spill]]  ;;  %s10774_s25 = smov [#allocation7]  }
  0x11   : > { %p10882_p8 = pnand %p8571_p5, %p279_p7  ;;  %s292_s26 = sshll.u32 %s10774_s25, 4  ;;  %s293_s26 = int_to_ptr.vmem [resolvable:$true] %s292_s26 }
  0x12   : > { %s14042_s4 = sld [smem:[#allocation89_spill]]  ;;  %s10775_s11 = smov 64  }
  0x13   : > { %p10403_p9 = pneg %p10882_p8  ;;  %s10776_s12 = smov 4  }
  0x14   : > { %s10777_s18 = smov [#allocation9]   ;;  %s14043_s6 = sld [smem:[#allocation90_spill]] }
  0x15   : > { %p10890_p10 = pnand %p10403_p9, %p75_p1  ;;  %s309_s21 = sshll.u32 %s10777_s18, 4  ;;  %s310_s21 = int_to_ptr.vmem [resolvable:$true] %s309_s21 }
  0x16   : > { %s290_s23 = sshll.u32 %s14039_s2, 4  ;;  %s10778_s29 = smov [#allocation10]   ;;  %s291_s23 = int_to_ptr.hbm [resolvable:$true] %s290_s23 }
  0x17   : > { %10406 = dma.hbm_to_vmem [thread:$0]  (!%p10890_p10), %s291_s23, 2048, %s293_s26, [#allocation8], %s10775_s11, %s10775_s11, %s10776_s12  }
  0x18   : > { %s307_s30 = sshll.u32 %s14042_s4, 4  ;;  %s326_s2 = sshll.u32 %s10778_s29, 4  ;;  %s308_s30 = int_to_ptr.hbm [resolvable:$true] %s307_s30  ;;  %s327_s2 = int_to_ptr.vmem [resolvable:$true] %s326_s2 }
  0x19   : > { %10409 = dma.hbm_to_vmem [thread:$0]  (!%p10890_p10), %s308_s30, 9216, %s310_s21, [#allocation8], %s10775_s11, %s10775_s11, %s10776_s12  }
  0x1a   : > { %s324_s28 = sshll.u32 %s14043_s6, 4  ;;  %s10905_s23 = sadd.s32 1, %s10772_s16   ;;  %s325_s28 = int_to_ptr.hbm [resolvable:$true] %s324_s28 }
  0x1b   : > { %10412 = dma.hbm_to_vmem [thread:$0]  (!%p10890_p10), %s325_s28, 2048, %s327_s2, [#allocation11], %s10775_s11, %s10775_s11, %s10776_s12  }
  0x1c   : > { %s58_s26 = ssub.s32 %s10772_s16, %s10905_s23  ;;  %s61_s18 = sadd.s32 1, %s10768_s15 }
  0x1d   : > { %p59_p11 = scmp.eq.s32.totalorder %s58_s26, 0  ;;  %p68_p12 = scmp.ne.s32.totalorder %s10768_s15, %s10764_s14 }
  0x1e   : > { %p69_p13 = scmp.eq.s32.totalorder %s10772_s16, 0  ;;  %p10424_p0 = scmp.lt.s32.totalorder %s10772_s16, 3 }
  0x1f   : > { %s10917_s22 = scalar_select %p59_p11, %s10768_s15, %s61_s18  }
  0x20   : > { %p70_p3 = por %p69_p13, %p68_p12  ;;  %p10921_p5 = por %p266_p2, %p68_p12 }
  0x21   : > { %14044 = sst [smem:[#allocation17_spill]] %s10917_s22  ;;  %s357_s21 = sand.u32 1, %s10768_s15  }
  0x22   : > { %s10032_s25 = sshll.u32 %s10772_s16, 8  ;;  %s8576_s27 = sshll.u32 %s357_s21, 8 }
  0x23   : > { %s366_s11 = scalar_lea.hbm %s13930_s1, %s10032_s25  ;;  %s361_s28 = scalar_lea.vmem [#allocation4], %s8576_s27 }
  0x24   : > { %s367_s12 = sshll.u32 %s366_s11, 4  ;;  %s369_s26 = sshll.u32 %s361_s28, 4  ;;  %s368_s12 = int_to_ptr.hbm [resolvable:$true] %s367_s12  ;;  %s370_s26 = int_to_ptr.vmem [resolvable:$true] %s369_s26 }
  0x25   : > { %p10932_p7 = pnand %p10424_p0, %p70_p3  ;;  %s358_s4 = scalar_lea.sflag [#allocation5], %s357_s21 }
  0x26   : > { %s10668_s6 = sshra.s32 %s368_s12, 4  ;;  %s10675_s29 = scalar_lea.hbm %s13930_s1, 768  ;;  %s10669_s6 = int_to_ptr.hbm [resolvable:$true] %s10668_s6 }
  0x27   : > { %s10670_s22 = scalar_lea.hbm %s10669_s6, 256  ;;  %p10672_p9 = pneg %p10932_p7 }
  0x28   : > { %p10671_p2 = scmp.ne.s32.totalorder %s10669_s6, %s10670_s22  ;;  %p10676_p12 = scmp.lt.s32.totalorder %s10669_s6, %s13930_s1 }
  0x29   : > { %p10677_p13 = scmp.lt.s32.totalorder %s10675_s29, %s10670_s22 }
  0x2a   : > { %p10673_p10 = pnand %p10672_p9, %p10671_p2 }
  0x2b   : > { %p10678_p0 = por %p10677_p13, %p10676_p12 }
  0x2c   : > { %p10674_p11 = pneg %p10673_p10 }
  0x2e   : > { %p10679_p3 = pnand %p10678_p0, %p10674_p11 }
  0x30   : > { %10682 = shalt.err (!%p10679_p3)
}
  0x31   : > { %s10779_s21 = smov 128   ;;  %s10780_s28 = smov 8  }
  0x32   : > { %10416 = dma.hbm_to_vmem [thread:$0]  (!%p10932_p7), %s368_s12, 4096, %s370_s26, %s358_s4, %s10779_s21, %s10779_s21, %s10780_s28  }
  0x33   : > { %381 = sbr.rel (%p10882_p8) target bundleno = 1859 (0x743), region = 60 }
  0x38   : > { %s10949_s25 = sand.u32 1, %s10764_s14  }
  0x39   : > { %s8580_s6 = sshll.u32 %s10949_s25, 8  ;;  %s384_s22 = scalar_lea.sflag [#allocation5], %s10949_s25 }
  0x3a   : > { %s10955_s27 = scalar_lea.vmem [#allocation4], %s8580_s6 }
  0x3b   : > { %10743 = dma.done.wait (%p10869_p4), %s384_s22, 4096  }
  0x3c   : > { %10745 = vsyncadd (%p10869_p4), %s384_s22, 4294963200 }
  0x3d   : > { %10747 = dma.done.wait (%p75_p1), [#allocation8], 11264  }
  0x3e   : > { %10749 = vsyncadd (%p75_p1), [#allocation8], 4294956032 }
  0x3f   : > { %10751 = dma.done.wait (%p75_p1), [#allocation11], 2048  }
  0x40   : > { %10753 = vsyncadd (%p75_p1), [#allocation11], 4294965248  ;;  %v10073_v0 = vld [vmem:[#allocation7 + $0x38] sm:$0xff]  ;;  %v10072_v2 = vld [vmem:[#allocation7 + $0x30] sm:$0xff]  ;;  %p445_p1 = scmp.lt.s32.totalorder %s10860_s17, 2  ;;  %vm1395_vm0 = vcmask 1043456  }
  0x41   : > { %v10081_v1 = vld [vmem:[#allocation7 + $0x78] sm:$0xff]  ;;  %775 = vmatpush.bf16.msra.mxu0 %v10073_v0  ;;  %v10080_v3 = vld [vmem:[#allocation7 + $0x70] sm:$0xff]  ;;  %10371 = vmatpush.bf16.msra.mxu2 %v10073_v0  ;;  %v10071_v4 = vld [vmem:[#allocation7 + $0x28] sm:$0xff]  ;;  %vm1396_vm1 = vsmask.f32 7938  ;;  %vm1402_vm6 = vcmask 1040384  }
  0x42   : > { %864 = vmatpush.bf16.msra.mxu1 %v10081_v1  ;;  %10379 = vmatpush.bf16.msra.mxu3 %v10081_v1  ;;  %v10079_v5 = vld [vmem:[#allocation7 + $0x68] sm:$0xff]  ;;  %v10070_v6 = vld [vmem:[#allocation7 + $0x20] sm:$0xff]  ;;  %v10069_v8 = vld [vmem:[#allocation7 + $0x18] sm:$0xff]  ;;  %s446_s4 = scalar_select %p445_p1, %s10860_s17, 2  ;;  %vm2137_vm3 = vsmask.f32 7424 }
  0x43   : > { %v10078_v7 = vld [vmem:[#allocation7 + $0x60] sm:$0xff]  ;;  %v10077_v9 = vld [vmem:[#allocation7 + $0x58] sm:$0xff]  ;;  %v10068_v10 = vld [vmem:[#allocation7 + $0x10] sm:$0xff]  ;;  %vm1071_vm4 = vsmask.f32 256  ;;  %vm3633_vm9 = vcmask 1046528  }
  0x44   : > { %v10076_v11 = vld [vmem:[#allocation7 + $0x50] sm:$0xff]  ;;  %s10033_s19 = sshll.u32 %s446_s4, 8  ;;  %v10067_v12 = vld [vmem:[#allocation7 + $0x8] sm:$0xff]  ;;  %v10066_v14 = vld [vmem:[#allocation7] sm:$0xff]  ;;  %vm1072_vm5 = vsmask.f32 4368 }
  0x45   : > { %776 = vmatpush.bf16.msra.mxu0 %v10072_v2  ;;  %10372 = vmatpush.bf16.msra.mxu2 %v10072_v2  ;;  %v10075_v13 = vld [vmem:[#allocation7 + $0x48] sm:$0xff]  ;;  %s10974_s26 = scalar_lea.vmem %s13929_s0, %s10033_s19  ;;  %v10074_v15 = vld [vmem:[#allocation7 + $0x40] sm:$0xff]  ;;  %v10169_v28 = vld [vmem:[#allocation9 + $0x138] sm:$0xff]  ;;  %s12315_s12 = scalar_lea.vmem [#allocation12], %s8580_s6  ;;  %vm8407_vm10 = vcmask 519168  }
  0x46   : > { %865 = vmatpush.bf16.msra.mxu1 %v10080_v3  ;;  %10380 = vmatpush.bf16.msra.mxu3 %v10080_v3  ;;  %v8589_v16 = vld [vmem:[%s10974_s26] sm:$0xf]  ;;  %v10035_v17 = vld [vmem:[%s10974_s26 + $0x4] sm:$0xf0]  ;;  %v10034_v18 = vld [vmem:[%s10974_s26 + $0x4] sm:$0xf] }
  0x47   : > { %v8591_v19 = vld [vmem:[%s10974_s26 + $0x8] sm:$0xf0]  ;;  %v8653_v20 = vld [vmem:[%s10974_s26 + $0x80] sm:$0xf]  ;;  %v10051_v21 = vld [vmem:[%s10974_s26 + $0x84] sm:$0xf0]  ;;  %v8590_v22 = vor.u32 %v10035_v17, %v8589_v16 }
  0x48   : > { %v8594_v23 = vor.u32 %v10034_v18, %v8591_v19  ;;  %v8654_v24 = vor.u32 %v10051_v21, %v8653_v20  ;;  %v10050_v25 = vld [vmem:[%s10974_s26 + $0x84] sm:$0xf]  ;;  %v8655_v26 = vld [vmem:[%s10974_s26 + $0x88] sm:$0xf0]  ;;  %v8597_v29 = vld [vmem:[%s10974_s26 + $0x10] sm:$0xf] }
  0x49   : > { %777 = vmatpush.bf16.msra.mxu0 %v10071_v4  ;;  %10373 = vmatpush.bf16.msra.mxu2 %v10071_v4  ;;  %v8658_v27 = vor.u32 %v10050_v25, %v8655_v26  ;;  %v10037_v30 = vld [vmem:[%s10974_s26 + $0x14] sm:$0xf0]  ;;  %v10036_v31 = vld [vmem:[%s10974_s26 + $0x14] sm:$0xf]  ;;  %v8599_v32 = vld [vmem:[%s10974_s26 + $0x18] sm:$0xf0] }
  0x4a   : > { %866 = vmatpush.bf16.msra.mxu1 %v10079_v5  ;;  %10381 = vmatpush.bf16.msra.mxu3 %v10079_v5  ;;  %v8661_v33 = vld [vmem:[%s10974_s26 + $0x90] sm:$0xf]  ;;  %v10053_v34 = vld [vmem:[%s10974_s26 + $0x94] sm:$0xf0]  ;;  %v8598_v35 = vor.u32 %v10037_v30, %v8597_v29  ;;  %v8602_v36 = vor.u32 %v10036_v31, %v8599_v32  ;;  %v10052_v38 = vld [vmem:[%s10974_s26 + $0x94] sm:$0xf] }
  0x4b   : > { %v8662_v37 = vor.u32 %v10053_v34, %v8661_v33  ;;  %v8663_v39 = vld [vmem:[%s10974_s26 + $0x98] sm:$0xf0]  ;;  %v10177_v41 = vld [vmem:[#allocation9 + $0x178] sm:$0xff]  ;;  %v10168_v42 = vld [vmem:[#allocation9 + $0x130] sm:$0xff]  ;;  %s10370_s18 = sshll.u32 %s10860_s17, 8  ;;  %s8453_s11 = sshll.u32 %s12315_s12, 4  ;;  %s8454_s11 = int_to_ptr.vmem [resolvable:$true] %s8453_s11 }
  0x4c   : > { %v8666_v40 = vor.u32 %v10052_v38, %v8663_v39  ;;  %v8605_v43 = vld [vmem:[%s10974_s26 + $0x20] sm:$0xf]  ;;  %v10039_v44 = vld [vmem:[%s10974_s26 + $0x24] sm:$0xf0]  ;;  %v10038_v45 = vld [vmem:[%s10974_s26 + $0x24] sm:$0xf]  ;;  %s8452_s2 = scalar_lea.hbm %s13939_s10, %s10370_s18 }
  0x4d   : > { %778 = vmatpush.bf16.msra.mxu0 %v10070_v6  ;;  %10374 = vmatpush.bf16.msra.mxu2 %v10070_v6  ;;  %v8607_v46 = vld [vmem:[%s10974_s26 + $0x28] sm:$0xf0]  ;;  %v8669_v47 = vld [vmem:[%s10974_s26 + $0xa0] sm:$0xf]  ;;  %v10055_v48 = vld [vmem:[%s10974_s26 + $0xa4] sm:$0xf0]  ;;  %v8606_v49 = vor.u32 %v10039_v44, %v8605_v43 }
  0x4e   : > { %867 = vmatpush.bf16.msra.mxu1 %v10078_v7  ;;  %10382 = vmatpush.bf16.msra.mxu3 %v10078_v7  ;;  %v8610_v50 = vor.u32 %v10038_v45, %v8607_v46  ;;  %v8670_v51 = vor.u32 %v10055_v48, %v8669_v47  ;;  %v10054_v52 = vld [vmem:[%s10974_s26 + $0xa4] sm:$0xf]  ;;  %v8671_v53 = vld [vmem:[%s10974_s26 + $0xa8] sm:$0xf0]  ;;  %v10167_v56 = vld [vmem:[#allocation9 + $0x128] sm:$0xff]  ;;  %s8455_s21 = sshll.u32 %s8452_s2, 4  ;;  %s8456_s21 = int_to_ptr.hbm [resolvable:$true] %s8455_s21 }
  0x4f   : > { %v8674_v54 = vor.u32 %v10054_v52, %v8671_v53  ;;  %v10176_v55 = vld [vmem:[#allocation9 + $0x170] sm:$0xff]  ;;  %v8613_v57 = vld [vmem:[%s10974_s26 + $0x30] sm:$0xf]  ;;  %v10041_v58 = vld [vmem:[%s10974_s26 + $0x34] sm:$0xf0]  ;;  %s8441_s17 = scalar_lea.sflag [#allocation6], %s10949_s25 }
  0x50   : > { %v10040_v59 = vld [vmem:[%s10974_s26 + $0x34] sm:$0xf]  ;;  %v8615_v60 = vld [vmem:[%s10974_s26 + $0x38] sm:$0xf0]  ;;  %v8677_v61 = vld [vmem:[%s10974_s26 + $0xb0] sm:$0xf]  ;;  %v8614_v63 = vor.u32 %v10041_v58, %v8613_v57 }
  0x51   : > { %779 = vmatpush.bf16.msra.mxu0 %v10069_v8  ;;  %10375 = vmatpush.bf16.msra.mxu2 %v10069_v8  ;;  %v10057_v62 = vld [vmem:[%s10974_s26 + $0xb4] sm:$0xf0]  ;;  %v8618_v0 = vor.u32 %v10040_v59, %v8615_v60  ;;  %v10056_v2 = vld [vmem:[%s10974_s26 + $0xb4] sm:$0xf]  ;;  %v8679_v3 = vld [vmem:[%s10974_s26 + $0xb8] sm:$0xf0] }
  0x52   : > { %868 = vmatpush.bf16.msra.mxu1 %v10077_v9  ;;  %10383 = vmatpush.bf16.msra.mxu3 %v10077_v9  ;;  %v8678_v1 = vor.u32 %v10057_v62, %v8677_v61  ;;  %v8682_v4 = vor.u32 %v10056_v2, %v8679_v3  ;;  %v10175_v5 = vld [vmem:[#allocation9 + $0x168] sm:$0xff]  ;;  %v10166_v6 = vld [vmem:[#allocation9 + $0x120] sm:$0xff]  ;;  %v8621_v7 = vld [vmem:[%s10974_s26 + $0x40] sm:$0xf]  ;;  %s10712_s28 = sshra.s32 %s8456_s21, 4  ;;  %s10718_s24 = scalar_lea.hbm %s13939_s10, 768  ;;  %s10713_s28 = int_to_ptr.hbm [resolvable:$true] %s10712_s28 }
  0x53   : > { %v10043_v8 = vld [vmem:[%s10974_s26 + $0x44] sm:$0xf0]  ;;  %v10042_v9 = vld [vmem:[%s10974_s26 + $0x44] sm:$0xf]  ;;  %v8687_v17 = vld [vmem:[%s10974_s26 + $0xc8] sm:$0xf0]  ;;  %p10719_p2 = scmp.lt.s32.totalorder %s10713_s28, %s13939_s10 }
  0x54   : > { %v10058_v16 = vld [vmem:[%s10974_s26 + $0xc4] sm:$0xf]  ;;  %v10174_v19 = vld [vmem:[#allocation9 + $0x160] sm:$0xff]  ;;  %v10165_v20 = vld [vmem:[#allocation9 + $0x118] sm:$0xff]  ;;  %s10714_s22 = scalar_lea.hbm %s10713_s28, 256 }
  0x55   : > { %780 = vmatpush.bf16.msra.mxu0 %v10068_v10  ;;  %10376 = vmatpush.bf16.msra.mxu2 %v10068_v10  ;;  %v8623_v10 = vld [vmem:[%s10974_s26 + $0x48] sm:$0xf0]  ;;  %v8690_v18 = vor.u32 %v10058_v16, %v8687_v17  ;;  %v8629_v21 = vld [vmem:[%s10974_s26 + $0x50] sm:$0xf]  ;;  %v10061_v26 = vld [vmem:[%s10974_s26 + $0xd4] sm:$0xf0]  ;;  %p10715_p4 = scmp.ne.s32.totalorder %s10713_s28, %s10714_s22  ;;  %p10720_p9 = scmp.lt.s32.totalorder %s10718_s24, %s10714_s22 }
  0x56   : > { %869 = vmatpush.bf16.msra.mxu1 %v10076_v11  ;;  %10384 = vmatpush.bf16.msra.mxu3 %v10076_v11  ;;  %v8685_v11 = vld [vmem:[%s10974_s26 + $0xc0] sm:$0xf]  ;;  %v8693_v25 = vld [vmem:[%s10974_s26 + $0xd0] sm:$0xf]  ;;  %v10137_v30 = vld [vmem:[#allocation9 + $0x38] sm:$0xff] }
  0x57   : > { %v8694_v29 = vor.u32 %v10061_v26, %v8693_v25  ;;  %v10060_v31 = vld [vmem:[%s10974_s26 + $0xd4] sm:$0xf]  ;;  %v8695_v32 = vld [vmem:[%s10974_s26 + $0xd8] sm:$0xf0]  ;;  %v10136_v34 = vld [vmem:[#allocation9 + $0x30] sm:$0xff]  ;;  %p10716_p8 = pnand %p10715_p4, %p10921_p5  ;;  %p10721_p10 = por %p10720_p9, %p10719_p2 }
  0x58   : > { %v8698_v33 = vor.u32 %v10060_v31, %v8695_v32  ;;  %v10160_v38 = vld [vmem:[#allocation9 + $0xf0] sm:$0xff]  ;;  %v10134_v39 = vld [vmem:[#allocation9 + $0x20] sm:$0xff]  ;;  %v8639_v43 = vld [vmem:[%s10974_s26 + $0x68] sm:$0xf0] }
  0x59   : > { %781 = vmatpush.bf16.msra.mxu0 %v10067_v12  ;;  %10377 = vmatpush.bf16.msra.mxu2 %v10067_v12  ;;  %v10059_v12 = vld [vmem:[%s10974_s26 + $0xc4] sm:$0xf0]  ;;  %v8701_v44 = vld [vmem:[%s10974_s26 + $0xe0] sm:$0xf]  ;;  %v8703_v52 = vld [vmem:[%s10974_s26 + $0xe8] sm:$0xf0]  ;;  %p10717_p7 = pneg %p10716_p8 }
  0x5a   : > { %870 = vmatpush.bf16.msra.mxu1 %v10075_v13  ;;  %10385 = vmatpush.bf16.msra.mxu3 %v10075_v13  ;;  %v8622_v13 = vor.u32 %v10043_v8, %v8621_v7  ;;  %v10063_v45 = vld [vmem:[%s10974_s26 + $0xe4] sm:$0xf0]  ;;  %v8645_v57 = vld [vmem:[%s10974_s26 + $0x70] sm:$0xf]  ;;  %v10049_v58 = vld [vmem:[%s10974_s26 + $0x74] sm:$0xf0] }
  0x5b   : > { %v8702_v48 = vor.u32 %v10063_v45, %v8701_v44  ;;  %v10048_v59 = vld [vmem:[%s10974_s26 + $0x74] sm:$0xf]  ;;  %v8647_v60 = vld [vmem:[%s10974_s26 + $0x78] sm:$0xf0]  ;;  %v8646_v61 = vor.u32 %v10049_v58, %v8645_v57  ;;  %vm11081_vm2 = vmand %vm1395_vm0, %vm1396_vm1  ;;  %p10722_p11 = pnand %p10721_p10, %p10717_p7 }
  0x5c   : > { %v8650_v62 = vor.u32 %v10048_v59, %v8647_v60  ;;  %v8709_v16 = vld [vmem:[%s10974_s26 + $0xf0] sm:$0xf]  ;;  %v10065_v17 = vld [vmem:[%s10974_s26 + $0xf4] sm:$0xf0]  ;;  %vm11174_vm7 = vmor %vm1071_vm4, %vm1072_vm5 }
  0x5d   : > { %782 = vmatpush.bf16.msra.mxu0 %v10066_v14  ;;  %10378 = vmatpush.bf16.msra.mxu2 %v10066_v14  ;;  %v8626_v14 = vor.u32 %v10042_v9, %v8623_v10  ;;  %v14047_v10 = vmov 0  ;;  %vm11181_vm8 = vmand %vm1402_vm6, %vm1071_vm4 }
  0x5e   : > { %871 = vmatpush.bf16.msra.mxu1 %v10074_v15  ;;  %10386 = vmatpush.bf16.msra.mxu3 %v10074_v15  ;;  %v8686_v15 = vor.u32 %v10059_v12, %v8685_v11  ;;  %v14048_v10 = vsel %vm11081_vm2, 4294967295, %v14047_v10 }
  0x5f   : > { %14049 = vst [vmem:[#allocation18_spill] sm:$0xff] %v14048_v10 }
  0x60   : > { %783 = vmatmul.bf16.vlgmr.msra.gmra.mxu0 %v8590_v22  ;;  %823 = vmatmul.bf16.vlgmr.msra.gmra.mxu2 %v8654_v24  ;;  %v10045_v22 = vld [vmem:[%s10974_s26 + $0x54] sm:$0xf0]  ;;  %v8631_v24 = vld [vmem:[%s10974_s26 + $0x58] sm:$0xf0] }
  0x61   : > { %872 = vmatmul.bf16.vlgmr.msra.gmra.mxu1 %v8594_v23  ;;  %912 = vmatmul.bf16.vlgmr.msra.gmra.mxu3 %v8658_v27  ;;  %v10044_v23 = vld [vmem:[%s10974_s26 + $0x54] sm:$0xf]  ;;  %v8630_v27 = vor.u32 %v10045_v22, %v8629_v21  ;;  %v10156_v21 = vld [vmem:[#allocation9 + $0xd0] sm:$0xff] }
  0x62   : > { %3044 = vmatpush.bf16.msrb.mxu3 %v10169_v28  ;;  %3133 = vmatpush.bf16.msrb.mxu0 %v10177_v41  ;;  %v8634_v28 = vor.u32 %v10044_v23, %v8631_v24  ;;  %v10047_v41 = vld [vmem:[%s10974_s26 + $0x64] sm:$0xf0]  ;;  %v10130_v22 = vld [vmem:[#allocation9] sm:$0xff] }
  0x63   : > { %3366 = vmatpush.bf16.msrb.mxu1 %v10137_v30  ;;  %v8711_v30 = vld [vmem:[%s10974_s26 + $0xf8] sm:$0xf0] }
  0x66   : > { %3045 = vmatpush.bf16.msrb.mxu3 %v10168_v42  ;;  %3134 = vmatpush.bf16.msrb.mxu0 %v10176_v55  ;;  %v10046_v42 = vld [vmem:[%s10974_s26 + $0x64] sm:$0xf] }
  0x67   : > { %3367 = vmatpush.bf16.msrb.mxu1 %v10136_v34  ;;  %v8642_v47 = vor.u32 %v10046_v42, %v8639_v43  ;;  %v10132_v55 = vld [vmem:[#allocation9 + $0x10] sm:$0xff] }
  0x68   : > { %v10172_v42 = vld [vmem:[#allocation9 + $0x150] sm:$0xff] }
  0x6a   : > { %3046 = vmatpush.bf16.msrb.mxu3 %v10167_v56  ;;  %3135 = vmatpush.bf16.msrb.mxu0 %v10175_v5  ;;  %v10781_v56 = vmov 0  }
  0x6b   : > { %988 = vst [vmem:[#allocation2 + $0xc] sm:$0xf] %v10781_v56 }
  0x6c   : > { %985 = vst [vmem:[#allocation2] sm:$0xf] %v10781_v56 }
  0x6d   : > { %986 = vst [vmem:[#allocation2 + $0x4] sm:$0xf] %v10781_v56 }
  0x6e   : > { %3047 = vmatpush.bf16.msrb.mxu3 %v10166_v6  ;;  %3136 = vmatpush.bf16.msrb.mxu0 %v10174_v19  ;;  %987 = vst [vmem:[#allocation2 + $0x8] sm:$0x1] %v10781_v56  ;;  %v10157_v19 = vld [vmem:[#allocation9 + $0xd8] sm:$0xff] }
  0x6f   : > { %989 = vst [vmem:[#allocation2 + $0x10] sm:$0xf] %v10781_v56 }
  0x70   : > { %788 = vmatmul.bf16.gmra.mxu0 %v8598_v35  ;;  %828 = vmatmul.bf16.gmra.mxu2 %v8662_v37  ;;  %v10173_v35 = vld [vmem:[#allocation9 + $0x158] sm:$0xff]  ;;  %v10135_v37 = vld [vmem:[#allocation9 + $0x28] sm:$0xff]  ;;  %990 = vst [vmem:[#allocation2 + $0x14] sm:$0x1] %v10781_v56 }
  0x71   : > { %877 = vmatmul.bf16.gmra.mxu1 %v8602_v36  ;;  %917 = vmatmul.bf16.gmra.mxu3 %v8666_v40  ;;  %v10161_v36 = vld [vmem:[#allocation9 + $0xf8] sm:$0xff]  ;;  %v8637_v40 = vld [vmem:[%s10974_s26 + $0x60] sm:$0xf]  ;;  %991 = vst [vmem:[#allocation2 + $0x18] sm:$0xf] %v10781_v56 }
  0x72   : > { %3048 = vmatpush.bf16.msrb.mxu3 %v10165_v20  ;;  %3137 = vmatpush.bf16.msrb.mxu0 %v10173_v35  ;;  %v8638_v46 = vor.u32 %v10047_v41, %v8637_v40  ;;  %992 = vst [vmem:[#allocation2 + $0x1c] sm:$0xf] %v10781_v56  ;;  %v1398_v11 = vld [vmem:[#allocation2 + $0xc] sm:$0xf]  ;;  %v10131_v20 = vld [vmem:[#allocation9 + $0x8] sm:$0xff]  ;;  %v10154_v35 = vld [vmem:[#allocation9 + $0xc0] sm:$0xff] }
  0x73   : > { %2955 = vmatpush.bf16.msrb.mxu2 %v10161_v36  ;;  %3368 = vmatpush.bf16.msrb.mxu1 %v10135_v37  ;;  %993 = vst [vmem:[#allocation2 + $0x20] sm:$0x1] %v10781_v56 }
  0x74   : > { %994 = vst [vmem:[#allocation2 + $0x24] sm:$0xf] %v10781_v56  ;;  %v10082_v23 = vld [vmem:[#allocation2] sm:$0xff] }
  0x75   : > { %995 = vst [vmem:[#allocation2 + $0x28] sm:$0xf] %v10781_v56  ;;  %v1514_v24 = vld [vmem:[#allocation2 + $0x8] sm:$0x1]  ;;  %v2139_v36 = vshrl.u32 %v10082_v23, 16 }
  0x76   : > { %996 = vst [vmem:[#allocation2 + $0x2c] sm:$0x1] %v10781_v56  ;;  %3138 = vmatpush.bf16.msrb.mxu0 %v10172_v42 }
  0x77   : > { %2956 = vmatpush.bf16.msrb.mxu2 %v10160_v38  ;;  %3369 = vmatpush.bf16.msrb.mxu1 %v10134_v39  ;;  %997 = vst [vmem:[#allocation2 + $0x30] sm:$0xf] %v10781_v56 }
  0x78   : > { %998 = vst [vmem:[#allocation2 + $0x34] sm:$0xf] %v10781_v56 }
  0x79   : > { %999 = vst [vmem:[#allocation2 + $0x38] sm:$0x1] %v10781_v56 }
  0x7a   : > { %1000 = vst [vmem:[#allocation2 + $0x3c] sm:$0xf] %v10781_v56 }
  0x7b   : > { %1001 = vst [vmem:[#allocation2 + $0x40] sm:$0xf] %v10781_v56 }
  0x7c   : > { %1002 = vst [vmem:[#allocation2 + $0x44] sm:$0x1] %v10781_v56 }
  0x7d   : > { %1003 = vst [vmem:[#allocation2 + $0x48] sm:$0xf] %v10781_v56 }
  0x7e   : > { %1004 = vst [vmem:[#allocation2 + $0x4c] sm:$0xf] %v10781_v56 }
  0x7f   : > { %1005 = vst [vmem:[#allocation2 + $0x50] sm:$0x1] %v10781_v56 }
  0x80   : > { %793 = vmatmul.bf16.gmra.mxu0 %v8606_v49  ;;  %833 = vmatmul.bf16.gmra.mxu2 %v8670_v51  ;;  %v10159_v49 = vld [vmem:[#allocation9 + $0xe8] sm:$0xff]  ;;  %v10062_v51 = vld [vmem:[%s10974_s26 + $0xe4] sm:$0xf]  ;;  %1006 = vst [vmem:[#allocation2 + $0x54] sm:$0xf] %v10781_v56 }
  0x81   : > { %882 = vmatmul.bf16.gmra.mxu1 %v8610_v50  ;;  %922 = vmatmul.bf16.gmra.mxu3 %v8674_v54  ;;  %v10133_v50 = vld [vmem:[#allocation9 + $0x18] sm:$0xff]  ;;  %v8706_v53 = vor.u32 %v10062_v51, %v8703_v52  ;;  %v10158_v54 = vld [vmem:[#allocation9 + $0xe0] sm:$0xff]  ;;  %1007 = vst [vmem:[#allocation2 + $0x58] sm:$0xf] %v10781_v56 }
  0x82   : > { %2957 = vmatpush.bf16.msrb.mxu2 %v10159_v49  ;;  %3370 = vmatpush.bf16.msrb.mxu1 %v10133_v50  ;;  %1008 = vst [vmem:[#allocation2 + $0x5c] sm:$0x1] %v10781_v56  ;;  %v10171_v49 = vld [vmem:[#allocation9 + $0x148] sm:$0xff] }
  0x83   : > { %1009 = vst [vmem:[#allocation2 + $0x60] sm:$0xf] %v10781_v56  ;;  %3139 = vmatpush.bf16.msrb.mxu0 %v10171_v49 }
  0x84   : > { %1010 = vst [vmem:[#allocation2 + $0x64] sm:$0xf] %v10781_v56 }
  0x85   : > { %1011 = vst [vmem:[#allocation2 + $0x68] sm:$0x1] %v10781_v56 }
  0x86   : > { %2958 = vmatpush.bf16.msrb.mxu2 %v10158_v54  ;;  %3371 = vmatpush.bf16.msrb.mxu1 %v10132_v55  ;;  %1012 = vst [vmem:[#allocation2 + $0x6c] sm:$0xf] %v10781_v56 }
  0x87   : > { %1013 = vst [vmem:[#allocation2 + $0x70] sm:$0xf] %v10781_v56 }
  0x88   : > { %1014 = vst [vmem:[#allocation2 + $0x74] sm:$0x1] %v10781_v56 }
  0x89   : > { %1015 = vst [vmem:[#allocation2 + $0x78] sm:$0xf] %v10781_v56 }
  0x8a   : > { %1016 = vst [vmem:[#allocation2 + $0x7c] sm:$0xf] %v10781_v56  ;;  %2959 = vmatpush.bf16.msrb.mxu2 %v10157_v19  ;;  %3372 = vmatpush.bf16.msrb.mxu1 %v10131_v20  ;;  %v10153_v20 = vld [vmem:[#allocation9 + $0xb8] sm:$0xff] }
  0x8b   : > { %1017 = vst [vmem:[#allocation2 + $0x80] sm:$0x1] %v10781_v56 }
  0x8c   : > { %1018 = vst [vmem:[#allocation2 + $0x84] sm:$0xf] %v10781_v56 }
  0x8d   : > { %1019 = vst [vmem:[#allocation2 + $0x88] sm:$0xf] %v10781_v56 }
  0x8e   : > { %1020 = vst [vmem:[#allocation2 + $0x8c] sm:$0x1] %v10781_v56  ;;  %2960 = vmatpush.bf16.msrb.mxu2 %v10156_v21  ;;  %3373 = vmatpush.bf16.msrb.mxu1 %v10130_v22 }
  0x8f   : > { %1021 = vst [vmem:[#allocation2 + $0x90] sm:$0xf] %v10781_v56 }
  0x90   : > { %798 = vmatmul.bf16.gmra.mxu0 %v8614_v63  ;;  %838 = vmatmul.bf16.gmra.mxu2 %v8678_v1  ;;  %v10164_v63 = vld [vmem:[#allocation9 + $0x110] sm:$0xff]  ;;  %1022 = vst [vmem:[#allocation2 + $0x94] sm:$0xf] %v10781_v56 }
  0x91   : > { %887 = vmatmul.bf16.gmra.mxu1 %v8618_v0  ;;  %927 = vmatmul.bf16.gmra.mxu3 %v8682_v4  ;;  %v11061_v0 = vld [vmem:[%s13932_s3] ss:$0 sm:$0xff]  ;;  %1023 = vst [vmem:[#allocation2 + $0x98] sm:$0x1] %v10781_v56 }
  0x92   : > { %3049 = vmatpush.bf16.msrb.mxu3 %v10164_v63  ;;  %1024 = vst [vmem:[#allocation2 + $0x9c] sm:$0xf] %v10781_v56 }
  0x93   : > { %1025 = vst [vmem:[#allocation2 + $0xa0] sm:$0xf] %v10781_v56 }
  0x94   : > { %1026 = vst [vmem:[#allocation2 + $0xa4] sm:$0x1] %v10781_v56 }
  0x95   : > { %1027 = vst [vmem:[#allocation2 + $0xa8] sm:$0xf] %v10781_v56 }
  0x96   : > { %1028 = vst [vmem:[#allocation2 + $0xac] sm:$0xf] %v10781_v56 }
  0x97   : > { %1029 = vst [vmem:[#allocation2 + $0xb0] sm:$0x1] %v10781_v56 }
  0x98   : > { %1030 = vst [vmem:[#allocation2 + $0xb4] sm:$0xf] %v10781_v56 }
  0x99   : > { %1031 = vst [vmem:[#allocation2 + $0xb8] sm:$0xf] %v10781_v56 }
  0x9a   : > { %1032 = vst [vmem:[#allocation2 + $0xbc] sm:$0x1] %v10781_v56 }
  0x9b   : > { %1033 = vst [vmem:[#allocation2 + $0xc0] sm:$0xf] %v10781_v56 }
  0x9c   : > { %1034 = vst [vmem:[#allocation2 + $0xc4] sm:$0xf] %v10781_v56 }
  0x9d   : > { %1035 = vst [vmem:[#allocation2 + $0xc8] sm:$0x1] %v10781_v56 }
  0x9e   : > { %1036 = vst [vmem:[#allocation2 + $0xcc] sm:$0xf] %v10781_v56 }
  0x9f   : > { %1037 = vst [vmem:[#allocation2 + $0xd0] sm:$0xf] %v10781_v56 }
  0xa0   : > { %803 = vmatmul.bf16.gmra.mxu0 %v8622_v13  ;;  %843 = vmatmul.bf16.gmra.mxu2 %v8686_v15  ;;  %1038 = vst [vmem:[#allocation2 + $0xd4] sm:$0x1] %v10781_v56 }
  0xa1   : > { %892 = vmatmul.bf16.gmra.mxu1 %v8626_v14  ;;  %932 = vmatmul.bf16.gmra.mxu3 %v8690_v18  ;;  %4984 = vst [vmem:[#allocation3] sm:$0xf] %v10781_v56  ;;  %v8710_v18 = vor.u32 %v10065_v17, %v8709_v16 }
  0xa2   : > { %4985 = vst [vmem:[#allocation3 + $0x4] sm:$0xf] %v10781_v56 }
  0xa3   : > { %4986 = vst [vmem:[#allocation3 + $0x8] sm:$0x1] %v10781_v56 }
  0xa4   : > { %4987 = vst [vmem:[#allocation3 + $0xc] sm:$0xf] %v10781_v56 }
  0xa5   : > { %4988 = vst [vmem:[#allocation3 + $0x10] sm:$0xf] %v10781_v56 }
  0xa6   : > { %4989 = vst [vmem:[#allocation3 + $0x14] sm:$0x1] %v10781_v56 }
  0xa7   : > { %4990 = vst [vmem:[#allocation3 + $0x18] sm:$0xf] %v10781_v56 }
  0xa8   : > { %4991 = vst [vmem:[#allocation3 + $0x1c] sm:$0xf] %v10781_v56 }
  0xa9   : > { %4992 = vst [vmem:[#allocation3 + $0x20] sm:$0x1] %v10781_v56 }
  0xaa   : > { %4993 = vst [vmem:[#allocation3 + $0x24] sm:$0xf] %v10781_v56 }
  0xab   : > { %4994 = vst [vmem:[#allocation3 + $0x28] sm:$0xf] %v10781_v56 }
  0xac   : > { %4995 = vst [vmem:[#allocation3 + $0x2c] sm:$0x1] %v10781_v56 }
  0xad   : > { %4996 = vst [vmem:[#allocation3 + $0x30] sm:$0xf] %v10781_v56 }
  0xae   : > { %4997 = vst [vmem:[#allocation3 + $0x34] sm:$0xf] %v10781_v56 }
  0xaf   : > { %4998 = vst [vmem:[#allocation3 + $0x38] sm:$0x1] %v10781_v56 }
  0xb0   : > { %808 = vmatmul.bf16.gmra.mxu0 %v8630_v27  ;;  %848 = vmatmul.bf16.gmra.mxu2 %v8694_v29  ;;  %4999 = vst [vmem:[#allocation3 + $0x3c] sm:$0xf] %v10781_v56  ;;  %v10155_v27 = vld [vmem:[#allocation9 + $0xc8] sm:$0xff]  ;;  %v10064_v29 = vld [vmem:[%s10974_s26 + $0xf4] sm:$0xf] }
  0xb1   : > { %897 = vmatmul.bf16.gmra.mxu1 %v8634_v28  ;;  %937 = vmatmul.bf16.gmra.mxu3 %v8698_v33  ;;  %v1707_v28 = vunpack.c.l.b16 %v1514_v24  ;;  %5000 = vst [vmem:[#allocation3 + $0x40] sm:$0xf] %v10781_v56  ;;  %v8714_v31 = vor.u32 %v10064_v29, %v8711_v30  ;;  %v2141_v33 = vshll.u32 %v10082_v23, 16 }
  0xb2   : > { %5001 = vst [vmem:[#allocation3 + $0x44] sm:$0x1] %v10781_v56  ;;  %2961 = vmatpush.bf16.msrb.mxu2 %v10155_v27 }
  0xb3   : > { %v11127_v32 = vpack.c.b16 %v1707_v28, %v1707_v28  ;;  %5002 = vst [vmem:[#allocation3 + $0x48] sm:$0xf] %v10781_v56  ;;  %v2143_v37 = vrot.slane %v2141_v33, 1  ;;  %v14050_v28 = vmov 0  ;;  %v14053_v33 = vmov 0 }
  0xb4   : > { %5003 = vst [vmem:[#allocation3 + $0x4c] sm:$0xf] %v10781_v56  ;;  %v14051_v28 = vsel %vm11174_vm7, 4294967295, %v14050_v28  ;;  %v14054_v33 = vsel %vm11181_vm8, 4294967295, %v14053_v33 }
  0xb5   : > { %5004 = vst [vmem:[#allocation3 + $0x50] sm:$0x1] %v10781_v56  ;;  %v2146_v38 = vshll.u32 %v11127_v32, 16  ;;  %v2144_v39 = vor.u32 %v2143_v37, %v2139_v36 }
  0xb6   : > { %5005 = vst [vmem:[#allocation3 + $0x54] sm:$0xf] %v10781_v56  ;;  %2962 = vmatpush.bf16.msrb.mxu2 %v10154_v35 }
  0xb7   : > { %5006 = vst [vmem:[#allocation3 + $0x58] sm:$0xf] %v10781_v56  ;;  %v2148_v40 = vrot.slane %v2146_v38, 1 }
  0xb8   : > { %5007 = vst [vmem:[#allocation3 + $0x5c] sm:$0x1] %v10781_v56 }
  0xb9   : > { %5008 = vst [vmem:[#allocation3 + $0x60] sm:$0xf] %v10781_v56 }
  0xba   : > { %5009 = vst [vmem:[#allocation3 + $0x64] sm:$0xf] %v10781_v56 }
  0xbb   : > { %5010 = vst [vmem:[#allocation3 + $0x68] sm:$0x1] %v10781_v56 }
  0xbc   : > { %5011 = vst [vmem:[#allocation3 + $0x6c] sm:$0xf] %v10781_v56 }
  0xbd   : > { %5012 = vst [vmem:[#allocation3 + $0x70] sm:$0xf] %v10781_v56 }
  0xbe   : > { %5013 = vst [vmem:[#allocation3 + $0x74] sm:$0x1] %v10781_v56 }
  0xbf   : > { %5014 = vst [vmem:[#allocation3 + $0x78] sm:$0xf] %v10781_v56 }
  0xc0   : > { %813 = vmatmul.bf16.gmra.mxu0 %v8638_v46  ;;  %853 = vmatmul.bf16.gmra.mxu2 %v8702_v48  ;;  %v10163_v46 = vld [vmem:[#allocation9 + $0x108] sm:$0xff]  ;;  %5015 = vst [vmem:[#allocation3 + $0x7c] sm:$0xf] %v10781_v56 }
  0xc1   : > { %902 = vmatmul.bf16.gmra.mxu1 %v8642_v47  ;;  %942 = vmatmul.bf16.gmra.mxu3 %v8706_v53  ;;  %v2149_v47 = vsel %vm2137_vm3, %v2144_v39, %v2148_v40  ;;  %v10162_v53 = vld [vmem:[#allocation9 + $0x100] sm:$0xff]  ;;  %5016 = vst [vmem:[#allocation3 + $0x80] sm:$0x1] %v10781_v56 }
  0xc2   : > { %3050 = vmatpush.bf16.msrb.mxu3 %v10163_v46  ;;  %5017 = vst [vmem:[#allocation3 + $0x84] sm:$0xf] %v10781_v56  ;;  %v1407_v46 = vld [vmem:[#allocation2 + $0x18] sm:$0xf] }
  0xc3   : > { %5018 = vst [vmem:[#allocation3 + $0x88] sm:$0xf] %v10781_v56 }
  0xc4   : > { %5019 = vst [vmem:[#allocation3 + $0x8c] sm:$0x1] %v10781_v56 }
  0xc5   : > { %5020 = vst [vmem:[#allocation3 + $0x90] sm:$0xf] %v10781_v56 }
  0xc6   : > { %3051 = vmatpush.bf16.msrb.mxu3 %v10162_v53  ;;  %5021 = vst [vmem:[#allocation3 + $0x94] sm:$0xf] %v10781_v56 }
  0xc7   : > { %5022 = vst [vmem:[#allocation3 + $0x98] sm:$0x1] %v10781_v56 }
  0xc8   : > { %5023 = vst [vmem:[#allocation3 + $0x9c] sm:$0xf] %v10781_v56 }
  0xc9   : > { %5024 = vst [vmem:[#allocation3 + $0xa0] sm:$0xf] %v10781_v56 }
  0xca   : > { %5025 = vst [vmem:[#allocation3 + $0xa4] sm:$0x1] %v10781_v56  ;;  %3544 = vmatpush.bf16.msra.mxu3 %v10153_v20  ;;  %v1418_v20 = vld [vmem:[#allocation2 + $0x2c] sm:$0x1] }
  0xcb   : > { %5026 = vst [vmem:[#allocation3 + $0xa8] sm:$0xf] %v10781_v56 }
  0xcc   : > { %5027 = vst [vmem:[#allocation3 + $0xac] sm:$0xf] %v10781_v56 }
  0xcd   : > { %14052 = vst [vmem:[#allocation19_spill] sm:$0xff] %v14051_v28 }
  0xce   : > { %5028 = vst [vmem:[#allocation3 + $0xb0] sm:$0x1] %v10781_v56 }
  0xcf   : > { %14055 = vst [vmem:[#allocation20_spill] sm:$0xff] %v14054_v33 }
  0xd0   : > { %818 = vmatmul.bf16.gmra.mxu0 %v8646_v61  ;;  %858 = vmatmul.bf16.gmra.mxu2 %v8710_v18  ;;  %v10170_v18 = vld [vmem:[#allocation9 + $0x140] sm:$0xff]  ;;  %5029 = vst [vmem:[#allocation3 + $0xb4] sm:$0xf] %v10781_v56 }
  0xd1   : > { %907 = vmatmul.bf16.gmra.mxu1 %v8650_v62  ;;  %947 = vmatmul.bf16.gmra.mxu3 %v8714_v31  ;;  %5030 = vst [vmem:[#allocation3 + $0xb8] sm:$0xf] %v10781_v56 }
  0xd2   : > { %3140 = vmatpush.bf16.msrb.mxu0 %v10170_v18  ;;  %5031 = vst [vmem:[#allocation3 + $0xbc] sm:$0x1] %v10781_v56 }
  0xd3   : > { %5032 = vst [vmem:[#allocation3 + $0xc0] sm:$0xf] %v10781_v56 }
  0xd4   : > { %5033 = vst [vmem:[#allocation3 + $0xc4] sm:$0xf] %v10781_v56 }
  0xd5   : > { %5034 = vst [vmem:[#allocation3 + $0xc8] sm:$0x1] %v10781_v56 }
  0xd6   : > { %5035 = vst [vmem:[#allocation3 + $0xcc] sm:$0xf] %v10781_v56 }
  0xd7   : > { %5036 = vst [vmem:[#allocation3 + $0xd0] sm:$0xf] %v10781_v56 }
  0xd8   : > { %5037 = vst [vmem:[#allocation3 + $0xd4] sm:$0x1] %v10781_v56 }
  0xdd   : > { %v784_v1 = vpop.f32.mrf.mxu0 }
  0xde   : > { %v785_v2 = vadd.f32 %v11061_v0, %v784_v1  ;;  %v873_v3 = vpop.f32.mrf.mxu1 }
  0xe0   : > { %v874_v4 = vadd.f32 %v873_v3, %v785_v2  ;;  %2963 = vmatmul.bf16.vlgmr.msrb.gmra.mxu2 %v2149_v47 }
  0xe1   : > { %3374 = vmatmul.bf16.vlgmr.msrb.gmra.mxu1 %v10082_v23 }
  0xe2   : > { %v953_v5 = vmax.f32 %v874_v4, 0.0 }
  0xe3   : > { %v824_v50 = vpop.f32.mrf.mxu2 }
  0xe4   : > { %v1039_v6 = vpack.c.bf16 %v953_v5, %v953_v5  ;;  %v825_v55 = vadd.f32 %v11061_v0, %v824_v50  ;;  %v913_v62 = vpop.f32.mrf.mxu3 }
  0xe5   : > { %v786_v14 = vpop.f32.mrf.mxu0 }
  0xe6   : > { %v1075_v7 = vshrl.u32 %v1039_v6, 16  ;;  %v1078_v9 = vshll.u32 %v1039_v6, 16  ;;  %v875_v15 = vpop.f32.mrf.mxu1  ;;  %v787_v34 = vadd.f32 %v11061_v0, %v786_v14  ;;  %v914_v3 = vadd.f32 %v913_v62, %v825_v55 }
  0xe8   : > { %v11078_v8 = vrot.slane %v1075_v7, 7  ;;  %v876_v41 = vadd.f32 %v875_v15, %v787_v34  ;;  %v1404_v34 = vld [vmem:[#allocation2 + $0x14] sm:$0x1] }
  0xea   : > { %v1080_v12 = vor.u32 %v1078_v9, %v11078_v8  ;;  %v954_v51 = vmax.f32 %v876_v41, 0.0  ;;  %v1081_v24 = vrot.slane %v11078_v8, 4 }
  0xeb   : > { %v826_v2 = vpop.f32.mrf.mxu2 }
  0xec   : > { %v1399_v13 = vsel %vm11081_vm2, %v1080_v12, %v1398_v11  ;;  %v1040_v57 = vpack.c.bf16 %v954_v51, %v954_v51  ;;  %v827_v9 = vadd.f32 %v11061_v0, %v826_v2  ;;  %v969_v11 = vmax.f32 %v914_v3, 0.0  ;;  %v915_v19 = vpop.f32.mrf.mxu3 }
  0xed   : > { %1400 = vst [vmem:[#allocation2 + $0xc] sm:$0xf] %v1399_v13  ;;  %v789_v25 = vpop.f32.mrf.mxu0 }
  0xee   : > { %v878_v26 = vpop.f32.mrf.mxu1  ;;  %v790_v43 = vadd.f32 %v11061_v0, %v789_v25  ;;  %v1083_v4 = vshrl.u32 %v1040_v57, 16  ;;  %v1086_v21 = vshll.u32 %v1040_v57, 16  ;;  %v916_v23 = vadd.f32 %v915_v19, %v827_v9 }
  0xf0   : > { %v879_v52 = vadd.f32 %v878_v26, %v790_v43  ;;  %v1085_v12 = vrot.slane %v1083_v4, 7  ;;  %v11169_v26 = vpack.c.bf16 %v969_v11, %v969_v11  ;;  %v970_v8 = vmax.f32 %v916_v23, 0.0 }
  0xf2   : > { %v955_v58 = vmax.f32 %v879_v52, 0.0  ;;  %v1088_v29 = vor.u32 %v1086_v21, %v1085_v12  ;;  %v1090_v30 = vrot.slane %v1085_v12, 4  ;;  %v11188_v40 = vpack.c.bf16 %v970_v8, %v970_v8 }
  0xf3   : > { %v829_v27 = vpop.f32.mrf.mxu2  ;;  %v1211_v42 = vshrl.u32 %v11169_v26, 16 }
  0xf4   : > { %v1041_v5 = vpack.c.bf16 %v955_v58, %v955_v58  ;;  %v830_v39 = vadd.f32 %v11061_v0, %v829_v27  ;;  %v1089_v43 = vsel %vm11174_vm7, %v1081_v24, %v1088_v29  ;;  %v1219_v53 = vshrl.u32 %v11188_v40, 16  ;;  %v1411_v58 = vld [vmem:[#allocation2 + $0x20] sm:$0x1] }
  0xf5   : > { %v791_v44 = vpop.f32.mrf.mxu0  ;;  %v1222_v12 = vshll.u32 %v11188_v40, 16  ;;  %1401 = vst [vmem:[#allocation2 + $0x10] sm:$0xf] %v1089_v43 }
  0xf6   : > { %v880_v45 = vpop.f32.mrf.mxu1  ;;  %v792_v48 = vadd.f32 %v11061_v0, %v791_v44  ;;  %v1092_v13 = vshrl.u32 %v1041_v5, 16  ;;  %v1095_v37 = vshll.u32 %v1041_v5, 16  ;;  %v1405_v44 = vsel %vm11181_vm8, %v1090_v30, %v1404_v34  ;;  %v1456_v30 = vld [vmem:[#allocation2 + $0x6c] sm:$0xf] }
  0xf7   : > { %v1221_v11 = vrot.slane %v1219_v53, 7  ;;  %1406 = vst [vmem:[#allocation2 + $0x14] sm:$0x1] %v1405_v44  ;;  %v1421_v44 = vld [vmem:[#allocation2 + $0x30] sm:$0xf] }
  0xf8   : > { %v881_v54 = vadd.f32 %v880_v45, %v792_v48  ;;  %v1094_v31 = vrot.slane %v1092_v13, 7 }
  0xf9   : > { %v1224_v8 = vor.u32 %v1222_v12, %v1221_v11 }
  0xfa   : > { %v956_v63 = vmax.f32 %v881_v54, 0.0  ;;  %v1097_v45 = vor.u32 %v1095_v37, %v1094_v31  ;;  %v918_v54 = vpop.f32.mrf.mxu3  ;;  %v1098_v3 = vrot.slane %v1094_v31, 4 }
  0xfb   : > { %v831_v2 = vpop.f32.mrf.mxu2 }
  0xfc   : > { %v11156_v7 = vpack.c.bf16 %v956_v63, %v956_v63  ;;  %v11205_v63 = vrot.slane %v1211_v42, 7  ;;  %v1408_v4 = vsel %vm11081_vm2, %v1097_v45, %v1407_v46 }
  0xfd   : > { %v794_v59 = vpop.f32.mrf.mxu0  ;;  %1409 = vst [vmem:[#allocation2 + $0x18] sm:$0xf] %v1408_v4 }
  0xfe   : > { %v883_v60 = vpop.f32.mrf.mxu1  ;;  %v795_v61 = vadd.f32 %v11061_v0, %v794_v59  ;;  %v1100_v22 = vshrl.u32 %v11156_v7, 16  ;;  %v1103_v47 = vshll.u32 %v11156_v7, 16  ;;  %v1214_v59 = vshll.u32 %v11169_v26, 16 }
  0xff   : > { %v1217_v56 = vrot.slane %v11205_v63, 4 }
 0x100   : > { %v884_v1 = vadd.f32 %v883_v60, %v795_v61  ;;  %v1102_v38 = vrot.slane %v1100_v22, 7  ;;  %v919_v60 = vadd.f32 %v918_v54, %v830_v39  ;;  %v1216_v21 = vor.u32 %v1214_v59, %v11205_v63  ;;  %v10083_v54 = vld [vmem:[#allocation2 + $0xc] sm:$0xff]  ;;  %v1517_v59 = vld [vmem:[#allocation2 + $0x14] sm:$0x1] }
 0x101   : > { %3379 = vmatmul.bf16.gmra.mxu1 %v10083_v54  ;;  %v2177_v4 = vshll.u32 %v10083_v54, 16 }
 0x102   : > { %v957_v6 = vmax.f32 %v884_v1, 0.0  ;;  %v1105_v55 = vor.u32 %v1103_v47, %v1102_v38  ;;  %v1107_v57 = vrot.slane %v1102_v38, 4  ;;  %v1226_v38 = vrot.slane %v1221_v11, 4 }
 0x103   : > { %v11231_v46 = vpop.f32.mrf.mxu2  ;;  %v1457_v47 = vsel %vm11081_vm2, %v1216_v21, %v1456_v30 }
 0x104   : > { %v11162_v16 = vpack.c.bf16 %v957_v6, %v957_v6  ;;  %v971_v6 = vmax.f32 %v919_v60, 0.0  ;;  %v1106_v13 = vsel %vm11174_vm7, %v1098_v3, %v1105_v55  ;;  %v1412_v18 = vsel %vm11181_vm8, %v1107_v57, %v1411_v58  ;;  %v10098_v55 = vld [vmem:[#allocation2 + $0xc] sm:$0xff]  ;;  %1458 = vst [vmem:[#allocation2 + $0x6c] sm:$0xf] %v1457_v47  ;;  %v1562_v60 = vld [vmem:[#allocation2 + $0x14] sm:$0x1] }
 0x105   : > { %v796_v14 = vpop.f32.mrf.mxu0  ;;  %1410 = vst [vmem:[#allocation2 + $0x1c] sm:$0xf] %v1106_v13  ;;  %v1225_v58 = vsel %vm11174_vm7, %v1217_v56, %v1224_v8  ;;  %v2175_v3 = vshrl.u32 %v10083_v54, 16  ;;  %v2153_v11 = vshll.u32 %v10098_v55, 16 }
 0x106   : > { %v885_v15 = vpop.f32.mrf.mxu1  ;;  %v797_v17 = vadd.f32 %v11061_v0, %v796_v14  ;;  %v1109_v35 = vshrl.u32 %v11162_v16, 16  ;;  %v1112_v61 = vshll.u32 %v11162_v16, 16  ;;  %v1414_v14 = vld [vmem:[#allocation2 + $0x24] sm:$0xf]  ;;  %v832_v16 = vadd.f32 %v11061_v0, %v831_v2  ;;  %1413 = vst [vmem:[#allocation2 + $0x20] sm:$0x1] %v1412_v18 }
 0x107   : > { %v1710_v2 = vunpack.c.l.b16 %v1517_v59  ;;  %1459 = vst [vmem:[#allocation2 + $0x70] sm:$0xf] %v1225_v58 }
 0x108   : > { %v886_v25 = vadd.f32 %v885_v15, %v797_v17  ;;  %v1111_v50 = vrot.slane %v1109_v35, 7  ;;  %v1057_v17 = vpack.c.bf16 %v971_v6, %v971_v6  ;;  %v10185_v35 = vld [vmem:[#allocation9 + $0x1b8] sm:$0xff] }
 0x109   : > { %4019 = vmatpush.bf16.msra.mxu0 %v10185_v35 }
 0x10a   : > { %v958_v36 = vmax.f32 %v886_v25, 0.0  ;;  %v1114_v7 = vor.u32 %v1112_v61, %v1111_v50  ;;  %v1115_v23 = vrot.slane %v1111_v50, 4  ;;  %v1228_v26 = vshrl.u32 %v1057_v17, 16  ;;  %v1463_v50 = vld [vmem:[#allocation2 + $0x78] sm:$0xf] }
 0x10b   : > { %v1231_v27 = vshll.u32 %v1057_v17, 16  ;;  %v2179_v17 = vrot.slane %v2177_v4, 1 }
 0x10c   : > { %v1044_v41 = vpack.c.bf16 %v958_v36, %v958_v36  ;;  %v1415_v29 = vsel %vm11081_vm2, %v1114_v7, %v1414_v14  ;;  %v920_v36 = vpop.f32.mrf.mxu3  ;;  %v11225_v39 = vrot.slane %v1228_v26, 7  ;;  %v11246_v12 = vld [vmem:[#allocation2 + $0x18] sm:$0xff] }
 0x10d   : > { %v799_v48 = vpop.f32.mrf.mxu0  ;;  %v921_v40 = vadd.f32 %v920_v36, %v832_v16  ;;  %1416 = vst [vmem:[#allocation2 + $0x24] sm:$0xf] %v1415_v29  ;;  %v11252_v16 = vpack.c.b16 %v1710_v2, %v1710_v2  ;;  %v2180_v26 = vor.u32 %v2179_v17, %v2175_v3  ;;  %v2213_v30 = vshll.u32 %v11246_v12, 16 }
 0x10e   : > { %v888_v49 = vpop.f32.mrf.mxu1  ;;  %v1117_v51 = vshrl.u32 %v1044_v41, 16  ;;  %v800_v52 = vadd.f32 %v11061_v0, %v799_v48  ;;  %v1120_v5 = vshll.u32 %v1044_v41, 16  ;;  %v1460_v48 = vld [vmem:[#allocation2 + $0x74] sm:$0x1] }
 0x10f   : > { %v972_v53 = vmax.f32 %v921_v40, 0.0 }
 0x110   : > { %v1119_v62 = vrot.slane %v1117_v51, 7  ;;  %v889_v1 = vadd.f32 %v888_v49, %v800_v52  ;;  %v1233_v49 = vor.u32 %v1231_v27, %v11225_v39  ;;  %v2182_v27 = vshll.u32 %v11252_v16, 16 }
 0x111   : > { %v11248_v14 = vpack.c.bf16 %v972_v53, %v972_v53  ;;  %3384 = vmatmul.bf16.gmra.mxu1 %v11246_v12 }
 0x112   : > { %v959_v9 = vmax.f32 %v889_v1, 0.0  ;;  %v1122_v15 = vor.u32 %v1120_v5, %v1119_v62  ;;  %v1124_v19 = vrot.slane %v1119_v62, 4  ;;  %v1461_v62 = vsel %vm11181_vm8, %v1226_v38, %v1460_v48 }
 0x113   : > { %v1464_v1 = vsel %vm11081_vm2, %v1233_v49, %v1463_v50  ;;  %v1851_v5 = vunpack.c.l.b16 %v1562_v60  ;;  %1462 = vst [vmem:[#allocation2 + $0x74] sm:$0x1] %v1461_v62  ;;  %v2184_v38 = vrot.slane %v2182_v27, 1  ;;  %v2211_v48 = vshrl.u32 %v11246_v12, 16 }
 0x114   : > { %v1045_v22 = vpack.c.bf16 %v959_v9, %v959_v9  ;;  %v1123_v37 = vsel %vm11174_vm7, %v1115_v23, %v1122_v15  ;;  %v1419_v41 = vsel %vm11181_vm8, %v1124_v19, %v1418_v20  ;;  %v2151_v9 = vshrl.u32 %v10098_v55, 16  ;;  %v11250_v15 = vpop.f32.mrf.mxu3  ;;  %v1425_v19 = vld [vmem:[#allocation2 + $0x38] sm:$0x1]  ;;  %v1520_v20 = vld [vmem:[#allocation2 + $0x20] sm:$0x1] }
 0x115   : > { %v801_v24 = vpop.f32.mrf.mxu0  ;;  %1417 = vst [vmem:[#allocation2 + $0x28] sm:$0xf] %v1123_v37  ;;  %v11254_v18 = vpack.c.b16 %v1851_v5, %v1851_v5  ;;  %v10099_v37 = vld [vmem:[#allocation2 + $0x18] sm:$0xff]  ;;  %v2185_v50 = vsel %vm2137_vm3, %v2180_v26, %v2184_v38  ;;  %v835_v62 = vadd.f32 %v11061_v0, %v11231_v46  ;;  %v1239_v4 = vshll.u32 %v11248_v14, 16 }
 0x116   : > { %v890_v25 = vpop.f32.mrf.mxu1  ;;  %v1126_v31 = vshrl.u32 %v1045_v22, 16  ;;  %v802_v34 = vadd.f32 %v11061_v0, %v801_v24  ;;  %v1129_v43 = vshll.u32 %v1045_v22, 16  ;;  %1420 = vst [vmem:[#allocation2 + $0x2c] sm:$0x1] %v1419_v41  ;;  %v2155_v22 = vrot.slane %v2153_v11, 1  ;;  %2968 = vmatmul.bf16.gmra.mxu2 %v2185_v50 }
 0x117   : > { %1465 = vst [vmem:[#allocation2 + $0x78] sm:$0xf] %v1464_v1  ;;  %v1713_v24 = vunpack.c.l.b16 %v1520_v20  ;;  %v2158_v29 = vshll.u32 %v11254_v18, 16  ;;  %v2215_v41 = vrot.slane %v2213_v30, 1  ;;  %v2189_v59 = vshll.u32 %v10099_v37, 16 }
 0x118   : > { %v11229_v42 = vrot.slane %v1126_v31, 7  ;;  %v891_v45 = vadd.f32 %v890_v25, %v802_v34  ;;  %v11257_v25 = vpop.f32.mrf.mxu2  ;;  %v1565_v31 = vld [vmem:[#allocation2 + $0x20] sm:$0x1]  ;;  %v2156_v8 = vor.u32 %v2155_v22, %v2151_v9  ;;  %v1236_v1 = vshrl.u32 %v11248_v14, 16 }
 0x119   : > { %v11262_v36 = vpack.c.b16 %v1713_v24, %v1713_v24  ;;  %v2160_v40 = vrot.slane %v2158_v29, 1  ;;  %v2191_v9 = vrot.slane %v2189_v59, 1 }
 0x11a   : > { %v1131_v51 = vor.u32 %v1129_v43, %v11229_v42  ;;  %v960_v52 = vmax.f32 %v891_v45, 0.0  ;;  %v1132_v57 = vrot.slane %v11229_v42, 4  ;;  %v1854_v42 = vunpack.c.l.b16 %v1565_v31  ;;  %v10114_v43 = vld [vmem:[#allocation2 + $0x18] sm:$0xff] }
 0x11b   : > { %v2218_v49 = vshll.u32 %v11262_v36, 16  ;;  %v2163_v3 = vshrl.u32 %v10114_v43, 16  ;;  %v1238_v17 = vrot.slane %v1236_v1, 7 }
 0x11c   : > { %v1422_v61 = vsel %vm11081_vm2, %v1131_v51, %v1421_v44  ;;  %v1046_v63 = vpack.c.bf16 %v960_v52, %v960_v52  ;;  %v1611_v44 = vld [vmem:[#allocation2 + $0x20] sm:$0x1]  ;;  %v2161_v51 = vsel %vm2137_vm3, %v2156_v8, %v2160_v40  ;;  %v1234_v52 = vrot.slane %v11225_v39, 4  ;;  %v11291_v26 = vld [vmem:[#allocation2 + $0x24] sm:$0xff] }
 0x11d   : > { %1423 = vst [vmem:[#allocation2 + $0x30] sm:$0xf] %v1422_v61  ;;  %v804_v6 = vpop.f32.mrf.mxu0  ;;  %v11273_v53 = vpack.c.b16 %v1854_v42, %v1854_v42  ;;  %3052 = vmatmul.bf16.vlgmr.msrb.gmra.mxu3 %v2161_v51  ;;  %v2220_v58 = vrot.slane %v2218_v49, 1  ;;  %v1995_v60 = vunpack.c.l.b16 %v1611_v44  ;;  %v2165_v61 = vshll.u32 %v10114_v43, 16  ;;  %v1523_v27 = vld [vmem:[#allocation2 + $0x2c] sm:$0x1] }
 0x11e   : > { %v893_v7 = vpop.f32.mrf.mxu1  ;;  %v1134_v13 = vshrl.u32 %v1046_v63, 16  ;;  %v805_v21 = vadd.f32 %v11061_v0, %v804_v6  ;;  %v1137_v56 = vshll.u32 %v1046_v63, 16  ;;  %v11284_v6 = vpop.f32.mrf.mxu3  ;;  %v1243_v24 = vrot.slane %v1238_v17, 4  ;;  %v10100_v49 = vld [vmem:[#allocation2 + $0x24] sm:$0xff]  ;;  %v1428_v51 = vld [vmem:[#allocation2 + $0x3c] sm:$0xf] }
 0x11f   : > { %v2194_v39 = vshll.u32 %v11273_v53, 16  ;;  %v11279_v2 = vpack.c.b16 %v1995_v60, %v1995_v60  ;;  %v2167_v11 = vrot.slane %v2165_v61, 1  ;;  %v924_v8 = vadd.f32 %v11250_v15, %v835_v62  ;;  %v10115_v1 = vld [vmem:[#allocation2 + $0x24] sm:$0xff] }
 0x120   : > { %v1136_v23 = vrot.slane %v1134_v13, 7  ;;  %v894_v63 = vadd.f32 %v893_v7, %v805_v21  ;;  %v11282_v5 = vpop.f32.mrf.mxu2  ;;  %v2187_v7 = vshrl.u32 %v10099_v37, 16  ;;  %v1467_v21 = vld [vmem:[#allocation2 + $0x80] sm:$0x1]  ;;  %v2247_v62 = vshrl.u32 %v11291_v26, 16 }
 0x121   : > { %14056 = vst [vmem:[#allocation21_spill] sm:$0xff] %v11279_v2  ;;  %v2170_v20 = vshll.u32 %v11279_v2, 16  ;;  %v2196_v29 = vrot.slane %v2194_v39, 1  ;;  %v1468_v40 = vsel %vm11181_vm8, %v1243_v24, %v1467_v21  ;;  %v973_v15 = vmax.f32 %v924_v8, 0.0  ;;  %v1614_v39 = vld [vmem:[#allocation2 + $0x2c] sm:$0x1]  ;;  %3389 = vmatmul.bf16.gmra.mxu1 %v11291_v26 }
 0x122   : > { %v1139_v34 = vor.u32 %v1137_v56, %v1136_v23  ;;  %v1141_v35 = vrot.slane %v1136_v23, 4  ;;  %v961_v13 = vmax.f32 %v894_v63, 0.0  ;;  %v2168_v23 = vor.u32 %v2167_v11, %v2163_v3  ;;  %1469 = vst [vmem:[#allocation2 + $0x80] sm:$0x1] %v1468_v40 }
 0x123   : > { %v1241_v56 = vor.u32 %v1239_v4, %v1238_v17  ;;  %v2172_v30 = vrot.slane %v2170_v20, 1 }
 0x124   : > { %v1140_v45 = vsel %vm11174_vm7, %v1132_v57, %v1139_v34  ;;  %v1426_v47 = vsel %vm11181_vm8, %v1141_v35, %v1425_v19  ;;  %v2216_v57 = vor.u32 %v2215_v41, %v2211_v48  ;;  %v10152_v19 = vld [vmem:[#allocation9 + $0xb0] sm:$0xff]  ;;  %v1047_v14 = vpack.c.bf16 %v961_v13, %v961_v13  ;;  %v1568_v34 = vld [vmem:[#allocation2 + $0x2c] sm:$0x1] }
 0x125   : > { %1424 = vst [vmem:[#allocation2 + $0x34] sm:$0xf] %v1140_v45  ;;  %v806_v54 = vpop.f32.mrf.mxu0  ;;  %3545 = vmatpush.bf16.msra.mxu3 %v10152_v19  ;;  %v2192_v35 = vor.u32 %v2191_v9, %v2187_v7  ;;  %v1242_v38 = vsel %vm11174_vm7, %v1234_v52, %v1241_v56  ;;  %v2173_v43 = vsel %vm2137_vm3, %v2168_v23, %v2172_v30  ;;  %v1716_v45 = vunpack.c.l.b16 %v1523_v27  ;;  %v1432_v13 = vld [vmem:[#allocation2 + $0x44] sm:$0x1] }
 0x126   : > { %v895_v55 = vpop.f32.mrf.mxu1  ;;  %1427 = vst [vmem:[#allocation2 + $0x38] sm:$0x1] %v1426_v47  ;;  %v11287_v46 = vsel %vm2137_vm3, %v2216_v57, %v2220_v58  ;;  %v807_v22 = vadd.f32 %v11061_v0, %v806_v54  ;;  %v1143_v37 = vshrl.u32 %v1047_v14, 16  ;;  %3141 = vmatmul.bf16.vlgmr.msrb.gmra.mxu0 %v2173_v43  ;;  %v1146_v47 = vshll.u32 %v1047_v14, 16  ;;  %v928_v59 = vpop.f32.mrf.mxu3  ;;  %v1470_v56 = vld [vmem:[#allocation2 + $0x84] sm:$0xf] }
 0x127   : > { %1466 = vst [vmem:[#allocation2 + $0x7c] sm:$0xf] %v1242_v38  ;;  %v2249_v48 = vshll.u32 %v11291_v26, 16  ;;  %v1857_v50 = vunpack.c.l.b16 %v1568_v34  ;;  %v837_v52 = vadd.f32 %v11061_v0, %v11257_v25  ;;  %v11307_v57 = vpack.c.b16 %v1716_v45, %v1716_v45  ;;  %2973 = vmatmul.bf16.gmra.mxu2 %v11287_v46  ;;  %v10184_v38 = vld [vmem:[#allocation9 + $0x1b0] sm:$0xff] }
 0x128   : > { %v896_v31 = vadd.f32 %v895_v55, %v807_v22  ;;  %v1145_v12 = vrot.slane %v1143_v37, 7  ;;  %v1059_v55 = vpack.c.bf16 %v973_v15, %v973_v15  ;;  %v11309_v58 = vpop.f32.mrf.mxu2  ;;  %v2197_v60 = vsel %vm2137_vm3, %v2192_v35, %v2196_v29  ;;  %4020 = vmatpush.bf16.msra.mxu0 %v10184_v38 }
 0x129   : > { %v2251_v63 = vrot.slane %v2249_v48, 1  ;;  %v11313_v11 = vpack.c.b16 %v1857_v50, %v1857_v50  ;;  %v2254_v17 = vshll.u32 %v11307_v57, 16  ;;  %v2223_v19 = vshrl.u32 %v10100_v49, 16 }
 0x12a   : > { %v962_v44 = vmax.f32 %v896_v31, 0.0  ;;  %v1148_v61 = vor.u32 %v1146_v47, %v1145_v12  ;;  %v1245_v4 = vshrl.u32 %v1059_v55, 16  ;;  %v1248_v9 = vshll.u32 %v1059_v55, 16 }
 0x12b   : > { %v2225_v7 = vshll.u32 %v10100_v49, 16  ;;  %v1998_v23 = vunpack.c.l.b16 %v1614_v39  ;;  %v1149_v14 = vrot.slane %v1145_v12, 4  ;;  %v2252_v24 = vor.u32 %v2251_v63, %v2247_v62 }
 0x12c   : > { %v1048_v54 = vpack.c.bf16 %v962_v44, %v962_v44  ;;  %v1429_v25 = vsel %vm11081_vm2, %v1148_v61, %v1428_v51  ;;  %v11318_v22 = vrot.slane %v1245_v4, 7  ;;  %v2201_v29 = vshll.u32 %v10115_v1, 16  ;;  %v11332_v48 = vld [vmem:[#allocation2 + $0x30] sm:$0xff] }
 0x12d   : > { %v11299_v41 = vpop.f32.mrf.mxu0  ;;  %1430 = vst [vmem:[#allocation2 + $0x3c] sm:$0xf] %v1429_v25  ;;  %v2227_v27 = vrot.slane %v2225_v7, 1  ;;  %3057 = vmatmul.bf16.gmra.mxu3 %v2197_v60  ;;  %v2230_v37 = vshll.u32 %v11313_v11, 16  ;;  %v2256_v43 = vrot.slane %v2254_v17, 1  ;;  %v11324_v44 = vpack.c.b16 %v1998_v23, %v1998_v23 }
 0x12e   : > { %v11301_v42 = vpop.f32.mrf.mxu1  ;;  %v1151_v3 = vshrl.u32 %v1048_v54, 16  ;;  %v1154_v21 = vshll.u32 %v1048_v54, 16  ;;  %v1250_v35 = vor.u32 %v1248_v9, %v11318_v22  ;;  %v1251_v40 = vrot.slane %v11318_v22, 4  ;;  %v1526_v49 = vld [vmem:[#allocation2 + $0x38] sm:$0x1]  ;;  %v11341_v61 = vpop.f32.mrf.mxu3 }
 0x12f   : > { %14057 = vst [vmem:[#allocation22_spill] sm:$0xff] %v11324_v44  ;;  %v2199_v15 = vshrl.u32 %v10115_v1, 16  ;;  %v2203_v47 = vrot.slane %v2201_v29, 1  ;;  %v2228_v51 = vor.u32 %v2227_v27, %v2223_v19  ;;  %v2206_v54 = vshll.u32 %v11324_v44, 16 }
 0x130   : > { %v1153_v20 = vrot.slane %v1151_v3, 7  ;;  %v1471_v12 = vsel %vm11081_vm2, %v1250_v35, %v1470_v56  ;;  %v11334_v50 = vpop.f32.mrf.mxu2  ;;  %v840_v55 = vadd.f32 %v11061_v0, %v11282_v5  ;;  %v810_v60 = vadd.f32 %v11061_v0, %v11299_v41  ;;  %v11363_v35 = vld [vmem:[#allocation2 + $0x30] sm:$0xff] }
 0x131   : > { %v2232_v62 = vrot.slane %v2230_v37, 1  ;;  %v2204_v63 = vor.u32 %v2203_v47, %v2199_v15  ;;  %v926_v1 = vadd.f32 %v11284_v6, %v837_v52  ;;  %1472 = vst [vmem:[#allocation2 + $0x84] sm:$0xf] %v1471_v12  ;;  %v2208_v3 = vrot.slane %v2206_v54, 1  ;;  %3394 = vmatmul.bf16.gmra.mxu1 %v11332_v48 }
 0x132   : > { %v1156_v8 = vor.u32 %v1154_v21, %v1153_v20  ;;  %v1158_v34 = vrot.slane %v1153_v20, 4  ;;  %v899_v4 = vadd.f32 %v11301_v42, %v810_v60  ;;  %v929_v9 = vadd.f32 %v928_v59, %v840_v55 }
 0x133   : > { %v1719_v25 = vunpack.c.l.b16 %v1526_v49  ;;  %v2257_v5 = vsel %vm2137_vm3, %v2252_v24, %v2256_v43  ;;  %v2285_v41 = vshll.u32 %v11332_v48, 16  ;;  %v2209_v19 = vsel %vm2137_vm3, %v2204_v63, %v2208_v3 }
 0x134   : > { %v1157_v45 = vsel %vm11174_vm7, %v1149_v14, %v1156_v8  ;;  %v1433_v46 = vsel %vm11181_vm8, %v1158_v34, %v1432_v13  ;;  %v974_v13 = vmax.f32 %v926_v1, 0.0  ;;  %v963_v7 = vmax.f32 %v899_v4, 0.0  ;;  %v1571_v14 = vld [vmem:[#allocation2 + $0x38] sm:$0x1] }
 0x135   : > { %v811_v30 = vpop.f32.mrf.mxu0  ;;  %1431 = vst [vmem:[#allocation2 + $0x40] sm:$0xf] %v1157_v45  ;;  %v975_v6 = vmax.f32 %v929_v9, 0.0  ;;  %v11350_v52 = vpack.c.b16 %v1719_v25, %v1719_v25  ;;  %v2233_v42 = vsel %vm2137_vm3, %v2228_v51, %v2232_v62  ;;  %v2287_v23 = vrot.slane %v2285_v41, 1  ;;  %v1474_v51 = vld [vmem:[#allocation2 + $0x8c] sm:$0x1] }
 0x136   : > { %v900_v31 = vpop.f32.mrf.mxu1  ;;  %1434 = vst [vmem:[#allocation2 + $0x44] sm:$0x1] %v1433_v46  ;;  %v812_v39 = vadd.f32 %v11061_v0, %v811_v30  ;;  %v1060_v59 = vpack.c.bf16 %v974_v13, %v974_v13  ;;  %3146 = vmatmul.bf16.gmra.mxu0 %v2209_v19  ;;  %v1049_v56 = vpack.c.bf16 %v963_v7, %v963_v7  ;;  %v2283_v34 = vshrl.u32 %v11332_v48, 16  ;;  %v1435_v62 = vld [vmem:[#allocation2 + $0x48] sm:$0xf]  ;;  %v10116_v41 = vld [vmem:[#allocation2 + $0x30] sm:$0xff] }
 0x137   : > { %v11357_v24 = vadd.f32 %v11061_v0, %v11309_v58  ;;  %v1061_v26 = vpack.c.bf16 %v975_v6, %v975_v6  ;;  %v2290_v27 = vshll.u32 %v11350_v52, 16  ;;  %v1860_v15 = vunpack.c.l.b16 %v1571_v14  ;;  %v933_v0 = vpop.f32.mrf.mxu3  ;;  %v1439_v25 = vld [vmem:[#allocation2 + $0x50] sm:$0x1]  ;;  %v1617_v19 = vld [vmem:[#allocation2 + $0x38] sm:$0x1]  ;;  %2978 = vmatmul.bf16.gmra.mxu2 %v2257_v5 }
 0x138   : > { %v901_v17 = vadd.f32 %v900_v31, %v812_v39  ;;  %v1253_v30 = vshrl.u32 %v1060_v59, 16  ;;  %v1256_v31 = vshll.u32 %v1060_v59, 16  ;;  %v1160_v37 = vshrl.u32 %v1049_v56, 16  ;;  %v11365_v45 = vpop.f32.mrf.mxu2  ;;  %v1477_v14 = vld [vmem:[#allocation2 + $0x90] sm:$0xf] }
 0x139   : > { %v1262_v38 = vshrl.u32 %v1061_v26, 16  ;;  %v1265_v43 = vshll.u32 %v1061_v26, 16  ;;  %v1163_v58 = vshll.u32 %v1049_v56, 16  ;;  %v2288_v47 = vor.u32 %v2287_v23, %v2283_v34 }
 0x13a   : > { %v964_v21 = vmax.f32 %v901_v17, 0.0  ;;  %v1255_v46 = vrot.slane %v1253_v30, 7  ;;  %v1162_v49 = vrot.slane %v1160_v37, 7  ;;  %v2292_v60 = vrot.slane %v2290_v27, 1 }
 0x13b   : > { %v11367_v55 = vrot.slane %v1262_v38, 7  ;;  %v2261_v3 = vshll.u32 %v11363_v35, 16  ;;  %v11371_v17 = vpack.c.b16 %v1860_v15, %v1860_v15  ;;  %v2259_v26 = vshrl.u32 %v11363_v35, 16 }
 0x13c   : > { %v1050_v8 = vpack.c.bf16 %v964_v21, %v964_v21  ;;  %v1258_v63 = vor.u32 %v1256_v31, %v1255_v46  ;;  %v1260_v1 = vrot.slane %v1255_v46, 4  ;;  %v1165_v4 = vor.u32 %v1163_v58, %v1162_v49  ;;  %v11405_v58 = vld [vmem:[#allocation2 + $0x3c] sm:$0xff] }
 0x13d   : > { %v11352_v20 = vpop.f32.mrf.mxu0  ;;  %v1166_v9 = vrot.slane %v1162_v49, 4  ;;  %v1267_v13 = vor.u32 %v1265_v43, %v11367_v55  ;;  %3062 = vmatmul.bf16.gmra.mxu3 %v2233_v42  ;;  %v2001_v42 = vunpack.c.l.b16 %v1617_v19  ;;  %v2266_v30 = vshll.u32 %v11371_v17, 16 }
 0x13e   : > { %v11360_v29 = vpop.f32.mrf.mxu1  ;;  %v1168_v12 = vshrl.u32 %v1050_v8, 16  ;;  %v1171_v54 = vshll.u32 %v1050_v8, 16  ;;  %v1259_v6 = vsel %vm11174_vm7, %v1251_v40, %v1258_v63  ;;  %v1475_v59 = vsel %vm11181_vm8, %v1260_v1, %v1474_v51  ;;  %v11392_v8 = vld [vmem:[%s13932_s3] ss:$0 sm:$0xff] }
 0x13f   : > { %v1436_v56 = vsel %vm11081_vm2, %v1165_v4, %v1435_v62  ;;  %1473 = vst [vmem:[#allocation2 + $0x88] sm:$0xf] %v1259_v6  ;;  %v2263_v40 = vrot.slane %v2261_v3, 1  ;;  %v1478_v27 = vsel %vm11081_vm2, %v1267_v13, %v1477_v14  ;;  %v2237_v31 = vshll.u32 %v10116_v41, 16  ;;  %v11407_v46 = vpop.f32.mrf.mxu3  ;;  %v1574_v13 = vld [vmem:[#allocation2 + $0x44] sm:$0x1] }
 0x140   : > { %v1170_v39 = vrot.slane %v1168_v12, 7  ;;  %1437 = vst [vmem:[#allocation2 + $0x48] sm:$0xf] %v1436_v56  ;;  %v845_v34 = vadd.f32 %v11392_v8, %v11334_v50  ;;  %v11397_v37 = vsel %vm2137_vm3, %v2288_v47, %v2292_v60  ;;  %v11399_v38 = vpack.c.b16 %v2001_v42, %v2001_v42  ;;  %v10151_v12 = vld [vmem:[#allocation9 + $0xa8] sm:$0xff]  ;;  %v11410_v60 = vpop.f32.mrf.mxu2 }
 0x141   : > { %1476 = vst [vmem:[#allocation2 + $0x8c] sm:$0x1] %v1475_v59  ;;  %v815_v43 = vadd.f32 %v11392_v8, %v11352_v20  ;;  %v931_v15 = vadd.f32 %v11341_v61, %v11357_v24  ;;  %v2235_v50 = vshrl.u32 %v10116_v41, 16  ;;  %v2239_v49 = vrot.slane %v2237_v31, 1  ;;  %3546 = vmatpush.bf16.msra.mxu3 %v10151_v12  ;;  %3399 = vmatmul.bf16.gmra.mxu1 %v11405_v58 }
 0x142   : > { %v1173_v21 = vor.u32 %v1171_v54, %v1170_v39  ;;  %v1175_v23 = vrot.slane %v1170_v39, 4  ;;  %14058 = vst [vmem:[#allocation23_spill] sm:$0xff] %v11399_v38  ;;  %v934_v47 = vadd.f32 %v933_v0, %v845_v34  ;;  %v1529_v54 = vld [vmem:[#allocation2 + $0x44] sm:$0x1]  ;;  %v2264_v62 = vor.u32 %v2263_v40, %v2259_v26 }
 0x143   : > { %1479 = vst [vmem:[#allocation2 + $0x90] sm:$0xf] %v1478_v27  ;;  %v2242_v20 = vshll.u32 %v11399_v38, 16  ;;  %v904_v61 = vadd.f32 %v11360_v29, %v815_v43  ;;  %v976_v24 = vmax.f32 %v931_v15, 0.0  ;;  %v2268_v63 = vrot.slane %v2266_v30, 1 }
 0x144   : > { %v1174_v5 = vsel %vm11174_vm7, %v1166_v9, %v1173_v21  ;;  %v1440_v22 = vsel %vm11181_vm8, %v1175_v23, %v1439_v25  ;;  %v2240_v1 = vor.u32 %v2239_v49, %v2235_v50  ;;  %v977_v3 = vmax.f32 %v934_v47, 0.0  ;;  %v1481_v30 = vld [vmem:[#allocation2 + $0x98] sm:$0x1]  ;;  %v1442_v49 = vld [vmem:[#allocation2 + $0x54] sm:$0xf] }
 0x145   : > { %v816_v7 = vpop.f32.mrf.mxu0  ;;  %1438 = vst [vmem:[#allocation2 + $0x4c] sm:$0xf] %v1174_v5  ;;  %v2244_v4 = vrot.slane %v2242_v20, 1  ;;  %v965_v9 = vmax.f32 %v904_v61, 0.0  ;;  %v1062_v0 = vpack.c.bf16 %v976_v24, %v976_v24  ;;  %v1722_v25 = vunpack.c.l.b16 %v1529_v54  ;;  %v10102_v54 = vld [vmem:[#allocation2 + $0x3c] sm:$0xff] }
 0x146   : > { %v905_v35 = vpop.f32.mrf.mxu1  ;;  %1441 = vst [vmem:[#allocation2 + $0x50] sm:$0x1] %v1440_v22  ;;  %v817_v51 = vadd.f32 %v11392_v8, %v816_v7  ;;  %v1268_v41 = vrot.slane %v11367_v55, 4  ;;  %v1063_v7 = vpack.c.bf16 %v977_v3, %v977_v3  ;;  %v2321_v6 = vshll.u32 %v11405_v58, 16  ;;  %v1446_v61 = vld [vmem:[#allocation2 + $0x5c] sm:$0x1] }
 0x147   : > { %v2245_v59 = vsel %vm2137_vm3, %v2240_v1, %v2244_v4  ;;  %v1051_v48 = vpack.c.bf16 %v965_v9, %v965_v9  ;;  %v1270_v21 = vshrl.u32 %v1062_v0, 16  ;;  %v1273_v23 = vshll.u32 %v1062_v0, 16  ;;  %v938_v27 = vpop.f32.mrf.mxu3  ;;  %2983 = vmatmul.bf16.gmra.mxu2 %v11397_v37 }
 0x148   : > { %v906_v39 = vadd.f32 %v905_v35, %v817_v51  ;;  %3151 = vmatmul.bf16.gmra.mxu0 %v2245_v59  ;;  %v1279_v56 = vshrl.u32 %v1063_v7, 16  ;;  %v1282_v26 = vshll.u32 %v1063_v7, 16  ;;  %v1863_v5 = vunpack.c.l.b16 %v1574_v13  ;;  %v1620_v13 = vld [vmem:[#allocation2 + $0x44] sm:$0x1] }
 0x149   : > { %v2269_v22 = vsel %vm2137_vm3, %v2264_v62, %v2268_v63  ;;  %v1177_v40 = vshrl.u32 %v1051_v48, 16  ;;  %v1272_v55 = vrot.slane %v1270_v21, 7  ;;  %v11421_v42 = vpack.c.b16 %v1722_v25, %v1722_v25  ;;  %v1484_v63 = vld [vmem:[#allocation2 + $0x9c] sm:$0xf] }
 0x14a   : > { %v966_v19 = vmax.f32 %v906_v39, 0.0  ;;  %v11423_v34 = vrot.slane %v1279_v56, 7  ;;  %v2319_v35 = vshrl.u32 %v11405_v58, 16  ;;  %v2323_v43 = vrot.slane %v2321_v6, 1  ;;  %v11429_v39 = vpop.f32.mrf.mxu2  ;;  %v10117_v25 = vld [vmem:[#allocation2 + $0x3c] sm:$0xff] }
 0x14b   : > { %v1179_v12 = vrot.slane %v1177_v40, 7  ;;  %v1180_v50 = vshll.u32 %v1051_v48, 16  ;;  %v1275_v51 = vor.u32 %v1273_v23, %v1272_v55  ;;  %v1277_v47 = vrot.slane %v1272_v55, 4 }
 0x14c   : > { %v1052_v14 = vpack.c.bf16 %v966_v19, %v966_v19  ;;  %v1284_v24 = vor.u32 %v1282_v26, %v11423_v34  ;;  %v11427_v1 = vpack.c.b16 %v1863_v5, %v1863_v5  ;;  %v2326_v0 = vshll.u32 %v11421_v42, 16  ;;  %v10183_v19 = vld [vmem:[#allocation9 + $0x1a8] sm:$0xff] }
 0x14d   : > { %v11417_v29 = vpop.f32.mrf.mxu0  ;;  %3067 = vmatmul.bf16.gmra.mxu3 %v2269_v22  ;;  %v1182_v3 = vor.u32 %v1180_v50, %v1179_v12  ;;  %v1276_v4 = vsel %vm11174_vm7, %v1268_v41, %v1275_v51  ;;  %v1482_v9 = vsel %vm11181_vm8, %v1277_v47, %v1481_v30  ;;  %v1183_v7 = vrot.slane %v1179_v12, 4  ;;  %4021 = vmatpush.bf16.msra.mxu0 %v10183_v19 }
 0x14e   : > { %v1185_v31 = vshrl.u32 %v1052_v14, 16  ;;  %v908_v15 = vpop.f32.mrf.mxu1  ;;  %v1188_v20 = vshll.u32 %v1052_v14, 16  ;;  %1480 = vst [vmem:[#allocation2 + $0x94] sm:$0xf] %v1276_v4  ;;  %v847_v6 = vadd.f32 %v11392_v8, %v11365_v45  ;;  %v2324_v41 = vor.u32 %v2323_v43, %v2319_v35 }
 0x14f   : > { %v1443_v48 = vsel %vm11081_vm2, %v1182_v3, %v1442_v49  ;;  %1483 = vst [vmem:[#allocation2 + $0x98] sm:$0x1] %v1482_v9  ;;  %v2297_v21 = vshll.u32 %v10102_v54, 16  ;;  %v1485_v56 = vsel %vm11081_vm2, %v1284_v24, %v1484_v63  ;;  %v2004_v45 = vunpack.c.l.b16 %v1620_v13  ;;  %v11450_v30 = vpop.f32.mrf.mxu3  ;;  %v1532_v63 = vld [vmem:[#allocation2 + $0x50] sm:$0x1] }
 0x150   : > { %v1187_v62 = vrot.slane %v1185_v31, 7  ;;  %1444 = vst [vmem:[#allocation2 + $0x54] sm:$0xf] %v1443_v48  ;;  %v2328_v5 = vrot.slane %v2326_v0, 1  ;;  %v2302_v22 = vshll.u32 %v11427_v1, 16  ;;  %v2273_v40 = vshll.u32 %v10117_v25, 16 }
 0x151   : > { %v850_v55 = vadd.f32 %v11392_v8, %v11410_v60  ;;  %v2299_v31 = vrot.slane %v2297_v21, 1  ;;  %v11452_v35 = vpack.c.b16 %v2004_v45, %v2004_v45  ;;  %v820_v43 = vadd.f32 %v11392_v8, %v11417_v29  ;;  %1486 = vst [vmem:[#allocation2 + $0x9c] sm:$0xf] %v1485_v56 }
 0x152   : > { %v1190_v59 = vor.u32 %v1188_v20, %v1187_v62  ;;  %v1192_v37 = vrot.slane %v1187_v62, 4  ;;  %v936_v12 = vadd.f32 %v11407_v46, %v847_v6  ;;  %v2271_v50 = vshrl.u32 %v10117_v25, 16  ;;  %v11460_v19 = vpop.f32.mrf.mxu2 }
 0x153   : > { %14059 = vst [vmem:[#allocation24_spill] sm:$0xff] %v11452_v35  ;;  %v2275_v49 = vrot.slane %v2273_v40, 1  ;;  %v939_v47 = vadd.f32 %v938_v27, %v850_v55  ;;  %v2295_v60 = vshrl.u32 %v10102_v54, 16  ;;  %v2278_v62 = vshll.u32 %v11452_v35, 16  ;;  %v11462_v27 = vld [vmem:[#allocation2 + $0x48] sm:$0xff] }
 0x154   : > { %v1191_v23 = vsel %vm11174_vm7, %v1183_v7, %v1190_v59  ;;  %v1447_v14 = vsel %vm11181_vm8, %v1192_v37, %v1446_v61  ;;  %v909_v20 = vadd.f32 %v908_v15, %v820_v43  ;;  %v978_v61 = vmax.f32 %v936_v12, 0.0  ;;  %v1577_v55 = vld [vmem:[#allocation2 + $0x50] sm:$0x1]  ;;  %3404 = vmatmul.bf16.gmra.mxu1 %v11462_v27 }
 0x155   : > { %v821_v26 = vpop.f32.mrf.mxu0  ;;  %1445 = vst [vmem:[#allocation2 + $0x58] sm:$0xf] %v1191_v23  ;;  %v2304_v3 = vrot.slane %v2302_v22, 1  ;;  %v2276_v4 = vor.u32 %v2275_v49, %v2271_v50  ;;  %v979_v9 = vmax.f32 %v939_v47, 0.0  ;;  %v2300_v46 = vor.u32 %v2299_v31, %v2295_v60  ;;  %v1488_v31 = vld [vmem:[#allocation2 + $0xa4] sm:$0x1] }
 0x156   : > { %1448 = vst [vmem:[#allocation2 + $0x5c] sm:$0x1] %v1447_v14  ;;  %v822_v51 = vadd.f32 %v11392_v8, %v821_v26  ;;  %v910_v24 = vpop.f32.mrf.mxu1  ;;  %v2280_v0 = vrot.slane %v2278_v62, 1  ;;  %v967_v25 = vmax.f32 %v909_v20, 0.0  ;;  %v1064_v13 = vpack.c.bf16 %v978_v61, %v978_v61  ;;  %v1449_v47 = vld [vmem:[#allocation2 + $0x60] sm:$0xf] }
 0x157   : > { %v1065_v54 = vpack.c.bf16 %v979_v9, %v979_v9  ;;  %v1725_v7 = vunpack.c.l.b16 %v1532_v63  ;;  %v1285_v48 = vrot.slane %v11423_v34, 4  ;;  %v11466_v56 = vpop.f32.mrf.mxu3  ;;  %v2329_v45 = vsel %vm2137_vm3, %v2324_v41, %v2328_v5  ;;  %v10103_v20 = vld [vmem:[#allocation2 + $0x48] sm:$0xff]  ;;  %v1595_v35 = vld [vmem:[#allocation2 + $0x98] sm:$0x1]  ;;  %v10124_v38 = vld [vmem:[#allocation2 + $0x90] sm:$0xff] }
 0x158   : > { %v911_v29 = vadd.f32 %v910_v24, %v822_v51  ;;  %v2281_v15 = vsel %vm2137_vm3, %v2276_v4, %v2280_v0  ;;  %v1053_v6 = vpack.c.bf16 %v967_v25, %v967_v25  ;;  %v1287_v59 = vshrl.u32 %v1064_v13, 16  ;;  %2988 = vmatmul.bf16.gmra.mxu2 %v2329_v45  ;;  %v1453_v61 = vld [vmem:[#allocation2 + $0x68] sm:$0x1]  ;;  %v1623_v25 = vld [vmem:[#allocation2 + $0x50] sm:$0x1] }
 0x159   : > { %v1290_v37 = vshll.u32 %v1064_v13, 16  ;;  %3156 = vmatmul.bf16.gmra.mxu0 %v2281_v15  ;;  %v1296_v23 = vshrl.u32 %v1065_v54, 16  ;;  %v1299_v14 = vshll.u32 %v1065_v54, 16  ;;  %v2305_v26 = vsel %vm2137_vm3, %v2300_v46, %v2304_v3  ;;  %v1491_v63 = vld [vmem:[#allocation2 + $0xa8] sm:$0xf]  ;;  %v10150_v13 = vld [vmem:[#allocation9 + $0xa0] sm:$0xff] }
 0x15a   : > { %v968_v58 = vmax.f32 %v911_v29, 0.0  ;;  %v1194_v22 = vshrl.u32 %v1053_v6, 16  ;;  %v1289_v40 = vrot.slane %v1287_v59, 7  ;;  %v11472_v50 = vpack.c.b16 %v1725_v7, %v1725_v7  ;;  %v10118_v0 = vld [vmem:[#allocation2 + $0x48] sm:$0xff]  ;;  %3547 = vmatpush.bf16.msra.mxu3 %v10150_v13 }
 0x15b   : > { %v11470_v12 = vrot.slane %v1296_v23, 7  ;;  %v2357_v34 = vshll.u32 %v11462_v27, 16  ;;  %v1197_v51 = vshll.u32 %v1053_v6, 16  ;;  %v1866_v3 = vunpack.c.l.b16 %v1577_v55 }
 0x15c   : > { %v1054_v21 = vpack.c.bf16 %v968_v58, %v968_v58  ;;  %v1196_v49 = vrot.slane %v1194_v22, 7  ;;  %v1292_v60 = vor.u32 %v1290_v37, %v1289_v40  ;;  %v1294_v62 = vrot.slane %v1289_v40, 4  ;;  %v10104_v13 = vld [vmem:[#allocation2 + $0x54] sm:$0xff] }
 0x15d   : > { %3072 = vmatmul.bf16.gmra.mxu3 %v2305_v26  ;;  %v1301_v24 = vor.u32 %v1299_v14, %v11470_v12  ;;  %v852_v46 = vadd.f32 %v11392_v8, %v11429_v39  ;;  %v2359_v15 = vrot.slane %v2357_v34, 1  ;;  %v2362_v59 = vshll.u32 %v11472_v50, 16 }
 0x15e   : > { %v1202_v43 = vshrl.u32 %v1054_v21, 16  ;;  %v1205_v5 = vshll.u32 %v1054_v21, 16  ;;  %v1199_v4 = vor.u32 %v1197_v51, %v1196_v49  ;;  %v1293_v29 = vsel %vm11174_vm7, %v1285_v48, %v1292_v60  ;;  %v856_v21 = vpop.f32.mrf.mxu2  ;;  %v1535_v51 = vld [vmem:[#allocation2 + $0x5c] sm:$0x1] }
 0x15f   : > { %v1489_v9 = vsel %vm11181_vm8, %v1294_v62, %v1488_v31  ;;  %v1200_v58 = vrot.slane %v1196_v49, 4  ;;  %1487 = vst [vmem:[#allocation2 + $0xa0] sm:$0xf] %v1293_v29  ;;  %v11485_v37 = vpack.c.b16 %v1866_v3, %v1866_v3  ;;  %v2333_v48 = vshll.u32 %v10103_v20, 16  ;;  %v11496_v31 = vpop.f32.mrf.mxu3 }
 0x160   : > { %v1204_v41 = vrot.slane %v1202_v43, 7  ;;  %v1450_v6 = vsel %vm11081_vm2, %v1199_v4, %v1449_v47  ;;  %1490 = vst [vmem:[#allocation2 + $0xa4] sm:$0x1] %v1489_v9  ;;  %v1492_v14 = vsel %vm11081_vm2, %v1301_v24, %v1491_v63  ;;  %v2007_v45 = vunpack.c.l.b16 %v1623_v25  ;;  %v1580_v9 = vld [vmem:[#allocation2 + $0x5c] sm:$0x1]  ;;  %v10089_v25 = vld [vmem:[#allocation2 + $0x54] sm:$0xff] }
 0x161   : > { %1451 = vst [vmem:[#allocation2 + $0x60] sm:$0xf] %v1450_v6  ;;  %v2335_v26 = vrot.slane %v2333_v48, 1  ;;  %v2338_v22 = vshll.u32 %v11485_v37, 16  ;;  %v2309_v40 = vshll.u32 %v10118_v0, 16  ;;  %v855_v55 = vadd.f32 %v11392_v8, %v11460_v19 }
 0x162   : > { %v1207_v54 = vor.u32 %v1205_v5, %v1204_v41  ;;  %v1209_v7 = vrot.slane %v1204_v41, 4  ;;  %v2355_v43 = vshrl.u32 %v11462_v27, 16  ;;  %v11499_v34 = vpack.c.b16 %v2007_v45, %v2007_v45  ;;  %1493 = vst [vmem:[#allocation2 + $0xa8] sm:$0xf] %v1492_v14 }
 0x163   : > { %v941_v49 = vadd.f32 %v11450_v30, %v852_v46  ;;  %v2331_v47 = vshrl.u32 %v10103_v20, 16  ;;  %v2307_v60 = vshrl.u32 %v10118_v0, 16  ;;  %v2311_v62 = vrot.slane %v2309_v40, 1  ;;  %v1495_v40 = vld [vmem:[#allocation2 + $0xb0] sm:$0x1] }
 0x164   : > { %v1208_v39 = vsel %vm11174_vm7, %v1200_v58, %v1207_v54  ;;  %v1454_v23 = vsel %vm11181_vm8, %v1209_v7, %v1453_v61  ;;  %14060 = vst [vmem:[#allocation25_spill] sm:$0xff] %v11499_v34  ;;  %v944_v41 = vadd.f32 %v11466_v56, %v855_v55  ;;  %v2360_v5 = vor.u32 %v2359_v15, %v2355_v43  ;;  %v10119_v58 = vld [vmem:[#allocation2 + $0x54] sm:$0xff]  ;;  %v1626_v56 = vld [vmem:[#allocation2 + $0x5c] sm:$0x1] }
 0x165   : > { %1452 = vst [vmem:[#allocation2 + $0x64] sm:$0xf] %v1208_v39  ;;  %v2364_v19 = vrot.slane %v2362_v59, 1  ;;  %v2314_v61 = vshll.u32 %v11499_v34, 16  ;;  %v980_v24 = vmax.f32 %v941_v49, 0.0  ;;  %v2336_v63 = vor.u32 %v2335_v26, %v2331_v47  ;;  %3409 = vmatmul.bf16.gmra.mxu1 %v10089_v25 }
 0x166   : > { %1455 = vst [vmem:[#allocation2 + $0x68] sm:$0x1] %v1454_v23  ;;  %v2340_v3 = vrot.slane %v2338_v22, 1  ;;  %v2312_v4 = vor.u32 %v2311_v62, %v2307_v60  ;;  %v981_v29 = vmax.f32 %v944_v41, 0.0  ;;  %v1728_v27 = vunpack.c.l.b16 %v1535_v51  ;;  %v859_v14 = vpop.f32.mrf.mxu2  ;;  %v1498_v41 = vld [vmem:[#allocation2 + $0xb4] sm:$0xf] }
 0x167   : > { %v2316_v30 = vrot.slane %v2314_v61, 1  ;;  %v1066_v46 = vpack.c.bf16 %v980_v24, %v980_v24  ;;  %v1302_v20 = vrot.slane %v11470_v12, 4  ;;  %v1869_v6 = vunpack.c.l.b16 %v1580_v9  ;;  %v948_v47 = vpop.f32.mrf.mxu3 }
 0x168   : > { %v1067_v0 = vpack.c.bf16 %v981_v29, %v981_v29  ;;  %v2365_v59 = vsel %vm2137_vm3, %v2360_v5, %v2364_v19  ;;  %v2341_v48 = vsel %vm2137_vm3, %v2336_v63, %v2340_v3  ;;  %v857_v12 = vadd.f32 %v11392_v8, %v856_v21  ;;  %v10182_v21 = vld [vmem:[#allocation9 + $0x1a0] sm:$0xff] }
 0x169   : > { %v2317_v54 = vsel %vm2137_vm3, %v2312_v4, %v2316_v30  ;;  %v1304_v7 = vshrl.u32 %v1066_v46, 16  ;;  %v1307_v15 = vshll.u32 %v1066_v46, 16  ;;  %v11510_v26 = vpack.c.b16 %v1728_v27, %v1728_v27  ;;  %2993 = vmatmul.bf16.gmra.mxu2 %v2365_v59  ;;  %4022 = vmatpush.bf16.msra.mxu0 %v10182_v21 }
 0x16a   : > { %3161 = vmatmul.bf16.gmra.mxu0 %v2317_v54  ;;  %v1313_v39 = vshrl.u32 %v1067_v0, 16  ;;  %v1316_v23 = vshll.u32 %v1067_v0, 16  ;;  %v2010_v22 = vunpack.c.l.b16 %v1626_v56  ;;  %v2393_v43 = vshll.u32 %v10089_v25, 16 }
 0x16b   : > { %v1306_v45 = vrot.slane %v1304_v7, 7  ;;  %v2369_v49 = vshll.u32 %v10104_v13, 16  ;;  %v2345_v51 = vshll.u32 %v10119_v58, 16  ;;  %v11514_v5 = vpack.c.b16 %v1869_v6, %v1869_v6 }
 0x16c   : > { %v11512_v55 = vrot.slane %v1313_v39, 7  ;;  %v11516_v19 = vpack.c.b16 %v2010_v22, %v2010_v22  ;;  %v860_v29 = vadd.f32 %v11392_v8, %v859_v14  ;;  %v2395_v30 = vrot.slane %v2393_v43, 1 }
 0x16d   : > { %3077 = vmatmul.bf16.gmra.mxu3 %v2341_v48  ;;  %v1309_v60 = vor.u32 %v1307_v15, %v1306_v45  ;;  %v1311_v62 = vrot.slane %v1306_v45, 4  ;;  %v2347_v24 = vrot.slane %v2345_v51, 1  ;;  %v2398_v46 = vshll.u32 %v11510_v26, 16  ;;  %v1538_v21 = vld [vmem:[#allocation2 + $0x68] sm:$0x1] }
 0x16e   : > { %14061 = vst [vmem:[#allocation26_spill] sm:$0xff] %v11516_v19  ;;  %v1318_v61 = vor.u32 %v1316_v23, %v11512_v55  ;;  %v2350_v4 = vshll.u32 %v11516_v19, 16  ;;  %v946_v27 = vadd.f32 %v11496_v31, %v857_v12  ;;  %v2371_v0 = vrot.slane %v2369_v49, 1  ;;  %v861_v22 = vpop.f32.mrf.mxu2 }
 0x16f   : > { %v1310_v63 = vsel %vm11174_vm7, %v1302_v20, %v1309_v60  ;;  %v1496_v3 = vsel %vm11181_vm8, %v1311_v62, %v1495_v40  ;;  %v2374_v20 = vshll.u32 %v11514_v5, 16  ;;  %v2343_v56 = vshrl.u32 %v10119_v58, 16  ;;  %v1629_v40 = vld [vmem:[#allocation2 + $0x68] sm:$0x1]  ;;  %v950_v60 = vpop.f32.mrf.mxu3 }
 0x170   : > { %1494 = vst [vmem:[#allocation2 + $0xac] sm:$0xf] %v1310_v63  ;;  %v1499_v9 = vsel %vm11081_vm2, %v1318_v61, %v1498_v41  ;;  %v949_v54 = vadd.f32 %v948_v47, %v860_v29  ;;  %v2391_v7 = vshrl.u32 %v10089_v25, 16  ;;  %v982_v15 = vmax.f32 %v946_v27, 0.0  ;;  %v10120_v47 = vld [vmem:[#allocation2 + $0x60] sm:$0xff] }
 0x171   : > { %1497 = vst [vmem:[#allocation2 + $0xb0] sm:$0x1] %v1496_v3  ;;  %v2367_v6 = vshrl.u32 %v10104_v13, 16  ;;  %v2348_v59 = vor.u32 %v2347_v24, %v2343_v56  ;;  %v2352_v48 = vrot.slane %v2350_v4, 1  ;;  %v2400_v14 = vrot.slane %v2398_v46, 1  ;;  %v10090_v27 = vld [vmem:[#allocation2 + $0x60] sm:$0xff] }
 0x172   : > { %1500 = vst [vmem:[#allocation2 + $0xb4] sm:$0xf] %v1499_v9  ;;  %v983_v39 = vmax.f32 %v949_v54, 0.0  ;;  %v2396_v23 = vor.u32 %v2395_v30, %v2391_v7  ;;  %v1068_v45 = vpack.c.bf16 %v982_v15, %v982_v15  ;;  %v2376_v12 = vrot.slane %v2374_v20, 1  ;;  %v1583_v25 = vld [vmem:[#allocation2 + $0x68] sm:$0x1] }
 0x173   : > { %v2372_v31 = vor.u32 %v2371_v0, %v2367_v6  ;;  %v862_v43 = vadd.f32 %v11392_v8, %v861_v22  ;;  %v2353_v13 = vsel %vm2137_vm3, %v2348_v59, %v2352_v48  ;;  %v2013_v61 = vunpack.c.l.b16 %v1629_v40  ;;  %v1502_v8 = vld [vmem:[#allocation2 + $0xbc] sm:$0x1]  ;;  %v1505_v0 = vld [vmem:[#allocation2 + $0xc0] sm:$0xf] }
 0x174   : > { %v1069_v49 = vpack.c.bf16 %v983_v39, %v983_v39  ;;  %v1321_v58 = vshrl.u32 %v1068_v45, 16  ;;  %v1324_v51 = vshll.u32 %v1068_v45, 16  ;;  %v1319_v24 = vrot.slane %v11512_v55, 4  ;;  %v10105_v56 = vld [vmem:[#allocation2 + $0x60] sm:$0xff]  ;;  %v11541_v39 = vpop.f32.mrf.mxu1 }
 0x175   : > { %v2401_v3 = vsel %vm2137_vm3, %v2396_v23, %v2400_v14  ;;  %v2377_v4 = vsel %vm2137_vm3, %v2372_v31, %v2376_v12  ;;  %v951_v9 = vadd.f32 %v950_v60, %v862_v43  ;;  %v1731_v20 = vunpack.c.l.b16 %v1538_v21  ;;  %3414 = vmatmul.bf16.gmra.mxu1 %v10090_v27 }
 0x176   : > { %v1330_v62 = vshrl.u32 %v1069_v49, 16  ;;  %v1333_v41 = vshll.u32 %v1069_v49, 16  ;;  %v1323_v63 = vrot.slane %v1321_v58, 7  ;;  %v1872_v54 = vunpack.c.l.b16 %v1583_v25 }
 0x177   : > { %v11535_v15 = vpack.c.b16 %v2013_v61, %v2013_v61  ;;  %v2381_v55 = vshll.u32 %v10120_v47, 16  ;;  %v984_v6 = vmax.f32 %v951_v9, 0.0  ;;  %v11545_v45 = vpack.c.b16 %v1731_v20, %v1731_v20 }
 0x178   : > { %v1332_v29 = vrot.slane %v1330_v62, 7  ;;  %v1326_v30 = vor.u32 %v1324_v51, %v1323_v63  ;;  %v1328_v46 = vrot.slane %v1323_v63, 4  ;;  %v2429_v22 = vshll.u32 %v10090_v27, 16  ;;  %v10149_v62 = vld [vmem:[#allocation9 + $0x98] sm:$0xff] }
 0x179   : > { %14062 = vst [vmem:[#allocation27_spill] sm:$0xff] %v11535_v15  ;;  %2998 = vmatmul.bf16.gmra.mxu2 %v2401_v3  ;;  %v1070_v14 = vpack.c.bf16 %v984_v6, %v984_v6  ;;  %v11547_v40 = vpack.c.b16 %v1872_v54, %v1872_v54  ;;  %v2405_v31 = vshll.u32 %v10105_v56, 16  ;;  %v2383_v12 = vrot.slane %v2381_v55, 1  ;;  %3548 = vmatpush.bf16.msra.mxu3 %v10149_v62 }
 0x17a   : > { %3166 = vmatmul.bf16.gmra.mxu0 %v2353_v13  ;;  %v1335_v7 = vor.u32 %v1333_v41, %v1332_v29  ;;  %v1327_v59 = vsel %vm11174_vm7, %v1319_v24, %v1326_v30  ;;  %v1503_v48 = vsel %vm11181_vm8, %v1328_v46, %v1502_v8  ;;  %v2386_v43 = vshll.u32 %v11535_v15, 16  ;;  %v1509_v24 = vld [vmem:[#allocation2 + $0xc8] sm:$0x1] }
 0x17b   : > { %1501 = vst [vmem:[#allocation2 + $0xb8] sm:$0xf] %v1327_v59  ;;  %v1338_v49 = vshrl.u32 %v1070_v14, 16  ;;  %v1341_v58 = vshll.u32 %v1070_v14, 16  ;;  %v1336_v51 = vrot.slane %v1332_v29, 4  ;;  %v2379_v60 = vshrl.u32 %v10120_v47, 16 }
 0x17c   : > { %v1506_v23 = vsel %vm11081_vm2, %v1335_v7, %v1505_v0  ;;  %1504 = vst [vmem:[#allocation2 + $0xbc] sm:$0x1] %v1503_v48  ;;  %v2431_v41 = vrot.slane %v2429_v22, 1  ;;  %v2434_v21 = vshll.u32 %v11545_v45, 16  ;;  %v2407_v25 = vrot.slane %v2405_v31, 1  ;;  %v11556_v55 = vpop.f32.mrf.mxu1  ;;  %v2964_v22 = vpop.f32.mrf.mxu2  ;;  %v11561_v31 = vld [vmem:[#allocation2 + $0x6c] sm:$0xff] }
 0x17d   : > { %3082 = vmatmul.bf16.gmra.mxu3 %v2377_v4  ;;  %1507 = vst [vmem:[#allocation2 + $0xc0] sm:$0xf] %v1506_v23  ;;  %v1340_v13 = vrot.slane %v1338_v49, 7  ;;  %v2410_v61 = vshll.u32 %v11547_v40, 16  ;;  %v2384_v63 = vor.u32 %v2383_v12, %v2379_v60  ;;  %v2388_v3 = vrot.slane %v2386_v43, 1  ;;  %v10106_v43 = vld [vmem:[#allocation2 + $0x6c] sm:$0xff] }
 0x17e   : > { %v2427_v9 = vshrl.u32 %v10090_v27, 16  ;;  %v2403_v30 = vshrl.u32 %v10105_v56, 16  ;;  %v2436_v0 = vrot.slane %v2434_v21, 1  ;;  %v1632_v7 = vld [vmem:[#allocation2 + $0x74] sm:$0x1]  ;;  %v10121_v56 = vld [vmem:[#allocation2 + $0x6c] sm:$0xff] }
 0x17f   : > { %v1343_v4 = vor.u32 %v1341_v58, %v1340_v13  ;;  %v1345_v8 = vrot.slane %v1340_v13, 4  ;;  %v2412_v54 = vrot.slane %v2410_v61, 1  ;;  %v2389_v6 = vsel %vm2137_vm3, %v2384_v63, %v2388_v3  ;;  %v1541_v59 = vld [vmem:[#allocation2 + $0x74] sm:$0x1]  ;;  %v10181_v60 = vld [vmem:[#allocation9 + $0x198] sm:$0xff] }
 0x180   : > { %v2432_v46 = vor.u32 %v2431_v41, %v2427_v9  ;;  %v2408_v20 = vor.u32 %v2407_v25, %v2403_v30  ;;  %v1586_v27 = vld [vmem:[#allocation2 + $0x74] sm:$0x1]  ;;  %v2016_v48 = vunpack.c.l.b16 %v1632_v7  ;;  %v1734_v12 = vunpack.c.l.b16 %v1541_v59  ;;  %4023 = vmatpush.bf16.msra.mxu0 %v10181_v60 }
 0x181   : > { %v1344_v47 = vsel %vm11174_vm7, %v1336_v51, %v1343_v4  ;;  %v1510_v29 = vsel %vm11181_vm8, %v1345_v8, %v1509_v24  ;;  %v1875_v49 = vunpack.c.l.b16 %v1586_v27  ;;  %v2417_v51 = vshll.u32 %v10121_v56, 16  ;;  %v1544_v27 = vld [vmem:[#allocation2 + $0x80] sm:$0x1] }
 0x182   : > { %1508 = vst [vmem:[#allocation2 + $0xc4] sm:$0xf] %v1344_v47  ;;  %v2437_v23 = vsel %vm2137_vm3, %v2432_v46, %v2436_v0  ;;  %v2413_v14 = vsel %vm2137_vm3, %v2408_v20, %v2412_v54  ;;  %v11563_v58 = vpack.c.b16 %v2016_v48, %v2016_v48  ;;  %v11565_v13 = vpack.c.b16 %v1734_v12, %v1734_v12  ;;  %v1635_v20 = vld [vmem:[#allocation2 + $0x80] sm:$0x1] }
 0x183   : > { %1511 = vst [vmem:[#allocation2 + $0xc8] sm:$0x1] %v1510_v29  ;;  %v2465_v62 = vshll.u32 %v11561_v31, 16  ;;  %v11568_v41 = vpack.c.b16 %v1875_v49, %v1875_v49  ;;  %v2441_v21 = vshll.u32 %v10106_v43, 16  ;;  %v2415_v61 = vshrl.u32 %v10121_v56, 16  ;;  %v11580_v49 = vld [vmem:[#allocation2 + $0x78] sm:$0xff] }
 0x184   : > { %14063 = vst [vmem:[#allocation28_spill] sm:$0xff] %v11563_v58  ;;  %v11570_v25 = vpop.f32.mrf.mxu1  ;;  %v2419_v24 = vrot.slane %v2417_v51, 1  ;;  %v2422_v63 = vshll.u32 %v11563_v58, 16  ;;  %v2463_v3 = vshrl.u32 %v11561_v31, 16  ;;  %v2439_v4 = vshrl.u32 %v10106_v43, 16  ;;  %v2966_v0 = vpop.f32.mrf.mxu2  ;;  %v10145_v43 = vld [vmem:[#allocation9 + $0x78] sm:$0xff] }
 0x185   : > { %3419 = vmatmul.bf16.gmra.mxu1 %v11561_v31  ;;  %v2467_v8 = vrot.slane %v2465_v62, 1  ;;  %v2470_v9 = vshll.u32 %v11565_v13, 16  ;;  %v2443_v30 = vrot.slane %v2441_v21, 1  ;;  %v2446_v47 = vshll.u32 %v11568_v41, 16  ;;  %3455 = vmatpush.bf16.msra.mxu2 %v10145_v43  ;;  %v10107_v21 = vld [vmem:[#allocation2 + $0x78] sm:$0xff] }
 0x186   : > { %v2420_v29 = vor.u32 %v2419_v24, %v2415_v61  ;;  %v2424_v46 = vrot.slane %v2422_v63, 1  ;;  %v2019_v12 = vunpack.c.l.b16 %v1635_v20  ;;  %v1737_v51 = vunpack.c.l.b16 %v1544_v27 }
 0x187   : > { %v2468_v54 = vor.u32 %v2467_v8, %v2463_v3  ;;  %v2472_v7 = vrot.slane %v2470_v9, 1  ;;  %v2448_v59 = vrot.slane %v2446_v47, 1  ;;  %v2477_v47 = vshll.u32 %v10107_v21, 16 }
 0x188   : > { %v2425_v48 = vsel %vm2137_vm3, %v2420_v29, %v2424_v46  ;;  %v11584_v24 = vpack.c.b16 %v2019_v12, %v2019_v12  ;;  %v11586_v3 = vpack.c.b16 %v1737_v51, %v1737_v51  ;;  %v3715_v58 = vrot.slane %v11561_v31, 1 }
 0x189   : > { %3003 = vmatmul.bf16.gmra.mxu2 %v2437_v23  ;;  %v1589_v23 = vld [vmem:[#allocation2 + $0x80] sm:$0x1]  ;;  %v2473_v60 = vsel %vm2137_vm3, %v2468_v54, %v2472_v7  ;;  %v2479_v51 = vrot.slane %v2477_v47, 1  ;;  %v3724_v34 = vrot.slane %v11580_v49, 1 }
 0x18a   : > { %3171 = vmatmul.bf16.gmra.mxu0 %v2389_v6  ;;  %v2444_v6 = vor.u32 %v2443_v30, %v2439_v4  ;;  %v1878_v61 = vunpack.c.l.b16 %v1589_v23  ;;  %14064 = vst [vmem:[#allocation29_spill] sm:$0xff] %v11584_v24  ;;  %v2501_v4 = vshll.u32 %v11580_v49, 16  ;;  %v2458_v7 = vshll.u32 %v11584_v24, 16  ;;  %v1547_v24 = vld [vmem:[#allocation2 + $0x8c] sm:$0x1] }
 0x18b   : > { %v2506_v12 = vshll.u32 %v11586_v3, 16 }
 0x18c   : > { %v11577_v56 = vpop.f32.mrf.mxu1  ;;  %v2449_v62 = vsel %vm2137_vm3, %v2444_v6, %v2448_v59  ;;  %v11591_v30 = vpack.c.b16 %v1878_v61, %v1878_v61  ;;  %v10193_v6 = vld [vmem:[#allocation9 + $0x1f8] sm:$0xff]  ;;  %v10148_v59 = vld [vmem:[#allocation9 + $0x90] sm:$0xff]  ;;  %v2503_v23 = vrot.slane %v2501_v4, 1 }
 0x18d   : > { %3087 = vmatmul.bf16.gmra.mxu3 %v2413_v14  ;;  %v10122_v14 = vld [vmem:[#allocation2 + $0x78] sm:$0xff]  ;;  %4108 = vmatpush.bf16.msra.mxu1 %v10193_v6  ;;  %v1638_v61 = vld [vmem:[#allocation2 + $0x8c] sm:$0x1] }
 0x18e   : > { %v2453_v63 = vshll.u32 %v10122_v14, 16  ;;  %v2451_v20 = vshrl.u32 %v10122_v14, 16  ;;  %3549 = vmatpush.bf16.msra.mxu3 %v10148_v59  ;;  %v2482_v14 = vshll.u32 %v11591_v30, 16  ;;  %v2022_v47 = vunpack.c.l.b16 %v1638_v61 }
 0x190   : > { %v2455_v54 = vrot.slane %v2453_v63, 1  ;;  %v2484_v10 = vrot.slane %v2482_v14, 1  ;;  %v11616_v31 = vpack.c.b16 %v2022_v47, %v2022_v47  ;;  %v10180_v14 = vld [vmem:[#allocation9 + $0x190] sm:$0xff] }
 0x191   : > { %4024 = vmatpush.bf16.msra.mxu0 %v10180_v14 }
 0x192   : > { %14065 = vst [vmem:[#allocation30_spill] sm:$0xff] %v11616_v31 }
 0x194   : > { %v11593_v46 = vpop.f32.mrf.mxu1 }
 0x195   : > { %3424 = vmatmul.bf16.gmra.mxu1 %v11580_v49 }
 0x199   : > { %3008 = vmatmul.bf16.gmra.mxu2 %v2473_v60  ;;  %v11589_v8 = vpop.f32.mrf.mxu2  ;;  %v2456_v60 = vor.u32 %v2455_v54, %v2451_v20  ;;  %v3716_v20 = vrot.slane %v11565_v13, 1 }
 0x19a   : > { %3176 = vmatmul.bf16.gmra.mxu0 %v2425_v48  ;;  %v2499_v48 = vshrl.u32 %v11580_v49, 16 }
 0x19c   : > { %v2504_v63 = vor.u32 %v2503_v23, %v2499_v48  ;;  %v11602_v59 = vpop.f32.mrf.mxu1  ;;  %v11608_v48 = vld [vmem:[#allocation2 + $0x84] sm:$0xff]  ;;  %v1740_v23 = vunpack.c.l.b16 %v1547_v24 }
 0x19d   : > { %3092 = vmatmul.bf16.gmra.mxu3 %v2449_v62  ;;  %v2460_v62 = vrot.slane %v2458_v7, 1  ;;  %v2535_v47 = vshrl.u32 %v11608_v48, 16 }
 0x19e   : > { %v11619_v61 = vpack.c.b16 %v1740_v23, %v1740_v23 }
 0x1a0   : > { %v3053_v9 = vpop.f32.mrf.mxu3  ;;  %v2542_v23 = vshll.u32 %v11619_v61, 16 }
 0x1a1   : > { %v3054_v29 = vadd.f32 %v3053_v9, %v2964_v22  ;;  %v2475_v22 = vshrl.u32 %v10107_v21, 16  ;;  %v2508_v9 = vrot.slane %v2506_v12, 1  ;;  %v2971_v33 = vpop.f32.mrf.mxu2  ;;  %v10123_v21 = vld [vmem:[#allocation2 + $0x84] sm:$0xff] }
 0x1a2   : > { %v10108_v12 = vld [vmem:[#allocation2 + $0x84] sm:$0xff]  ;;  %v2489_v13 = vshll.u32 %v10123_v21, 16  ;;  %v2544_v15 = vrot.slane %v2542_v23, 1 }
 0x1a3   : > { %v3142_v27 = vpop.f32.mrf.mxu0  ;;  %v2480_v4 = vor.u32 %v2479_v51, %v2475_v22  ;;  %v2509_v54 = vsel %vm2137_vm3, %v2504_v63, %v2508_v9  ;;  %v11614_v51 = vsel %vm3633_vm9, %v3715_v58, %v3716_v20  ;;  %v2513_v63 = vshll.u32 %v10108_v12, 16 }
 0x1a4   : > { %v11599_v43 = vadd.f32 %v3142_v27, %v3054_v29  ;;  %v2461_v29 = vsel %vm2137_vm3, %v2456_v60, %v2460_v62  ;;  %v1592_v27 = vld [vmem:[#allocation2 + $0x8c] sm:$0x1]  ;;  %v2537_v60 = vshll.u32 %v11608_v48, 16  ;;  %v11624_v58 = vpop.f32.mrf.mxu1 }
 0x1a5   : > { %v1881_v22 = vunpack.c.l.b16 %v1592_v27  ;;  %14066 = vst [vmem:[#allocation31_spill] sm:$0xff] %v11624_v58  ;;  %3429 = vmatmul.bf16.gmra.mxu1 %v11608_v48 }
 0x1a6   : > { %v2539_v20 = vrot.slane %v2537_v60, 1 }
 0x1a8   : > { %v3055_v28 = vpop.f32.mrf.mxu3 }
 0x1a9   : > { %v3056_v6 = vadd.f32 %v3055_v28, %v2966_v0  ;;  %v2485_v28 = vsel %vm2137_vm3, %v2480_v4, %v2484_v10  ;;  %3013 = vmatmul.bf16.gmra.mxu2 %v2509_v54  ;;  %v11621_v10 = vpack.c.b16 %v1881_v22, %v1881_v22  ;;  %v2487_v4 = vshrl.u32 %v10123_v21, 16  ;;  %v1641_v21 = vld [vmem:[#allocation2 + $0x98] sm:$0x1] }
 0x1aa   : > { %3181 = vmatmul.bf16.gmra.mxu0 %v2461_v29  ;;  %v2974_v24 = vpop.f32.mrf.mxu2  ;;  %v2494_v29 = vshll.u32 %v11616_v31, 16  ;;  %v2511_v54 = vshrl.u32 %v10108_v12, 16  ;;  %v1550_v12 = vld [vmem:[#allocation2 + $0x98] sm:$0x1] }
 0x1ab   : > { %v3144_v7 = vpop.f32.mrf.mxu0  ;;  %v1743_v23 = vunpack.c.l.b16 %v1550_v12 }
 0x1ac   : > { %v11611_v0 = vadd.f32 %v3144_v7, %v3056_v6  ;;  %v2491_v6 = vrot.slane %v2489_v13, 1  ;;  %v2496_v14 = vrot.slane %v2494_v29, 1  ;;  %v2540_v13 = vor.u32 %v2539_v20, %v2535_v47  ;;  %v10094_v20 = vld [vmem:[#allocation2 + $0x90] sm:$0xff] }
 0x1ad   : > { %3097 = vmatmul.bf16.gmra.mxu3 %v2485_v28  ;;  %v2515_v28 = vrot.slane %v2513_v63, 1  ;;  %v3725_v29 = vrot.slane %v11586_v3, 1  ;;  %v2525_v3 = vshll.u32 %v10124_v38, 16 }
 0x1ae   : > { %v2492_v22 = vor.u32 %v2491_v6, %v2487_v4  ;;  %v2025_v4 = vunpack.c.l.b16 %v1641_v21  ;;  %v10144_v6 = vld [vmem:[#allocation9 + $0x70] sm:$0xff] }
 0x1af   : > { %v2516_v19 = vor.u32 %v2515_v28, %v2511_v54  ;;  %3456 = vmatpush.bf16.msra.mxu2 %v10144_v6  ;;  %v11641_v54 = vsel %vm3633_vm9, %v3724_v34, %v3725_v29  ;;  %v10109_v28 = vld [vmem:[#allocation2 + $0x90] sm:$0xff]  ;;  %v10192_v6 = vld [vmem:[#allocation9 + $0x1f0] sm:$0xff]  ;;  %v2571_v29 = vshrl.u32 %v10094_v20, 16 }
 0x1b0   : > { %v3058_v62 = vpop.f32.mrf.mxu3  ;;  %v2497_v63 = vsel %vm2137_vm3, %v2492_v22, %v2496_v14  ;;  %14068 = vst [vmem:[#allocation33_spill] sm:$0xff] %v11641_v54  ;;  %v11647_v22 = vpack.c.b16 %v2025_v4, %v2025_v4  ;;  %v2573_v14 = vshll.u32 %v10094_v20, 16  ;;  %v10147_v4 = vld [vmem:[#allocation9 + $0x88] sm:$0xff]  ;;  %4109 = vmatpush.bf16.msra.mxu1 %v10192_v6 }
 0x1b1   : > { %v3059_v9 = vadd.f32 %v3058_v62, %v11589_v8  ;;  %v2518_v8 = vshll.u32 %v11621_v10, 16  ;;  %3550 = vmatpush.bf16.msra.mxu3 %v10147_v4 }
 0x1b2   : > { %v11633_v62 = vpop.f32.mrf.mxu2  ;;  %14069 = vst [vmem:[#allocation34_spill] sm:$0xff] %v11647_v22 }
 0x1b3   : > { %v3147_v27 = vpop.f32.mrf.mxu0  ;;  %v2520_v60 = vrot.slane %v2518_v8, 1  ;;  %v1884_v8 = vunpack.c.l.b16 %v1595_v35  ;;  %v2530_v35 = vshll.u32 %v11647_v22, 16 }
 0x1b4   : > { %v11629_v7 = vadd.f32 %v3147_v27, %v3059_v9  ;;  %v11636_v27 = vpop.f32.mrf.mxu1 }
 0x1b5   : > { %14067 = vst [vmem:[#allocation32_spill] sm:$0xff] %v11636_v27  ;;  %v2521_v49 = vsel %vm2137_vm3, %v2516_v19, %v2520_v60  ;;  %v11653_v34 = vpack.c.b16 %v1884_v8, %v1884_v8  ;;  %v2523_v60 = vshrl.u32 %v10124_v38, 16  ;;  %3434 = vmatmul.bf16.gmra.mxu1 %v10094_v20  ;;  %v2532_v44 = vrot.slane %v2530_v35, 1  ;;  %v1601_v27 = vld [vmem:[#allocation2 + $0xb0] sm:$0x1] }
 0x1b6   : > { %v3733_v20 = vrot.slane %v11608_v48, 1 }
 0x1b7   : > { %v2554_v8 = vshll.u32 %v11653_v34, 16 }
 0x1b8   : > { %v3060_v31 = vpop.f32.mrf.mxu3 }
 0x1b9   : > { %v3061_v9 = vadd.f32 %v3060_v31, %v2971_v33  ;;  %v2545_v33 = vsel %vm2137_vm3, %v2540_v13, %v2544_v15  ;;  %v2549_v15 = vshll.u32 %v10109_v28, 16  ;;  %v2556_v4 = vrot.slane %v2554_v8, 1 }
 0x1ba   : > { %3186 = vmatmul.bf16.gmra.mxu0 %v2497_v63  ;;  %3018 = vmatmul.bf16.gmra.mxu2 %v2545_v33  ;;  %v11649_v21 = vpop.f32.mrf.mxu2  ;;  %v11651_v63 = vpack.c.b16 %v1743_v23, %v1743_v23  ;;  %v2547_v33 = vshrl.u32 %v10109_v28, 16 }
 0x1bb   : > { %v3149_v47 = vpop.f32.mrf.mxu0 }
 0x1bc   : > { %v11645_v31 = vadd.f32 %v3149_v47, %v3061_v9  ;;  %14070 = vst [vmem:[#allocation35_spill] sm:$0xff] %v11651_v63  ;;  %v11655_v19 = vpop.f32.mrf.mxu1  ;;  %v2527_v9 = vrot.slane %v2525_v3, 1  ;;  %v2575_v47 = vrot.slane %v2573_v14, 1  ;;  %v2578_v23 = vshll.u32 %v11651_v63, 16  ;;  %v1644_v3 = vld [vmem:[#allocation2 + $0xa4] sm:$0x1] }
 0x1bd   : > { %3102 = vmatmul.bf16.gmra.mxu3 %v2521_v49  ;;  %14071 = vst [vmem:[#allocation36_spill] sm:$0xff] %v11655_v19  ;;  %v2551_v49 = vrot.slane %v2549_v15, 1  ;;  %v2028_v35 = vunpack.c.l.b16 %v1644_v3 }
 0x1be   : > { %v2576_v22 = vor.u32 %v2575_v47, %v2571_v29  ;;  %v2580_v14 = vrot.slane %v2578_v23, 1  ;;  %v3734_v29 = vrot.slane %v11619_v61, 1  ;;  %v10095_v47 = vld [vmem:[#allocation2 + $0x9c] sm:$0xff] }
 0x1bf   : > { %v2552_v6 = vor.u32 %v2551_v49, %v2547_v33  ;;  %v11677_v8 = vpack.c.b16 %v2028_v35, %v2028_v35  ;;  %v10179_v61 = vld [vmem:[#allocation9 + $0x188] sm:$0xff]  ;;  %v2609_v3 = vshll.u32 %v10095_v47, 16 }
 0x1c0   : > { %v3063_v12 = vpop.f32.mrf.mxu3  ;;  %v11671_v23 = vsel %vm3633_vm9, %v3733_v20, %v3734_v29  ;;  %v2581_v33 = vsel %vm2137_vm3, %v2576_v22, %v2580_v14  ;;  %4025 = vmatpush.bf16.msra.mxu0 %v10179_v61 }
 0x1c1   : > { %v3064_v13 = vadd.f32 %v3063_v12, %v2974_v24  ;;  %v2528_v12 = vor.u32 %v2527_v9, %v2523_v60  ;;  %v1553_v60 = vld [vmem:[#allocation2 + $0xa4] sm:$0x1]  ;;  %14073 = vst [vmem:[#allocation38_spill] sm:$0xff] %v11671_v23  ;;  %v2557_v48 = vsel %vm2137_vm3, %v2552_v6, %v2556_v4  ;;  %v10143_v23 = vld [vmem:[#allocation9 + $0x68] sm:$0xff] }
 0x1c2   : > { %v11662_v2 = vpop.f32.mrf.mxu2  ;;  %v1598_v9 = vld [vmem:[#allocation2 + $0xa4] sm:$0x1]  ;;  %14075 = vst [vmem:[#allocation40_spill] sm:$0xff] %v11677_v8  ;;  %3457 = vmatpush.bf16.msra.mxu2 %v10143_v23 }
 0x1c3   : > { %v2533_v63 = vsel %vm2137_vm3, %v2528_v12, %v2532_v44  ;;  %v1887_v49 = vunpack.c.l.b16 %v1598_v9 }
 0x1c4   : > { %v11666_v15 = vpop.f32.mrf.mxu1 }
 0x1c5   : > { %v3152_v24 = vpop.f32.mrf.mxu0  ;;  %14072 = vst [vmem:[#allocation37_spill] sm:$0xff] %v11666_v15  ;;  %v11685_v4 = vpack.c.b16 %v1887_v49, %v1887_v49  ;;  %3439 = vmatmul.bf16.gmra.mxu1 %v10095_v47 }
 0x1c6   : > { %v11660_v38 = vadd.f32 %v3152_v24, %v3064_v13  ;;  %v10125_v13 = vld [vmem:[#allocation2 + $0x9c] sm:$0xff] }
 0x1c7   : > { %v2561_v24 = vshll.u32 %v10125_v13, 16  ;;  %14077 = vst [vmem:[#allocation42_spill] sm:$0xff] %v11685_v4  ;;  %v2559_v35 = vshrl.u32 %v10125_v13, 16 }
 0x1c8   : > { %v3065_v19 = vpop.f32.mrf.mxu3 }
 0x1c9   : > { %v3066_v28 = vadd.f32 %v3065_v19, %v11633_v62  ;;  %v1746_v62 = vunpack.c.l.b16 %v1553_v60  ;;  %v11675_v19 = vld [vmem:[#allocation2 + $0x9c] sm:$0xff]  ;;  %v2563_v29 = vrot.slane %v2561_v24, 1  ;;  %v1647_v24 = vld [vmem:[#allocation2 + $0xb0] sm:$0x1] }
 0x1ca   : > { %3191 = vmatmul.bf16.gmra.mxu0 %v2533_v63  ;;  %14074 = vst [vmem:[#allocation39_spill] sm:$0xff] %v11675_v19  ;;  %3023 = vmatmul.bf16.gmra.mxu2 %v2581_v33  ;;  %v10191_v63 = vld [vmem:[#allocation9 + $0x1e8] sm:$0xff]  ;;  %v11681_v22 = vpop.f32.mrf.mxu2  ;;  %v2585_v20 = vshll.u32 %v11675_v19, 16  ;;  %v10190_v33 = vld [vmem:[#allocation9 + $0x1e0] sm:$0xff]  ;;  %v2583_v49 = vshrl.u32 %v11675_v19, 16  ;;  %v2031_v23 = vunpack.c.l.b16 %v1647_v24 }
 0x1cb   : > { %4110 = vmatpush.bf16.msra.mxu1 %v10191_v63  ;;  %v11683_v6 = vpack.c.b16 %v1746_v62, %v1746_v62  ;;  %v2590_v63 = vshll.u32 %v11685_v4, 16 }
 0x1cc   : > { %v11689_v9 = vpop.f32.mrf.mxu1  ;;  %v2587_v61 = vrot.slane %v2585_v20, 1  ;;  %v1556_v20 = vld [vmem:[#allocation2 + $0xb0] sm:$0x1] }
 0x1cd   : > { %3107 = vmatmul.bf16.gmra.mxu3 %v2557_v48  ;;  %v3154_v44 = vpop.f32.mrf.mxu0  ;;  %14076 = vst [vmem:[#allocation41_spill] sm:$0xff] %v11683_v6  ;;  %v2607_v48 = vshrl.u32 %v10095_v47, 16  ;;  %v2614_v62 = vshll.u32 %v11683_v6, 16  ;;  %v2592_v54 = vrot.slane %v2590_v63, 1  ;;  %v10141_v63 = vld [vmem:[#allocation9 + $0x58] sm:$0xff] }
 0x1ce   : > { %v11679_v12 = vadd.f32 %v3154_v44, %v3066_v28  ;;  %14078 = vst [vmem:[#allocation43_spill] sm:$0xff] %v11689_v9  ;;  %v2566_v28 = vshll.u32 %v11677_v8, 16  ;;  %v2611_v44 = vrot.slane %v2609_v3, 1  ;;  %v2588_v15 = vor.u32 %v2587_v61, %v2583_v49  ;;  %v11707_v49 = vld [vmem:[#allocation2 + $0xa8] sm:$0xff] }
 0x1cf   : > { %4111 = vmatpush.bf16.msra.mxu1 %v10190_v33  ;;  %v2616_v6 = vrot.slane %v2614_v62, 1  ;;  %v1749_v62 = vunpack.c.l.b16 %v1556_v20  ;;  %14081 = vst [vmem:[#allocation46_spill] sm:$0xff] %v11707_v49 }
 0x1d0   : > { %v3068_v14 = vpop.f32.mrf.mxu3  ;;  %v2568_v9 = vrot.slane %v2566_v28, 1  ;;  %v2612_v33 = vor.u32 %v2611_v44, %v2607_v48  ;;  %v10188_v28 = vld [vmem:[#allocation9 + $0x1d0] sm:$0xff]  ;;  %v2593_v44 = vsel %vm2137_vm3, %v2588_v15, %v2592_v54 }
 0x1d1   : > { %v3069_v60 = vadd.f32 %v3068_v14, %v11649_v21  ;;  %v10189_v21 = vld [vmem:[#allocation9 + $0x1d8] sm:$0xff]  ;;  %v2564_v14 = vor.u32 %v2563_v29, %v2559_v35  ;;  %v11716_v15 = vpack.c.b16 %v1749_v62, %v1749_v62  ;;  %v10139_v62 = vld [vmem:[#allocation9 + $0x48] sm:$0xff] }
 0x1d2   : > { %v11697_v3 = vpop.f32.mrf.mxu2  ;;  %v11703_v29 = vld [vmem:[#allocation2 + $0xa8] sm:$0xff]  ;;  %v2617_v48 = vsel %vm2137_vm3, %v2612_v33, %v2616_v6  ;;  %v2621_v33 = vshll.u32 %v11707_v49, 16 }
 0x1d3   : > { %4112 = vmatpush.bf16.msra.mxu1 %v10189_v21  ;;  %v2569_v35 = vsel %vm2137_vm3, %v2564_v14, %v2568_v9  ;;  %14080 = vst [vmem:[#allocation45_spill] sm:$0xff] %v11703_v29  ;;  %v10096_v21 = vld [vmem:[#allocation2 + $0xa8] sm:$0xff]  ;;  %v11709_v9 = vpack.c.b16 %v2031_v23, %v2031_v23  ;;  %v2597_v61 = vshll.u32 %v11703_v29, 16  ;;  %v10187_v14 = vld [vmem:[#allocation9 + $0x1c8] sm:$0xff]  ;;  %v2595_v23 = vshrl.u32 %v11703_v29, 16 }
 0x1d4   : > { %v11700_v19 = vpop.f32.mrf.mxu1  ;;  %14084 = vst [vmem:[#allocation49_spill] sm:$0xff] %v11716_v15 }
 0x1d5   : > { %14079 = vst [vmem:[#allocation44_spill] sm:$0xff] %v11700_v19  ;;  %3444 = vmatmul.bf16.gmra.mxu1 %v10096_v21 }
 0x1d6   : > { %v3157_v13 = vpop.f32.mrf.mxu0  ;;  %14082 = vst [vmem:[#allocation47_spill] sm:$0xff] %v11709_v9 }
 0x1d7   : > { %v11695_v8 = vadd.f32 %v3157_v13, %v3069_v60  ;;  %v10142_v60 = vld [vmem:[#allocation9 + $0x60] sm:$0xff]  ;;  %4113 = vmatpush.bf16.msra.mxu1 %v10188_v28  ;;  %v10140_v28 = vld [vmem:[#allocation9 + $0x50] sm:$0xff] }
 0x1d8   : > { %v3070_v47 = vpop.f32.mrf.mxu3  ;;  %3458 = vmatpush.bf16.msra.mxu2 %v10142_v60  ;;  %v2602_v60 = vshll.u32 %v11709_v9, 16  ;;  %v1650_v9 = vld [vmem:[#allocation2 + $0xbc] sm:$0x1] }
 0x1d9   : > { %v3071_v4 = vadd.f32 %v3070_v47, %v11662_v2  ;;  %v1890_v2 = vunpack.c.l.b16 %v1601_v27  ;;  %v2645_v47 = vshll.u32 %v10096_v21, 16 }
 0x1da   : > { %3196 = vmatmul.bf16.gmra.mxu0 %v2569_v35  ;;  %3028 = vmatmul.bf16.gmra.mxu2 %v2617_v48  ;;  %v10186_v48 = vld [vmem:[#allocation9 + $0x1c0] sm:$0xff] }
 0x1db   : > { %4114 = vmatpush.bf16.msra.mxu1 %v10187_v14  ;;  %v11714_v6 = vpop.f32.mrf.mxu2  ;;  %v11718_v27 = vpack.c.b16 %v1890_v2, %v1890_v2  ;;  %v2647_v14 = vrot.slane %v2645_v47, 1  ;;  %v2650_v2 = vshll.u32 %v11716_v15, 16  ;;  %v1559_v15 = vld [vmem:[#allocation2 + $0xbc] sm:$0x1] }
 0x1dc   : > { %3459 = vmatpush.bf16.msra.mxu2 %v10141_v63  ;;  %v11722_v35 = vpop.f32.mrf.mxu1  ;;  %v2643_v63 = vshrl.u32 %v10096_v21, 16 }
 0x1dd   : > { %3112 = vmatmul.bf16.gmra.mxu3 %v2593_v44  ;;  %14085 = vst [vmem:[#allocation50_spill] sm:$0xff] %v11718_v27  ;;  %v10146_v44 = vld [vmem:[#allocation9 + $0x80] sm:$0xff] }
 0x1de   : > { %v3159_v13 = vpop.f32.mrf.mxu0  ;;  %14086 = vst [vmem:[#allocation51_spill] sm:$0xff] %v11722_v35  ;;  %3551 = vmatpush.bf16.msra.mxu3 %v10146_v44  ;;  %v2604_v35 = vrot.slane %v2602_v60, 1  ;;  %v2648_v29 = vor.u32 %v2647_v14, %v2643_v63  ;;  %v2034_v60 = vunpack.c.l.b16 %v1650_v9  ;;  %v10138_v63 = vld [vmem:[#allocation9 + $0x40] sm:$0xff] }
 0x1df   : > { %v11712_v24 = vadd.f32 %v3159_v13, %v3071_v4  ;;  %v2599_v4 = vrot.slane %v2597_v61, 1  ;;  %4115 = vmatpush.bf16.msra.mxu1 %v10186_v48  ;;  %v2623_v13 = vrot.slane %v2621_v33, 1  ;;  %v2652_v48 = vrot.slane %v2650_v2, 1  ;;  %v10097_v14 = vld [vmem:[#allocation2 + $0xb4] sm:$0xff] }
 0x1e0   : > { %v3073_v54 = vpop.f32.mrf.mxu3  ;;  %3460 = vmatpush.bf16.msra.mxu2 %v10140_v28  ;;  %v11739_v2 = vld [vmem:[#allocation2 + $0xb4] sm:$0xff] }
 0x1e1   : > { %14083 = vst [vmem:[#allocation48_spill] sm:$0xff] %v11712_v24  ;;  %v3074_v20 = vadd.f32 %v3073_v54, %v11681_v22  ;;  %v2619_v22 = vshrl.u32 %v11707_v49, 16  ;;  %v2626_v54 = vshll.u32 %v11718_v27, 16  ;;  %v2600_v61 = vor.u32 %v2599_v4, %v2595_v23  ;;  %v1604_v23 = vld [vmem:[#allocation2 + $0xbc] sm:$0x1]  ;;  %v11735_v4 = vld [vmem:[#allocation2 + $0xb4] sm:$0xff] }
 0x1e2   : > { %14089 = vst [vmem:[#allocation54_spill] sm:$0xff] %v11735_v4 }
 0x1e3   : > { %v2991_v24 = vpop.f32.mrf.mxu2  ;;  %v2624_v21 = vor.u32 %v2623_v13, %v2619_v22  ;;  %v2628_v58 = vrot.slane %v2626_v54, 1  ;;  %v2605_v44 = vsel %vm2137_vm3, %v2600_v61, %v2604_v35  ;;  %14090 = vst [vmem:[#allocation55_spill] sm:$0xff] %v11739_v2  ;;  %v11741_v22 = vpack.c.b16 %v2034_v60, %v2034_v60  ;;  %v10178_v13 = vld [vmem:[#allocation9 + $0x180] sm:$0xff] }
 0x1e4   : > { %3461 = vmatpush.bf16.msra.mxu2 %v10139_v62  ;;  %v11732_v33 = vpop.f32.mrf.mxu1  ;;  %v1752_v62 = vunpack.c.l.b16 %v1559_v15  ;;  %v2633_v35 = vshll.u32 %v11735_v4, 16  ;;  %v2681_v54 = vshll.u32 %v10097_v14, 16  ;;  %4026 = vmatpush.bf16.msra.mxu0 %v10178_v13  ;;  %v2657_v15 = vshll.u32 %v11739_v2, 16 }
 0x1e5   : > { %14088 = vst [vmem:[#allocation53_spill] sm:$0xff] %v11732_v33  ;;  %3449 = vmatmul.bf16.gmra.mxu1 %v10097_v14 }
 0x1e6   : > { %14091 = vst [vmem:[#allocation56_spill] sm:$0xff] %v11741_v22  ;;  %v2635_v60 = vrot.slane %v2633_v35, 1 }
 0x1e7   : > { %v3162_v19 = vpop.f32.mrf.mxu0 }
 0x1e8   : > { %v3075_v47 = vpop.f32.mrf.mxu3  ;;  %v11729_v28 = vadd.f32 %v3162_v19, %v3074_v20  ;;  %3462 = vmatpush.bf16.msra.mxu2 %v10138_v63  ;;  %v2653_v19 = vsel %vm2137_vm3, %v2648_v29, %v2652_v48  ;;  %v2629_v20 = vsel %vm2137_vm3, %v2624_v21, %v2628_v58  ;;  %v11746_v29 = vpack.c.b16 %v1752_v62, %v1752_v62 }
 0x1e9   : > { %v3076_v49 = vadd.f32 %v3075_v47, %v11697_v3  ;;  %v1893_v3 = vunpack.c.l.b16 %v1604_v23  ;;  %v2631_v23 = vshrl.u32 %v11735_v4, 16  ;;  %v2638_v63 = vshll.u32 %v11741_v22, 16 }
 0x1ea   : > { %14087 = vst [vmem:[#allocation52_spill] sm:$0xff] %v11729_v28  ;;  %3201 = vmatmul.bf16.gmra.mxu0 %v2605_v44  ;;  %3033 = vmatmul.bf16.gmra.mxu2 %v2653_v19  ;;  %v2679_v19 = vshrl.u32 %v10097_v14, 16  ;;  %v2655_v62 = vshrl.u32 %v11739_v2, 16  ;;  %v11764_v2 = vld [vmem:[#allocation2 + $0xc0] sm:$0xff] }
 0x1eb   : > { %14093 = vst [vmem:[#allocation58_spill] sm:$0xff] %v11746_v29  ;;  %v11748_v58 = vpack.c.b16 %v1893_v3, %v1893_v3  ;;  %v2659_v3 = vrot.slane %v2657_v15, 1  ;;  %v2640_v33 = vrot.slane %v2638_v63, 1  ;;  %v1607_v15 = vld [vmem:[#allocation2 + $0xc8] sm:$0x1] }
 0x1ec   : > { %v2994_v61 = vpop.f32.mrf.mxu2  ;;  %v11752_v21 = vpop.f32.mrf.mxu1  ;;  %14096 = vst [vmem:[#allocation61_spill] sm:$0xff] %v11764_v2 }
 0x1ed   : > { %3117 = vmatmul.bf16.gmra.mxu3 %v2629_v20  ;;  %14094 = vst [vmem:[#allocation59_spill] sm:$0xff] %v11752_v21  ;;  %v2683_v20 = vrot.slane %v2681_v54, 1  ;;  %v2662_v13 = vshll.u32 %v11748_v58, 16  ;;  %v2660_v27 = vor.u32 %v2659_v3, %v2655_v62 }
 0x1ef   : > { %v3164_v9 = vpop.f32.mrf.mxu0  ;;  %v2684_v21 = vor.u32 %v2683_v20, %v2679_v19  ;;  %v2664_v54 = vrot.slane %v2662_v13, 1  ;;  %v11768_v19 = vld [vmem:[#allocation2 + $0xc0] sm:$0xff] }
 0x1f0   : > { %v3078_v47 = vpop.f32.mrf.mxu3  ;;  %v11744_v44 = vadd.f32 %v3164_v9, %v3076_v49  ;;  %v2686_v49 = vshll.u32 %v11746_v29, 16  ;;  %v2636_v9 = vor.u32 %v2635_v60, %v2631_v23 }
 0x1f1   : > { %v3079_v48 = vadd.f32 %v3078_v47, %v11714_v6  ;;  %v1653_v6 = vld [vmem:[#allocation2 + $0xc8] sm:$0x1]  ;;  %v2665_v63 = vsel %vm2137_vm3, %v2660_v27, %v2664_v54  ;;  %v2693_v27 = vshll.u32 %v11768_v19, 16 }
 0x1f2   : > { %14092 = vst [vmem:[#allocation57_spill] sm:$0xff] %v11744_v44  ;;  %v2688_v22 = vrot.slane %v2686_v49, 1  ;;  %v2641_v29 = vsel %vm2137_vm3, %v2636_v9, %v2640_v33  ;;  %v2037_v23 = vunpack.c.l.b16 %v1653_v6  ;;  %v3638_v33 = vrot.slane %v11254_v18, 1 }
 0x1f3   : > { %v2667_v6 = vshrl.u32 %v11764_v2, 16 }
 0x1f4   : > { %v2996_v44 = vpop.f32.mrf.mxu2  ;;  %v11761_v28 = vpop.f32.mrf.mxu1  ;;  %v2689_v60 = vsel %vm2137_vm3, %v2684_v21, %v2688_v22  ;;  %v11770_v20 = vpack.c.b16 %v2037_v23, %v2037_v23  ;;  %v2695_v23 = vrot.slane %v2693_v27, 1 }
 0x1f5   : > { %14095 = vst [vmem:[#allocation60_spill] sm:$0xff] %v11761_v28 }
 0x1f6   : > { %14097 = vst [vmem:[#allocation62_spill] sm:$0xff] %v11770_v20  ;;  %v2674_v54 = vshll.u32 %v11770_v20, 16 }
 0x1f7   : > { %v3167_v47 = vpop.f32.mrf.mxu0 }
 0x1f8   : > { %v3080_v4 = vpop.f32.mrf.mxu3  ;;  %v11759_v35 = vadd.f32 %v3167_v47, %v3079_v48  ;;  %v1896_v48 = vunpack.c.l.b16 %v1607_v15  ;;  %v10241_v15 = vld [vmem:[#allocation10 + $0x38] sm:$0xff] }
 0x1f9   : > { %v3081_v14 = vadd.f32 %v3080_v4, %v2991_v24  ;;  %v2669_v24 = vshll.u32 %v11764_v2, 16  ;;  %4774 = vmatpush.bf16.msrb.mxu3 %v10241_v15 }
 0x1fa   : > { %3206 = vmatmul.bf16.gmra.mxu0 %v2641_v29  ;;  %3038 = vmatmul.bf16.gmra.mxu2 %v2689_v60  ;;  %v10476_v29 = vld [vmem:[#allocation2 + $0xc] sm:$0xff]  ;;  %v11776_v21 = vpack.c.b16 %v1896_v48, %v1896_v48 }
 0x1fb   : > { %v3637_v22 = vrot.slane %v10476_v29, 1  ;;  %v2671_v47 = vrot.slane %v2669_v24, 1 }
 0x1fc   : > { %v2999_v49 = vpop.f32.mrf.mxu2  ;;  %v11779_v9 = vpop.f32.mrf.mxu1  ;;  %v2698_v60 = vshll.u32 %v11776_v21, 16 }
 0x1fd   : > { %3122 = vmatmul.bf16.gmra.mxu3 %v2665_v63  ;;  %14098 = vst [vmem:[#allocation63_spill] sm:$0xff] %v11779_v9  ;;  %v3639_v18 = vsel %vm3633_vm9, %v3637_v22, %v3638_v33  ;;  %v1656_v63 = vld [vmem:[#allocation2 + $0xd4] sm:$0x1]  ;;  %v2672_v48 = vor.u32 %v2671_v47, %v2667_v6 }
 0x1fe   : > { %4116 = vmatmul.bf16.vlgmr.msra.gmra.mxu1 %v3639_v18  ;;  %v2040_v9 = vunpack.c.l.b16 %v1656_v63  ;;  %v2700_v33 = vrot.slane %v2698_v60, 1 }
 0x1ff   : > { %v3169_v4 = vpop.f32.mrf.mxu0 }
 0x200   : > { %v3083_v62 = vpop.f32.mrf.mxu3  ;;  %v11774_v3 = vadd.f32 %v3169_v4, %v3081_v14  ;;  %v2691_v14 = vshrl.u32 %v11768_v19, 16  ;;  %v11793_v18 = vpack.c.b16 %v2040_v9, %v2040_v9 }
 0x201   : > { %v3084_v13 = vadd.f32 %v3083_v62, %v2994_v61  ;;  %v2676_v61 = vrot.slane %v2674_v54, 1  ;;  %v11786_v62 = vld [vmem:[#allocation2 + $0xcc] sm:$0xff] }
 0x202   : > { %v2696_v2 = vor.u32 %v2695_v23, %v2691_v14  ;;  %14100 = vst [vmem:[#allocation65_spill] sm:$0xff] %v11793_v18  ;;  %v2705_v6 = vshll.u32 %v11786_v62, 16  ;;  %v10249_v54 = vld [vmem:[#allocation10 + $0x78] sm:$0xff]  ;;  %v2703_v14 = vshrl.u32 %v11786_v62, 16 }
 0x203   : > { %v2677_v27 = vsel %vm2137_vm3, %v2672_v48, %v2676_v61  ;;  %4863 = vmatpush.bf16.msrb.mxu0 %v10249_v54 }
 0x204   : > { %v3001_v24 = vpop.f32.mrf.mxu2  ;;  %v11790_v15 = vpop.f32.mrf.mxu1  ;;  %v2701_v47 = vsel %vm2137_vm3, %v2696_v2, %v2700_v33  ;;  %v10477_v2 = vld [vmem:[#allocation2 + $0x18] sm:$0xff] }
 0x205   : > { %14099 = vst [vmem:[#allocation64_spill] sm:$0xff] %v11790_v15 }
 0x207   : > { %v3172_v4 = vpop.f32.mrf.mxu0 }
 0x208   : > { %v3085_v28 = vpop.f32.mrf.mxu3  ;;  %v11788_v20 = vadd.f32 %v3172_v4, %v3084_v13  ;;  %v3647_v13 = vrot.slane %v11273_v53, 1  ;;  %v3646_v4 = vrot.slane %v10477_v2, 1 }
 0x209   : > { %v3086_v22 = vadd.f32 %v3085_v28, %v2996_v44  ;;  %v2707_v28 = vrot.slane %v2705_v6, 1  ;;  %v2710_v44 = vshll.u32 %v11793_v18, 16 }
 0x20a   : > { %3211 = vmatmul.bf16.gmra.mxu0 %v2677_v27  ;;  %3463 = vmatmul.bf16.vlgmr.msra.gmra.mxu2 %v10476_v29  ;;  %v3648_v29 = vsel %vm3633_vm9, %v3646_v4, %v3647_v13  ;;  %v3656_v13 = vrot.slane %v11313_v11, 1 }
 0x20b   : > { %v2708_v33 = vor.u32 %v2707_v28, %v2703_v14  ;;  %v2712_v27 = vrot.slane %v2710_v44, 1 }
 0x20c   : > { %v3004_v23 = vpop.f32.mrf.mxu2  ;;  %v11802_v61 = vpop.f32.mrf.mxu1 }
 0x20d   : > { %3127 = vmatmul.bf16.gmra.mxu3 %v2701_v47  ;;  %14101 = vst [vmem:[#allocation66_spill] sm:$0xff] %v11802_v61  ;;  %v2713_v6 = vsel %vm2137_vm3, %v2708_v33, %v2712_v27  ;;  %v3635_v27 = vrot.slane %v11127_v32, 1 }
 0x20e   : > { %4121 = vmatmul.bf16.gmra.mxu1 %v3648_v29 }
 0x20f   : > { %v3174_v63 = vpop.f32.mrf.mxu0 }
 0x210   : > { %v3088_v60 = vpop.f32.mrf.mxu3  ;;  %v11800_v9 = vadd.f32 %v3174_v63, %v3086_v22 }
 0x211   : > { %v3089_v48 = vadd.f32 %v3088_v60, %v2999_v49  ;;  %v11810_v49 = vld [vmem:[#allocation2 + $0x18] sm:$0xff] }
 0x214   : > { %v3006_v47 = vpop.f32.mrf.mxu2  ;;  %v11808_v22 = vpop.f32.mrf.mxu1 }
 0x215   : > { %14102 = vst [vmem:[#allocation67_spill] sm:$0xff] %v11808_v22 }
 0x217   : > { %v3177_v53 = vpop.f32.mrf.mxu0 }
 0x218   : > { %v3090_v18 = vpop.f32.mrf.mxu3  ;;  %v11806_v54 = vadd.f32 %v3177_v53, %v3089_v48  ;;  %v10479_v48 = vld [vmem:[#allocation2 + $0x24] sm:$0xff] }
 0x219   : > { %v3091_v15 = vadd.f32 %v3090_v18, %v3001_v24  ;;  %v3655_v24 = vrot.slane %v10479_v48, 1  ;;  %v10240_v18 = vld [vmem:[#allocation10 + $0x30] sm:$0xff] }
 0x21a   : > { %3216 = vmatmul.bf16.gmra.mxu0 %v2713_v6  ;;  %3468 = vmatmul.bf16.gmra.mxu2 %v10477_v2  ;;  %v10480_v2 = vld [vmem:[#allocation2] sm:$0xff] }
 0x21b   : > { %v3657_v29 = vsel %vm3633_vm9, %v3655_v24, %v3656_v13  ;;  %v3634_v33 = vrot.slane %v10480_v2, 1  ;;  %4775 = vmatpush.bf16.msrb.mxu3 %v10240_v18  ;;  %v10248_v13 = vld [vmem:[#allocation10 + $0x70] sm:$0xff]  ;;  %v3665_v24 = vrot.slane %v11371_v17, 1 }
 0x21c   : > { %v3009_v14 = vpop.f32.mrf.mxu2  ;;  %v11816_v4 = vpop.f32.mrf.mxu1  ;;  %4864 = vmatpush.bf16.msrb.mxu0 %v10248_v13 }
 0x21d   : > { %3552 = vmatmul.bf16.vlgmr.msra.gmra.mxu3 %v11810_v49  ;;  %14103 = vst [vmem:[#allocation68_spill] sm:$0xff] %v11816_v4  ;;  %v3636_v11 = vsel %vm3633_vm9, %v3634_v33, %v3635_v27  ;;  %v11825_v4 = vld [vmem:[#allocation2 + $0x24] sm:$0xff] }
 0x21e   : > { %4126 = vmatmul.bf16.gmra.mxu1 %v3657_v29 }
 0x21f   : > { %v3179_v63 = vpop.f32.mrf.mxu0 }
 0x220   : > { %v3093_v28 = vpop.f32.mrf.mxu3  ;;  %v11814_v44 = vadd.f32 %v3179_v63, %v3091_v15 }
 0x221   : > { %v3094_v60 = vadd.f32 %v3093_v28, %v3004_v23 }
 0x224   : > { %v3011_v6 = vpop.f32.mrf.mxu2  ;;  %v11823_v28 = vpop.f32.mrf.mxu1 }
 0x225   : > { %14104 = vst [vmem:[#allocation69_spill] sm:$0xff] %v11823_v28 }
 0x227   : > { %v3182_v53 = vpop.f32.mrf.mxu0 }
 0x228   : > { %v3095_v15 = vpop.f32.mrf.mxu3  ;;  %v11821_v63 = vadd.f32 %v3182_v53, %v3094_v60  ;;  %v3644_v53 = vrot.slane %v11252_v16, 1  ;;  %v3674_v16 = vrot.slane %v11427_v1, 1 }
 0x229   : > { %v3096_v23 = vadd.f32 %v3095_v15, %v3006_v47  ;;  %v10482_v47 = vld [vmem:[#allocation2 + $0x30] sm:$0xff] }
 0x22a   : > { %4027 = vmatmul.bf16.vlgmr.msra.gmra.mxu0 %v3636_v11  ;;  %3473 = vmatmul.bf16.gmra.mxu2 %v10479_v48  ;;  %v3664_v27 = vrot.slane %v10482_v47, 1  ;;  %v10483_v15 = vld [vmem:[#allocation2 + $0xc] sm:$0xff] }
 0x22b   : > { %v3643_v28 = vrot.slane %v10483_v15, 1 }
 0x22c   : > { %v3014_v18 = vpop.f32.mrf.mxu2  ;;  %v11831_v33 = vpop.f32.mrf.mxu1  ;;  %v3666_v48 = vsel %vm3633_vm9, %v3664_v27, %v3665_v24 }
 0x22d   : > { %3557 = vmatmul.bf16.gmra.mxu3 %v11825_v4  ;;  %14105 = vst [vmem:[#allocation70_spill] sm:$0xff] %v11831_v33 }
 0x22e   : > { %4131 = vmatmul.bf16.gmra.mxu1 %v3666_v48 }
 0x22f   : > { %v3184_v32 = vpop.f32.mrf.mxu0 }
 0x230   : > { %v3098_v29 = vpop.f32.mrf.mxu3  ;;  %v11829_v2 = vadd.f32 %v3184_v32, %v3096_v23  ;;  %v11840_v32 = vld [vmem:[#allocation2 + $0x30] sm:$0xff] }
 0x231   : > { %v3099_v60 = vadd.f32 %v3098_v29, %v3009_v14  ;;  %v3645_v14 = vsel %vm3633_vm9, %v3643_v28, %v3644_v53  ;;  %14107 = vst [vmem:[#allocation72_spill] sm:$0xff] %v11840_v32 }
 0x234   : > { %v3016_v22 = vpop.f32.mrf.mxu2  ;;  %v11837_v23 = vpop.f32.mrf.mxu1 }
 0x235   : > { %14106 = vst [vmem:[#allocation71_spill] sm:$0xff] %v11837_v23 }
 0x237   : > { %v3187_v11 = vpop.f32.mrf.mxu0 }
 0x238   : > { %v3100_v17 = vpop.f32.mrf.mxu3  ;;  %v11835_v13 = vadd.f32 %v3187_v11, %v3099_v60 }
 0x239   : > { %v3101_v61 = vadd.f32 %v3100_v17, %v3011_v6  ;;  %v10485_v6 = vld [vmem:[#allocation2 + $0x3c] sm:$0xff] }
 0x23a   : > { %4032 = vmatmul.bf16.gmra.mxu0 %v3645_v14  ;;  %3478 = vmatmul.bf16.gmra.mxu2 %v10482_v47  ;;  %v3673_v15 = vrot.slane %v10485_v6, 1  ;;  %v10239_v17 = vld [vmem:[#allocation10 + $0x28] sm:$0xff]  ;;  %v3653_v47 = vrot.slane %v11262_v36, 1 }
 0x23b   : > { %4776 = vmatpush.bf16.msrb.mxu3 %v10239_v17  ;;  %v10486_v14 = vld [vmem:[#allocation2 + $0x18] sm:$0xff] }
 0x23c   : > { %v11846_v11 = vpop.f32.mrf.mxu1  ;;  %v3675_v28 = vsel %vm3633_vm9, %v3673_v15, %v3674_v16  ;;  %v3652_v23 = vrot.slane %v10486_v14, 1  ;;  %v10247_v16 = vld [vmem:[#allocation10 + $0x68] sm:$0xff]  ;;  %v3683_v15 = vrot.slane %v11485_v37, 1 }
 0x23d   : > { %3562 = vmatmul.bf16.gmra.mxu3 %v11840_v32  ;;  %v3019_v29 = vpop.f32.mrf.mxu2  ;;  %14108 = vst [vmem:[#allocation73_spill] sm:$0xff] %v11846_v11  ;;  %4865 = vmatpush.bf16.msrb.mxu0 %v10247_v16 }
 0x23e   : > { %4136 = vmatmul.bf16.gmra.mxu1 %v3675_v28 }
 0x23f   : > { %v3189_v24 = vpop.f32.mrf.mxu0 }
 0x240   : > { %v3103_v27 = vpop.f32.mrf.mxu3  ;;  %v11844_v48 = vadd.f32 %v3189_v24, %v3101_v61  ;;  %v3654_v24 = vsel %vm3633_vm9, %v3652_v23, %v3653_v47  ;;  %v3662_v47 = vrot.slane %v11307_v57, 1  ;;  %v3692_v57 = vrot.slane %v11514_v5, 1 }
 0x241   : > { %v3104_v60 = vadd.f32 %v3103_v27, %v3014_v18  ;;  %v11855_v27 = vld [vmem:[#allocation2 + $0x3c] sm:$0xff] }
 0x242   : > { %14110 = vst [vmem:[#allocation75_spill] sm:$0xff] %v11855_v27 }
 0x244   : > { %v11852_v18 = vpop.f32.mrf.mxu1 }
 0x245   : > { %v3021_v1 = vpop.f32.mrf.mxu2  ;;  %14109 = vst [vmem:[#allocation74_spill] sm:$0xff] %v11852_v18 }
 0x247   : > { %v3192_v53 = vpop.f32.mrf.mxu0 }
 0x248   : > { %v3105_v33 = vpop.f32.mrf.mxu3  ;;  %v11850_v32 = vadd.f32 %v3192_v53, %v3104_v60  ;;  %v10488_v53 = vld [vmem:[#allocation2 + $0x48] sm:$0xff] }
 0x249   : > { %v3106_v61 = vadd.f32 %v3105_v33, %v3016_v22  ;;  %v3682_v23 = vrot.slane %v10488_v53, 1 }
 0x24a   : > { %4037 = vmatmul.bf16.gmra.mxu0 %v3654_v24  ;;  %3483 = vmatmul.bf16.gmra.mxu2 %v10485_v6  ;;  %v10489_v24 = vld [vmem:[#allocation2 + $0x24] sm:$0xff] }
 0x24b   : > { %v3684_v6 = vsel %vm3633_vm9, %v3682_v23, %v3683_v15  ;;  %v3661_v18 = vrot.slane %v10489_v24, 1 }
 0x24c   : > { %v11861_v33 = vpop.f32.mrf.mxu1 }
 0x24d   : > { %3567 = vmatmul.bf16.gmra.mxu3 %v11855_v27  ;;  %v3024_v17 = vpop.f32.mrf.mxu2  ;;  %14111 = vst [vmem:[#allocation76_spill] sm:$0xff] %v11861_v33 }
 0x24e   : > { %4141 = vmatmul.bf16.gmra.mxu1 %v3684_v6 }
 0x24f   : > { %v3194_v36 = vpop.f32.mrf.mxu0 }
 0x250   : > { %v3108_v28 = vpop.f32.mrf.mxu3  ;;  %v11859_v60 = vadd.f32 %v3194_v36, %v3106_v61  ;;  %v11870_v36 = vld [vmem:[#allocation2 + $0x48] sm:$0xff] }
 0x251   : > { %v3109_v22 = vadd.f32 %v3108_v28, %v3019_v29  ;;  %v3663_v29 = vsel %vm3633_vm9, %v3661_v18, %v3662_v47  ;;  %14113 = vst [vmem:[#allocation78_spill] sm:$0xff] %v11870_v36 }
 0x254   : > { %v11867_v61 = vpop.f32.mrf.mxu1 }
 0x255   : > { %v3026_v11 = vpop.f32.mrf.mxu2  ;;  %14112 = vst [vmem:[#allocation77_spill] sm:$0xff] %v11867_v61 }
 0x257   : > { %v3197_v14 = vpop.f32.mrf.mxu0 }
 0x258   : > { %v3110_v37 = vpop.f32.mrf.mxu3  ;;  %v11865_v16 = vadd.f32 %v3197_v14, %v3109_v22 }
 0x259   : > { %v3111_v27 = vadd.f32 %v3110_v37, %v3021_v1  ;;  %v10491_v1 = vld [vmem:[#allocation2 + $0x54] sm:$0xff] }
 0x25a   : > { %4042 = vmatmul.bf16.gmra.mxu0 %v3663_v29  ;;  %3488 = vmatmul.bf16.gmra.mxu2 %v10488_v53  ;;  %v3691_v24 = vrot.slane %v10491_v1, 1  ;;  %v10238_v37 = vld [vmem:[#allocation10 + $0x20] sm:$0xff]  ;;  %v3671_v53 = vrot.slane %v11350_v52, 1 }
 0x25b   : > { %4777 = vmatpush.bf16.msrb.mxu3 %v10238_v37  ;;  %v10492_v29 = vld [vmem:[#allocation2 + $0x30] sm:$0xff] }
 0x25c   : > { %v11876_v14 = vpop.f32.mrf.mxu1  ;;  %v3693_v18 = vsel %vm3633_vm9, %v3691_v24, %v3692_v57  ;;  %v3670_v61 = vrot.slane %v10492_v29, 1  ;;  %v10246_v57 = vld [vmem:[#allocation10 + $0x60] sm:$0xff]  ;;  %v3701_v24 = vrot.slane %v11547_v40, 1 }
 0x25d   : > { %3572 = vmatmul.bf16.gmra.mxu3 %v11870_v36  ;;  %v3029_v28 = vpop.f32.mrf.mxu2  ;;  %14114 = vst [vmem:[#allocation79_spill] sm:$0xff] %v11876_v14  ;;  %4866 = vmatpush.bf16.msrb.mxu0 %v10246_v57 }
 0x25e   : > { %4146 = vmatmul.bf16.gmra.mxu1 %v3693_v18 }
 0x25f   : > { %v3199_v15 = vpop.f32.mrf.mxu0 }
 0x260   : > { %v3113_v23 = vpop.f32.mrf.mxu3  ;;  %v11874_v6 = vadd.f32 %v3199_v15, %v3111_v27  ;;  %v3672_v15 = vsel %vm3633_vm9, %v3670_v61, %v3671_v53  ;;  %v3680_v53 = vrot.slane %v11421_v42, 1  ;;  %v10497_v42 = vld [vmem:[#allocation2 + $0x6c] sm:$0xff] }
 0x261   : > { %v3114_v22 = vadd.f32 %v3113_v23, %v3024_v17  ;;  %v11885_v23 = vld [vmem:[#allocation2 + $0x54] sm:$0xff] }
 0x262   : > { %14116 = vst [vmem:[#allocation81_spill] sm:$0xff] %v11885_v23 }
 0x264   : > { %v11882_v17 = vpop.f32.mrf.mxu1 }
 0x265   : > { %v3031_v5 = vpop.f32.mrf.mxu2  ;;  %14115 = vst [vmem:[#allocation80_spill] sm:$0xff] %v11882_v17 }
 0x267   : > { %v3202_v47 = vpop.f32.mrf.mxu0 }
 0x268   : > { %v3115_v33 = vpop.f32.mrf.mxu3  ;;  %v11880_v36 = vadd.f32 %v3202_v47, %v3114_v22  ;;  %v10494_v47 = vld [vmem:[#allocation2 + $0x60] sm:$0xff] }
 0x269   : > { %v3116_v27 = vadd.f32 %v3115_v33, %v3026_v11  ;;  %v3700_v61 = vrot.slane %v10494_v47, 1 }
 0x26a   : > { %4047 = vmatmul.bf16.gmra.mxu0 %v3672_v15  ;;  %3493 = vmatmul.bf16.gmra.mxu2 %v10491_v1  ;;  %v10495_v15 = vld [vmem:[#allocation2 + $0x3c] sm:$0xff] }
 0x26b   : > { %v3702_v1 = vsel %vm3633_vm9, %v3700_v61, %v3701_v24  ;;  %v3679_v17 = vrot.slane %v10495_v15, 1  ;;  %v3710_v61 = vrot.slane %v11568_v41, 1 }
 0x26c   : > { %v11891_v33 = vpop.f32.mrf.mxu1 }
 0x26d   : > { %3577 = vmatmul.bf16.gmra.mxu3 %v11885_v23  ;;  %v3034_v37 = vpop.f32.mrf.mxu2  ;;  %14117 = vst [vmem:[#allocation82_spill] sm:$0xff] %v11891_v33 }
 0x26e   : > { %4151 = vmatmul.bf16.gmra.mxu1 %v3702_v1 }
 0x26f   : > { %v3204_v52 = vpop.f32.mrf.mxu0 }
 0x270   : > { %v3118_v18 = vpop.f32.mrf.mxu3  ;;  %v11889_v22 = vadd.f32 %v3204_v52, %v3116_v27  ;;  %v11900_v52 = vld [vmem:[#allocation2 + $0x60] sm:$0xff] }
 0x271   : > { %v3119_v11 = vadd.f32 %v3118_v18, %v3029_v28  ;;  %v3681_v28 = vsel %vm3633_vm9, %v3679_v17, %v3680_v53  ;;  %14120 = vst [vmem:[#allocation85_spill] sm:$0xff] %v11900_v52  ;;  %v3709_v18 = vrot.slane %v10497_v42, 1 }
 0x273   : > { %v3711_v17 = vsel %vm3633_vm9, %v3709_v18, %v3710_v61  ;;  %v10245_v18 = vld [vmem:[#allocation10 + $0x58] sm:$0xff] }
 0x274   : > { %v11897_v27 = vpop.f32.mrf.mxu1  ;;  %4867 = vmatpush.bf16.msrb.mxu0 %v10245_v18 }
 0x275   : > { %v3036_v14 = vpop.f32.mrf.mxu2  ;;  %14119 = vst [vmem:[#allocation84_spill] sm:$0xff] %v11897_v27 }
 0x277   : > { %v3207_v29 = vpop.f32.mrf.mxu0 }
 0x278   : > { %v3120_v40 = vpop.f32.mrf.mxu3  ;;  %v11895_v57 = vadd.f32 %v3207_v29, %v3119_v11 }
 0x279   : > { %v3121_v23 = vadd.f32 %v3120_v40, %v3031_v5  ;;  %v10237_v40 = vld [vmem:[#allocation10 + $0x18] sm:$0xff] }
 0x27a   : > { %14118 = vst [vmem:[#allocation83_spill] sm:$0xff] %v11895_v57  ;;  %4052 = vmatmul.bf16.gmra.mxu0 %v3681_v28  ;;  %3498 = vmatmul.bf16.gmra.mxu2 %v10494_v47  ;;  %v3689_v47 = vrot.slane %v11472_v50, 1  ;;  %v10498_v28 = vld [vmem:[#allocation2 + $0x48] sm:$0xff]  ;;  %v3376_v50 = vadd.f32 %v11541_v39, %v11599_v43  ;;  %v3378_v39 = vadd.f32 %v11556_v55, %v11611_v0 }
 0x27b   : > { %4778 = vmatpush.bf16.msrb.mxu3 %v10237_v40  ;;  %v3688_v27 = vrot.slane %v10498_v28, 1  ;;  %v3698_v28 = vrot.slane %v11510_v26, 1  ;;  %v11934_v26 = vld [vmem:[#allocation2 + $0x78] sm:$0xff]  ;;  %v3381_v55 = vadd.f32 %v11570_v25, %v11629_v7  ;;  %v3383_v7 = vadd.f32 %v11577_v56, %v11645_v31  ;;  %v10244_v56 = vld [vmem:[#allocation10 + $0x50] sm:$0xff] }
 0x27c   : > { %v11906_v29 = vpop.f32.mrf.mxu1  ;;  %v3386_v31 = vadd.f32 %v11593_v46, %v11660_v38  ;;  %4868 = vmatpush.bf16.msrb.mxu0 %v10244_v56  ;;  %v3388_v46 = vadd.f32 %v11602_v59, %v11679_v12  ;;  %v14123_v59 = vld [vmem:[#allocation31_spill] sm:$0xff] }
 0x27d   : > { %3582 = vmatmul.bf16.gmra.mxu3 %v11900_v52  ;;  %v3039_v1 = vpop.f32.mrf.mxu2  ;;  %v3391_v12 = vadd.f32 %v14123_v59, %v11695_v8  ;;  %v10235_v8 = vld [vmem:[#allocation10 + $0x8] sm:$0xff] }
 0x27e   : > { %4156 = vmatmul.bf16.gmra.mxu1 %v3711_v17 }
 0x27f   : > { %v3209_v24 = vpop.f32.mrf.mxu0 }
 0x280   : > { %v3123_v15 = vpop.f32.mrf.mxu3  ;;  %v11904_v11 = vadd.f32 %v3209_v24, %v3121_v23  ;;  %v11915_v24 = vld [vmem:[#allocation2 + $0x6c] sm:$0xff] }
 0x281   : > { %v3124_v5 = vadd.f32 %v3123_v15, %v3034_v37  ;;  %v3690_v37 = vsel %vm3633_vm9, %v3688_v27, %v3689_v47  ;;  %14122 = vst [vmem:[#allocation87_spill] sm:$0xff] %v11915_v24  ;;  %v10500_v15 = vld [vmem:[#allocation2 + $0x78] sm:$0xff] }
 0x282   : > { %v3718_v40 = vrot.slane %v10500_v15, 1 }
 0x284   : > { %v11912_v23 = vpop.f32.mrf.mxu1 }
 0x285   : > { %v3041_v33 = vpop.f32.mrf.mxu2 }
 0x287   : > { %v3212_v53 = vpop.f32.mrf.mxu0 }
 0x288   : > { %v3125_v52 = vpop.f32.mrf.mxu3  ;;  %v11910_v41 = vadd.f32 %v3212_v53, %v3124_v5  ;;  %v3719_v5 = vrot.slane %v11591_v30, 1 }
 0x289   : > { %v3126_v57 = vadd.f32 %v3125_v52, %v3036_v14 }
 0x28a   : > { %14121 = vst [vmem:[#allocation86_spill] sm:$0xff] %v11910_v41  ;;  %4057 = vmatmul.bf16.gmra.mxu0 %v3690_v37  ;;  %3503 = vmatmul.bf16.gmra.mxu2 %v10497_v42  ;;  %v3720_v53 = vsel %vm3633_vm9, %v3718_v40, %v3719_v5  ;;  %v10501_v37 = vld [vmem:[#allocation2 + $0x54] sm:$0xff]  ;;  %v10201_v40 = vld [vmem:[#allocation9 + $0x238] sm:$0xff] }
 0x28b   : > { %v3697_v30 = vrot.slane %v10501_v37, 1  ;;  %4197 = vmatpush.bf16.msrb.mxu2 %v10201_v40  ;;  %v10503_v5 = vld [vmem:[#allocation2 + $0x84] sm:$0xff] }
 0x28c   : > { %v11923_v47 = vpop.f32.mrf.mxu1 }
 0x28d   : > { %3587 = vmatmul.bf16.gmra.mxu3 %v11915_v24  ;;  %v3464_v52 = vpop.f32.mrf.mxu2 }
 0x28e   : > { %v3465_v42 = vadd.f32 %v3464_v52, %v3376_v50  ;;  %4161 = vmatmul.bf16.gmra.mxu1 %v3720_v53 }
 0x28f   : > { %v3214_v61 = vpop.f32.mrf.mxu0 }
 0x290   : > { %v3128_v14 = vpop.f32.mrf.mxu3  ;;  %v11921_v17 = vadd.f32 %v3214_v61, %v3126_v57  ;;  %v3699_v61 = vsel %vm3633_vm9, %v3697_v30, %v3698_v28 }
 0x291   : > { %v3129_v27 = vadd.f32 %v3128_v14, %v3039_v1  ;;  %v3727_v14 = vrot.slane %v10503_v5, 1 }
 0x294   : > { %v11931_v50 = vpop.f32.mrf.mxu1 }
 0x295   : > { %v3466_v24 = vpop.f32.mrf.mxu2 }
 0x296   : > { %v3467_v1 = vadd.f32 %v3466_v24, %v3378_v39  ;;  %v10329_v39 = vld [vmem:[%s13937_s8 + $0xf8] sm:$0xff] }
 0x297   : > { %v3217_v43 = vpop.f32.mrf.mxu0  ;;  %6945 = vmatpush.bf16.msrb.mxu1 %v10329_v39 }
 0x298   : > { %v3130_v18 = vpop.f32.mrf.mxu3  ;;  %v11929_v41 = vadd.f32 %v3217_v43, %v3129_v27  ;;  %v10236_v43 = vld [vmem:[#allocation10 + $0x10] sm:$0xff] }
 0x299   : > { %v3131_v57 = vadd.f32 %v3130_v18, %v3041_v33  ;;  %v3728_v33 = vrot.slane %v11621_v10, 1  ;;  %4779 = vmatpush.bf16.msrb.mxu3 %v10236_v43  ;;  %v3707_v10 = vrot.slane %v11545_v45, 1  ;;  %v11961_v45 = vld [vmem:[#allocation2 + $0x84] sm:$0xff] }
 0x29a   : > { %4062 = vmatmul.bf16.gmra.mxu0 %v3699_v61  ;;  %3508 = vmatmul.bf16.gmra.mxu2 %v10500_v15 }
 0x29b   : > { %v3729_v25 = vsel %vm3633_vm9, %v3727_v14, %v3728_v33 }
 0x29c   : > { %v11944_v15 = vpop.f32.mrf.mxu1 }
 0x29d   : > { %3592 = vmatmul.bf16.gmra.mxu3 %v11934_v26  ;;  %v3469_v24 = vpop.f32.mrf.mxu2 }
 0x29e   : > { %v3470_v53 = vadd.f32 %v3469_v24, %v3381_v55  ;;  %4166 = vmatmul.bf16.gmra.mxu1 %v3729_v25  ;;  %4780 = vmatpush.bf16.msrb.mxu3 %v10235_v8 }
 0x29f   : > { %v3219_v0 = vpop.f32.mrf.mxu0 }
 0x2a0   : > { %v3553_v52 = vpop.f32.mrf.mxu3  ;;  %v11940_v27 = vadd.f32 %v3219_v0, %v3131_v57 }
 0x2a1   : > { %v11942_v28 = vadd.f32 %v3553_v52, %v3465_v42  ;;  %v10504_v42 = vld [vmem:[#allocation2 + $0x60] sm:$0xff] }
 0x2a2   : > { %v3706_v30 = vrot.slane %v10504_v42, 1 }
 0x2a4   : > { %v11958_v0 = vpop.f32.mrf.mxu1  ;;  %v3708_v14 = vsel %vm3633_vm9, %v3706_v30, %v3707_v10 }
 0x2a5   : > { %v3471_v18 = vpop.f32.mrf.mxu2 }
 0x2a6   : > { %v3472_v40 = vadd.f32 %v3471_v18, %v3383_v7 }
 0x2a7   : > { %v4028_v37 = vpop.f32.mrf.mxu0 }
 0x2a8   : > { %v3555_v57 = vpop.f32.mrf.mxu3  ;;  %v11954_v61 = vadd.f32 %v11906_v29, %v4028_v37  ;;  %v10506_v29 = vld [vmem:[#allocation2 + $0x90] sm:$0xff] }
 0x2a9   : > { %v11956_v55 = vadd.f32 %v3555_v57, %v3467_v1  ;;  %v3736_v24 = vrot.slane %v10506_v29, 1  ;;  %v3737_v1 = vrot.slane %v11653_v34, 1  ;;  %v11985_v57 = vld [vmem:[#allocation2 + $0x90] sm:$0xff] }
 0x2aa   : > { %4067 = vmatmul.bf16.gmra.mxu0 %v3708_v14  ;;  %3513 = vmatmul.bf16.gmra.mxu2 %v10503_v5 }
 0x2ab   : > { %v3738_v7 = vsel %vm3633_vm9, %v3736_v24, %v3737_v1 }
 0x2ac   : > { %v11972_v10 = vpop.f32.mrf.mxu1 }
 0x2ad   : > { %3597 = vmatmul.bf16.gmra.mxu3 %v11961_v45  ;;  %v3474_v52 = vpop.f32.mrf.mxu2 }
 0x2ae   : > { %v3475_v5 = vadd.f32 %v3474_v52, %v3386_v31  ;;  %4171 = vmatmul.bf16.gmra.mxu1 %v3738_v7  ;;  %v14125_v31 = vld [vmem:[#allocation42_spill] sm:$0xff] }
 0x2af   : > { %v4030_v33 = vpop.f32.mrf.mxu0 }
 0x2b0   : > { %v3558_v39 = vpop.f32.mrf.mxu3  ;;  %v11968_v43 = vadd.f32 %v11912_v23, %v4030_v33 }
 0x2b1   : > { %v11970_v25 = vadd.f32 %v3558_v39, %v3470_v53  ;;  %v10200_v53 = vld [vmem:[#allocation9 + $0x230] sm:$0xff]  ;;  %v10328_v39 = vld [vmem:[%s13937_s8 + $0xf0] sm:$0xff] }
 0x2b2   : > { %4198 = vmatpush.bf16.msrb.mxu2 %v10200_v53  ;;  %6946 = vmatpush.bf16.msrb.mxu1 %v10328_v39 }
 0x2b4   : > { %v11982_v18 = vpop.f32.mrf.mxu1 }
 0x2b5   : > { %v3476_v37 = vpop.f32.mrf.mxu2 }
 0x2b6   : > { %v3477_v30 = vadd.f32 %v3476_v37, %v3388_v46  ;;  %v14127_v46 = vld [vmem:[#allocation48_spill] sm:$0xff] }
 0x2b7   : > { %v4033_v38 = vpop.f32.mrf.mxu0 }
 0x2b8   : > { %v3560_v34 = vpop.f32.mrf.mxu3  ;;  %v11978_v42 = vadd.f32 %v11923_v47, %v4033_v38  ;;  %v14124_v47 = vld [vmem:[#allocation39_spill] sm:$0xff]  ;;  %v14128_v38 = vld [vmem:[#allocation32_spill] sm:$0xff] }
 0x2b9   : > { %v11980_v23 = vadd.f32 %v3560_v34, %v3472_v40  ;;  %v3745_v56 = vrot.slane %v14124_v47, 1  ;;  %v3746_v40 = vrot.slane %v14125_v31, 1  ;;  %v3393_v37 = vadd.f32 %v14128_v38, %v14127_v46  ;;  %v14131_v47 = vld [vmem:[#allocation33_spill] sm:$0xff]  ;;  %v12013_v31 = vld [vmem:[#allocation2 + $0x9c] sm:$0xff]  ;;  %v14136_v46 = vld [vmem:[#allocation50_spill] sm:$0xff] }
 0x2ba   : > { %4072 = vmatmul.bf16.gmra.mxu0 %v11614_v51  ;;  %3518 = vmatmul.bf16.gmra.mxu2 %v10506_v29  ;;  %14132 = vst [vmem:[#allocation48_spill] sm:$0xff] %v12013_v31 }
 0x2bb   : > { %v3747_v7 = vsel %vm3633_vm9, %v3745_v56, %v3746_v40  ;;  %v10508_v56 = vld [vmem:[#allocation2 + $0x9c] sm:$0xff] }
 0x2bc   : > { %v11997_v29 = vpop.f32.mrf.mxu1  ;;  %v10243_v40 = vld [vmem:[#allocation10 + $0x48] sm:$0xff] }
 0x2bd   : > { %3602 = vmatmul.bf16.gmra.mxu3 %v11985_v57  ;;  %v3479_v33 = vpop.f32.mrf.mxu2  ;;  %4869 = vmatpush.bf16.msrb.mxu0 %v10243_v40 }
 0x2be   : > { %v3480_v51 = vadd.f32 %v3479_v33, %v3391_v12  ;;  %4176 = vmatmul.bf16.gmra.mxu1 %v3747_v7  ;;  %v14133_v33 = vld [vmem:[#allocation52_spill] sm:$0xff] }
 0x2bf   : > { %v4035_v14 = vpop.f32.mrf.mxu0 }
 0x2c0   : > { %v3563_v24 = vpop.f32.mrf.mxu3  ;;  %v11993_v1 = vadd.f32 %v11931_v50, %v4035_v14 }
 0x2c1   : > { %v11995_v52 = vadd.f32 %v3563_v24, %v3475_v5  ;;  %v14134_v24 = vld [vmem:[#allocation36_spill] sm:$0xff] }
 0x2c2   : > { %v3396_v39 = vadd.f32 %v14134_v24, %v14133_v33  ;;  %v10199_v33 = vld [vmem:[#allocation9 + $0x228] sm:$0xff]  ;;  %v14137_v24 = vld [vmem:[#allocation57_spill] sm:$0xff] }
 0x2c3   : > { %14126 = vst [vmem:[#allocation31_spill] sm:$0xff] %v11995_v52  ;;  %4199 = vmatpush.bf16.msrb.mxu2 %v10199_v33 }
 0x2c4   : > { %v12010_v14 = vpop.f32.mrf.mxu1 }
 0x2c5   : > { %v3481_v34 = vpop.f32.mrf.mxu2  ;;  %14130 = vst [vmem:[#allocation42_spill] sm:$0xff] %v12010_v14  ;;  %v14138_v14 = vld [vmem:[#allocation37_spill] sm:$0xff] }
 0x2c6   : > { %v3482_v59 = vadd.f32 %v3481_v34, %v3393_v37 }
 0x2c7   : > { %v4038_v50 = vpop.f32.mrf.mxu0 }
 0x2c8   : > { %v3565_v53 = vpop.f32.mrf.mxu3  ;;  %v12006_v5 = vadd.f32 %v11944_v15, %v4038_v50  ;;  %v14135_v15 = vld [vmem:[#allocation46_spill] sm:$0xff] }
 0x2c9   : > { %v12008_v12 = vadd.f32 %v3565_v53, %v3477_v30  ;;  %v3754_v7 = vrot.slane %v14135_v15, 1  ;;  %v3755_v30 = vrot.slane %v14136_v46, 1 }
 0x2ca   : > { %4077 = vmatmul.bf16.gmra.mxu0 %v14131_v47  ;;  %3523 = vmatmul.bf16.gmra.mxu2 %v10508_v56 }
 0x2cb   : > { %14129 = vst [vmem:[#allocation39_spill] sm:$0xff] %v12008_v12  ;;  %v3756_v56 = vsel %vm3633_vm9, %v3754_v7, %v3755_v30  ;;  %v3398_v12 = vadd.f32 %v14138_v14, %v14137_v24  ;;  %v14141_v7 = vld [vmem:[#allocation45_spill] sm:$0xff]  ;;  %v14142_v30 = vld [vmem:[#allocation43_spill] sm:$0xff] }
 0x2cc   : > { %v12025_v47 = vpop.f32.mrf.mxu1  ;;  %v10197_v14 = vld [vmem:[#allocation9 + $0x218] sm:$0xff] }
 0x2cd   : > { %3607 = vmatmul.bf16.gmra.mxu3 %v12013_v31  ;;  %v3484_v38 = vpop.f32.mrf.mxu2 }
 0x2ce   : > { %v3485_v34 = vadd.f32 %v3484_v38, %v3396_v39  ;;  %4181 = vmatmul.bf16.gmra.mxu1 %v3756_v56  ;;  %v14140_v38 = vld [vmem:[#allocation38_spill] sm:$0xff] }
 0x2cf   : > { %v4040_v8 = vpop.f32.mrf.mxu0 }
 0x2d0   : > { %v3568_v37 = vpop.f32.mrf.mxu3  ;;  %v12021_v50 = vadd.f32 %v11958_v0, %v4040_v8  ;;  %v10198_v8 = vld [vmem:[#allocation9 + $0x220] sm:$0xff] }
 0x2d1   : > { %v12023_v53 = vadd.f32 %v3568_v37, %v3480_v51  ;;  %4200 = vmatpush.bf16.msrb.mxu2 %v10198_v8  ;;  %v3401_v37 = vadd.f32 %v14142_v30, %v11759_v35  ;;  %v10196_v8 = vld [vmem:[#allocation9 + $0x210] sm:$0xff]  ;;  %v10234_v35 = vld [vmem:[#allocation10] sm:$0xff]  ;;  %v14145_v30 = vld [vmem:[#allocation35_spill] sm:$0xff] }
 0x2d2   : > { %4781 = vmatpush.bf16.msrb.mxu3 %v10234_v35 }
 0x2d4   : > { %v12035_v51 = vpop.f32.mrf.mxu1 }
 0x2d5   : > { %v3486_v40 = vpop.f32.mrf.mxu2  ;;  %14139 = vst [vmem:[#allocation32_spill] sm:$0xff] %v12035_v51  ;;  %4201 = vmatpush.bf16.msrb.mxu2 %v10197_v14 }
 0x2d6   : > { %v3487_v0 = vadd.f32 %v3486_v40, %v3398_v12 }
 0x2d7   : > { %v4043_v46 = vpop.f32.mrf.mxu0 }
 0x2d8   : > { %v3570_v31 = vpop.f32.mrf.mxu3  ;;  %v12031_v52 = vadd.f32 %v11972_v10, %v4043_v46  ;;  %v14143_v10 = vld [vmem:[#allocation55_spill] sm:$0xff] }
 0x2d9   : > { %v12033_v39 = vadd.f32 %v3570_v31, %v3482_v59  ;;  %v3763_v33 = vrot.slane %v14143_v10, 1  ;;  %v3764_v59 = vrot.slane %v11748_v58, 1  ;;  %4202 = vmatpush.bf16.msrb.mxu2 %v10196_v8  ;;  %v10195_v58 = vld [vmem:[#allocation9 + $0x208] sm:$0xff]  ;;  %v10194_v8 = vld [vmem:[#allocation9 + $0x200] sm:$0xff] }
 0x2da   : > { %4082 = vmatmul.bf16.gmra.mxu0 %v14140_v38  ;;  %3528 = vmatmul.bf16.gmra.mxu2 %v14135_v15  ;;  %v10327_v15 = vld [vmem:[%s13937_s8 + $0xe8] sm:$0xff] }
 0x2db   : > { %6947 = vmatpush.bf16.msrb.mxu1 %v10327_v15 }
 0x2dc   : > { %v12052_v38 = vpop.f32.mrf.mxu1 }
 0x2dd   : > { %3612 = vmatmul.bf16.gmra.mxu3 %v14141_v7  ;;  %v3489_v12 = vpop.f32.mrf.mxu2  ;;  %v3765_v7 = vsel %vm3633_vm9, %v3763_v33, %v3764_v59  ;;  %4203 = vmatpush.bf16.msrb.mxu2 %v10195_v58  ;;  %v14149_v58 = vld [vmem:[#allocation51_spill] sm:$0xff] }
 0x2de   : > { %v3490_v46 = vadd.f32 %v3489_v12, %v3401_v37  ;;  %4186 = vmatmul.bf16.gmra.mxu1 %v3765_v7  ;;  %v14146_v37 = vld [vmem:[#allocation44_spill] sm:$0xff]  ;;  %v10242_v7 = vld [vmem:[#allocation10 + $0x40] sm:$0xff] }
 0x2df   : > { %v4045_v56 = vpop.f32.mrf.mxu0  ;;  %4870 = vmatpush.bf16.msrb.mxu0 %v10242_v7 }
 0x2e0   : > { %v3573_v31 = vpop.f32.mrf.mxu3  ;;  %v12045_v24 = vadd.f32 %v11982_v18, %v4045_v56  ;;  %v10510_v18 = vld [vmem:[#allocation2 + $0x90] sm:$0xff]  ;;  %v3403_v56 = vadd.f32 %v14146_v37, %v11774_v3 }
 0x2e1   : > { %v12047_v40 = vadd.f32 %v3573_v31, %v3485_v34  ;;  %v3742_v14 = vrot.slane %v10510_v18, 1  ;;  %v3743_v34 = vrot.slane %v14145_v30, 1  ;;  %4204 = vmatpush.bf16.msrb.mxu2 %v10194_v8  ;;  %v14148_v3 = vld [vmem:[#allocation54_spill] sm:$0xff]  ;;  %v3406_v18 = vadd.f32 %v14149_v58, %v11788_v20  ;;  %v14151_v8 = vld [vmem:[#allocation53_spill] sm:$0xff] }
 0x2e3   : > { %14144 = vst [vmem:[#allocation33_spill] sm:$0xff] %v12047_v40  ;;  %v3744_v15 = vsel %vm3633_vm9, %v3742_v14, %v3743_v34 }
 0x2e4   : > { %v12064_v35 = vpop.f32.mrf.mxu1 }
 0x2e5   : > { %v3491_v31 = vpop.f32.mrf.mxu2  ;;  %14147 = vst [vmem:[#allocation52_spill] sm:$0xff] %v12064_v35 }
 0x2e6   : > { %v3492_v33 = vadd.f32 %v3491_v31, %v3403_v56  ;;  %v10511_v56 = vld [vmem:[#allocation2 + $0x9c] sm:$0xff]  ;;  %v14150_v31 = vld [vmem:[#allocation41_spill] sm:$0xff] }
 0x2e7   : > { %v4048_v12 = vpop.f32.mrf.mxu0 }
 0x2e8   : > { %v3575_v51 = vpop.f32.mrf.mxu3  ;;  %v12059_v40 = vadd.f32 %v11997_v29, %v4048_v12  ;;  %v3751_v12 = vrot.slane %v10511_v56, 1 }
 0x2e9   : > { %v12061_v59 = vadd.f32 %v3575_v51, %v3487_v0  ;;  %v3772_v0 = vrot.slane %v11768_v19, 1  ;;  %v3773_v51 = vrot.slane %v11776_v21, 1 }
 0x2ea   : > { %4087 = vmatmul.bf16.gmra.mxu0 %v3744_v15  ;;  %3533 = vmatmul.bf16.gmra.mxu2 %v14143_v10  ;;  %v3752_v15 = vrot.slane %v14150_v31, 1 }
 0x2eb   : > { %v3774_v10 = vsel %vm3633_vm9, %v3772_v0, %v3773_v51  ;;  %v14152_v51 = vld [vmem:[#allocation61_spill] sm:$0xff] }
 0x2ec   : > { %v4152_v20 = vpop.f32.mrf.mxu1  ;;  %v3753_v0 = vsel %vm3633_vm9, %v3751_v12, %v3752_v15  ;;  %v14155_v15 = vld [vmem:[#allocation49_spill] sm:$0xff] }
 0x2ed   : > { %3617 = vmatmul.bf16.gmra.mxu3 %v14148_v3  ;;  %v3494_v14 = vpop.f32.mrf.mxu2  ;;  %v3408_v3 = vadd.f32 %v14151_v8, %v11800_v9  ;;  %v3761_v8 = vrot.slane %v14155_v15, 1 }
 0x2ee   : > { %v3495_v34 = vadd.f32 %v3494_v14, %v3406_v18  ;;  %4191 = vmatmul.bf16.gmra.mxu1 %v3774_v10  ;;  %v14153_v14 = vld [vmem:[#allocation59_spill] sm:$0xff] }
 0x2ef   : > { %v12070_v29 = vpop.f32.mrf.mxu0 }
 0x2f0   : > { %v3578_v30 = vpop.f32.mrf.mxu3 }
 0x2f1   : > { %v12074_v37 = vadd.f32 %v3578_v30, %v3490_v46  ;;  %v3411_v30 = vadd.f32 %v14153_v14, %v11806_v54  ;;  %v14156_v54 = vld [vmem:[#allocation60_spill] sm:$0xff] }
 0x2f4   : > { %v12092_v31 = vpop.f32.mrf.mxu1 }
 0x2f5   : > { %v3496_v35 = vpop.f32.mrf.mxu2  ;;  %14154 = vst [vmem:[#allocation36_spill] sm:$0xff] %v12092_v31 }
 0x2f6   : > { %v3497_v18 = vadd.f32 %v3496_v35, %v3408_v3  ;;  %v3413_v3 = vadd.f32 %v14156_v54, %v11814_v44 }
 0x2f7   : > { %v4053_v58 = vpop.f32.mrf.mxu0 }
 0x2f8   : > { %v3580_v21 = vpop.f32.mrf.mxu3  ;;  %v12081_v7 = vadd.f32 %v12025_v47, %v4053_v58 }
 0x2f9   : > { %v12083_v46 = vadd.f32 %v3580_v21, %v3492_v33  ;;  %v10326_v33 = vld [vmem:[%s13937_s8 + $0xe0] sm:$0xff] }
 0x2fa   : > { %4092 = vmatmul.bf16.gmra.mxu0 %v3753_v0  ;;  %3538 = vmatmul.bf16.gmra.mxu2 %v11768_v19  ;;  %v10512_v19 = vld [vmem:[#allocation2 + $0xa8] sm:$0xff] }
 0x2fb   : > { %6948 = vmatpush.bf16.msrb.mxu1 %v10326_v33  ;;  %v3760_v12 = vrot.slane %v10512_v19, 1  ;;  %v3640_v33 = vrot.slane %v11810_v49, 1  ;;  %v10513_v49 = vld [vmem:[#allocation2 + $0xb4] sm:$0xff] }
 0x2fc   : > { %v4157_v19 = vpop.f32.mrf.mxu1 }
 0x2fd   : > { %3622 = vmatmul.bf16.gmra.mxu3 %v14152_v51  ;;  %v3499_v10 = vpop.f32.mrf.mxu2 }
 0x2fe   : > { %v3500_v47 = vadd.f32 %v3499_v10, %v3411_v30 }
 0x2ff   : > { %v12090_v9 = vpop.f32.mrf.mxu0 }
 0x300   : > { %v3583_v56 = vpop.f32.mrf.mxu3 }
 0x301   : > { %v12094_v35 = vadd.f32 %v3583_v56, %v3495_v34  ;;  %v14157_v34 = vld [vmem:[#allocation21_spill] sm:$0xff]  ;;  %v3762_v56 = vsel %vm3633_vm9, %v3760_v12, %v3761_v8 }
 0x302   : > { %v3641_v14 = vrot.slane %v14157_v34, 1 }
 0x304   : > { %v3642_v44 = vsel %vm3633_vm9, %v3640_v33, %v3641_v14  ;;  %v12118_v8 = vpop.f32.mrf.mxu1  ;;  %v9261_v14 = vld [vmem:[%s10955_s27] sm:$0xf] }
 0x305   : > { %v3501_v21 = vpop.f32.mrf.mxu2  ;;  %14160 = vst [vmem:[#allocation50_spill] sm:$0xff] %v12118_v8 }
 0x306   : > { %v3502_v30 = vadd.f32 %v3501_v21, %v3413_v3  ;;  %v3769_v21 = vrot.slane %v10513_v49, 1 }
 0x307   : > { %v4058_v58 = vpop.f32.mrf.mxu0 }
 0x308   : > { %v3585_v0 = vpop.f32.mrf.mxu3  ;;  %v12103_v51 = vadd.f32 %v12052_v38, %v4058_v58  ;;  %v14159_v38 = vld [vmem:[#allocation63_spill] sm:$0xff] }
 0x309   : > { %v12106_v10 = vadd.f32 %v3585_v0, %v3497_v18  ;;  %v3416_v15 = vadd.f32 %v14159_v38, %v11821_v63  ;;  %v14161_v0 = vld [vmem:[#allocation58_spill] sm:$0xff] }
 0x30a   : > { %4097 = vmatmul.bf16.gmra.mxu0 %v3762_v56  ;;  %4205 = vmatmul.bf16.vlgmr.msrb.gmra.mxu2 %v3642_v44  ;;  %v3770_v34 = vrot.slane %v14161_v0, 1  ;;  %v10203_v56 = vld [vmem:[%s10955_s27 + $0x4] sm:$0xf0]  ;;  %v3649_v0 = vrot.slane %v11825_v4, 1 }
 0x30b   : > { %14158 = vst [vmem:[#allocation46_spill] sm:$0xff] %v12106_v10  ;;  %v14163_v10 = vld [vmem:[#allocation22_spill] sm:$0xff]  ;;  %v9262_v49 = vor.u32 %v10203_v56, %v9261_v14  ;;  %v10325_v4 = vld [vmem:[%s13937_s8 + $0xd8] sm:$0xff] }
 0x30c   : > { %v10202_v14 = vld [vmem:[%s10955_s27 + $0x4] sm:$0xf]  ;;  %v9263_v56 = vld [vmem:[%s10955_s27 + $0x8] sm:$0xf0]  ;;  %6949 = vmatpush.bf16.msrb.mxu1 %v10325_v4 }
 0x30d   : > { %3627 = vmatmul.bf16.gmra.mxu3 %v11786_v62  ;;  %v3504_v18 = vpop.f32.mrf.mxu2  ;;  %v14162_v62 = vld [vmem:[#allocation64_spill] sm:$0xff] }
 0x30e   : > { %v3505_v58 = vadd.f32 %v3504_v18, %v3416_v15  ;;  %v3418_v33 = vadd.f32 %v14162_v62, %v11829_v2  ;;  %v3650_v15 = vrot.slane %v14163_v10, 1  ;;  %v14164_v10 = vld [vmem:[#allocation66_spill] sm:$0xff] }
 0x30f   : > { %v12114_v54 = vpop.f32.mrf.mxu0  ;;  %v3421_v62 = vadd.f32 %v14164_v10, %v11835_v13 }
 0x310   : > { %v3588_v3 = vpop.f32.mrf.mxu3  ;;  %v3651_v2 = vsel %vm3633_vm9, %v3649_v0, %v3650_v15  ;;  %v9266_v15 = vor.u32 %v10202_v14, %v9263_v56  ;;  %v14170_v14 = vld [vmem:[#allocation72_spill] sm:$0xff] }
 0x311   : > { %v12116_v12 = vadd.f32 %v3588_v3, %v3500_v47  ;;  %v3771_v3 = vsel %vm3633_vm9, %v3769_v21, %v3770_v34  ;;  %v3658_v56 = vrot.slane %v14170_v14, 1  ;;  %v10207_v14 = vld [vmem:[%s10955_s27 + $0x24] sm:$0xf0] }
 0x315   : > { %v3506_v63 = vpop.f32.mrf.mxu2 }
 0x316   : > { %v3507_v47 = vadd.f32 %v3506_v63, %v3418_v33  ;;  %v9269_v63 = vld [vmem:[%s10955_s27 + $0x10] sm:$0xf] }
 0x317   : > { %v4063_v44 = vpop.f32.mrf.mxu0 }
 0x318   : > { %v3590_v38 = vpop.f32.mrf.mxu3  ;;  %v12125_v31 = vadd.f32 %v4152_v20, %v4063_v44  ;;  %v4162_v20 = vpop.f32.mrf.mxu1 }
 0x319   : > { %v12128_v18 = vadd.f32 %v3590_v38, %v3502_v30  ;;  %v10205_v38 = vld [vmem:[%s10955_s27 + $0x14] sm:$0xf0] }
 0x31a   : > { %4102 = vmatmul.bf16.gmra.mxu0 %v3771_v3  ;;  %4210 = vmatmul.bf16.gmra.mxu2 %v3651_v2  ;;  %v14166_v3 = vld [vmem:[#allocation67_spill] sm:$0xff]  ;;  %v9270_v4 = vor.u32 %v10205_v38, %v9269_v63  ;;  %v10204_v63 = vld [vmem:[%s10955_s27 + $0x14] sm:$0xf]  ;;  %v9271_v38 = vld [vmem:[%s10955_s27 + $0x18] sm:$0xf0] }
 0x31b   : > { %v3423_v13 = vadd.f32 %v14166_v3, %v11844_v48 }
 0x31d   : > { %4782 = vmatmul.bf16.vlgmr.msrb.gmra.mxu3 %v9262_v49  ;;  %v3509_v33 = vpop.f32.mrf.mxu2 }
 0x31e   : > { %v3510_v21 = vadd.f32 %v3509_v33, %v3421_v62 }
 0x31f   : > { %v12135_v30 = vpop.f32.mrf.mxu0 }
 0x320   : > { %v3593_v44 = vpop.f32.mrf.mxu3  ;;  %v12151_v33 = vpop.f32.mrf.mxu1 }
 0x321   : > { %v12137_v34 = vadd.f32 %v3593_v44, %v3505_v58  ;;  %v14167_v58 = vld [vmem:[#allocation23_spill] sm:$0xff]  ;;  %14168 = vst [vmem:[#allocation37_spill] sm:$0xff] %v12151_v33  ;;  %v9277_v33 = vld [vmem:[%s10955_s27 + $0x20] sm:$0xf] }
 0x322   : > { %v3659_v62 = vrot.slane %v14167_v58, 1 }
 0x323   : > { %14165 = vst [vmem:[#allocation57_spill] sm:$0xff] %v12137_v34 }
 0x324   : > { %v3660_v48 = vsel %vm3633_vm9, %v3658_v56, %v3659_v62  ;;  %v14173_v62 = vld [vmem:[#allocation69_spill] sm:$0xff] }
 0x325   : > { %v3511_v0 = vpop.f32.mrf.mxu2  ;;  %v3428_v56 = vadd.f32 %v14173_v62, %v11859_v60 }
 0x326   : > { %v3512_v44 = vadd.f32 %v3511_v0, %v3423_v13 }
 0x327   : > { %v4068_v49 = vpop.f32.mrf.mxu0 }
 0x328   : > { %v3595_v2 = vpop.f32.mrf.mxu3  ;;  %v12148_v10 = vadd.f32 %v4157_v19, %v4068_v49  ;;  %v14171_v19 = vld [vmem:[#allocation68_spill] sm:$0xff] }
 0x329   : > { %v12153_v34 = vadd.f32 %v3595_v2, %v3507_v47  ;;  %v3426_v3 = vadd.f32 %v14171_v19, %v11850_v32  ;;  %v4167_v2 = vpop.f32.mrf.mxu1  ;;  %v14174_v19 = vld [vmem:[#allocation24_spill] sm:$0xff] }
 0x32a   : > { %4871 = vmatmul.bf16.vlgmr.msrb.gmra.mxu0 %v9266_v15  ;;  %4215 = vmatmul.bf16.gmra.mxu2 %v3660_v48  ;;  %v9274_v15 = vor.u32 %v10204_v63, %v9271_v38  ;;  %v3668_v8 = vrot.slane %v14174_v19, 1 }
 0x32b   : > { %14169 = vst [vmem:[#allocation38_spill] sm:$0xff] %v12153_v34 }
 0x32d   : > { %4787 = vmatmul.bf16.gmra.mxu3 %v9270_v4  ;;  %v3514_v58 = vpop.f32.mrf.mxu2 }
 0x32e   : > { %v3515_v0 = vadd.f32 %v3514_v58, %v3426_v3  ;;  %v9278_v3 = vor.u32 %v10207_v14, %v9277_v33  ;;  %v14175_v58 = vld [vmem:[#allocation75_spill] sm:$0xff]  ;;  %v10324_v14 = vld [vmem:[%s13937_s8 + $0xd0] sm:$0xff] }
 0x32f   : > { %v12159_v49 = vpop.f32.mrf.mxu0  ;;  %6950 = vmatpush.bf16.msrb.mxu1 %v10324_v14 }
 0x330   : > { %14172 = vst [vmem:[#allocation45_spill] sm:$0xff] %v12159_v49  ;;  %v3598_v13 = vpop.f32.mrf.mxu3 }
 0x331   : > { %v12161_v47 = vadd.f32 %v3598_v13, %v3510_v21  ;;  %v3667_v13 = vrot.slane %v14175_v58, 1  ;;  %v12176_v63 = vpop.f32.mrf.mxu1 }
 0x332   : > { %14176 = vst [vmem:[#allocation43_spill] sm:$0xff] %v12176_v63 }
 0x333   : > { %v3669_v60 = vsel %vm3633_vm9, %v3667_v13, %v3668_v8  ;;  %v9279_v8 = vld [vmem:[%s10955_s27 + $0x28] sm:$0xf0] }
 0x335   : > { %v3516_v48 = vpop.f32.mrf.mxu2 }
 0x336   : > { %v3517_v49 = vadd.f32 %v3516_v48, %v3428_v56  ;;  %v10209_v48 = vld [vmem:[%s10955_s27 + $0x34] sm:$0xf0] }
 0x337   : > { %v4073_v4 = vpop.f32.mrf.mxu0 }
 0x338   : > { %v3600_v34 = vpop.f32.mrf.mxu3  ;;  %v12169_v32 = vadd.f32 %v4162_v20, %v4073_v4  ;;  %v14177_v20 = vld [vmem:[#allocation70_spill] sm:$0xff]  ;;  %v9285_v4 = vld [vmem:[%s10955_s27 + $0x30] sm:$0xf] }
 0x339   : > { %v12172_v21 = vadd.f32 %v3600_v34, %v3512_v44  ;;  %v3431_v38 = vadd.f32 %v14177_v20, %v11865_v16  ;;  %v14179_v16 = vld [vmem:[#allocation71_spill] sm:$0xff]  ;;  %v9286_v14 = vor.u32 %v10209_v48, %v9285_v4  ;;  %v10208_v4 = vld [vmem:[%s10955_s27 + $0x34] sm:$0xf]  ;;  %v9287_v48 = vld [vmem:[%s10955_s27 + $0x38] sm:$0xf0] }
 0x33a   : > { %4876 = vmatmul.bf16.gmra.mxu0 %v9274_v15  ;;  %4220 = vmatmul.bf16.gmra.mxu2 %v3669_v60  ;;  %v10206_v15 = vld [vmem:[%s10955_s27 + $0x24] sm:$0xf]  ;;  %v3433_v58 = vadd.f32 %v14179_v16, %v11874_v6 }
 0x33b   : > { %v9282_v19 = vor.u32 %v10206_v15, %v9279_v8 }
 0x33d   : > { %4792 = vmatmul.bf16.gmra.mxu3 %v9278_v3  ;;  %v3519_v34 = vpop.f32.mrf.mxu2  ;;  %v4172_v3 = vpop.f32.mrf.mxu1 }
 0x33e   : > { %v3520_v56 = vadd.f32 %v3519_v34, %v3431_v38 }
 0x33f   : > { %v12180_v62 = vpop.f32.mrf.mxu0 }
 0x340   : > { %v3603_v44 = vpop.f32.mrf.mxu3 }
 0x341   : > { %v12182_v33 = vadd.f32 %v3603_v44, %v3515_v0  ;;  %v14181_v0 = vld [vmem:[#allocation25_spill] sm:$0xff] }
 0x342   : > { %v3677_v34 = vrot.slane %v14181_v0, 1  ;;  %v9290_v0 = vor.u32 %v10208_v4, %v9287_v48  ;;  %v14192_v48 = vld [vmem:[#allocation76_spill] sm:$0xff] }
 0x343   : > { %14178 = vst [vmem:[#allocation55_spill] sm:$0xff] %v12182_v33  ;;  %v14183_v33 = vld [vmem:[#allocation78_spill] sm:$0xff] }
 0x344   : > { %v3676_v15 = vrot.slane %v14183_v33, 1  ;;  %v9293_v33 = vld [vmem:[%s10955_s27 + $0x40] sm:$0xf] }
 0x345   : > { %v3521_v60 = vpop.f32.mrf.mxu2 }
 0x346   : > { %v3522_v44 = vadd.f32 %v3521_v60, %v3433_v58  ;;  %v3678_v6 = vsel %vm3633_vm9, %v3676_v15, %v3677_v34  ;;  %v12204_v60 = vpop.f32.mrf.mxu1  ;;  %v14187_v34 = vld [vmem:[#allocation74_spill] sm:$0xff] }
 0x347   : > { %v4078_v13 = vpop.f32.mrf.mxu0  ;;  %14186 = vst [vmem:[#allocation51_spill] sm:$0xff] %v12204_v60 }
 0x348   : > { %v3605_v20 = vpop.f32.mrf.mxu3  ;;  %v12193_v38 = vadd.f32 %v4167_v2, %v4078_v13  ;;  %v14184_v2 = vld [vmem:[#allocation73_spill] sm:$0xff] }
 0x349   : > { %v12196_v63 = vadd.f32 %v3605_v20, %v3517_v49  ;;  %v3436_v8 = vadd.f32 %v14184_v2, %v11880_v36 }
 0x34a   : > { %14180 = vst [vmem:[#allocation35_spill] sm:$0xff] %v12193_v38  ;;  %4881 = vmatmul.bf16.gmra.mxu0 %v9282_v19  ;;  %4225 = vmatmul.bf16.gmra.mxu2 %v3678_v6  ;;  %v10211_v19 = vld [vmem:[%s10955_s27 + $0x44] sm:$0xf0] }
 0x34b   : > { %14182 = vst [vmem:[#allocation44_spill] sm:$0xff] %v12196_v63  ;;  %v14188_v63 = vld [vmem:[#allocation26_spill] sm:$0xff] }
 0x34d   : > { %4797 = vmatmul.bf16.gmra.mxu3 %v9286_v14  ;;  %v3524_v13 = vpop.f32.mrf.mxu2  ;;  %v3438_v14 = vadd.f32 %v14187_v34, %v11889_v22 }
 0x34e   : > { %v3525_v49 = vadd.f32 %v3524_v13, %v3436_v8  ;;  %v14190_v13 = vld [vmem:[#allocation81_spill] sm:$0xff]  ;;  %v4177_v4 = vpop.f32.mrf.mxu1 }
 0x34f   : > { %v12202_v16 = vpop.f32.mrf.mxu0 }
 0x350   : > { %14185 = vst [vmem:[#allocation54_spill] sm:$0xff] %v12202_v16  ;;  %v3608_v58 = vpop.f32.mrf.mxu3  ;;  %v3686_v16 = vrot.slane %v14188_v63, 1 }
 0x351   : > { %v12206_v20 = vadd.f32 %v3608_v58, %v3520_v56  ;;  %v9294_v56 = vor.u32 %v10211_v19, %v9293_v33  ;;  %v3685_v58 = vrot.slane %v14190_v13, 1  ;;  %v10323_v33 = vld [vmem:[%s13937_s8 + $0xc8] sm:$0xff]  ;;  %v10210_v19 = vld [vmem:[%s10955_s27 + $0x44] sm:$0xf] }
 0x352   : > { %6951 = vmatpush.bf16.msrb.mxu1 %v10323_v33 }
 0x353   : > { %v3687_v22 = vsel %vm3633_vm9, %v3685_v58, %v3686_v16  ;;  %v14196_v58 = vld [vmem:[#allocation77_spill] sm:$0xff] }
 0x355   : > { %v3526_v6 = vpop.f32.mrf.mxu2 }
 0x356   : > { %v3527_v38 = vadd.f32 %v3526_v6, %v3438_v14  ;;  %v12232_v16 = vpop.f32.mrf.mxu1 }
 0x357   : > { %v4083_v15 = vpop.f32.mrf.mxu0  ;;  %14195 = vst [vmem:[#allocation59_spill] sm:$0xff] %v12232_v16  ;;  %v14200_v16 = vld [vmem:[#allocation85_spill] sm:$0xff] }
 0x358   : > { %v3610_v36 = vpop.f32.mrf.mxu3  ;;  %v12214_v2 = vadd.f32 %v4172_v3, %v4083_v15  ;;  %v14191_v3 = vld [vmem:[#allocation83_spill] sm:$0xff] }
 0x359   : > { %v12217_v8 = vadd.f32 %v3610_v36, %v3522_v44  ;;  %v3441_v34 = vadd.f32 %v14192_v48, %v14191_v3  ;;  %v9301_v36 = vld [vmem:[%s10955_s27 + $0x50] sm:$0xf] }
 0x35a   : > { %4886 = vmatmul.bf16.gmra.mxu0 %v9290_v0  ;;  %4230 = vmatmul.bf16.gmra.mxu2 %v3687_v22  ;;  %v9295_v0 = vld [vmem:[%s10955_s27 + $0x48] sm:$0xf0]  ;;  %v3443_v22 = vadd.f32 %v14196_v58, %v11904_v11 }
 0x35b   : > { %14189 = vst [vmem:[#allocation41_spill] sm:$0xff] %v12217_v8  ;;  %v9298_v13 = vor.u32 %v10210_v19, %v9295_v0  ;;  %v3694_v19 = vrot.slane %v14200_v16, 1  ;;  %v14202_v58 = vld [vmem:[#allocation79_spill] sm:$0xff] }
 0x35c   : > { %v10215_v16 = vld [vmem:[%s10955_s27 + $0x64] sm:$0xf0] }
 0x35d   : > { %4802 = vmatmul.bf16.gmra.mxu3 %v9294_v56  ;;  %v3529_v14 = vpop.f32.mrf.mxu2  ;;  %v10213_v56 = vld [vmem:[%s10955_s27 + $0x54] sm:$0xf0] }
 0x35e   : > { %v3530_v15 = vadd.f32 %v3529_v14, %v3441_v34  ;;  %v14198_v14 = vld [vmem:[#allocation27_spill] sm:$0xff]  ;;  %v9302_v33 = vor.u32 %v10213_v56, %v9301_v36  ;;  %v4182_v0 = vpop.f32.mrf.mxu1  ;;  %v10212_v36 = vld [vmem:[%s10955_s27 + $0x54] sm:$0xf]  ;;  %v9303_v56 = vld [vmem:[%s10955_s27 + $0x58] sm:$0xf0] }
 0x35f   : > { %v12223_v63 = vpop.f32.mrf.mxu0 }
 0x360   : > { %14193 = vst [vmem:[#allocation53_spill] sm:$0xff] %v12223_v63  ;;  %v3613_v44 = vpop.f32.mrf.mxu3 }
 0x361   : > { %v12225_v6 = vadd.f32 %v3613_v44, %v3525_v49  ;;  %v3695_v44 = vrot.slane %v14198_v14, 1 }
 0x363   : > { %14194 = vst [vmem:[#allocation61_spill] sm:$0xff] %v12225_v6  ;;  %v3696_v11 = vsel %vm3633_vm9, %v3694_v19, %v3695_v44  ;;  %v14204_v44 = vld [vmem:[#allocation80_spill] sm:$0xff] }
 0x364   : > { %v3448_v19 = vadd.f32 %v14204_v44, %v11921_v17 }
 0x365   : > { %v3531_v48 = vpop.f32.mrf.mxu2 }
 0x366   : > { %v3532_v6 = vadd.f32 %v3531_v48, %v3443_v22 }
 0x367   : > { %v4088_v3 = vpop.f32.mrf.mxu0 }
 0x368   : > { %v3615_v34 = vpop.f32.mrf.mxu3  ;;  %v12238_v49 = vadd.f32 %v4177_v4, %v4088_v3  ;;  %v14201_v4 = vld [vmem:[#allocation86_spill] sm:$0xff] }
 0x369   : > { %v12241_v8 = vadd.f32 %v3615_v34, %v3527_v38  ;;  %v3446_v3 = vadd.f32 %v14202_v58, %v14201_v4  ;;  %v14205_v4 = vld [vmem:[#allocation87_spill] sm:$0xff] }
 0x36a   : > { %14197 = vst [vmem:[#allocation49_spill] sm:$0xff] %v12238_v49  ;;  %4891 = vmatmul.bf16.gmra.mxu0 %v9298_v13  ;;  %4235 = vmatmul.bf16.gmra.mxu2 %v3696_v11  ;;  %v9306_v13 = vor.u32 %v10212_v36, %v9303_v56  ;;  %v3703_v58 = vrot.slane %v14205_v4, 1 }
 0x36b   : > { %14199 = vst [vmem:[#allocation60_spill] sm:$0xff] %v12241_v8  ;;  %v9309_v8 = vld [vmem:[%s10955_s27 + $0x60] sm:$0xf] }
 0x36d   : > { %4807 = vmatmul.bf16.gmra.mxu3 %v9302_v33  ;;  %v3534_v22 = vpop.f32.mrf.mxu2 }
 0x36e   : > { %v3535_v38 = vadd.f32 %v3534_v22, %v3446_v3 }
 0x36f   : > { %v12247_v14 = vpop.f32.mrf.mxu0 }
 0x370   : > { %14203 = vst [vmem:[#allocation21_spill] sm:$0xff] %v12247_v14  ;;  %v3618_v48 = vpop.f32.mrf.mxu3  ;;  %v14206_v14 = vld [vmem:[#allocation28_spill] sm:$0xff] }
 0x371   : > { %v12249_v34 = vadd.f32 %v3618_v48, %v3530_v15  ;;  %v3704_v63 = vrot.slane %v14206_v14, 1  ;;  %v12261_v15 = vpop.f32.mrf.mxu1  ;;  %v9310_v48 = vor.u32 %v10215_v16, %v9309_v8  ;;  %v10217_v8 = vld [vmem:[%s10955_s27 + $0x74] sm:$0xf0] }
 0x373   : > { %v3705_v17 = vsel %vm3633_vm9, %v3703_v58, %v3704_v63  ;;  %v14209_v63 = vld [vmem:[#allocation84_spill] sm:$0xff] }
 0x375   : > { %v3536_v11 = vpop.f32.mrf.mxu2 }
 0x376   : > { %v3537_v3 = vadd.f32 %v3536_v11, %v3448_v19  ;;  %v9317_v11 = vld [vmem:[%s10955_s27 + $0x70] sm:$0xf] }
 0x377   : > { %v4093_v33 = vpop.f32.mrf.mxu0 }
 0x378   : > { %v3620_v49 = vpop.f32.mrf.mxu3  ;;  %v12257_v60 = vadd.f32 %v4182_v0, %v4093_v33  ;;  %v14208_v0 = vld [vmem:[#allocation82_spill] sm:$0xff] }
 0x379   : > { %v12263_v22 = vadd.f32 %v3620_v49, %v3532_v6  ;;  %v3451_v36 = vadd.f32 %v14208_v0, %v11929_v41  ;;  %v4187_v19 = vpop.f32.mrf.mxu1  ;;  %v10214_v6 = vld [vmem:[%s10955_s27 + $0x64] sm:$0xf]  ;;  %v9311_v49 = vld [vmem:[%s10955_s27 + $0x68] sm:$0xf0]  ;;  %v3712_v0 = vrot.slane %v11934_v26, 1 }
 0x37a   : > { %4896 = vmatmul.bf16.gmra.mxu0 %v9306_v13  ;;  %4240 = vmatmul.bf16.gmra.mxu2 %v3705_v17  ;;  %v9314_v16 = vor.u32 %v10214_v6, %v9311_v49  ;;  %v3453_v13 = vadd.f32 %v14209_v63, %v11940_v27  ;;  %v10322_v27 = vld [vmem:[%s13937_s8 + $0xc0] sm:$0xff] }
 0x37b   : > { %14207 = vst [vmem:[#allocation63_spill] sm:$0xff] %v12263_v22  ;;  %v14210_v22 = vld [vmem:[#allocation29_spill] sm:$0xff]  ;;  %6952 = vmatpush.bf16.msrb.mxu1 %v10322_v27  ;;  %v10216_v63 = vld [vmem:[%s10955_s27 + $0x74] sm:$0xf] }
 0x37d   : > { %4812 = vmatmul.bf16.gmra.mxu3 %v9310_v48  ;;  %v3539_v14 = vpop.f32.mrf.mxu2 }
 0x37e   : > { %v3540_v33 = vadd.f32 %v3539_v14, %v3451_v36  ;;  %v3713_v36 = vrot.slane %v14210_v22, 1 }
 0x37f   : > { %v12268_v56 = vpop.f32.mrf.mxu0 }
 0x380   : > { %v3623_v44 = vpop.f32.mrf.mxu3  ;;  %v3714_v6 = vsel %vm3633_vm9, %v3712_v0, %v3713_v36 }
 0x381   : > { %v12270_v4 = vadd.f32 %v3623_v44, %v3535_v38  ;;  %v9318_v44 = vor.u32 %v10217_v8, %v9317_v11  ;;  %v12298_v8 = vld [vmem:[%s13934_s5] ss:$0 sm:$0xff] }
 0x385   : > { %v3541_v48 = vpop.f32.mrf.mxu2 }
 0x386   : > { %v3542_v38 = vadd.f32 %v3541_v48, %v3453_v13  ;;  %v9319_v13 = vld [vmem:[%s10955_s27 + $0x78] sm:$0xf0]  ;;  %v9325_v48 = vld [vmem:[%s10955_s27 + $0x80] sm:$0xf] }
 0x387   : > { %v4098_v58 = vpop.f32.mrf.mxu0  ;;  %v9322_v0 = vor.u32 %v10216_v63, %v9319_v13 }
 0x388   : > { %v3625_v17 = vpop.f32.mrf.mxu3  ;;  %v12278_v41 = vadd.f32 %v4187_v19, %v4098_v58  ;;  %v12288_v19 = vpop.f32.mrf.mxu1 }
 0x389   : > { %v12282_v14 = vadd.f32 %v3625_v17, %v3537_v3  ;;  %14212 = vst [vmem:[#allocation64_spill] sm:$0xff] %v12288_v19  ;;  %v10219_v17 = vld [vmem:[%s10955_s27 + $0x84] sm:$0xf0] }
 0x38a   : > { %4901 = vmatmul.bf16.gmra.mxu0 %v9314_v16  ;;  %4245 = vmatmul.bf16.gmra.mxu2 %v3714_v6 }
 0x38b   : > { %14211 = vst [vmem:[#allocation58_spill] sm:$0xff] %v12282_v14  ;;  %v9326_v14 = vor.u32 %v10219_v17, %v9325_v48  ;;  %v12326_v48 = vld [vmem:[%s13936_s7] ss:$0 sm:$0xff] }
 0x38d   : > { %4817 = vmatmul.bf16.gmra.mxu3 %v9318_v44  ;;  %v4206_v22 = vpop.f32.mrf.mxu2 }
 0x38e   : > { %v4207_v11 = vadd.f32 %v4206_v22, %v11954_v61  ;;  %v14216_v22 = vld [vmem:[#allocation30_spill] sm:$0xff] }
 0x38f   : > { %v12290_v26 = vpop.f32.mrf.mxu0 }
 0x390   : > { %14213 = vst [vmem:[#allocation22_spill] sm:$0xff] %v12290_v26  ;;  %v3628_v3 = vpop.f32.mrf.mxu3  ;;  %v4286_v16 = vadd.f32 %v4207_v11, %v11942_v28  ;;  %v4192_v36 = vpop.f32.mrf.mxu1 }
 0x391   : > { %v12292_v49 = vadd.f32 %v3628_v3, %v3540_v33  ;;  %v3721_v3 = vrot.slane %v11961_v45, 1 }
 0x392   : > { %v4322_v58 = vadd.f32 %v12298_v8, %v4286_v16 }
 0x393   : > { %14214 = vst [vmem:[#allocation66_spill] sm:$0xff] %v12292_v49  ;;  %v3722_v49 = vrot.slane %v14216_v22, 1 }
 0x394   : > { %v4354_v33 = vmax.f32 %v4322_v58, 0.0 }
 0x395   : > { %v4208_v61 = vpop.f32.mrf.mxu2  ;;  %v3723_v45 = vsel %vm3633_vm9, %v3721_v3, %v3722_v49  ;;  %v9327_v49 = vld [vmem:[%s10955_s27 + $0x88] sm:$0xf0] }
 0x396   : > { %v4386_v28 = vpack.c.bf16 %v4354_v33, %v4354_v33  ;;  %v4209_v16 = vadd.f32 %v4208_v61, %v11968_v43  ;;  %v10250_v33 = vld [vmem:[#allocation3] sm:$0xff] }
 0x397   : > { %v4103_v44 = vpop.f32.mrf.mxu0 }
 0x398   : > { %v3630_v27 = vpop.f32.mrf.mxu3  ;;  %v12306_v6 = vadd.f32 %v4192_v36, %v4103_v44  ;;  %4418 = vst [vmem:[%s12315_s12] sm:$0xf] %v4386_v28  ;;  %v4287_v63 = vadd.f32 %v4209_v16, %v11956_v55  ;;  %v10218_v55 = vld [vmem:[%s10955_s27 + $0x84] sm:$0xf]  ;;  %v5505_v44 = vld [vmem:[#allocation3 + $0x8] sm:$0x1]  ;;  %v6129_v28 = vshrl.u32 %v10250_v33, 16 }
 0x399   : > { %v12310_v11 = vadd.f32 %v3630_v27, %v3542_v38  ;;  %v10345_v27 = vld [vmem:[%s13937_s8 + $0x178] sm:$0xff]  ;;  %v5698_v3 = vunpack.c.l.b16 %v5505_v44  ;;  %v3730_v44 = vrot.slane %v11985_v57, 1 }
 0x39a   : > { %14215 = vst [vmem:[#allocation67_spill] sm:$0xff] %v12306_v6  ;;  %4906 = vmatmul.bf16.gmra.mxu0 %v9322_v0  ;;  %v4323_v13 = vadd.f32 %v12298_v8, %v4287_v63  ;;  %4250 = vmatmul.bf16.gmra.mxu2 %v3723_v45  ;;  %v10337_v16 = vld [vmem:[%s13937_s8 + $0x138] sm:$0xff]  ;;  %v9333_v63 = vld [vmem:[%s10955_s27 + $0x90] sm:$0xf]  ;;  %v10221_v45 = vld [vmem:[%s10955_s27 + $0x94] sm:$0xf0] }
 0x39b   : > { %14217 = vst [vmem:[#allocation23_spill] sm:$0xff] %v12310_v11  ;;  %7123 = vmatpush.bf16.msra.mxu3 %v10345_v27  ;;  %7034 = vmatpush.bf16.msra.mxu2 %v10337_v16  ;;  %v14220_v27 = vld [vmem:[#allocation34_spill] sm:$0xff] }
 0x39c   : > { %v4355_v38 = vmax.f32 %v4323_v13, 0.0  ;;  %v9330_v13 = vor.u32 %v10218_v55, %v9327_v49  ;;  %v3731_v11 = vrot.slane %v14220_v27, 1  ;;  %v9334_v49 = vor.u32 %v10221_v45, %v9333_v63  ;;  %v14221_v27 = vld [vmem:[#allocation31_spill] sm:$0xff] }
 0x39d   : > { %4822 = vmatmul.bf16.gmra.mxu3 %v9326_v14  ;;  %v4211_v58 = vpop.f32.mrf.mxu2 }
 0x39e   : > { %v4387_v0 = vpack.c.bf16 %v4355_v38, %v4355_v38  ;;  %v4212_v36 = vadd.f32 %v4211_v58, %v11978_v42  ;;  %v6131_v42 = vshll.u32 %v10250_v33, 16  ;;  %v12346_v38 = vpack.c.b16 %v5698_v3, %v5698_v3 }
 0x39f   : > { %v12321_v43 = vpop.f32.mrf.mxu0 }
 0x3a0   : > { %14218 = vst [vmem:[#allocation72_spill] sm:$0xff] %v12321_v43  ;;  %v4783_v17 = vpop.f32.mrf.mxu3  ;;  %v4288_v14 = vadd.f32 %v4212_v36, %v11970_v25  ;;  %v10305_v25 = vld [vmem:[%s13937_s8 + $0x38] sm:$0xff]  ;;  %v6136_v43 = vshll.u32 %v12346_v38, 16 }
 0x3a1   : > { %4419 = vst [vmem:[%s12315_s12 + $0x8] sm:$0xf] %v4387_v0  ;;  %v4784_v61 = vadd.f32 %v12326_v48, %v4783_v17  ;;  %v6133_v0 = vrot.slane %v6131_v42, 1  ;;  %7356 = vmatpush.bf16.msra.mxu0 %v10305_v25  ;;  %v3732_v25 = vsel %vm3633_vm9, %v3730_v44, %v3731_v11 }
 0x3a2   : > { %v4324_v22 = vadd.f32 %v12298_v8, %v4288_v14  ;;  %14219 = vst [vmem:[#allocation68_spill] sm:$0xff] %v12346_v38  ;;  %v6138_v42 = vrot.slane %v6136_v43, 1 }
 0x3a3   : > { %v6134_v3 = vor.u32 %v6133_v0, %v6129_v28 }
 0x3a4   : > { %v4356_v58 = vmax.f32 %v4324_v22, 0.0 }
 0x3a5   : > { %v4213_v36 = vpop.f32.mrf.mxu2 }
 0x3a6   : > { %v4388_v6 = vpack.c.bf16 %v4356_v58, %v4356_v58  ;;  %v4214_v55 = vadd.f32 %v4213_v36, %v11993_v1  ;;  %v5391_v36 = vld [vmem:[#allocation3 + $0xc] sm:$0xf] }
 0x3a7   : > { %v4872_v17 = vpop.f32.mrf.mxu0 }
 0x3a8   : > { %v4785_v14 = vpop.f32.mrf.mxu3  ;;  %v4873_v33 = vadd.f32 %v4872_v17, %v4784_v61  ;;  %4420 = vst [vmem:[%s12315_s12 + $0x10] sm:$0xf] %v4388_v6  ;;  %v4289_v16 = vadd.f32 %v4214_v55, %v11980_v23  ;;  %v10313_v61 = vld [vmem:[%s13937_s8 + $0x78] sm:$0xff]  ;;  %v6139_v17 = vsel %vm2137_vm3, %v6134_v3, %v6138_v42  ;;  %v9335_v3 = vld [vmem:[%s10955_s27 + $0x98] sm:$0xf0] }
 0x3a9   : > { %v4786_v1 = vadd.f32 %v12326_v48, %v4785_v14  ;;  %6953 = vmatmul.bf16.vlgmr.msrb.gmra.mxu1 %v6139_v17  ;;  %v9341_v17 = vld [vmem:[%s10955_s27 + $0xa0] sm:$0xf] }
 0x3aa   : > { %v4952_v22 = vmax.f32 %v4873_v33, 0.0  ;;  %4911 = vmatmul.bf16.gmra.mxu0 %v9330_v13  ;;  %v4325_v58 = vadd.f32 %v12298_v8, %v4289_v16  ;;  %4255 = vmatmul.bf16.gmra.mxu2 %v3732_v25 }
 0x3ab   : > { %7445 = vmatpush.bf16.msra.mxu1 %v10313_v61 }
 0x3ac   : > { %v5038_v57 = vpack.c.bf16 %v4952_v22, %v4952_v22  ;;  %v4357_v23 = vmax.f32 %v4325_v58, 0.0  ;;  %v10223_v58 = vld [vmem:[%s10955_s27 + $0xa4] sm:$0xf0] }
 0x3ad   : > { %4827 = vmatmul.bf16.gmra.mxu3 %v9334_v49  ;;  %v4216_v45 = vpop.f32.mrf.mxu2  ;;  %v10220_v49 = vld [vmem:[%s10955_s27 + $0x94] sm:$0xf] }
 0x3ae   : > { %v5071_v43 = vshrl.u32 %v5038_v57, 16  ;;  %v5074_v63 = vshll.u32 %v5038_v57, 16  ;;  %v4389_v0 = vpack.c.bf16 %v4357_v23, %v4357_v23  ;;  %v4217_v33 = vadd.f32 %v4216_v45, %v12006_v5  ;;  %v14223_v23 = vld [vmem:[#allocation48_spill] sm:$0xff] }
 0x3af   : > { %v4874_v6 = vpop.f32.mrf.mxu0  ;;  %v9338_v5 = vor.u32 %v10220_v49, %v9335_v3 }
 0x3b0   : > { %v5073_v28 = vrot.slane %v5071_v43, 7  ;;  %v4788_v11 = vpop.f32.mrf.mxu3  ;;  %v4875_v13 = vadd.f32 %v4874_v6, %v4786_v1  ;;  %4421 = vst [vmem:[%s12315_s12 + $0x18] sm:$0xf] %v4389_v0  ;;  %v4290_v55 = vadd.f32 %v4217_v33, %v14221_v27  ;;  %v3739_v6 = vrot.slane %v14223_v23, 1  ;;  %v14224_v33 = vld [vmem:[#allocation40_spill] sm:$0xff] }
 0x3b1   : > { %v4789_v16 = vadd.f32 %v12326_v48, %v4788_v11  ;;  %v3740_v11 = vrot.slane %v14224_v33, 1  ;;  %v5398_v33 = vld [vmem:[#allocation3 + $0x18] sm:$0xf] }
 0x3b2   : > { %v5076_v14 = vor.u32 %v5074_v63, %v5073_v28  ;;  %v4953_v44 = vmax.f32 %v4875_v13, 0.0  ;;  %v4326_v57 = vadd.f32 %v12298_v8, %v4290_v55  ;;  %v9342_v55 = vor.u32 %v10223_v58, %v9341_v17 }
 0x3b4   : > { %v5392_v42 = vsel %vm11081_vm2, %v5076_v14, %v5391_v36  ;;  %v5039_v61 = vpack.c.bf16 %v4953_v44, %v4953_v44  ;;  %v4358_v1 = vmax.f32 %v4326_v57, 0.0  ;;  %v5395_v44 = vld [vmem:[#allocation3 + $0x14] sm:$0x1]  ;;  %v14225_v57 = vld [vmem:[#allocation39_spill] sm:$0xff] }
 0x3b5   : > { %5393 = vst [vmem:[#allocation3 + $0xc] sm:$0xf] %v5392_v42  ;;  %v4218_v13 = vpop.f32.mrf.mxu2  ;;  %v5077_v42 = vrot.slane %v5073_v28, 4 }
 0x3b6   : > { %v5079_v25 = vshrl.u32 %v5039_v61, 16  ;;  %v5082_v45 = vshll.u32 %v5039_v61, 16  ;;  %v4390_v14 = vpack.c.bf16 %v4358_v1, %v4358_v1  ;;  %v4219_v27 = vadd.f32 %v4218_v13, %v12021_v50 }
 0x3b7   : > { %v4877_v43 = vpop.f32.mrf.mxu0  ;;  %v3741_v1 = vsel %vm3633_vm9, %v3739_v6, %v3740_v11 }
 0x3b8   : > { %v5081_v63 = vrot.slane %v5079_v25, 7  ;;  %v4790_v0 = vpop.f32.mrf.mxu3  ;;  %v4878_v36 = vadd.f32 %v4877_v43, %v4789_v16  ;;  %4422 = vst [vmem:[%s12315_s12 + $0x20] sm:$0xf] %v4390_v14  ;;  %v4291_v23 = vadd.f32 %v4219_v27, %v14225_v57 }
 0x3b9   : > { %v4791_v28 = vadd.f32 %v12326_v48, %v4790_v0  ;;  %v10222_v0 = vld [vmem:[%s10955_s27 + $0xa4] sm:$0xf] }
 0x3ba   : > { %v5084_v38 = vor.u32 %v5082_v45, %v5081_v63  ;;  %v5086_v49 = vrot.slane %v5081_v63, 4  ;;  %v4954_v3 = vmax.f32 %v4878_v36, 0.0  ;;  %4916 = vmatmul.bf16.gmra.mxu0 %v9338_v5  ;;  %v4327_v50 = vadd.f32 %v12298_v8, %v4291_v23  ;;  %4260 = vmatmul.bf16.gmra.mxu2 %v3741_v1  ;;  %v10514_v23 = vld [vmem:[#allocation2 + $0xa8] sm:$0xff] }
 0x3bc   : > { %v5085_v61 = vsel %vm11174_vm7, %v5077_v42, %v5084_v38  ;;  %v5396_v16 = vsel %vm11181_vm8, %v5086_v49, %v5395_v44  ;;  %v5040_v43 = vpack.c.bf16 %v4954_v3, %v4954_v3  ;;  %v4359_v58 = vmax.f32 %v4327_v50, 0.0  ;;  %v10344_v42 = vld [vmem:[%s13937_s8 + $0x170] sm:$0xff] }
 0x3bd   : > { %5394 = vst [vmem:[#allocation3 + $0x10] sm:$0xf] %v5085_v61  ;;  %4832 = vmatmul.bf16.gmra.mxu3 %v9342_v55  ;;  %v4221_v45 = vpop.f32.mrf.mxu2  ;;  %v9343_v55 = vld [vmem:[%s10955_s27 + $0xa8] sm:$0xf0]  ;;  %v9349_v61 = vld [vmem:[%s10955_s27 + $0xb0] sm:$0xf] }
 0x3be   : > { %5397 = vst [vmem:[#allocation3 + $0x14] sm:$0x1] %v5396_v16  ;;  %v5088_v17 = vshrl.u32 %v5040_v43, 16  ;;  %v5091_v63 = vshll.u32 %v5040_v43, 16  ;;  %v4391_v36 = vpack.c.bf16 %v4359_v58, %v4359_v58  ;;  %v4222_v11 = vadd.f32 %v4221_v45, %v12031_v52  ;;  %v10225_v16 = vld [vmem:[%s10955_s27 + $0xb4] sm:$0xf0]  ;;  %7124 = vmatpush.bf16.msra.mxu3 %v10344_v42 }
 0x3bf   : > { %v4879_v38 = vpop.f32.mrf.mxu0  ;;  %v3748_v52 = vrot.slane %v10514_v23, 1  ;;  %v10336_v50 = vld [vmem:[%s13937_s8 + $0x130] sm:$0xff]  ;;  %v14228_v58 = vld [vmem:[#allocation47_spill] sm:$0xff] }
 0x3c0   : > { %v12384_v5 = vrot.slane %v5088_v17, 7  ;;  %v4793_v13 = vpop.f32.mrf.mxu3  ;;  %v4880_v6 = vadd.f32 %v4879_v38, %v4791_v28  ;;  %4423 = vst [vmem:[%s12315_s12 + $0x28] sm:$0xf] %v4391_v36  ;;  %v4292_v27 = vadd.f32 %v4222_v11, %v12023_v53  ;;  %v10304_v28 = vld [vmem:[%s13937_s8 + $0x30] sm:$0xff]  ;;  %v3749_v38 = vrot.slane %v14228_v58, 1  ;;  %7035 = vmatpush.bf16.msra.mxu2 %v10336_v50 }
 0x3c1   : > { %v4794_v3 = vadd.f32 %v12326_v48, %v4793_v13  ;;  %7357 = vmatpush.bf16.msra.mxu0 %v10304_v28  ;;  %v5402_v58 = vld [vmem:[#allocation3 + $0x20] sm:$0x1]  ;;  %v10312_v28 = vld [vmem:[%s13937_s8 + $0x70] sm:$0xff] }
 0x3c2   : > { %v5093_v14 = vor.u32 %v5091_v63, %v12384_v5  ;;  %v4955_v44 = vmax.f32 %v4880_v6, 0.0  ;;  %v4328_v1 = vadd.f32 %v12298_v8, %v4292_v27  ;;  %v9346_v63 = vor.u32 %v10222_v0, %v9343_v55  ;;  %7446 = vmatpush.bf16.msra.mxu1 %v10312_v28 }
 0x3c3   : > { %v5094_v13 = vrot.slane %v12384_v5, 4  ;;  %v3750_v50 = vsel %vm3633_vm9, %v3748_v52, %v3749_v38 }
 0x3c4   : > { %v5399_v49 = vsel %vm11081_vm2, %v5093_v14, %v5398_v33  ;;  %v5041_v57 = vpack.c.bf16 %v4955_v44, %v4955_v44  ;;  %v10251_v43 = vld [vmem:[#allocation3 + $0xc] sm:$0xff]  ;;  %v4360_v6 = vmax.f32 %v4328_v1, 0.0  ;;  %v9350_v33 = vor.u32 %v10225_v16, %v9349_v61 }
 0x3c5   : > { %5400 = vst [vmem:[#allocation3 + $0x18] sm:$0xf] %v5399_v49  ;;  %v5508_v53 = vld [vmem:[#allocation3 + $0x14] sm:$0x1]  ;;  %v6167_v11 = vshll.u32 %v10251_v43, 16  ;;  %v4223_v27 = vpop.f32.mrf.mxu2  ;;  %v6165_v55 = vshrl.u32 %v10251_v43, 16 }
 0x3c6   : > { %v5096_v17 = vshrl.u32 %v5041_v57, 16  ;;  %v5701_v45 = vunpack.c.l.b16 %v5508_v53  ;;  %v5099_v44 = vshll.u32 %v5041_v57, 16  ;;  %v4392_v26 = vpack.c.bf16 %v4360_v6, %v4360_v6 }
 0x3c7   : > { %v4882_v36 = vpop.f32.mrf.mxu0  ;;  %v4224_v0 = vadd.f32 %v4223_v27, %v12045_v24  ;;  %v6169_v5 = vrot.slane %v6167_v11, 1  ;;  %v5405_v27 = vld [vmem:[#allocation3 + $0x24] sm:$0xf] }
 0x3c8   : > { %v5098_v14 = vrot.slane %v5096_v17, 7  ;;  %v4795_v42 = vpop.f32.mrf.mxu3  ;;  %v4883_v49 = vadd.f32 %v4882_v36, %v4794_v3  ;;  %v12409_v23 = vpack.c.b16 %v5701_v45, %v5701_v45  ;;  %4424 = vst [vmem:[%s12315_s12 + $0x30] sm:$0xf] %v4392_v26 }
 0x3c9   : > { %v4293_v57 = vadd.f32 %v4224_v0, %v12033_v39  ;;  %v6170_v3 = vor.u32 %v6169_v5, %v6165_v55  ;;  %v4796_v39 = vadd.f32 %v12326_v48, %v4795_v42  ;;  %v14229_v0 = vld [vmem:[#allocation33_spill] sm:$0xff]  ;;  %v10224_v5 = vld [vmem:[%s10955_s27 + $0xb4] sm:$0xf] }
 0x3ca   : > { %v5101_v1 = vor.u32 %v5099_v44, %v5098_v14  ;;  %v5103_v53 = vrot.slane %v5098_v14, 4  ;;  %v4956_v61 = vmax.f32 %v4883_v49, 0.0  ;;  %4921 = vmatmul.bf16.gmra.mxu0 %v9346_v63  ;;  %v6172_v16 = vshll.u32 %v12409_v23, 16  ;;  %4265 = vmatmul.bf16.gmra.mxu2 %v3750_v50  ;;  %v10227_v50 = vld [vmem:[%s10955_s27 + $0xc4] sm:$0xf0] }
 0x3cb   : > { %v4329_v26 = vadd.f32 %v12298_v8, %v4293_v57  ;;  %v9357_v57 = vld [vmem:[%s10955_s27 + $0xc0] sm:$0xf] }
 0x3cc   : > { %v5102_v24 = vsel %vm11174_vm7, %v5094_v13, %v5101_v1  ;;  %v5403_v43 = vsel %vm11181_vm8, %v5103_v53, %v5402_v58  ;;  %v5042_v17 = vpack.c.bf16 %v4956_v61, %v4956_v61  ;;  %v6174_v63 = vrot.slane %v6172_v16, 1  ;;  %v9351_v1 = vld [vmem:[%s10955_s27 + $0xb8] sm:$0xf0] }
 0x3cd   : > { %5401 = vst [vmem:[#allocation3 + $0x1c] sm:$0xf] %v5102_v24  ;;  %4837 = vmatmul.bf16.gmra.mxu3 %v9350_v33  ;;  %v4361_v45 = vmax.f32 %v4329_v26, 0.0  ;;  %v4226_v11 = vpop.f32.mrf.mxu2  ;;  %v14231_v26 = vld [vmem:[#allocation42_spill] sm:$0xff] }
 0x3ce   : > { %5404 = vst [vmem:[#allocation3 + $0x20] sm:$0x1] %v5403_v43  ;;  %v5105_v52 = vshrl.u32 %v5042_v17, 16  ;;  %v6175_v38 = vsel %vm2137_vm3, %v6170_v3, %v6174_v63  ;;  %v5108_v36 = vshll.u32 %v5042_v17, 16  ;;  %v4227_v42 = vadd.f32 %v4226_v11, %v12059_v40  ;;  %v10515_v40 = vld [vmem:[#allocation2 + $0xb4] sm:$0xff]  ;;  %v14230_v43 = vld [vmem:[#allocation56_spill] sm:$0xff] }
 0x3cf   : > { %6958 = vmatmul.bf16.gmra.mxu1 %v6175_v38  ;;  %v4884_v13 = vpop.f32.mrf.mxu0  ;;  %v4393_v44 = vpack.c.bf16 %v4361_v45, %v4361_v45  ;;  %v3757_v24 = vrot.slane %v10515_v40, 1  ;;  %v3758_v17 = vrot.slane %v14230_v43, 1  ;;  %v9354_v38 = vor.u32 %v10224_v5, %v9351_v1 }
 0x3d0   : > { %v5107_v6 = vrot.slane %v5105_v52, 7  ;;  %v4798_v14 = vpop.f32.mrf.mxu3  ;;  %v4885_v33 = vadd.f32 %v4884_v13, %v4796_v39  ;;  %v4294_v55 = vadd.f32 %v4227_v42, %v14229_v0  ;;  %v4140_v39 = vadd.f32 %v14231_v26, %v12070_v29 }
 0x3d1   : > { %4425 = vst [vmem:[%s12315_s12 + $0x38] sm:$0xf] %v4393_v44  ;;  %v4799_v61 = vadd.f32 %v12326_v48, %v4798_v14  ;;  %v9358_v14 = vor.u32 %v10227_v50, %v9357_v57 }
 0x3d2   : > { %v5110_v49 = vor.u32 %v5108_v36, %v5107_v6  ;;  %v4957_v58 = vmax.f32 %v4885_v33, 0.0  ;;  %v4330_v28 = vadd.f32 %v12298_v8, %v4294_v55  ;;  %v5111_v13 = vrot.slane %v5107_v6, 4 }
 0x3d4   : > { %v5406_v53 = vsel %vm11081_vm2, %v5110_v49, %v5405_v27  ;;  %v5043_v16 = vpack.c.bf16 %v4957_v58, %v4957_v58  ;;  %v10252_v3 = vld [vmem:[#allocation3 + $0x18] sm:$0xff]  ;;  %v4362_v36 = vmax.f32 %v4330_v28, 0.0 }
 0x3d5   : > { %5407 = vst [vmem:[#allocation3 + $0x24] sm:$0xf] %v5406_v53  ;;  %v5511_v63 = vld [vmem:[#allocation3 + $0x20] sm:$0x1]  ;;  %v6203_v33 = vshll.u32 %v10252_v3, 16  ;;  %v4228_v42 = vpop.f32.mrf.mxu2  ;;  %v6201_v29 = vshrl.u32 %v10252_v3, 16 }
 0x3d6   : > { %v5113_v52 = vshrl.u32 %v5043_v16, 16  ;;  %v5704_v45 = vunpack.c.l.b16 %v5511_v63  ;;  %v5116_v27 = vshll.u32 %v5043_v16, 16  ;;  %v4394_v55 = vpack.c.bf16 %v4362_v36, %v4362_v36  ;;  %v5409_v53 = vld [vmem:[#allocation3 + $0x2c] sm:$0x1] }
 0x3d7   : > { %v4887_v11 = vpop.f32.mrf.mxu0  ;;  %v4229_v40 = vadd.f32 %v4228_v42, %v4140_v39  ;;  %v6205_v43 = vrot.slane %v6203_v33, 1  ;;  %v3759_v16 = vsel %vm3633_vm9, %v3757_v24, %v3758_v17  ;;  %v10335_v17 = vld [vmem:[%s13937_s8 + $0x128] sm:$0xff] }
 0x3d8   : > { %v5115_v44 = vrot.slane %v5113_v52, 7  ;;  %v4800_v49 = vpop.f32.mrf.mxu3  ;;  %v4888_v58 = vadd.f32 %v4887_v11, %v4799_v61  ;;  %v12440_v0 = vpack.c.b16 %v5704_v45, %v5704_v45  ;;  %4426 = vst [vmem:[%s12315_s12 + $0x40] sm:$0xf] %v4394_v55  ;;  %7036 = vmatpush.bf16.msra.mxu2 %v10335_v17  ;;  %v10226_v55 = vld [vmem:[%s10955_s27 + $0xc4] sm:$0xf] }
 0x3d9   : > { %v4295_v50 = vadd.f32 %v4229_v40, %v12061_v59  ;;  %v6206_v28 = vor.u32 %v6205_v43, %v6201_v29  ;;  %v4801_v52 = vadd.f32 %v12326_v48, %v4800_v49  ;;  %v9359_v40 = vld [vmem:[%s10955_s27 + $0xc8] sm:$0xf0]  ;;  %v10343_v29 = vld [vmem:[%s13937_s8 + $0x168] sm:$0xff] }
 0x3da   : > { %v5118_v5 = vor.u32 %v5116_v27, %v5115_v44  ;;  %v5120_v1 = vrot.slane %v5115_v44, 4  ;;  %v4958_v6 = vmax.f32 %v4888_v58, 0.0  ;;  %4926 = vmatmul.bf16.gmra.mxu0 %v9354_v38  ;;  %v6208_v57 = vshll.u32 %v12440_v0, 16  ;;  %4270 = vmatmul.bf16.gmra.mxu2 %v3759_v16  ;;  %v5412_v27 = vld [vmem:[#allocation3 + $0x30] sm:$0xf] }
 0x3db   : > { %v4331_v39 = vadd.f32 %v12298_v8, %v4295_v50  ;;  %v10229_v50 = vld [vmem:[%s10955_s27 + $0xd4] sm:$0xf0]  ;;  %7125 = vmatpush.bf16.msra.mxu3 %v10343_v29 }
 0x3dc   : > { %v5119_v61 = vsel %vm11174_vm7, %v5111_v13, %v5118_v5  ;;  %v5410_v63 = vsel %vm11181_vm8, %v5120_v1, %v5409_v53  ;;  %v5044_v3 = vpack.c.bf16 %v4958_v6, %v4958_v6  ;;  %v6210_v26 = vrot.slane %v6208_v57, 1  ;;  %v10516_v6 = vld [vmem:[#allocation2 + $0xc0] sm:$0xff] }
 0x3dd   : > { %5408 = vst [vmem:[#allocation3 + $0x28] sm:$0xf] %v5119_v61  ;;  %4842 = vmatmul.bf16.gmra.mxu3 %v9358_v14  ;;  %v4363_v38 = vmax.f32 %v4331_v39, 0.0  ;;  %v4231_v11 = vpop.f32.mrf.mxu2  ;;  %v9365_v57 = vld [vmem:[%s10955_s27 + $0xd0] sm:$0xf] }
 0x3de   : > { %5411 = vst [vmem:[#allocation3 + $0x2c] sm:$0x1] %v5410_v63  ;;  %v5122_v59 = vshrl.u32 %v5044_v3, 16  ;;  %v6211_v24 = vsel %vm2137_vm3, %v6206_v28, %v6210_v26  ;;  %v5125_v36 = vshll.u32 %v5044_v3, 16  ;;  %v4232_v42 = vadd.f32 %v4231_v11, %v12081_v7  ;;  %v10334_v3 = vld [vmem:[%s13937_s8 + $0x120] sm:$0xff] }
 0x3df   : > { %6963 = vmatmul.bf16.gmra.mxu1 %v6211_v24  ;;  %v4889_v45 = vpop.f32.mrf.mxu0  ;;  %v4395_v44 = vpack.c.bf16 %v4363_v38, %v4363_v38  ;;  %v3766_v7 = vrot.slane %v10516_v6, 1  ;;  %v14233_v26 = vld [vmem:[#allocation32_spill] sm:$0xff]  ;;  %7037 = vmatpush.bf16.msra.mxu2 %v10334_v3 }
 0x3e0   : > { %v12456_v13 = vrot.slane %v5122_v59, 7  ;;  %v4803_v14 = vpop.f32.mrf.mxu3  ;;  %v4890_v33 = vadd.f32 %v4889_v45, %v4801_v52  ;;  %v4296_v53 = vadd.f32 %v4232_v42, %v12074_v37  ;;  %v14232_v37 = vld [vmem:[#allocation62_spill] sm:$0xff]  ;;  %v4145_v39 = vadd.f32 %v14233_v26, %v12090_v9 }
 0x3e1   : > { %4427 = vst [vmem:[%s12315_s12 + $0x48] sm:$0xf] %v4395_v44  ;;  %v4804_v5 = vadd.f32 %v12326_v48, %v4803_v14  ;;  %v3767_v61 = vrot.slane %v14232_v37, 1  ;;  %v9362_v59 = vor.u32 %v10226_v55, %v9359_v40  ;;  %v10303_v14 = vld [vmem:[%s13937_s8 + $0x28] sm:$0xff]  ;;  %v5416_v55 = vld [vmem:[#allocation3 + $0x38] sm:$0x1] }
 0x3e2   : > { %v5127_v49 = vor.u32 %v5125_v36, %v12456_v13  ;;  %v4959_v58 = vmax.f32 %v4890_v33, 0.0  ;;  %v4332_v28 = vadd.f32 %v12298_v8, %v4296_v53  ;;  %v5128_v17 = vrot.slane %v12456_v13, 4  ;;  %v10333_v13 = vld [vmem:[%s13937_s8 + $0x118] sm:$0xff]  ;;  %7358 = vmatpush.bf16.msra.mxu0 %v10303_v14  ;;  %v10311_v37 = vld [vmem:[%s13937_s8 + $0x68] sm:$0xff] }
 0x3e3   : > { %v9366_v36 = vor.u32 %v10229_v50, %v9365_v57  ;;  %v3768_v50 = vsel %vm3633_vm9, %v3766_v7, %v3767_v61  ;;  %7038 = vmatpush.bf16.msra.mxu2 %v10333_v13  ;;  %7447 = vmatpush.bf16.msra.mxu1 %v10311_v37  ;;  %v10331_v14 = vld [vmem:[%s13937_s8 + $0x108] sm:$0xff] }
 0x3e4   : > { %v5413_v43 = vsel %vm11081_vm2, %v5127_v49, %v5412_v27  ;;  %v5045_v1 = vpack.c.bf16 %v4959_v58, %v4959_v58  ;;  %v10253_v16 = vld [vmem:[#allocation3 + $0x24] sm:$0xff]  ;;  %v4364_v38 = vmax.f32 %v4332_v28, 0.0 }
 0x3e5   : > { %5414 = vst [vmem:[#allocation3 + $0x30] sm:$0xf] %v5413_v43  ;;  %v5514_v63 = vld [vmem:[#allocation3 + $0x2c] sm:$0x1]  ;;  %v6239_v11 = vshll.u32 %v10253_v16, 16  ;;  %v4233_v27 = vpop.f32.mrf.mxu2  ;;  %v6237_v40 = vshrl.u32 %v10253_v16, 16 }
 0x3e6   : > { %v5130_v52 = vshrl.u32 %v5045_v1, 16  ;;  %v5707_v24 = vunpack.c.l.b16 %v5514_v63  ;;  %v5133_v44 = vshll.u32 %v5045_v1, 16  ;;  %v4396_v58 = vpack.c.bf16 %v4364_v38, %v4364_v38 }
 0x3e7   : > { %v4892_v45 = vpop.f32.mrf.mxu0  ;;  %v4234_v53 = vadd.f32 %v4233_v27, %v4145_v39  ;;  %v6241_v29 = vrot.slane %v6239_v11, 1 }
 0x3e8   : > { %v5132_v33 = vrot.slane %v5130_v52, 7  ;;  %v4805_v42 = vpop.f32.mrf.mxu3  ;;  %v4893_v9 = vadd.f32 %v4892_v45, %v4804_v5  ;;  %v12483_v49 = vpack.c.b16 %v5707_v24, %v5707_v24  ;;  %4428 = vst [vmem:[%s12315_s12 + $0x50] sm:$0xf] %v4396_v58  ;;  %v10332_v52 = vld [vmem:[%s13937_s8 + $0x110] sm:$0xff] }
 0x3e9   : > { %v4297_v5 = vadd.f32 %v4234_v53, %v12083_v46  ;;  %v6242_v28 = vor.u32 %v6241_v29, %v6237_v40  ;;  %v4806_v46 = vadd.f32 %v12326_v48, %v4805_v42  ;;  %7039 = vmatpush.bf16.msra.mxu2 %v10332_v52  ;;  %v10517_v42 = vld [vmem:[#allocation2 + $0xcc] sm:$0xff]  ;;  %v10231_v29 = vld [vmem:[%s10955_s27 + $0xe4] sm:$0xf0] }
 0x3ea   : > { %v5135_v43 = vor.u32 %v5133_v44, %v5132_v33  ;;  %v5137_v6 = vrot.slane %v5132_v33, 4  ;;  %v4960_v57 = vmax.f32 %v4893_v9, 0.0  ;;  %4931 = vmatmul.bf16.gmra.mxu0 %v9362_v59  ;;  %v6244_v1 = vshll.u32 %v12483_v49, 16  ;;  %4275 = vmatmul.bf16.gmra.mxu2 %v3768_v50  ;;  %v5419_v44 = vld [vmem:[#allocation3 + $0x3c] sm:$0xf] }
 0x3eb   : > { %v4333_v39 = vadd.f32 %v12298_v8, %v4297_v5  ;;  %v3775_v9 = vrot.slane %v10517_v42, 1  ;;  %v9373_v40 = vld [vmem:[%s10955_s27 + $0xe0] sm:$0xf]  ;;  %v5423_v42 = vld [vmem:[#allocation3 + $0x44] sm:$0x1] }
 0x3ec   : > { %v5136_v16 = vsel %vm11174_vm7, %v5128_v17, %v5135_v43  ;;  %v5417_v63 = vsel %vm11181_vm8, %v5137_v6, %v5416_v55  ;;  %v5046_v3 = vpack.c.bf16 %v4960_v57, %v4960_v57  ;;  %v6246_v26 = vrot.slane %v6244_v1, 1  ;;  %v14234_v55 = vld [vmem:[#allocation65_spill] sm:$0xff]  ;;  %v10228_v6 = vld [vmem:[%s10955_s27 + $0xd4] sm:$0xf] }
 0x3ed   : > { %5415 = vst [vmem:[#allocation3 + $0x34] sm:$0xf] %v5136_v16  ;;  %4847 = vmatmul.bf16.gmra.mxu3 %v9366_v36  ;;  %v4365_v59 = vmax.f32 %v4333_v39, 0.0  ;;  %v4236_v45 = vpop.f32.mrf.mxu2  ;;  %v3776_v53 = vrot.slane %v14234_v55, 1  ;;  %v9367_v57 = vld [vmem:[%s10955_s27 + $0xd8] sm:$0xf0]  ;;  %7040 = vmatpush.bf16.msra.mxu2 %v10331_v14  ;;  %v9374_v39 = vor.u32 %v10231_v29, %v9373_v40 }
 0x3ee   : > { %5418 = vst [vmem:[#allocation3 + $0x38] sm:$0x1] %v5417_v63  ;;  %v5139_v7 = vshrl.u32 %v5046_v3, 16  ;;  %v6247_v61 = vsel %vm2137_vm3, %v6242_v28, %v6246_v26  ;;  %v5142_v38 = vshll.u32 %v5046_v3, 16  ;;  %v4237_v27 = vadd.f32 %v4236_v45, %v12103_v51  ;;  %v14235_v28 = vld [vmem:[#allocation52_spill] sm:$0xff] }
 0x3ef   : > { %6968 = vmatmul.bf16.gmra.mxu1 %v6247_v61  ;;  %v4894_v24 = vpop.f32.mrf.mxu0  ;;  %v4397_v33 = vpack.c.bf16 %v4365_v59, %v4365_v59  ;;  %v4150_v37 = vadd.f32 %v14235_v28, %v12114_v54  ;;  %v10342_v3 = vld [vmem:[%s13937_s8 + $0x160] sm:$0xff]  ;;  %v3777_v59 = vsel %vm3633_vm9, %v3775_v9, %v3776_v53 }
 0x3f0   : > { %v12505_v17 = vrot.slane %v5139_v7, 7  ;;  %v4808_v36 = vpop.f32.mrf.mxu3  ;;  %v4895_v11 = vadd.f32 %v4894_v24, %v4806_v46  ;;  %v4298_v43 = vadd.f32 %v4237_v27, %v12094_v35  ;;  %v10330_v35 = vld [vmem:[%s13937_s8 + $0x100] sm:$0xff]  ;;  %v9370_v46 = vor.u32 %v10228_v6, %v9367_v57  ;;  %7126 = vmatpush.bf16.msra.mxu3 %v10342_v3  ;;  %v14236_v6 = vld [vmem:[#allocation46_spill] sm:$0xff] }
 0x3f1   : > { %4429 = vst [vmem:[%s12315_s12 + $0x58] sm:$0xf] %v4397_v33  ;;  %v4809_v5 = vadd.f32 %v12326_v48, %v4808_v36  ;;  %7041 = vmatpush.bf16.msra.mxu2 %v10330_v35 }
 0x3f2   : > { %v5144_v13 = vor.u32 %v5142_v38, %v12505_v17  ;;  %v4961_v58 = vmax.f32 %v4895_v11, 0.0  ;;  %v4334_v16 = vadd.f32 %v12298_v8, %v4298_v43  ;;  %v5145_v61 = vrot.slane %v12505_v17, 4  ;;  %v10341_v17 = vld [vmem:[%s13937_s8 + $0x158] sm:$0xff]  ;;  %v10266_v43 = vld [vmem:[#allocation3 + $0xc] sm:$0xff] }
 0x3f4   : > { %v5420_v1 = vsel %vm11081_vm2, %v5144_v13, %v5419_v44  ;;  %v5047_v51 = vpack.c.bf16 %v4961_v58, %v4961_v58  ;;  %v10254_v50 = vld [vmem:[#allocation3 + $0x30] sm:$0xff]  ;;  %v4366_v52 = vmax.f32 %v4334_v16, 0.0  ;;  %7127 = vmatpush.bf16.msra.mxu3 %v10341_v17 }
 0x3f5   : > { %5421 = vst [vmem:[#allocation3 + $0x3c] sm:$0xf] %v5420_v1  ;;  %v5517_v63 = vld [vmem:[#allocation3 + $0x38] sm:$0x1]  ;;  %v6275_v24 = vshll.u32 %v10254_v50, 16  ;;  %v4238_v36 = vpop.f32.mrf.mxu2  ;;  %v6273_v9 = vshrl.u32 %v10254_v50, 16 }
 0x3f6   : > { %v5147_v26 = vshrl.u32 %v5047_v51, 16  ;;  %v5710_v7 = vunpack.c.l.b16 %v5517_v63  ;;  %v5150_v45 = vshll.u32 %v5047_v51, 16  ;;  %v5553_v44 = vld [vmem:[#allocation3 + $0x14] sm:$0x1]  ;;  %v4398_v27 = vpack.c.bf16 %v4366_v52, %v4366_v52 }
 0x3f7   : > { %v4897_v54 = vpop.f32.mrf.mxu0  ;;  %v4239_v13 = vadd.f32 %v4238_v36, %v4150_v37  ;;  %v6277_v58 = vrot.slane %v6275_v24, 1 }
 0x3f8   : > { %v5149_v38 = vrot.slane %v5147_v26, 7  ;;  %v4810_v11 = vpop.f32.mrf.mxu3  ;;  %v4898_v14 = vadd.f32 %v4897_v54, %v4809_v5  ;;  %v12533_v33 = vpack.c.b16 %v5710_v7, %v5710_v7  ;;  %4430 = vst [vmem:[%s12315_s12 + $0x60] sm:$0xf] %v4398_v27  ;;  %v5842_v5 = vunpack.c.l.b16 %v5553_v44  ;;  %v12560_v44 = vld [vmem:[%s10955_s27 + $0xf0] sm:$0xf] }
 0x3f9   : > { %v4299_v57 = vadd.f32 %v4239_v13, %v14236_v6  ;;  %v6278_v1 = vor.u32 %v6277_v58, %v6273_v9  ;;  %v4811_v63 = vadd.f32 %v12326_v48, %v4810_v11  ;;  %v6143_v26 = vshll.u32 %v10266_v43, 16  ;;  %v5426_v11 = vld [vmem:[#allocation3 + $0x48] sm:$0xf]  ;;  %v10230_v13 = vld [vmem:[%s10955_s27 + $0xe4] sm:$0xf] }
 0x3fa   : > { %v5152_v55 = vor.u32 %v5150_v45, %v5149_v38  ;;  %v5154_v53 = vrot.slane %v5149_v38, 4  ;;  %v4962_v40 = vmax.f32 %v4898_v14, 0.0  ;;  %4936 = vmatmul.bf16.gmra.mxu0 %v9370_v46  ;;  %v6280_v29 = vshll.u32 %v12533_v33, 16  ;;  %4280 = vmatmul.bf16.gmra.mxu2 %v3777_v59  ;;  %v10340_v46 = vld [vmem:[%s13937_s8 + $0x150] sm:$0xff]  ;;  %v10339_v45 = vld [vmem:[%s13937_s8 + $0x148] sm:$0xff] }
 0x3fb   : > { %v4335_v16 = vadd.f32 %v12298_v8, %v4299_v57  ;;  %v12551_v52 = vpack.c.b16 %v5842_v5, %v5842_v5  ;;  %7128 = vmatpush.bf16.msra.mxu3 %v10340_v46  ;;  %v6145_v9 = vrot.slane %v6143_v26, 1  ;;  %v6141_v6 = vshrl.u32 %v10266_v43, 16  ;;  %v10302_v43 = vld [vmem:[%s13937_s8 + $0x20] sm:$0xff] }
 0x3fc   : > { %v5153_v51 = vsel %vm11174_vm7, %v5145_v61, %v5152_v55  ;;  %v5424_v50 = vsel %vm11181_vm8, %v5154_v53, %v5423_v42  ;;  %v5048_v28 = vpack.c.bf16 %v4962_v40, %v4962_v40  ;;  %v6282_v37 = vrot.slane %v6280_v29, 1  ;;  %v12564_v42 = vld [vmem:[%s10955_s27 + $0xf4] sm:$0xf0]  ;;  %v9375_v55 = vld [vmem:[%s10955_s27 + $0xe8] sm:$0xf0]  ;;  %7359 = vmatpush.bf16.msra.mxu0 %v10302_v43 }
 0x3fd   : > { %5422 = vst [vmem:[#allocation3 + $0x40] sm:$0xf] %v5153_v51  ;;  %4852 = vmatmul.bf16.gmra.mxu3 %v9374_v39  ;;  %v4367_v7 = vmax.f32 %v4335_v16, 0.0  ;;  %v4241_v59 = vpop.f32.mrf.mxu2  ;;  %v6148_v53 = vshll.u32 %v12551_v52, 16  ;;  %v9378_v16 = vor.u32 %v10230_v13, %v9375_v55  ;;  %v5602_v55 = vld [vmem:[#allocation3 + $0x20] sm:$0x1] }
 0x3fe   : > { %5425 = vst [vmem:[#allocation3 + $0x44] sm:$0x1] %v5424_v50  ;;  %v5156_v35 = vshrl.u32 %v5048_v28, 16  ;;  %v6283_v3 = vsel %vm2137_vm3, %v6278_v1, %v6282_v37  ;;  %v5159_v54 = vshll.u32 %v5048_v28, 16  ;;  %v4242_v14 = vadd.f32 %v4241_v59, %v12125_v31  ;;  %v14237_v1 = vld [vmem:[#allocation36_spill] sm:$0xff] }
 0x3ff   : > { %6973 = vmatmul.bf16.gmra.mxu1 %v6283_v3  ;;  %v4899_v61 = vpop.f32.mrf.mxu0  ;;  %v4399_v36 = vpack.c.bf16 %v4367_v7, %v4367_v7  ;;  %7129 = vmatpush.bf16.msra.mxu3 %v10339_v45  ;;  %v4155_v5 = vadd.f32 %v14237_v1, %v12135_v30  ;;  %v10338_v28 = vld [vmem:[%s13937_s8 + $0x140] sm:$0xff]  ;;  %v6150_v26 = vrot.slane %v6148_v53, 1  ;;  %v5556_v45 = vld [vmem:[#allocation3 + $0x20] sm:$0x1] }
 0x400   : > { %v12553_v39 = vrot.slane %v5156_v35, 7  ;;  %v4813_v24 = vpop.f32.mrf.mxu3  ;;  %v4900_v38 = vadd.f32 %v4899_v61, %v4811_v63  ;;  %v4300_v58 = vadd.f32 %v4242_v14, %v12116_v12  ;;  %v9382_v12 = vor.u32 %v12564_v42, %v12560_v44 }
 0x401   : > { %4431 = vst [vmem:[%s12315_s12 + $0x68] sm:$0xf] %v4399_v36  ;;  %v4814_v31 = vadd.f32 %v12326_v48, %v4813_v24  ;;  %v6146_v63 = vor.u32 %v6145_v9, %v6141_v6  ;;  %v10301_v36 = vld [vmem:[%s13937_s8 + $0x18] sm:$0xff]  ;;  %v10310_v6 = vld [vmem:[%s13937_s8 + $0x60] sm:$0xff] }
 0x402   : > { %v5161_v17 = vor.u32 %v5159_v54, %v12553_v39  ;;  %v4963_v27 = vmax.f32 %v4900_v38, 0.0  ;;  %v4336_v51 = vadd.f32 %v12298_v8, %v4300_v58  ;;  %v5162_v30 = vrot.slane %v12553_v39, 4  ;;  %7360 = vmatpush.bf16.msra.mxu0 %v10301_v36  ;;  %7448 = vmatpush.bf16.msra.mxu1 %v10310_v6  ;;  %v5433_v36 = vld [vmem:[#allocation3 + $0x54] sm:$0xf] }
 0x403   : > { %7130 = vmatpush.bf16.msra.mxu3 %v10338_v28 }
 0x404   : > { %v5427_v40 = vsel %vm11081_vm2, %v5161_v17, %v5426_v11  ;;  %v5049_v29 = vpack.c.bf16 %v4963_v27, %v4963_v27  ;;  %v10255_v57 = vld [vmem:[#allocation3 + $0x3c] sm:$0xff]  ;;  %v4368_v3 = vmax.f32 %v4336_v51, 0.0  ;;  %v5430_v11 = vld [vmem:[#allocation3 + $0x50] sm:$0x1] }
 0x405   : > { %5428 = vst [vmem:[#allocation3 + $0x48] sm:$0xf] %v5427_v40  ;;  %v5520_v50 = vld [vmem:[#allocation3 + $0x44] sm:$0x1]  ;;  %v6311_v46 = vshll.u32 %v10255_v57, 16  ;;  %v4243_v54 = vpop.f32.mrf.mxu2  ;;  %v6309_v44 = vshrl.u32 %v10255_v57, 16  ;;  %v6151_v40 = vsel %vm2137_vm3, %v6146_v63, %v6150_v26 }
 0x406   : > { %v5164_v37 = vshrl.u32 %v5049_v29, 16  ;;  %v5713_v35 = vunpack.c.l.b16 %v5520_v50  ;;  %v5167_v61 = vshll.u32 %v5049_v29, 16  ;;  %v4400_v39 = vpack.c.bf16 %v4368_v3, %v4368_v3  ;;  %v12591_v27 = vld [vmem:[#allocation3 + $0x18] sm:$0xff] }
 0x407   : > { %v4902_v8 = vpop.f32.mrf.mxu0  ;;  %v4244_v14 = vadd.f32 %v4243_v54, %v4155_v5  ;;  %v6313_v17 = vrot.slane %v6311_v46, 1  ;;  %v5845_v29 = vunpack.c.l.b16 %v5556_v45  ;;  %v10282_v50 = vld [vmem:[#allocation3 + $0x18] sm:$0xff]  ;;  %v6179_v43 = vshll.u32 %v12591_v27, 16 }
 0x408   : > { %v5166_v7 = vrot.slane %v5164_v37, 7  ;;  %v4815_v59 = vpop.f32.mrf.mxu3  ;;  %v4903_v24 = vadd.f32 %v4902_v8, %v4814_v31  ;;  %v12586_v38 = vpack.c.b16 %v5713_v35, %v5713_v35  ;;  %4432 = vst [vmem:[%s12315_s12 + $0x70] sm:$0xf] %v4400_v39  ;;  %v5986_v37 = vunpack.c.l.b16 %v5602_v55  ;;  %v10300_v3 = vld [vmem:[%s13937_s8 + $0x10] sm:$0xff] }
 0x409   : > { %v4301_v53 = vadd.f32 %v4244_v14, %v12128_v18  ;;  %v6314_v31 = vor.u32 %v6313_v17, %v6309_v44  ;;  %v12607_v18 = vld [vmem:[%s13934_s5] ss:$0 sm:$0xff]  ;;  %7361 = vmatpush.bf16.msra.mxu0 %v10300_v3  ;;  %v14239_v14 = vld [vmem:[#allocation45_spill] sm:$0xff]  ;;  %v14240_v44 = vld [vmem:[#allocation50_spill] sm:$0xff] }
 0x40a   : > { %v5169_v42 = vor.u32 %v5167_v61, %v5166_v7  ;;  %v5171_v13 = vrot.slane %v5166_v7, 4  ;;  %v4964_v9 = vmax.f32 %v4903_v24, 0.0  ;;  %4941 = vmatmul.bf16.gmra.mxu0 %v9378_v16  ;;  %v6316_v58 = vshll.u32 %v12586_v38, 16  ;;  %7042 = vmatmul.bf16.vlgmr.msra.gmra.mxu2 %v6151_v40  ;;  %v10299_v24 = vld [vmem:[%s13937_s8 + $0x8] sm:$0xff] }
 0x40b   : > { %v4337_v28 = vadd.f32 %v12607_v18, %v4301_v53  ;;  %v4816_v16 = vadd.f32 %v12326_v48, %v4815_v59  ;;  %v12618_v26 = vpack.c.b16 %v5986_v37, %v5986_v37  ;;  %v6155_v59 = vshll.u32 %v10282_v50, 16  ;;  %v14241_v53 = vld [vmem:[#allocation57_spill] sm:$0xff] }
 0x40c   : > { %v5170_v57 = vsel %vm11174_vm7, %v5162_v30, %v5169_v42  ;;  %v5431_v1 = vsel %vm11181_vm8, %v5171_v13, %v5430_v11  ;;  %v5050_v5 = vpack.c.bf16 %v4964_v9, %v4964_v9  ;;  %v6318_v51 = vrot.slane %v6316_v58, 1  ;;  %v10232_v9 = vld [vmem:[%s10955_s27 + $0xf4] sm:$0xf]  ;;  %v9383_v58 = vld [vmem:[%s10955_s27 + $0xf8] sm:$0xf0] }
 0x40d   : > { %5429 = vst [vmem:[#allocation3 + $0x4c] sm:$0xf] %v5170_v57  ;;  %4857 = vmatmul.bf16.gmra.mxu3 %v9382_v12  ;;  %v12613_v30 = vpack.c.b16 %v5845_v29, %v5845_v29  ;;  %v4369_v8 = vmax.f32 %v4337_v28, 0.0  ;;  %v4246_v7 = vpop.f32.mrf.mxu2  ;;  %v6181_v11 = vrot.slane %v6179_v43, 1  ;;  %v4160_v17 = vadd.f32 %v14240_v44, %v14239_v14  ;;  %v12641_v57 = vld [vmem:[%s13936_s7] ss:$0 sm:$0xff]  ;;  %7362 = vmatpush.bf16.msra.mxu0 %v10299_v24 }
 0x40e   : > { %5432 = vst [vmem:[#allocation3 + $0x50] sm:$0x1] %v5431_v1  ;;  %v5173_v63 = vshrl.u32 %v5050_v5, 16  ;;  %v6319_v35 = vsel %vm2137_vm3, %v6314_v31, %v6318_v51  ;;  %v5176_v48 = vshll.u32 %v5050_v5, 16  ;;  %v4247_v39 = vadd.f32 %v4246_v7, %v12148_v10  ;;  %v5559_v7 = vld [vmem:[#allocation3 + $0x2c] sm:$0x1] }
 0x40f   : > { %6978 = vmatmul.bf16.gmra.mxu1 %v6319_v35  ;;  %v4904_v12 = vpop.f32.mrf.mxu0  ;;  %14238 = vst [vmem:[#allocation69_spill] sm:$0xff] %v12618_v26  ;;  %v4401_v45 = vpack.c.bf16 %v4369_v8, %v4369_v8  ;;  %v6184_v55 = vshll.u32 %v12613_v30, 16  ;;  %v6177_v31 = vshrl.u32 %v12591_v27, 16  ;;  %v6157_v29 = vrot.slane %v6155_v59, 1  ;;  %v10298_v35 = vld [vmem:[%s13937_s8] sm:$0xff] }
 0x410   : > { %v12620_v46 = vrot.slane %v5173_v63, 7  ;;  %v4818_v61 = vpop.f32.mrf.mxu3  ;;  %v4905_v54 = vadd.f32 %v4904_v12, %v4816_v16  ;;  %v4302_v40 = vadd.f32 %v4247_v39, %v14241_v53  ;;  %v6160_v6 = vshll.u32 %v12618_v26, 16 }
 0x411   : > { %4433 = vst [vmem:[%s12315_s12 + $0x78] sm:$0xf] %v4401_v45  ;;  %v4819_v1 = vadd.f32 %v12641_v57, %v4818_v61  ;;  %v6153_v51 = vshrl.u32 %v10282_v50, 16  ;;  %v9386_v37 = vor.u32 %v10232_v9, %v9383_v58  ;;  %v6182_v16 = vor.u32 %v6181_v11, %v6177_v31  ;;  %7363 = vmatpush.bf16.msra.mxu0 %v10298_v35  ;;  %v10268_v58 = vld [vmem:[#allocation3 + $0x24] sm:$0xff] }
 0x412   : > { %v5178_v42 = vor.u32 %v5176_v48, %v12620_v46  ;;  %v4965_v13 = vmax.f32 %v4905_v54, 0.0  ;;  %v5179_v43 = vrot.slane %v12620_v46, 4  ;;  %v4338_v27 = vadd.f32 %v12607_v18, %v4302_v40 }
 0x413   : > { %v6186_v8 = vrot.slane %v6184_v55, 1  ;;  %v6158_v12 = vor.u32 %v6157_v29, %v6153_v51  ;;  %v6162_v59 = vrot.slane %v6160_v6, 1  ;;  %v5848_v55 = vunpack.c.l.b16 %v5559_v7  ;;  %v5605_v6 = vld [vmem:[#allocation3 + $0x2c] sm:$0x1] }
 0x414   : > { %v5434_v10 = vsel %vm11081_vm2, %v5178_v42, %v5433_v36  ;;  %v5051_v5 = vpack.c.bf16 %v4965_v13, %v4965_v13  ;;  %v10256_v28 = vld [vmem:[#allocation3 + $0x48] sm:$0xff]  ;;  %v4370_v50 = vmax.f32 %v4338_v27, 0.0  ;;  %v5437_v42 = vld [vmem:[#allocation3 + $0x5c] sm:$0x1] }
 0x415   : > { %5435 = vst [vmem:[#allocation3 + $0x54] sm:$0xf] %v5434_v10  ;;  %v5523_v63 = vld [vmem:[#allocation3 + $0x50] sm:$0x1]  ;;  %v6347_v46 = vshll.u32 %v10256_v28, 16  ;;  %v4248_v45 = vpop.f32.mrf.mxu2  ;;  %v6345_v14 = vshrl.u32 %v10256_v28, 16  ;;  %v6163_v51 = vsel %vm2137_vm3, %v6158_v12, %v6162_v59 }
 0x416   : > { %v5181_v3 = vshrl.u32 %v5051_v5, 16  ;;  %v5716_v48 = vunpack.c.l.b16 %v5523_v63  ;;  %v5184_v61 = vshll.u32 %v5051_v5, 16  ;;  %v4402_v44 = vpack.c.bf16 %v4370_v50, %v4370_v50  ;;  %v14243_v10 = vld [vmem:[#allocation38_spill] sm:$0xff] }
 0x417   : > { %v4907_v54 = vpop.f32.mrf.mxu0  ;;  %v4249_v13 = vadd.f32 %v4248_v45, %v4160_v17  ;;  %v6349_v9 = vrot.slane %v6347_v46, 1  ;;  %v6187_v5 = vsel %vm2137_vm3, %v6182_v16, %v6186_v8  ;;  %v6215_v16 = vshll.u32 %v10268_v58, 16 }
 0x418   : > { %v5183_v24 = vrot.slane %v5181_v3, 7  ;;  %v4820_v36 = vpop.f32.mrf.mxu3  ;;  %v4908_v39 = vadd.f32 %v4907_v54, %v4819_v1  ;;  %v12649_v11 = vpack.c.b16 %v5716_v48, %v5716_v48  ;;  %4434 = vst [vmem:[%s12315_s12 + $0x80] sm:$0xf] %v4402_v44  ;;  %v12661_v48 = vpack.c.b16 %v5848_v55, %v5848_v55 }
 0x419   : > { %v4303_v1 = vadd.f32 %v4249_v13, %v14243_v10  ;;  %v6350_v28 = vor.u32 %v6349_v9, %v6345_v14  ;;  %v5989_v8 = vunpack.c.l.b16 %v5605_v6  ;;  %v4821_v12 = vadd.f32 %v12641_v57, %v4820_v36 }
 0x41a   : > { %14242 = vst [vmem:[#allocation24_spill] sm:$0xff] %v12649_v11  ;;  %v5186_v53 = vor.u32 %v5184_v61, %v5183_v24  ;;  %v5188_v40 = vrot.slane %v5183_v24, 4  ;;  %v4966_v31 = vmax.f32 %v4908_v39, 0.0  ;;  %4946 = vmatmul.bf16.gmra.mxu0 %v9386_v37  ;;  %v6352_v29 = vshll.u32 %v12649_v11, 16  ;;  %v10283_v37 = vld [vmem:[#allocation3 + $0x24] sm:$0xff]  ;;  %7047 = vmatmul.bf16.gmra.mxu2 %v6187_v5 }
 0x41b   : > { %v4339_v3 = vadd.f32 %v12607_v18, %v4303_v1  ;;  %v12665_v54 = vpack.c.b16 %v5989_v8, %v5989_v8  ;;  %v6191_v14 = vshll.u32 %v10283_v37, 16  ;;  %v6217_v13 = vrot.slane %v6215_v16, 1 }
 0x41c   : > { %v5187_v17 = vsel %vm11174_vm7, %v5179_v43, %v5186_v53  ;;  %v5438_v27 = vsel %vm11181_vm8, %v5188_v40, %v5437_v42  ;;  %v5052_v63 = vpack.c.bf16 %v4966_v31, %v4966_v31  ;;  %v6354_v35 = vrot.slane %v6352_v29, 1  ;;  %v5440_v42 = vld [vmem:[#allocation3 + $0x60] sm:$0xf] }
 0x41d   : > { %5436 = vst [vmem:[#allocation3 + $0x58] sm:$0xf] %v5187_v17  ;;  %7131 = vmatmul.bf16.vlgmr.msra.gmra.mxu3 %v6163_v51  ;;  %v4371_v50 = vmax.f32 %v4339_v3, 0.0  ;;  %v4251_v24 = vpop.f32.mrf.mxu2  ;;  %v6220_v9 = vshll.u32 %v12661_v48, 16  ;;  %v6193_v40 = vrot.slane %v6191_v14, 1  ;;  %v6213_v29 = vshrl.u32 %v10268_v58, 16 }
 0x41e   : > { %5439 = vst [vmem:[#allocation3 + $0x5c] sm:$0x1] %v5438_v27  ;;  %v5190_v7 = vshrl.u32 %v5052_v63, 16  ;;  %v6355_v43 = vsel %vm2137_vm3, %v6350_v28, %v6354_v35  ;;  %v5193_v46 = vshll.u32 %v5052_v63, 16  ;;  %v4252_v36 = vadd.f32 %v4251_v24, %v12169_v32  ;;  %v14245_v28 = vld [vmem:[#allocation37_spill] sm:$0xff] }
 0x41f   : > { %6983 = vmatmul.bf16.gmra.mxu1 %v6355_v43  ;;  %v4909_v61 = vpop.f32.mrf.mxu0  ;;  %14244 = vst [vmem:[#allocation75_spill] sm:$0xff] %v12665_v54  ;;  %v4403_v44 = vpack.c.bf16 %v4371_v50, %v4371_v50  ;;  %v6196_v6 = vshll.u32 %v12665_v54, 16  ;;  %v6189_v32 = vshrl.u32 %v10283_v37, 16  ;;  %v4165_v17 = vadd.f32 %v14245_v28, %v12180_v62 }
 0x420   : > { %v12667_v59 = vrot.slane %v5190_v7, 7  ;;  %v4823_v45 = vpop.f32.mrf.mxu3  ;;  %v4910_v39 = vadd.f32 %v4909_v61, %v4821_v12  ;;  %v4304_v31 = vadd.f32 %v4252_v36, %v12161_v47  ;;  %v6218_v63 = vor.u32 %v6217_v13, %v6213_v29  ;;  %v5562_v12 = vld [vmem:[#allocation3 + $0x38] sm:$0x1]  ;;  %v12684_v13 = vld [vmem:[#allocation3 + $0x30] sm:$0xff] }
 0x421   : > { %4435 = vst [vmem:[%s12315_s12 + $0x88] sm:$0xf] %v4403_v44  ;;  %v4824_v1 = vadd.f32 %v12641_v57, %v4823_v45  ;;  %v6222_v35 = vrot.slane %v6220_v9, 1  ;;  %v6194_v16 = vor.u32 %v6193_v40, %v6189_v32  ;;  %v6198_v37 = vrot.slane %v6196_v6, 1  ;;  %v5608_v6 = vld [vmem:[#allocation3 + $0x38] sm:$0x1] }
 0x422   : > { %v5195_v55 = vor.u32 %v5193_v46, %v12667_v59  ;;  %v4967_v53 = vmax.f32 %v4910_v39, 0.0  ;;  %v4340_v27 = vadd.f32 %v12607_v18, %v4304_v31  ;;  %v5196_v58 = vrot.slane %v12667_v59, 4  ;;  %v10520_v31 = vld [vmem:[#allocation3] sm:$0xff] }
 0x423   : > { %v5851_v9 = vunpack.c.l.b16 %v5562_v12 }
 0x424   : > { %v5441_v10 = vsel %vm11081_vm2, %v5195_v55, %v5440_v42  ;;  %v5053_v5 = vpack.c.bf16 %v4967_v53, %v4967_v53  ;;  %v10257_v51 = vld [vmem:[#allocation3 + $0x54] sm:$0xff]  ;;  %v4372_v7 = vmax.f32 %v4340_v27, 0.0  ;;  %v5444_v42 = vld [vmem:[#allocation3 + $0x68] sm:$0x1] }
 0x425   : > { %5442 = vst [vmem:[#allocation3 + $0x60] sm:$0xf] %v5441_v10  ;;  %v5526_v47 = vld [vmem:[#allocation3 + $0x5c] sm:$0x1]  ;;  %v6383_v61 = vshll.u32 %v10257_v51, 16  ;;  %v4253_v24 = vpop.f32.mrf.mxu2  ;;  %v6381_v14 = vshrl.u32 %v10257_v51, 16 }
 0x426   : > { %v5198_v3 = vshrl.u32 %v5053_v5, 16  ;;  %v5719_v8 = vunpack.c.l.b16 %v5526_v47  ;;  %v5201_v43 = vshll.u32 %v5053_v5, 16  ;;  %v4404_v44 = vpack.c.bf16 %v4372_v7, %v4372_v7  ;;  %v10309_v51 = vld [vmem:[%s13937_s8 + $0x58] sm:$0xff]  ;;  %v5617_v54 = vld [vmem:[#allocation3 + $0x5c] sm:$0x1] }
 0x427   : > { %v4912_v50 = vpop.f32.mrf.mxu0  ;;  %v4254_v59 = vadd.f32 %v4253_v24, %v4165_v17  ;;  %v6385_v36 = vrot.slane %v6383_v61, 1  ;;  %v6199_v5 = vsel %vm2137_vm3, %v6194_v16, %v6198_v37  ;;  %v5992_v16 = vunpack.c.l.b16 %v5608_v6  ;;  %7449 = vmatpush.bf16.msra.mxu1 %v10309_v51 }
 0x428   : > { %v5200_v46 = vrot.slane %v5198_v3, 7  ;;  %v4825_v62 = vpop.f32.mrf.mxu3  ;;  %v4913_v45 = vadd.f32 %v4912_v50, %v4824_v1  ;;  %v12682_v39 = vpack.c.b16 %v5719_v8, %v5719_v8  ;;  %4436 = vst [vmem:[%s12315_s12 + $0x90] sm:$0xf] %v4404_v44  ;;  %v6223_v1 = vsel %vm2137_vm3, %v6218_v63, %v6222_v35  ;;  %v10284_v3 = vld [vmem:[#allocation3 + $0x30] sm:$0xff] }
 0x429   : > { %v4305_v10 = vadd.f32 %v4254_v59, %v12172_v21  ;;  %v6386_v32 = vor.u32 %v6385_v36, %v6381_v14  ;;  %v12699_v63 = vpack.c.b16 %v5851_v9, %v5851_v9  ;;  %v6251_v35 = vshll.u32 %v12684_v13, 16 }
 0x42a   : > { %14246 = vst [vmem:[#allocation70_spill] sm:$0xff] %v12682_v39  ;;  %v5203_v55 = vor.u32 %v5201_v43, %v5200_v46  ;;  %v5205_v53 = vrot.slane %v5200_v46, 4  ;;  %v4968_v40 = vmax.f32 %v4913_v45, 0.0  ;;  %7364 = vmatmul.bf16.vlgmr.msra.gmra.mxu0 %v10520_v31  ;;  %v6388_v29 = vshll.u32 %v12682_v39, 16  ;;  %7052 = vmatmul.bf16.gmra.mxu2 %v6223_v1 }
 0x42b   : > { %v4341_v21 = vadd.f32 %v12607_v18, %v4305_v10  ;;  %v4826_v8 = vadd.f32 %v12641_v57, %v4825_v62  ;;  %v12704_v50 = vpack.c.b16 %v5992_v16, %v5992_v16  ;;  %v6227_v14 = vshll.u32 %v10284_v3, 16  ;;  %v14248_v62 = vld [vmem:[#allocation35_spill] sm:$0xff] }
 0x42c   : > { %v5204_v28 = vsel %vm11174_vm7, %v5196_v58, %v5203_v55  ;;  %v5445_v17 = vsel %vm11181_vm8, %v5205_v53, %v5444_v42  ;;  %v5054_v27 = vpack.c.bf16 %v4968_v40, %v4968_v40  ;;  %v6390_v47 = vrot.slane %v6388_v29, 1  ;;  %v5447_v42 = vld [vmem:[#allocation3 + $0x6c] sm:$0xf]  ;;  %v12710_v55 = vpop.f32.mrf.mxu1  ;;  %v14249_v29 = vld [vmem:[#allocation55_spill] sm:$0xff] }
 0x42d   : > { %5443 = vst [vmem:[#allocation3 + $0x64] sm:$0xf] %v5204_v28  ;;  %7136 = vmatmul.bf16.gmra.mxu3 %v6199_v5  ;;  %v4373_v7 = vmax.f32 %v4341_v21, 0.0  ;;  %v4256_v46 = vpop.f32.mrf.mxu2  ;;  %v6253_v36 = vrot.slane %v6251_v35, 1  ;;  %v6256_v9 = vshll.u32 %v12699_v63, 16  ;;  %v6229_v31 = vrot.slane %v6227_v14, 1 }
 0x42e   : > { %5446 = vst [vmem:[#allocation3 + $0x68] sm:$0x1] %v5445_v17  ;;  %v5207_v58 = vshrl.u32 %v5054_v27, 16  ;;  %v6391_v12 = vsel %vm2137_vm3, %v6386_v32, %v6390_v47  ;;  %v5210_v61 = vshll.u32 %v5054_v27, 16  ;;  %v4257_v59 = vadd.f32 %v4256_v46, %v14248_v62  ;;  %v14250_v27 = vld [vmem:[#allocation54_spill] sm:$0xff]  ;;  %v14251_v47 = vld [vmem:[#allocation43_spill] sm:$0xff] }
 0x42f   : > { %6988 = vmatmul.bf16.gmra.mxu1 %v6391_v12  ;;  %v4914_v43 = vpop.f32.mrf.mxu0  ;;  %14247 = vst [vmem:[#allocation71_spill] sm:$0xff] %v12704_v50  ;;  %v4405_v44 = vpack.c.bf16 %v4373_v7, %v4373_v7  ;;  %v6249_v10 = vshrl.u32 %v12684_v13, 16  ;;  %v6232_v1 = vshll.u32 %v12704_v50, 16  ;;  %v6225_v28 = vshrl.u32 %v10284_v3, 16 }
 0x430   : > { %v12706_v37 = vrot.slane %v5207_v58, 7  ;;  %v4828_v24 = vpop.f32.mrf.mxu3  ;;  %v4915_v45 = vadd.f32 %v4914_v43, %v4826_v8  ;;  %v4306_v6 = vadd.f32 %v4257_v59, %v14249_v29  ;;  %v4170_v21 = vadd.f32 %v14251_v47, %v14250_v27  ;;  %v5611_v27 = vld [vmem:[#allocation3 + $0x44] sm:$0x1]  ;;  %v14253_v47 = vld [vmem:[#allocation44_spill] sm:$0xff] }
 0x431   : > { %4437 = vst [vmem:[%s12315_s12 + $0x98] sm:$0xf] %v4405_v44  ;;  %v4829_v32 = vadd.f32 %v12641_v57, %v4828_v24  ;;  %v6254_v16 = vor.u32 %v6253_v36, %v6249_v10  ;;  %v6258_v8 = vrot.slane %v6256_v9, 1  ;;  %v6230_v7 = vor.u32 %v6229_v31, %v6225_v28  ;;  %v12726_v31 = vld [vmem:[#allocation3 + $0x3c] sm:$0xff]  ;;  %v10521_v28 = vld [vmem:[#allocation3 + $0xc] sm:$0xff] }
 0x432   : > { %v5212_v53 = vor.u32 %v5210_v61, %v12706_v37  ;;  %v4969_v40 = vmax.f32 %v4915_v45, 0.0  ;;  %v4342_v35 = vadd.f32 %v12607_v18, %v4306_v6  ;;  %v5213_v13 = vrot.slane %v12706_v37, 4  ;;  %v5565_v61 = vld [vmem:[#allocation3 + $0x44] sm:$0x1] }
 0x433   : > { %v6234_v3 = vrot.slane %v6232_v1, 1  ;;  %v5854_v6 = vunpack.c.l.b16 %v5565_v61 }
 0x434   : > { %v5448_v5 = vsel %vm11081_vm2, %v5212_v53, %v5447_v42  ;;  %v5055_v51 = vpack.c.bf16 %v4969_v40, %v4969_v40  ;;  %v10258_v17 = vld [vmem:[#allocation3 + $0x60] sm:$0xff]  ;;  %v4374_v46 = vmax.f32 %v4342_v35, 0.0  ;;  %v5451_v40 = vld [vmem:[#allocation3 + $0x74] sm:$0x1]  ;;  %v6259_v35 = vsel %vm2137_vm3, %v6254_v16, %v6258_v8 }
 0x435   : > { %5449 = vst [vmem:[#allocation3 + $0x6c] sm:$0xf] %v5448_v5  ;;  %v5529_v58 = vld [vmem:[#allocation3 + $0x68] sm:$0x1]  ;;  %v6419_v14 = vshll.u32 %v10258_v17, 16  ;;  %v4258_v42 = vpop.f32.mrf.mxu2  ;;  %v6417_v36 = vshrl.u32 %v10258_v17, 16  ;;  %v5995_v8 = vunpack.c.l.b16 %v5611_v27 }
 0x436   : > { %v5215_v12 = vshrl.u32 %v5055_v51, 16  ;;  %v5722_v43 = vunpack.c.l.b16 %v5529_v58  ;;  %v5218_v24 = vshll.u32 %v5055_v51, 16  ;;  %v4406_v9 = vpack.c.bf16 %v4374_v46, %v4374_v46  ;;  %v12728_v51 = vpop.f32.mrf.mxu1 }
 0x437   : > { %v4917_v45 = vpop.f32.mrf.mxu0  ;;  %v4259_v37 = vadd.f32 %v4258_v42, %v4170_v21  ;;  %v6421_v29 = vrot.slane %v6419_v14, 1  ;;  %v6235_v21 = vsel %vm2137_vm3, %v6230_v7, %v6234_v3  ;;  %v12740_v14 = vpack.c.b16 %v5854_v6, %v5854_v6 }
 0x438   : > { %v5217_v44 = vrot.slane %v5215_v12, 7  ;;  %v4830_v62 = vpop.f32.mrf.mxu3  ;;  %v4918_v59 = vadd.f32 %v4917_v45, %v4829_v32  ;;  %v12724_v53 = vpack.c.b16 %v5722_v43, %v5722_v43  ;;  %4438 = vst [vmem:[%s12315_s12 + $0xa0] sm:$0xf] %v4406_v9  ;;  %v6287_v16 = vshll.u32 %v12726_v31, 16 }
 0x439   : > { %v4307_v17 = vadd.f32 %v4259_v37, %v14253_v47  ;;  %v6422_v58 = vor.u32 %v6421_v29, %v6417_v36  ;;  %v4831_v7 = vadd.f32 %v12641_v57, %v4830_v62 }
 0x43a   : > { %14252 = vst [vmem:[#allocation25_spill] sm:$0xff] %v12724_v53  ;;  %v5220_v10 = vor.u32 %v5218_v24, %v5217_v44  ;;  %v5222_v5 = vrot.slane %v5217_v44, 4  ;;  %v4970_v1 = vmax.f32 %v4918_v59, 0.0  ;;  %7369 = vmatmul.bf16.gmra.mxu0 %v10521_v28  ;;  %v6424_v32 = vshll.u32 %v12724_v53, 16  ;;  %v10285_v24 = vld [vmem:[#allocation3 + $0x3c] sm:$0xff]  ;;  %7057 = vmatmul.bf16.gmra.mxu2 %v6259_v35  ;;  %v10528_v53 = vld [vmem:[#allocation3 + $0x48] sm:$0xff] }
 0x43b   : > { %v4343_v45 = vadd.f32 %v12607_v18, %v4307_v17  ;;  %v12745_v59 = vpack.c.b16 %v5995_v8, %v5995_v8  ;;  %v6263_v6 = vshll.u32 %v10285_v24, 16  ;;  %v6292_v28 = vshll.u32 %v12740_v14, 16 }
 0x43c   : > { %v5221_v12 = vsel %vm11174_vm7, %v5213_v13, %v5220_v10  ;;  %v5452_v43 = vsel %vm11181_vm8, %v5222_v5, %v5451_v40  ;;  %v5056_v61 = vpack.c.bf16 %v4970_v1, %v4970_v1  ;;  %v6426_v46 = vrot.slane %v6424_v32, 1  ;;  %v5454_v5 = vld [vmem:[#allocation3 + $0x78] sm:$0xf] }
 0x43d   : > { %5450 = vst [vmem:[#allocation3 + $0x70] sm:$0xf] %v5221_v12  ;;  %7141 = vmatmul.bf16.gmra.mxu3 %v6235_v21  ;;  %v4375_v44 = vmax.f32 %v4343_v45, 0.0  ;;  %v4261_v40 = vpop.f32.mrf.mxu2  ;;  %v6289_v1 = vrot.slane %v6287_v16, 1  ;;  %v6265_v47 = vrot.slane %v6263_v6, 1  ;;  %v6285_v35 = vshrl.u32 %v12726_v31, 16 }
 0x43e   : > { %5453 = vst [vmem:[#allocation3 + $0x74] sm:$0x1] %v5452_v43  ;;  %v5224_v13 = vshrl.u32 %v5056_v61, 16  ;;  %v6427_v3 = vsel %vm2137_vm3, %v6422_v58, %v6426_v46  ;;  %v5227_v9 = vshll.u32 %v5056_v61, 16  ;;  %v4262_v62 = vadd.f32 %v4261_v40, %v12214_v2  ;;  %v12758_v12 = vpop.f32.mrf.mxu1  ;;  %v14255_v45 = vld [vmem:[#allocation53_spill] sm:$0xff]  ;;  %v14256_v16 = vld [vmem:[#allocation51_spill] sm:$0xff] }
 0x43f   : > { %6993 = vmatmul.bf16.gmra.mxu1 %v6427_v3  ;;  %v4919_v42 = vpop.f32.mrf.mxu0  ;;  %14254 = vst [vmem:[#allocation78_spill] sm:$0xff] %v12745_v59  ;;  %v4407_v10 = vpack.c.bf16 %v4375_v44, %v4375_v44  ;;  %v6268_v21 = vshll.u32 %v12745_v59, 16  ;;  %v6261_v61 = vshrl.u32 %v10285_v24, 16  ;;  %v4175_v8 = vadd.f32 %v14256_v16, %v14255_v45  ;;  %v5568_v40 = vld [vmem:[#allocation3 + $0x50] sm:$0x1] }
 0x440   : > { %v12747_v36 = vrot.slane %v5224_v13, 7  ;;  %v4833_v37 = vpop.f32.mrf.mxu3  ;;  %v4920_v29 = vadd.f32 %v4919_v42, %v4831_v7  ;;  %v4308_v17 = vadd.f32 %v4262_v62, %v12206_v20  ;;  %v6290_v7 = vor.u32 %v6289_v1, %v6285_v35  ;;  %v5458_v35 = vld [vmem:[#allocation3 + $0x80] sm:$0x1] }
 0x441   : > { %4439 = vst [vmem:[%s12315_s12 + $0xa8] sm:$0xf] %v4407_v10  ;;  %v4834_v2 = vadd.f32 %v12641_v57, %v4833_v37  ;;  %v6294_v31 = vrot.slane %v6292_v28, 1  ;;  %v6266_v42 = vor.u32 %v6265_v47, %v6261_v61  ;;  %v6270_v24 = vrot.slane %v6268_v21, 1  ;;  %v12767_v47 = vld [vmem:[#allocation3 + $0x48] sm:$0xff]  ;;  %v10522_v21 = vld [vmem:[#allocation3 + $0x18] sm:$0xff] }
 0x442   : > { %v5229_v32 = vor.u32 %v5227_v9, %v12747_v36  ;;  %v4971_v27 = vmax.f32 %v4920_v29, 0.0  ;;  %v4344_v20 = vadd.f32 %v12607_v18, %v4308_v17  ;;  %v5230_v3 = vrot.slane %v12747_v36, 4 }
 0x443   : > { %v5857_v61 = vunpack.c.l.b16 %v5568_v40  ;;  %v10308_v40 = vld [vmem:[%s13937_s8 + $0x50] sm:$0xff] }
 0x444   : > { %v5455_v58 = vsel %vm11081_vm2, %v5229_v32, %v5454_v5  ;;  %v5057_v43 = vpack.c.bf16 %v4971_v27, %v4971_v27  ;;  %v10259_v46 = vld [vmem:[#allocation3 + $0x6c] sm:$0xff]  ;;  %v4376_v29 = vmax.f32 %v4344_v20, 0.0  ;;  %7450 = vmatpush.bf16.msra.mxu1 %v10308_v40 }
 0x445   : > { %5456 = vst [vmem:[#allocation3 + $0x78] sm:$0xf] %v5455_v58  ;;  %v5532_v13 = vld [vmem:[#allocation3 + $0x74] sm:$0x1]  ;;  %v6455_v10 = vshll.u32 %v10259_v46, 16  ;;  %v4263_v62 = vpop.f32.mrf.mxu2  ;;  %v6453_v1 = vshrl.u32 %v10259_v46, 16  ;;  %v6295_v46 = vsel %vm2137_vm3, %v6290_v7, %v6294_v31  ;;  %v12784_v31 = vpack.c.b16 %v5857_v61, %v5857_v61 }
 0x446   : > { %v5232_v44 = vshrl.u32 %v5057_v43, 16  ;;  %v5725_v9 = vunpack.c.l.b16 %v5532_v13  ;;  %v5235_v37 = vshll.u32 %v5057_v43, 16  ;;  %v4408_v28 = vpack.c.bf16 %v4376_v29, %v4376_v29  ;;  %v5614_v13 = vld [vmem:[#allocation3 + $0x50] sm:$0x1] }
 0x447   : > { %v4922_v6 = vpop.f32.mrf.mxu0  ;;  %v4264_v36 = vadd.f32 %v4263_v62, %v4175_v8  ;;  %v6457_v58 = vrot.slane %v6455_v10, 1  ;;  %v10286_v62 = vld [vmem:[#allocation3 + $0x48] sm:$0xff]  ;;  %14259 = vst [vmem:[#allocation74_spill] sm:$0xff] %v12784_v31 }
 0x448   : > { %v5234_v5 = vrot.slane %v5232_v44, 7  ;;  %v4835_v32 = vpop.f32.mrf.mxu3  ;;  %v4923_v27 = vadd.f32 %v4922_v6, %v4834_v2  ;;  %v12765_v17 = vpack.c.b16 %v5725_v9, %v5725_v9  ;;  %4440 = vst [vmem:[%s12315_s12 + $0xb0] sm:$0xf] %v4408_v28  ;;  %v14258_v2 = vld [vmem:[#allocation41_spill] sm:$0xff]  ;;  %v6271_v9 = vsel %vm2137_vm3, %v6266_v42, %v6270_v24 }
 0x449   : > { %v4309_v44 = vadd.f32 %v4264_v36, %v14258_v2  ;;  %v6458_v8 = vor.u32 %v6457_v58, %v6453_v1  ;;  %v6323_v42 = vshll.u32 %v12767_v47, 16  ;;  %v5998_v24 = vunpack.c.l.b16 %v5614_v13  ;;  %v5461_v13 = vld [vmem:[#allocation3 + $0x84] sm:$0xf] }
 0x44a   : > { %14257 = vst [vmem:[#allocation73_spill] sm:$0xff] %v12765_v17  ;;  %v5237_v45 = vor.u32 %v5235_v37, %v5234_v5  ;;  %v5239_v43 = vrot.slane %v5234_v5, 4  ;;  %v4972_v16 = vmax.f32 %v4923_v27, 0.0  ;;  %7374 = vmatmul.bf16.gmra.mxu0 %v10522_v21  ;;  %v6460_v20 = vshll.u32 %v12765_v17, 16  ;;  %7062 = vmatmul.bf16.gmra.mxu2 %v6295_v46 }
 0x44b   : > { %v4345_v7 = vadd.f32 %v12607_v18, %v4309_v44  ;;  %v12789_v36 = vpack.c.b16 %v5998_v24, %v5998_v24  ;;  %v6299_v21 = vshll.u32 %v10286_v62, 16  ;;  %v6325_v44 = vrot.slane %v6323_v42, 1 }
 0x44c   : > { %v5238_v29 = vsel %vm11174_vm7, %v5230_v3, %v5237_v45  ;;  %v5459_v37 = vsel %vm11181_vm8, %v5239_v43, %v5458_v35  ;;  %v5058_v6 = vpack.c.bf16 %v4972_v16, %v4972_v16  ;;  %v12781_v10 = vpop.f32.mrf.mxu1  ;;  %v6462_v5 = vrot.slane %v6460_v20, 1 }
 0x44d   : > { %5457 = vst [vmem:[#allocation3 + $0x7c] sm:$0xf] %v5238_v29  ;;  %7146 = vmatmul.bf16.gmra.mxu3 %v6271_v9  ;;  %v4836_v3 = vadd.f32 %v12641_v57, %v4835_v32  ;;  %v4377_v28 = vmax.f32 %v4345_v7, 0.0  ;;  %v4266_v45 = vpop.f32.mrf.mxu2  ;;  %v14261_v32 = vld [vmem:[#allocation49_spill] sm:$0xff]  ;;  %v6328_v46 = vshll.u32 %v12784_v31, 16  ;;  %v6301_v40 = vrot.slane %v6299_v21, 1 }
 0x44e   : > { %5460 = vst [vmem:[#allocation3 + $0x80] sm:$0x1] %v5459_v37  ;;  %v5241_v27 = vshrl.u32 %v5058_v6, 16  ;;  %v6463_v1 = vsel %vm2137_vm3, %v6458_v8, %v6462_v5  ;;  %v5244_v61 = vshll.u32 %v5058_v6, 16  ;;  %v4267_v2 = vadd.f32 %v4266_v45, %v14261_v32  ;;  %v14262_v29 = vld [vmem:[#allocation61_spill] sm:$0xff] }
 0x44f   : > { %6998 = vmatmul.bf16.gmra.mxu1 %v6463_v1  ;;  %v4924_v35 = vpop.f32.mrf.mxu0  ;;  %14260 = vst [vmem:[#allocation26_spill] sm:$0xff] %v12789_v36  ;;  %v4409_v20 = vpack.c.bf16 %v4377_v28, %v4377_v28  ;;  %v6321_v6 = vshrl.u32 %v12767_v47, 16  ;;  %v6304_v5 = vshll.u32 %v12789_v36, 16  ;;  %v14263_v28 = vld [vmem:[#allocation21_spill] sm:$0xff]  ;;  %v6330_v47 = vrot.slane %v6328_v46, 1 }
 0x450   : > { %v12791_v58 = vrot.slane %v5241_v27, 7  ;;  %v4838_v43 = vpop.f32.mrf.mxu3  ;;  %v4925_v16 = vadd.f32 %v4924_v35, %v4836_v3  ;;  %v4310_v37 = vadd.f32 %v4267_v2, %v14262_v29  ;;  %v6297_v27 = vshrl.u32 %v10286_v62, 16  ;;  %v14264_v35 = vld [vmem:[#allocation59_spill] sm:$0xff] }
 0x451   : > { %4441 = vst [vmem:[%s12315_s12 + $0xb8] sm:$0xf] %v4409_v20  ;;  %v4839_v24 = vadd.f32 %v12641_v57, %v4838_v43  ;;  %v5571_v43 = vld [vmem:[#allocation3 + $0x5c] sm:$0x1]  ;;  %v6306_v62 = vrot.slane %v6304_v5, 1  ;;  %v10523_v5 = vld [vmem:[#allocation3 + $0x24] sm:$0xff] }
 0x452   : > { %v5246_v9 = vor.u32 %v5244_v61, %v12791_v58  ;;  %v4973_v8 = vmax.f32 %v4925_v16, 0.0  ;;  %v4180_v61 = vadd.f32 %v14264_v35, %v14263_v28  ;;  %v4346_v45 = vadd.f32 %v12607_v18, %v4310_v37 }
 0x453   : > { %v6326_v16 = vor.u32 %v6325_v44, %v6321_v6  ;;  %v5247_v20 = vrot.slane %v12791_v58, 4  ;;  %v5465_v6 = vld [vmem:[#allocation3 + $0x8c] sm:$0x1] }
 0x454   : > { %v5462_v7 = vsel %vm11081_vm2, %v5246_v9, %v5461_v13  ;;  %v5059_v3 = vpack.c.bf16 %v4973_v8, %v4973_v8  ;;  %v12803_v42 = vpop.f32.mrf.mxu1  ;;  %v10260_v1 = vld [vmem:[#allocation3 + $0x78] sm:$0xff]  ;;  %v6302_v13 = vor.u32 %v6301_v40, %v6297_v27  ;;  %v4378_v9 = vmax.f32 %v4346_v45, 0.0 }
 0x455   : > { %5463 = vst [vmem:[#allocation3 + $0x84] sm:$0xf] %v5462_v7  ;;  %v5535_v21 = vld [vmem:[#allocation3 + $0x80] sm:$0x1]  ;;  %v6491_v36 = vshll.u32 %v10260_v1, 16  ;;  %v4268_v50 = vpop.f32.mrf.mxu2  ;;  %v6489_v44 = vshrl.u32 %v10260_v1, 16  ;;  %v5860_v27 = vunpack.c.l.b16 %v5571_v43  ;;  %v6331_v1 = vsel %vm2137_vm3, %v6326_v16, %v6330_v47 }
 0x456   : > { %v5249_v32 = vshrl.u32 %v5059_v3, 16  ;;  %v5728_v2 = vunpack.c.l.b16 %v5535_v21  ;;  %v5252_v8 = vshll.u32 %v5059_v3, 16  ;;  %v4410_v46 = vpack.c.bf16 %v4378_v9, %v4378_v9  ;;  %v12811_v40 = vld [vmem:[#allocation3 + $0x54] sm:$0xff] }
 0x457   : > { %v4927_v29 = vpop.f32.mrf.mxu0  ;;  %v4269_v58 = vadd.f32 %v4268_v50, %v4180_v61  ;;  %v6493_v35 = vrot.slane %v6491_v36, 1  ;;  %v6307_v9 = vsel %vm2137_vm3, %v6302_v13, %v6306_v62  ;;  %v12825_v16 = vpack.c.b16 %v5860_v27, %v5860_v27 }
 0x458   : > { %v5251_v59 = vrot.slane %v5249_v32, 7  ;;  %v4840_v28 = vpop.f32.mrf.mxu3  ;;  %v4928_v7 = vadd.f32 %v4927_v29, %v4839_v24  ;;  %v12809_v37 = vpack.c.b16 %v5728_v2, %v5728_v2  ;;  %4442 = vst [vmem:[%s12315_s12 + $0xc0] sm:$0xf] %v4410_v46  ;;  %v14266_v24 = vld [vmem:[#allocation60_spill] sm:$0xff]  ;;  %v10287_v29 = vld [vmem:[#allocation3 + $0x54] sm:$0xff]  ;;  %v6359_v47 = vshll.u32 %v12811_v40, 16 }
 0x459   : > { %v4311_v2 = vadd.f32 %v4269_v58, %v14266_v24  ;;  %v6494_v50 = vor.u32 %v6493_v35, %v6489_v44  ;;  %14267 = vst [vmem:[#allocation83_spill] sm:$0xff] %v12825_v16  ;;  %v6001_v13 = vunpack.c.l.b16 %v5617_v54 }
 0x45a   : > { %14265 = vst [vmem:[#allocation81_spill] sm:$0xff] %v12809_v37  ;;  %v5254_v45 = vor.u32 %v5252_v8, %v5251_v59  ;;  %v5256_v3 = vrot.slane %v5251_v59, 4  ;;  %v4974_v21 = vmax.f32 %v4928_v7, 0.0  ;;  %7379 = vmatmul.bf16.gmra.mxu0 %v10523_v5  ;;  %v6496_v32 = vshll.u32 %v12809_v37, 16  ;;  %7067 = vmatmul.bf16.gmra.mxu2 %v6331_v1 }
 0x45b   : > { %v4347_v7 = vadd.f32 %v12607_v18, %v4311_v2  ;;  %v12830_v58 = vpack.c.b16 %v6001_v13, %v6001_v13  ;;  %v6335_v5 = vshll.u32 %v10287_v29, 16  ;;  %v6361_v24 = vrot.slane %v6359_v47, 1 }
 0x45c   : > { %v5255_v36 = vsel %vm11174_vm7, %v5247_v20, %v5254_v45  ;;  %v5466_v59 = vsel %vm11181_vm8, %v5256_v3, %v5465_v6  ;;  %v5060_v61 = vpack.c.bf16 %v4974_v21, %v4974_v21  ;;  %v12822_v43 = vpop.f32.mrf.mxu1  ;;  %v6498_v8 = vrot.slane %v6496_v32, 1  ;;  %v5468_v32 = vld [vmem:[#allocation3 + $0x90] sm:$0xf] }
 0x45d   : > { %5464 = vst [vmem:[#allocation3 + $0x88] sm:$0xf] %v5255_v36  ;;  %7151 = vmatmul.bf16.gmra.mxu3 %v6307_v9  ;;  %v4841_v20 = vadd.f32 %v12641_v57, %v4840_v28  ;;  %v4379_v46 = vmax.f32 %v4347_v7, 0.0  ;;  %v4271_v27 = vpop.f32.mrf.mxu2  ;;  %v6364_v2 = vshll.u32 %v12825_v16, 16  ;;  %v6333_v13 = vshrl.u32 %v10287_v29, 16 }
 0x45e   : > { %5467 = vst [vmem:[#allocation3 + $0x8c] sm:$0x1] %v5466_v59  ;;  %v5258_v62 = vshrl.u32 %v5060_v61, 16  ;;  %v6499_v44 = vsel %vm2137_vm3, %v6494_v50, %v6498_v8  ;;  %v5261_v45 = vshll.u32 %v5060_v61, 16  ;;  %v4272_v28 = vadd.f32 %v4271_v27, %v12257_v60 }
 0x45f   : > { %7003 = vmatmul.bf16.gmra.mxu1 %v6499_v44  ;;  %v4929_v6 = vpop.f32.mrf.mxu0  ;;  %14268 = vst [vmem:[#allocation76_spill] sm:$0xff] %v12830_v58  ;;  %v4411_v54 = vpack.c.bf16 %v4379_v46, %v4379_v46  ;;  %v6337_v50 = vrot.slane %v6335_v5, 1  ;;  %v6357_v59 = vshrl.u32 %v12811_v40, 16  ;;  %v6340_v61 = vshll.u32 %v12830_v58, 16 }
 0x460   : > { %v12832_v35 = vrot.slane %v5258_v62, 7  ;;  %v4843_v3 = vpop.f32.mrf.mxu3  ;;  %v4930_v21 = vadd.f32 %v4929_v6, %v4841_v20  ;;  %v4312_v36 = vadd.f32 %v4272_v28, %v12249_v34  ;;  %v4185_v62 = vadd.f32 %v12261_v15, %v12268_v56 }
 0x461   : > { %4443 = vst [vmem:[%s12315_s12 + $0xc8] sm:$0xf] %v4411_v54  ;;  %v4844_v7 = vadd.f32 %v12641_v57, %v4843_v3  ;;  %v6362_v40 = vor.u32 %v6361_v24, %v6357_v59  ;;  %v6366_v44 = vrot.slane %v6364_v2, 1  ;;  %v6338_v27 = vor.u32 %v6337_v50, %v6333_v13  ;;  %v5472_v2 = vld [vmem:[#allocation3 + $0x98] sm:$0x1]  ;;  %v12856_v59 = vld [vmem:[#allocation3 + $0x60] sm:$0xff] }
 0x462   : > { %v5263_v1 = vor.u32 %v5261_v45, %v12832_v35  ;;  %v4975_v9 = vmax.f32 %v4930_v21, 0.0  ;;  %v4348_v34 = vadd.f32 %v12607_v18, %v4312_v36  ;;  %v5264_v6 = vrot.slane %v12832_v35, 4  ;;  %v5574_v21 = vld [vmem:[#allocation3 + $0x68] sm:$0x1] }
 0x464   : > { %v5469_v8 = vsel %vm11081_vm2, %v5263_v1, %v5468_v32  ;;  %v5061_v60 = vpack.c.bf16 %v4975_v9, %v4975_v9  ;;  %v12844_v47 = vpop.f32.mrf.mxu1  ;;  %v12846_v20 = vld [vmem:[#allocation3 + $0x84] sm:$0xff]  ;;  %v4380_v5 = vmax.f32 %v4348_v34, 0.0  ;;  %v6342_v32 = vrot.slane %v6340_v61, 1  ;;  %v10524_v34 = vld [vmem:[#allocation3 + $0x30] sm:$0xff] }
 0x465   : > { %5470 = vst [vmem:[#allocation3 + $0x90] sm:$0xf] %v5469_v8  ;;  %v5538_v46 = vld [vmem:[#allocation3 + $0x8c] sm:$0x1]  ;;  %v6527_v28 = vshll.u32 %v12846_v20, 16  ;;  %v4273_v15 = vpop.f32.mrf.mxu2  ;;  %v6525_v24 = vshrl.u32 %v12846_v20, 16  ;;  %v5863_v8 = vunpack.c.l.b16 %v5574_v21 }
 0x466   : > { %v5266_v45 = vshrl.u32 %v5061_v60, 16  ;;  %v5731_v3 = vunpack.c.l.b16 %v5538_v46  ;;  %v5269_v54 = vshll.u32 %v5061_v60, 16  ;;  %v4412_v35 = vpack.c.bf16 %v4380_v5, %v4380_v5  ;;  %v10307_v21 = vld [vmem:[%s13937_s8 + $0x48] sm:$0xff] }
 0x467   : > { %v4932_v29 = vpop.f32.mrf.mxu0  ;;  %v4274_v50 = vadd.f32 %v4273_v15, %v4185_v62  ;;  %v6529_v36 = vrot.slane %v6527_v28, 1  ;;  %v6343_v5 = vsel %vm2137_vm3, %v6338_v27, %v6342_v32  ;;  %v12878_v27 = vpack.c.b16 %v5863_v8, %v5863_v8  ;;  %7451 = vmatpush.bf16.msra.mxu1 %v10307_v21 }
 0x468   : > { %v5268_v1 = vrot.slane %v5266_v45, 7  ;;  %v4845_v56 = vpop.f32.mrf.mxu3  ;;  %v4933_v9 = vadd.f32 %v4932_v29, %v4844_v7  ;;  %v12853_v18 = vpack.c.b16 %v5731_v3, %v5731_v3  ;;  %v5620_v7 = vld [vmem:[#allocation3 + $0x68] sm:$0x1]  ;;  %4444 = vst [vmem:[%s12315_s12 + $0xd0] sm:$0xf] %v4412_v35  ;;  %v14270_v45 = vld [vmem:[#allocation63_spill] sm:$0xff]  ;;  %v6367_v29 = vsel %vm2137_vm3, %v6362_v40, %v6366_v44 }
 0x469   : > { %v4313_v3 = vadd.f32 %v4274_v50, %v14270_v45  ;;  %v6530_v62 = vor.u32 %v6529_v36, %v6525_v24  ;;  %v10288_v35 = vld [vmem:[#allocation3 + $0x60] sm:$0xff]  ;;  %v12875_v40 = vld [vmem:[%s13934_s5] ss:$0 sm:$0xff]  ;;  %14271 = vst [vmem:[#allocation27_spill] sm:$0xff] %v12878_v27  ;;  %v6004_v32 = vunpack.c.l.b16 %v5620_v7  ;;  %v4846_v24 = vadd.f32 %v12641_v57, %v4845_v56 }
 0x46a   : > { %14269 = vst [vmem:[#allocation77_spill] sm:$0xff] %v12853_v18  ;;  %v5271_v60 = vor.u32 %v5269_v54, %v5268_v1  ;;  %v5273_v61 = vrot.slane %v5268_v1, 4  ;;  %v4976_v13 = vmax.f32 %v4933_v9, 0.0  ;;  %7384 = vmatmul.bf16.gmra.mxu0 %v10524_v34  ;;  %v6532_v46 = vshll.u32 %v12853_v18, 16  ;;  %7072 = vmatmul.bf16.gmra.mxu2 %v6367_v29  ;;  %v5475_v29 = vld [vmem:[#allocation3 + $0x9c] sm:$0xf] }
 0x46b   : > { %v4349_v44 = vadd.f32 %v12875_v40, %v4313_v3  ;;  %v6371_v7 = vshll.u32 %v10288_v35, 16  ;;  %v10526_v18 = vld [vmem:[#allocation3 + $0x3c] sm:$0xff] }
 0x46c   : > { %v5272_v54 = vsel %vm11174_vm7, %v5264_v6, %v5271_v60  ;;  %v5473_v28 = vsel %vm11181_vm8, %v5273_v61, %v5472_v2  ;;  %v5062_v1 = vpack.c.bf16 %v4976_v13, %v4976_v13  ;;  %v12870_v15 = vpop.f32.mrf.mxu1  ;;  %v6534_v9 = vrot.slane %v6532_v46, 1 }
 0x46d   : > { %5471 = vst [vmem:[#allocation3 + $0x94] sm:$0xf] %v5272_v54  ;;  %7156 = vmatmul.bf16.gmra.mxu3 %v6343_v5  ;;  %v6395_v6 = vshll.u32 %v12856_v59, 16  ;;  %v4381_v36 = vmax.f32 %v4349_v44, 0.0  ;;  %v12883_v61 = vpack.c.b16 %v6004_v32, %v6004_v32  ;;  %v4276_v34 = vpop.f32.mrf.mxu2 }
 0x46e   : > { %5474 = vst [vmem:[#allocation3 + $0x98] sm:$0x1] %v5473_v28  ;;  %v5275_v2 = vshrl.u32 %v5062_v1, 16  ;;  %v6535_v50 = vsel %vm2137_vm3, %v6530_v62, %v6534_v9  ;;  %v5278_v8 = vshll.u32 %v5062_v1, 16  ;;  %v4277_v56 = vadd.f32 %v4276_v34, %v12278_v41 }
 0x46f   : > { %7008 = vmatmul.bf16.gmra.mxu1 %v6535_v50  ;;  %v4934_v60 = vpop.f32.mrf.mxu0  ;;  %14272 = vst [vmem:[#allocation85_spill] sm:$0xff] %v12883_v61  ;;  %v4413_v3 = vpack.c.bf16 %v4381_v36, %v4381_v36  ;;  %v6397_v5 = vrot.slane %v6395_v6, 1  ;;  %v6400_v62 = vshll.u32 %v12878_v27, 16  ;;  %v6373_v28 = vrot.slane %v6371_v7, 1  ;;  %v14273_v36 = vld [vmem:[#allocation22_spill] sm:$0xff] }
 0x470   : > { %v12885_v13 = vrot.slane %v5275_v2, 7  ;;  %v4848_v46 = vpop.f32.mrf.mxu3  ;;  %v4935_v45 = vadd.f32 %v4934_v60, %v4846_v24  ;;  %v4314_v9 = vadd.f32 %v4277_v56, %v12270_v4  ;;  %v6393_v1 = vshrl.u32 %v12856_v59, 16  ;;  %v14274_v60 = vld [vmem:[#allocation64_spill] sm:$0xff] }
 0x471   : > { %4445 = vst [vmem:[%s12315_s12 + $0xd8] sm:$0xf] %v4413_v3  ;;  %v6376_v44 = vshll.u32 %v12883_v61, 16  ;;  %v4849_v24 = vadd.f32 %v12641_v57, %v4848_v46  ;;  %v6369_v2 = vshrl.u32 %v10288_v35, 16  ;;  %v6402_v34 = vrot.slane %v6400_v62, 1 }
 0x472   : > { %v5280_v21 = vor.u32 %v5278_v8, %v12885_v13  ;;  %v4977_v54 = vmax.f32 %v4935_v45, 0.0  ;;  %v4190_v8 = vadd.f32 %v14274_v60, %v14273_v36  ;;  %v4350_v4 = vadd.f32 %v12875_v40, %v4314_v9  ;;  %v5577_v46 = vld [vmem:[#allocation3 + $0x74] sm:$0x1]  ;;  %v5479_v9 = vld [vmem:[#allocation3 + $0xa4] sm:$0x1] }
 0x473   : > { %v6398_v59 = vor.u32 %v6397_v5, %v6393_v1  ;;  %v5281_v7 = vrot.slane %v12885_v13, 4 }
 0x474   : > { %v5476_v32 = vsel %vm11081_vm2, %v5280_v21, %v5475_v29  ;;  %v5063_v41 = vpack.c.bf16 %v4977_v54, %v4977_v54  ;;  %v12897_v6 = vpop.f32.mrf.mxu1  ;;  %v12899_v50 = vld [vmem:[#allocation3 + $0x90] sm:$0xff]  ;;  %v6374_v29 = vor.u32 %v6373_v28, %v6369_v2  ;;  %v4382_v56 = vmax.f32 %v4350_v4, 0.0 }
 0x475   : > { %5477 = vst [vmem:[#allocation3 + $0x9c] sm:$0xf] %v5476_v32  ;;  %v5541_v45 = vld [vmem:[#allocation3 + $0x98] sm:$0x1]  ;;  %v6378_v54 = vrot.slane %v6376_v44, 1  ;;  %v6563_v61 = vshll.u32 %v12899_v50, 16  ;;  %v4278_v36 = vpop.f32.mrf.mxu2  ;;  %v6403_v26 = vsel %vm2137_vm3, %v6398_v59, %v6402_v34 }
 0x476   : > { %v5283_v3 = vshrl.u32 %v5063_v41, 16  ;;  %v5734_v57 = vunpack.c.l.b16 %v5541_v45  ;;  %v5286_v21 = vshll.u32 %v5063_v41, 16  ;;  %v6561_v62 = vshrl.u32 %v12899_v50, 16  ;;  %v12909_v2 = vld [vmem:[#allocation3 + $0x6c] sm:$0xff] }
 0x477   : > { %v4937_v35 = vpop.f32.mrf.mxu0  ;;  %v4414_v13 = vpack.c.bf16 %v4382_v56, %v4382_v56  ;;  %v4279_v28 = vadd.f32 %v4278_v36, %v4190_v8  ;;  %v6565_v1 = vrot.slane %v6563_v61, 1  ;;  %v5866_v41 = vunpack.c.l.b16 %v5577_v46  ;;  %v10289_v36 = vld [vmem:[#allocation3 + $0x6c] sm:$0xff] }
 0x478   : > { %v5285_v58 = vrot.slane %v5283_v3, 7  ;;  %v4850_v32 = vpop.f32.mrf.mxu3  ;;  %v4938_v60 = vadd.f32 %v4937_v35, %v4849_v24  ;;  %v12906_v5 = vpack.c.b16 %v5734_v57, %v5734_v57  ;;  %v5623_v24 = vld [vmem:[#allocation3 + $0x74] sm:$0x1]  ;;  %v14276_v57 = vld [vmem:[#allocation58_spill] sm:$0xff]  ;;  %v6379_v56 = vsel %vm2137_vm3, %v6374_v29, %v6378_v54 }
 0x479   : > { %4446 = vst [vmem:[%s12315_s12 + $0xe0] sm:$0xf] %v4414_v13  ;;  %v4315_v35 = vadd.f32 %v4279_v28, %v14276_v57  ;;  %v6566_v8 = vor.u32 %v6565_v1, %v6561_v62  ;;  %v12923_v59 = vpack.c.b16 %v5866_v41, %v5866_v41  ;;  %v6431_v34 = vshll.u32 %v12909_v2, 16  ;;  %v5482_v57 = vld [vmem:[#allocation3 + $0xa8] sm:$0xf] }
 0x47a   : > { %14275 = vst [vmem:[#allocation86_spill] sm:$0xff] %v12906_v5  ;;  %v5288_v4 = vor.u32 %v5286_v21, %v5285_v58  ;;  %v5290_v44 = vrot.slane %v5285_v58, 4  ;;  %v4978_v45 = vmax.f32 %v4938_v60, 0.0  ;;  %7389 = vmatmul.bf16.gmra.mxu0 %v10526_v18  ;;  %v6568_v3 = vshll.u32 %v12906_v5, 16  ;;  %7077 = vmatmul.bf16.gmra.mxu2 %v6403_v26 }
 0x47b   : > { %v4351_v60 = vadd.f32 %v12875_v40, %v4315_v35  ;;  %14277 = vst [vmem:[#allocation79_spill] sm:$0xff] %v12923_v59  ;;  %v6007_v29 = vunpack.c.l.b16 %v5623_v24  ;;  %v14279_v35 = vld [vmem:[#allocation67_spill] sm:$0xff] }
 0x47c   : > { %v5289_v61 = vsel %vm11174_vm7, %v5281_v7, %v5288_v4  ;;  %v5480_v58 = vsel %vm11181_vm8, %v5290_v44, %v5479_v9  ;;  %v5064_v46 = vpack.c.bf16 %v4978_v45, %v4978_v45  ;;  %v12920_v21 = vpop.f32.mrf.mxu1  ;;  %v6570_v18 = vrot.slane %v6568_v3, 1  ;;  %v12929_v7 = vld [vmem:[%s13936_s7] ss:$0 sm:$0xff] }
 0x47d   : > { %5478 = vst [vmem:[#allocation3 + $0xa0] sm:$0xf] %v5289_v61  ;;  %7161 = vmatmul.bf16.gmra.mxu3 %v6379_v56  ;;  %v4851_v54 = vadd.f32 %v12929_v7, %v4850_v32  ;;  %v4383_v9 = vmax.f32 %v4351_v60, 0.0  ;;  %v12933_v28 = vpack.c.b16 %v6007_v29, %v6007_v29  ;;  %v4281_v4 = vpop.f32.mrf.mxu2  ;;  %v6407_v3 = vshll.u32 %v10289_v36, 16  ;;  %v14280_v60 = vld [vmem:[#allocation66_spill] sm:$0xff] }
 0x47e   : > { %5481 = vst [vmem:[#allocation3 + $0xa4] sm:$0x1] %v5480_v58  ;;  %v5292_v62 = vshrl.u32 %v5064_v46, 16  ;;  %v6571_v13 = vsel %vm2137_vm3, %v6566_v8, %v6570_v18  ;;  %v5295_v41 = vshll.u32 %v5064_v46, 16  ;;  %v4282_v32 = vadd.f32 %v4281_v4, %v14279_v35 }
 0x47f   : > { %7013 = vmatmul.bf16.gmra.mxu1 %v6571_v13  ;;  %v4939_v26 = vpop.f32.mrf.mxu0  ;;  %14278 = vst [vmem:[#allocation80_spill] sm:$0xff] %v12933_v28  ;;  %v4415_v24 = vpack.c.bf16 %v4383_v9, %v4383_v9  ;;  %v6433_v56 = vrot.slane %v6431_v34, 1  ;;  %v6436_v8 = vshll.u32 %v12923_v59, 16  ;;  %v6409_v18 = vrot.slane %v6407_v3, 1 }
 0x480   : > { %v12935_v1 = vrot.slane %v5292_v62, 7  ;;  %v4853_v44 = vpop.f32.mrf.mxu3  ;;  %v4940_v45 = vadd.f32 %v4939_v26, %v4851_v54  ;;  %v4316_v29 = vadd.f32 %v4282_v32, %v14280_v60  ;;  %v6429_v46 = vshrl.u32 %v12909_v2, 16 }
 0x481   : > { %4447 = vst [vmem:[%s12315_s12 + $0xe8] sm:$0xf] %v4415_v24  ;;  %v6412_v62 = vshll.u32 %v12933_v28, 16  ;;  %v4854_v13 = vadd.f32 %v12929_v7, %v4853_v44  ;;  %v6405_v26 = vshrl.u32 %v10289_v36, 16  ;;  %v6438_v24 = vrot.slane %v6436_v8, 1 }
 0x482   : > { %v5297_v61 = vor.u32 %v5295_v41, %v12935_v1  ;;  %v4979_v58 = vmax.f32 %v4940_v45, 0.0  ;;  %v14281_v41 = vld [vmem:[#allocation72_spill] sm:$0xff]  ;;  %v4352_v3 = vadd.f32 %v12875_v40, %v4316_v29  ;;  %v6434_v2 = vor.u32 %v6433_v56, %v6429_v46 }
 0x483   : > { %v4195_v45 = vadd.f32 %v12710_v55, %v14281_v41  ;;  %v5298_v32 = vrot.slane %v12935_v1, 4  ;;  %v6414_v5 = vrot.slane %v6412_v62, 1  ;;  %v10306_v55 = vld [vmem:[%s13937_s8 + $0x40] sm:$0xff]  ;;  %v10275_v62 = vld [vmem:[#allocation3 + $0x78] sm:$0xff] }
 0x484   : > { %v5483_v54 = vsel %vm11081_vm2, %v5297_v61, %v5482_v57  ;;  %v5065_v9 = vpack.c.bf16 %v4979_v58, %v4979_v58  ;;  %v12947_v34 = vpop.f32.mrf.mxu1  ;;  %v12949_v4 = vld [vmem:[#allocation3 + $0x9c] sm:$0xff]  ;;  %v6410_v61 = vor.u32 %v6409_v18, %v6405_v26  ;;  %v4384_v60 = vmax.f32 %v4352_v3, 0.0  ;;  %v5486_v26 = vld [vmem:[#allocation3 + $0xb0] sm:$0x1]  ;;  %7452 = vmatpush.bf16.msra.mxu1 %v10306_v55 }
 0x485   : > { %5484 = vst [vmem:[#allocation3 + $0xa8] sm:$0xf] %v5483_v54  ;;  %v5544_v35 = vld [vmem:[#allocation3 + $0xa4] sm:$0x1]  ;;  %v5580_v58 = vld [vmem:[#allocation3 + $0x80] sm:$0x1]  ;;  %v4283_v56 = vpop.f32.mrf.mxu2  ;;  %v6439_v27 = vsel %vm2137_vm3, %v6434_v2, %v6438_v24 }
 0x486   : > { %v5300_v57 = vshrl.u32 %v5065_v9, 16  ;;  %v5737_v44 = vunpack.c.l.b16 %v5544_v35  ;;  %v5303_v28 = vshll.u32 %v5065_v9, 16  ;;  %v6599_v37 = vshll.u32 %v12949_v4, 16 }
 0x487   : > { %v4942_v36 = vpop.f32.mrf.mxu0  ;;  %v6597_v1 = vshrl.u32 %v12949_v4, 16  ;;  %v4416_v18 = vpack.c.bf16 %v4384_v60, %v4384_v60  ;;  %v4284_v9 = vadd.f32 %v4283_v56, %v4195_v45  ;;  %v5869_v3 = vunpack.c.l.b16 %v5580_v58 }
 0x488   : > { %v5302_v29 = vrot.slane %v5300_v57, 7  ;;  %v4855_v8 = vpop.f32.mrf.mxu3  ;;  %v4943_v46 = vadd.f32 %v4942_v36, %v4854_v13  ;;  %v12959_v54 = vpack.c.b16 %v5737_v44, %v5737_v44  ;;  %v6601_v41 = vrot.slane %v6599_v37, 1  ;;  %v5626_v13 = vld [vmem:[#allocation3 + $0x80] sm:$0x1] }
 0x489   : > { %4448 = vst [vmem:[%s12315_s12 + $0xf0] sm:$0xf] %v4416_v18  ;;  %v14283_v44 = vld [vmem:[#allocation23_spill] sm:$0xff]  ;;  %v6415_v60 = vsel %vm2137_vm3, %v6410_v61, %v6414_v5  ;;  %v12974_v2 = vpack.c.b16 %v5869_v3, %v5869_v3  ;;  %v6467_v5 = vshll.u32 %v10275_v62, 16  ;;  %v6010_v24 = vunpack.c.l.b16 %v5626_v13 }
 0x48a   : > { %14282 = vst [vmem:[#allocation87_spill] sm:$0xff] %v12959_v54  ;;  %v5305_v35 = vor.u32 %v5303_v28, %v5302_v29  ;;  %v5307_v17 = vrot.slane %v5302_v29, 4  ;;  %v4980_v59 = vmax.f32 %v4943_v46, 0.0  ;;  %7394 = vmatmul.bf16.gmra.mxu0 %v10528_v53  ;;  %v6604_v57 = vshll.u32 %v12959_v54, 16  ;;  %v10290_v29 = vld [vmem:[#allocation3 + $0x78] sm:$0xff]  ;;  %7082 = vmatmul.bf16.gmra.mxu2 %v6439_v27 }
 0x48b   : > { %v4317_v36 = vadd.f32 %v4284_v9, %v14283_v44  ;;  %v6602_v45 = vor.u32 %v6601_v41, %v6597_v1  ;;  %14284 = vst [vmem:[#allocation28_spill] sm:$0xff] %v12974_v2  ;;  %v12978_v1 = vpack.c.b16 %v6010_v24, %v6010_v24  ;;  %v6443_v41 = vshll.u32 %v10290_v29, 16 }
 0x48c   : > { %v5306_v37 = vsel %vm11174_vm7, %v5298_v32, %v5305_v35  ;;  %v5487_v28 = vsel %vm11181_vm8, %v5307_v17, %v5486_v26  ;;  %v5066_v58 = vpack.c.bf16 %v4980_v59, %v4980_v59  ;;  %v12971_v55 = vpop.f32.mrf.mxu1  ;;  %v6606_v53 = vrot.slane %v6604_v57, 1  ;;  %v5489_v35 = vld [vmem:[#allocation3 + $0xb4] sm:$0xf] }
 0x48d   : > { %5485 = vst [vmem:[#allocation3 + $0xac] sm:$0xf] %v5306_v37  ;;  %v4353_v56 = vadd.f32 %v12875_v40, %v4317_v36  ;;  %7166 = vmatmul.bf16.gmra.mxu3 %v6415_v60  ;;  %v4856_v32 = vadd.f32 %v12929_v7, %v4855_v8  ;;  %v12982_v26 = vpop.f32.mrf.mxu2  ;;  %v6469_v8 = vrot.slane %v6467_v5, 1  ;;  %v6472_v57 = vshll.u32 %v12974_v2, 16  ;;  %v5583_v5 = vld [vmem:[#allocation3 + $0x8c] sm:$0x1] }
 0x48e   : > { %5488 = vst [vmem:[#allocation3 + $0xb0] sm:$0x1] %v5487_v28  ;;  %v5309_v61 = vshrl.u32 %v5066_v58, 16  ;;  %v6607_v17 = vsel %vm2137_vm3, %v6602_v45, %v6606_v53  ;;  %v5312_v40 = vshll.u32 %v5066_v58, 16  ;;  %v6465_v36 = vshrl.u32 %v10275_v62, 16 }
 0x48f   : > { %v4385_v59 = vmax.f32 %v4353_v56, 0.0  ;;  %7018 = vmatmul.bf16.gmra.mxu1 %v6607_v17  ;;  %v4944_v46 = vpop.f32.mrf.mxu0  ;;  %14285 = vst [vmem:[#allocation82_spill] sm:$0xff] %v12978_v1  ;;  %v6445_v60 = vrot.slane %v6443_v41, 1  ;;  %v6448_v45 = vshll.u32 %v12978_v1, 16 }
 0x490   : > { %v12980_v18 = vrot.slane %v5309_v61, 7  ;;  %v4858_v27 = vpop.f32.mrf.mxu3  ;;  %v4945_v9 = vadd.f32 %v4944_v46, %v4856_v32  ;;  %v6470_v24 = vor.u32 %v6469_v8, %v6465_v36  ;;  %v6474_v32 = vrot.slane %v6472_v57, 1  ;;  %v5629_v8 = vld [vmem:[#allocation3 + $0x8c] sm:$0x1] }
 0x491   : > { %v4417_v3 = vpack.c.bf16 %v4385_v59, %v4385_v59  ;;  %v4859_v28 = vadd.f32 %v12929_v7, %v4858_v27  ;;  %v6441_v61 = vshrl.u32 %v10290_v29, 16 }
 0x492   : > { %v5314_v13 = vor.u32 %v5312_v40, %v12980_v18  ;;  %v4981_v44 = vmax.f32 %v4945_v9, 0.0  ;;  %v6450_v9 = vrot.slane %v6448_v45, 1  ;;  %v5315_v29 = vrot.slane %v12980_v18, 4  ;;  %v13003_v45 = vld [vmem:[#allocation3 + $0x84] sm:$0xff] }
 0x493   : > { %4449 = vst [vmem:[%s12315_s12 + $0xf8] sm:$0xf] %v4417_v3  ;;  %v6446_v40 = vor.u32 %v6445_v60, %v6441_v61  ;;  %v5872_v3 = vunpack.c.l.b16 %v5583_v5  ;;  %v6475_v57 = vsel %vm2137_vm3, %v6470_v24, %v6474_v32 }
 0x494   : > { %v5490_v37 = vsel %vm11081_vm2, %v5314_v13, %v5489_v35  ;;  %v5067_v58 = vpack.c.bf16 %v4981_v44, %v4981_v44  ;;  %v12991_v53 = vpop.f32.mrf.mxu1  ;;  %v12993_v56 = vld [vmem:[#allocation3 + $0xa8] sm:$0xff]  ;;  %v5493_v13 = vld [vmem:[#allocation3 + $0xbc] sm:$0x1] }
 0x495   : > { %5491 = vst [vmem:[#allocation3 + $0xb4] sm:$0xf] %v5490_v37  ;;  %v5547_v17 = vld [vmem:[#allocation3 + $0xb0] sm:$0x1]  ;;  %v6635_v41 = vshll.u32 %v12993_v56, 16  ;;  %v12996_v1 = vpop.f32.mrf.mxu2  ;;  %v6633_v36 = vshrl.u32 %v12993_v56, 16  ;;  %v6451_v32 = vsel %vm2137_vm3, %v6446_v40, %v6450_v9 }
 0x496   : > { %v5317_v62 = vshrl.u32 %v5067_v58, 16  ;;  %v5740_v59 = vunpack.c.l.b16 %v5547_v17  ;;  %v5320_v35 = vshll.u32 %v5067_v58, 16  ;;  %v10353_v58 = vld [vmem:[%s13937_s8 + $0x1b8] sm:$0xff] }
 0x497   : > { %v4947_v46 = vpop.f32.mrf.mxu0  ;;  %v6637_v60 = vrot.slane %v6635_v41, 1  ;;  %v6013_v41 = vunpack.c.l.b16 %v5629_v8  ;;  %8008 = vmatpush.bf16.msrb.mxu3 %v10353_v58  ;;  %v10361_v8 = vld [vmem:[%s13937_s8 + $0x1f8] sm:$0xff] }
 0x498   : > { %v5319_v27 = vrot.slane %v5317_v62, 7  ;;  %v4860_v44 = vpop.f32.mrf.mxu3  ;;  %v4948_v54 = vadd.f32 %v4947_v46, %v4859_v28  ;;  %v12998_v37 = vpack.c.b16 %v5740_v59, %v5740_v59  ;;  %v10321_v28 = vld [vmem:[%s13937_s8 + $0xb8] sm:$0xff]  ;;  %v10529_v62 = vld [vmem:[#allocation3 + $0x54] sm:$0xff]  ;;  %8097 = vmatpush.bf16.msrb.mxu0 %v10361_v8  ;;  %v7046_v8 = vadd.f32 %v12996_v1, %v12758_v12  ;;  %v5500_v12 = vld [vmem:[#allocation3 + $0xc8] sm:$0x1] }
 0x499   : > { %v4861_v24 = vadd.f32 %v12929_v7, %v4860_v44  ;;  %v6638_v59 = vor.u32 %v6637_v60, %v6633_v36  ;;  %v10291_v46 = vld [vmem:[#allocation3 + $0x84] sm:$0xff]  ;;  %7534 = vmatpush.bf16.msrb.mxu2 %v10321_v28  ;;  %v6503_v7 = vshll.u32 %v13003_v45, 16  ;;  %v13027_v36 = vpack.c.b16 %v5872_v3, %v5872_v3 }
 0x49a   : > { %14286 = vst [vmem:[#allocation84_spill] sm:$0xff] %v12998_v37  ;;  %v5322_v5 = vor.u32 %v5320_v35, %v5319_v27  ;;  %v5324_v61 = vrot.slane %v5319_v27, 4  ;;  %v4982_v17 = vmax.f32 %v4948_v54, 0.0  ;;  %7399 = vmatmul.bf16.gmra.mxu0 %v10529_v62  ;;  %v6640_v18 = vshll.u32 %v12998_v37, 16  ;;  %7087 = vmatmul.bf16.gmra.mxu2 %v6475_v57 }
 0x49b   : > { %14287 = vst [vmem:[#allocation29_spill] sm:$0xff] %v13027_v36  ;;  %v6479_v57 = vshll.u32 %v10291_v46, 16  ;;  %v6501_v3 = vshrl.u32 %v13003_v45, 16 }
 0x49c   : > { %v5323_v2 = vsel %vm11174_vm7, %v5315_v29, %v5322_v5  ;;  %v5494_v27 = vsel %vm11181_vm8, %v5324_v61, %v5493_v13  ;;  %v5068_v54 = vpack.c.bf16 %v4982_v17, %v4982_v17  ;;  %v13018_v35 = vpop.f32.mrf.mxu1  ;;  %v6642_v62 = vrot.slane %v6640_v18, 1  ;;  %v5496_v61 = vld [vmem:[#allocation3 + $0xc0] sm:$0xf] }
 0x49d   : > { %5492 = vst [vmem:[#allocation3 + $0xb8] sm:$0xf] %v5323_v2  ;;  %7171 = vmatmul.bf16.gmra.mxu3 %v6451_v32  ;;  %v7044_v13 = vadd.f32 %v12982_v26, %v12728_v51  ;;  %v13029_v2 = vpack.c.b16 %v6013_v41, %v6013_v41  ;;  %v13031_v58 = vpop.f32.mrf.mxu2  ;;  %v6505_v18 = vrot.slane %v6503_v7, 1  ;;  %v10369_v51 = vld [vmem:[%s13937_s8 + $0x238] sm:$0xff]  ;;  %v6481_v41 = vrot.slane %v6479_v57, 1 }
 0x49e   : > { %5495 = vst [vmem:[#allocation3 + $0xbc] sm:$0x1] %v5494_v27  ;;  %v5326_v40 = vshrl.u32 %v5068_v54, 16  ;;  %v5329_v9 = vshll.u32 %v5068_v54, 16  ;;  %v6643_v44 = vsel %vm2137_vm3, %v6638_v59, %v6642_v62  ;;  %v6508_v59 = vshll.u32 %v13027_v36, 16  ;;  %8186 = vmatpush.bf16.msrb.mxu1 %v10369_v51 }
 0x49f   : > { %7023 = vmatmul.bf16.gmra.mxu1 %v6643_v44  ;;  %v4949_v29 = vpop.f32.mrf.mxu0  ;;  %14288 = vst [vmem:[#allocation30_spill] sm:$0xff] %v13029_v2  ;;  %v6484_v27 = vshll.u32 %v13029_v2, 16 }
 0x4a0   : > { %v5328_v60 = vrot.slane %v5326_v40, 7  ;;  %v7132_v28 = vpop.f32.mrf.mxu3  ;;  %v4950_v5 = vadd.f32 %v4949_v29, %v4861_v24  ;;  %v6506_v40 = vor.u32 %v6505_v18, %v6501_v3  ;;  %v5586_v18 = vld [vmem:[#allocation3 + $0x98] sm:$0x1] }
 0x4a1   : > { %v7133_v17 = vadd.f32 %v7132_v28, %v7044_v13  ;;  %v6486_v22 = vrot.slane %v6484_v27, 1  ;;  %v5632_v3 = vld [vmem:[#allocation3 + $0x98] sm:$0x1]  ;;  %v10530_v27 = vld [vmem:[#allocation3 + $0x60] sm:$0xff] }
 0x4a2   : > { %v5331_v26 = vor.u32 %v5329_v9, %v5328_v60  ;;  %v4983_v32 = vmax.f32 %v4950_v5, 0.0  ;;  %v6477_v9 = vshrl.u32 %v10291_v46, 16  ;;  %v6510_v5 = vrot.slane %v6508_v59, 1 }
 0x4a4   : > { %v5497_v24 = vsel %vm11081_vm2, %v5331_v26, %v5496_v61  ;;  %v5069_v54 = vpack.c.bf16 %v4983_v32, %v4983_v32  ;;  %v13041_v62 = vpop.f32.mrf.mxu1  ;;  %v13043_v7 = vld [vmem:[#allocation3 + $0xb4] sm:$0xff]  ;;  %v6482_v51 = vor.u32 %v6481_v41, %v6477_v9  ;;  %v5332_v26 = vrot.slane %v5328_v60, 4 }
 0x4a5   : > { %5498 = vst [vmem:[#allocation3 + $0xc0] sm:$0xf] %v5497_v24  ;;  %v5550_v44 = vld [vmem:[#allocation3 + $0xbc] sm:$0x1]  ;;  %v6671_v61 = vshll.u32 %v13043_v7, 16  ;;  %v7050_v2 = vpop.f32.mrf.mxu2  ;;  %v6511_v9 = vsel %vm2137_vm3, %v6506_v40, %v6510_v5  ;;  %v7049_v5 = vadd.f32 %v13031_v58, %v12781_v10 }
 0x4a6   : > { %v5334_v13 = vshrl.u32 %v5069_v54, 16  ;;  %v5337_v29 = vshll.u32 %v5069_v54, 16  ;;  %v5743_v57 = vunpack.c.l.b16 %v5550_v44  ;;  %v6669_v54 = vshrl.u32 %v13043_v7, 16  ;;  %v5595_v39 = vld [vmem:[#allocation3 + $0xbc] sm:$0x1] }
 0x4a7   : > { %v7365_v28 = vpop.f32.mrf.mxu0  ;;  %v6673_v44 = vrot.slane %v6671_v61, 1 }
 0x4a8   : > { %v5336_v32 = vrot.slane %v5334_v13, 7  ;;  %v7134_v37 = vpop.f32.mrf.mxu3  ;;  %v13048_v24 = vadd.f32 %v7365_v28, %v7133_v17  ;;  %v13050_v46 = vpack.c.b16 %v5743_v57, %v5743_v57  ;;  %v13055_v17 = vld [vmem:[#allocation3 + $0x90] sm:$0xff]  ;;  %v5875_v57 = vunpack.c.l.b16 %v5586_v18 }
 0x4a9   : > { %v7135_v1 = vadd.f32 %v7134_v37, %v7046_v8  ;;  %v6674_v13 = vor.u32 %v6673_v44, %v6669_v54  ;;  %v6016_v28 = vunpack.c.l.b16 %v5632_v3  ;;  %v6487_v8 = vsel %vm2137_vm3, %v6482_v51, %v6486_v22 }
 0x4aa   : > { %14289 = vst [vmem:[#allocation34_spill] sm:$0xff] %v13050_v46  ;;  %v5339_v59 = vor.u32 %v5337_v29, %v5336_v32  ;;  %v5341_v41 = vrot.slane %v5336_v32, 4  ;;  %7404 = vmatmul.bf16.gmra.mxu0 %v10530_v27  ;;  %v6676_v60 = vshll.u32 %v13050_v46, 16  ;;  %v10292_v32 = vld [vmem:[#allocation3 + $0x90] sm:$0xff]  ;;  %7092 = vmatmul.bf16.gmra.mxu2 %v6511_v9  ;;  %v6539_v19 = vshll.u32 %v13055_v17, 16 }
 0x4ab   : > { %v13070_v22 = vpack.c.b16 %v5875_v57, %v5875_v57  ;;  %v13072_v3 = vpack.c.b16 %v6016_v28, %v6016_v28  ;;  %v6513_v27 = vshrl.u32 %v10292_v32, 16 }
 0x4ac   : > { %v5340_v36 = vsel %vm11174_vm7, %v5332_v26, %v5339_v59  ;;  %v5501_v37 = vsel %vm11181_vm8, %v5341_v41, %v5500_v12  ;;  %v13062_v29 = vpop.f32.mrf.mxu1  ;;  %v6678_v61 = vrot.slane %v6676_v60, 1  ;;  %v6541_v54 = vrot.slane %v6539_v19, 1  ;;  %v10352_v19 = vld [vmem:[%s13937_s8 + $0x1b0] sm:$0xff] }
 0x4ad   : > { %5499 = vst [vmem:[#allocation3 + $0xc4] sm:$0xf] %v5340_v36  ;;  %7176 = vmatmul.bf16.gmra.mxu3 %v6487_v8  ;;  %v7053_v26 = vpop.f32.mrf.mxu2  ;;  %v6515_v36 = vshll.u32 %v10292_v32, 16  ;;  %v6544_v59 = vshll.u32 %v13070_v22, 16  ;;  %v6520_v58 = vshll.u32 %v13072_v3, 16  ;;  %v6537_v41 = vshrl.u32 %v13055_v17, 16 }
 0x4ae   : > { %5502 = vst [vmem:[#allocation3 + $0xc8] sm:$0x1] %v5501_v37  ;;  %v6679_v40 = vsel %vm2137_vm3, %v6674_v13, %v6678_v61  ;;  %v13091_v32 = vld [vmem:[#allocation3 + $0x9c] sm:$0xff]  ;;  %8009 = vmatpush.bf16.msrb.mxu3 %v10352_v19 }
 0x4af   : > { %7028 = vmatmul.bf16.gmra.mxu1 %v6679_v40  ;;  %v7367_v25 = vpop.f32.mrf.mxu0  ;;  %14290 = vst [vmem:[#allocation31_spill] sm:$0xff] %v13070_v22  ;;  %v6517_v10 = vrot.slane %v6515_v36, 1  ;;  %v6542_v9 = vor.u32 %v6541_v54, %v6537_v41  ;;  %v6546_v37 = vrot.slane %v6544_v59, 1  ;;  %v6522_v61 = vrot.slane %v6520_v58, 1  ;;  %v5589_v40 = vld [vmem:[#allocation3 + $0xa4] sm:$0x1] }
 0x4b0   : > { %v7137_v18 = vpop.f32.mrf.mxu3  ;;  %v13068_v51 = vadd.f32 %v7367_v25, %v7135_v1  ;;  %14291 = vst [vmem:[#allocation18_spill] sm:$0xff] %v13072_v3  ;;  %v7051_v1 = vadd.f32 %v7050_v2, %v12803_v42  ;;  %v5635_v25 = vld [vmem:[#allocation3 + $0xa4] sm:$0x1]  ;;  %v10320_v42 = vld [vmem:[%s13937_s8 + $0xb0] sm:$0xff]  ;;  %v13088_v2 = vld [vmem:[#allocation3 + $0x6c] sm:$0xff]  ;;  %v5878_v54 = vunpack.c.l.b16 %v5589_v40  ;;  %v7054_v41 = vadd.f32 %v7053_v26, %v12822_v43 }
 0x4b1   : > { %v7138_v12 = vadd.f32 %v7137_v18, %v7049_v5  ;;  %v6518_v8 = vor.u32 %v6517_v10, %v6513_v27  ;;  %14292 = vst [vmem:[#allocation48_spill] sm:$0xff] %v13088_v2  ;;  %7535 = vmatpush.bf16.msrb.mxu2 %v10320_v42  ;;  %v6547_v18 = vsel %vm2137_vm3, %v6542_v9, %v6546_v37  ;;  %v10293_v59 = vld [vmem:[#allocation3 + $0x9c] sm:$0xff]  ;;  %v6019_v10 = vunpack.c.l.b16 %v5635_v25  ;;  %v13101_v27 = vld [vmem:[#allocation3 + $0xc] sm:$0xff] }
 0x4b2   : > { %14293 = vst [vmem:[#allocation40_spill] sm:$0xff] %v13091_v32  ;;  %v10360_v58 = vld [vmem:[%s13937_s8 + $0x1f0] sm:$0xff]  ;;  %v6551_v40 = vshll.u32 %v10293_v59, 16 }
 0x4b3   : > { %v6523_v36 = vsel %vm2137_vm3, %v6518_v8, %v6522_v61  ;;  %8098 = vmatpush.bf16.msrb.mxu0 %v10360_v58  ;;  %v13107_v8 = vpack.c.b16 %v5878_v54, %v5878_v54  ;;  %v13109_v61 = vpack.c.b16 %v6019_v10, %v6019_v10  ;;  %v10368_v43 = vld [vmem:[%s13937_s8 + $0x230] sm:$0xff]  ;;  %v6549_v54 = vshrl.u32 %v10293_v59, 16 }
 0x4b4   : > { %v13074_v44 = vpop.f32.mrf.mxu1  ;;  %8187 = vmatpush.bf16.msrb.mxu1 %v10368_v43 }
 0x4b5   : > { %v7055_v13 = vpop.f32.mrf.mxu2  ;;  %14294 = vst [vmem:[#allocation39_spill] sm:$0xff] %v13107_v8  ;;  %v6580_v42 = vshll.u32 %v13107_v8, 16  ;;  %v5638_v8 = vld [vmem:[#allocation3 + $0xb0] sm:$0x1] }
 0x4b6   : > { %14295 = vst [vmem:[#allocation19_spill] sm:$0xff] %v13109_v61  ;;  %v7056_v10 = vadd.f32 %v7055_v13, %v12844_v47 }
 0x4b7   : > { %v7370_v60 = vpop.f32.mrf.mxu0 }
 0x4b8   : > { %v7139_v57 = vpop.f32.mrf.mxu3  ;;  %v13080_v28 = vadd.f32 %v7370_v60, %v7138_v12  ;;  %v6575_v60 = vshll.u32 %v13091_v32, 16 }
 0x4b9   : > { %v7140_v5 = vadd.f32 %v7139_v57, %v7051_v1 }
 0x4ba   : > { %7409 = vmatmul.bf16.gmra.mxu0 %v13088_v2  ;;  %7097 = vmatmul.bf16.gmra.mxu2 %v6547_v18  ;;  %v6577_v26 = vrot.slane %v6575_v60, 1  ;;  %v6553_v18 = vrot.slane %v6551_v40, 1  ;;  %v6582_v60 = vrot.slane %v6580_v42, 1  ;;  %v5592_v2 = vld [vmem:[#allocation3 + $0xb0] sm:$0x1]  ;;  %v13122_v40 = vld [vmem:[#allocation3 + $0x78] sm:$0xff]  ;;  %v6022_v42 = vunpack.c.l.b16 %v5638_v8 }
 0x4bb   : > { %14296 = vst [vmem:[#allocation20_spill] sm:$0xff] %v13122_v40 }
 0x4bc   : > { %v13095_v12 = vpop.f32.mrf.mxu1  ;;  %v6554_v43 = vor.u32 %v6553_v18, %v6549_v54 }
 0x4bd   : > { %7181 = vmatmul.bf16.gmra.mxu3 %v6523_v36  ;;  %v7058_v9 = vpop.f32.mrf.mxu2  ;;  %v6573_v36 = vshrl.u32 %v13091_v32, 16  ;;  %v5641_v32 = vld [vmem:[#allocation3 + $0xbc] sm:$0x1] }
 0x4be   : > { %v7059_v18 = vadd.f32 %v7058_v9, %v12870_v15 }
 0x4bf   : > { %7453 = vmatmul.bf16.vlgmr.msra.gmra.mxu1 %v13101_v27  ;;  %v7372_v1 = vpop.f32.mrf.mxu0 }
 0x4c0   : > { %v7142_v57 = vpop.f32.mrf.mxu3  ;;  %v13105_v37 = vadd.f32 %v7372_v1, %v7140_v5  ;;  %v6556_v5 = vshll.u32 %v13109_v61, 16  ;;  %v13125_v61 = vld [vmem:[#allocation3 + $0xa8] sm:$0xff] }
 0x4c1   : > { %v7143_v25 = vadd.f32 %v7142_v57, %v7054_v41  ;;  %v6578_v41 = vor.u32 %v6577_v26, %v6573_v36  ;;  %14297 = vst [vmem:[#allocation47_spill] sm:$0xff] %v13125_v61  ;;  %v13131_v26 = vld [vmem:[#allocation3 + $0xa8] sm:$0xff]  ;;  %v6611_v54 = vshll.u32 %v13125_v61, 16 }
 0x4c2   : > { %v6558_v46 = vrot.slane %v6556_v5, 1  ;;  %14298 = vst [vmem:[#allocation33_spill] sm:$0xff] %v13131_v26  ;;  %v13134_v5 = vld [vmem:[#allocation3 + $0x18] sm:$0xff]  ;;  %v6587_v8 = vshll.u32 %v13131_v26, 16 }
 0x4c3   : > { %v6583_v47 = vsel %vm2137_vm3, %v6578_v41, %v6582_v60  ;;  %v6613_v60 = vrot.slane %v6611_v54, 1 }
 0x4c4   : > { %v13114_v19 = vpop.f32.mrf.mxu1  ;;  %v6559_v13 = vsel %vm2137_vm3, %v6554_v43, %v6558_v46  ;;  %v6589_v43 = vrot.slane %v6587_v8, 1 }
 0x4c5   : > { %v7060_v1 = vpop.f32.mrf.mxu2 }
 0x4c7   : > { %v7375_v58 = vpop.f32.mrf.mxu0 }
 0x4c8   : > { %v7144_v57 = vpop.f32.mrf.mxu3  ;;  %v13120_v3 = vadd.f32 %v7375_v58, %v7143_v25  ;;  %v5881_v25 = vunpack.c.l.b16 %v5592_v2  ;;  %v13142_v2 = vpack.c.b16 %v6022_v42, %v6022_v42  ;;  %v7061_v42 = vadd.f32 %v7060_v1, %v12897_v6  ;;  %v10318_v6 = vld [vmem:[%s13937_s8 + $0xa0] sm:$0xff]  ;;  %v13164_v1 = vld [vmem:[#allocation3 + $0xb4] sm:$0xff] }
 0x4c9   : > { %v7145_v22 = vadd.f32 %v7144_v57, %v7056_v10 }
 0x4ca   : > { %7414 = vmatmul.bf16.gmra.mxu0 %v13122_v40  ;;  %7102 = vmatmul.bf16.gmra.mxu2 %v6583_v47  ;;  %v13140_v41 = vpack.c.b16 %v5881_v25, %v5881_v25  ;;  %14300 = vst [vmem:[#allocation42_spill] sm:$0xff] %v13142_v2  ;;  %v6592_v47 = vshll.u32 %v13142_v2, 16  ;;  %v6585_v25 = vshrl.u32 %v13131_v26, 16 }
 0x4cc   : > { %v13129_v59 = vpop.f32.mrf.mxu1  ;;  %14299 = vst [vmem:[#allocation56_spill] sm:$0xff] %v13140_v41  ;;  %v6616_v9 = vshll.u32 %v13140_v41, 16  ;;  %v6590_v41 = vor.u32 %v6589_v43, %v6585_v25  ;;  %v6594_v2 = vrot.slane %v6592_v47, 1  ;;  %v5884_v43 = vunpack.c.l.b16 %v5595_v39  ;;  %v13170_v47 = vld [vmem:[#allocation3 + $0xb4] sm:$0xff]  ;;  %v13179_v25 = vld [vmem:[#allocation3 + $0x24] sm:$0xff] }
 0x4cd   : > { %7186 = vmatmul.bf16.gmra.mxu3 %v6559_v13  ;;  %v7063_v10 = vpop.f32.mrf.mxu2  ;;  %v6609_v13 = vshrl.u32 %v13125_v61, 16  ;;  %v10351_v61 = vld [vmem:[%s13937_s8 + $0x1a8] sm:$0xff]  ;;  %14301 = vst [vmem:[#allocation62_spill] sm:$0xff] %v13170_v47 }
 0x4ce   : > { %v6618_v8 = vrot.slane %v6616_v9, 1  ;;  %8010 = vmatpush.bf16.msrb.mxu3 %v10351_v61  ;;  %v10359_v61 = vld [vmem:[%s13937_s8 + $0x1e8] sm:$0xff] }
 0x4cf   : > { %7458 = vmatmul.bf16.gmra.mxu1 %v13134_v5  ;;  %v7377_v36 = vpop.f32.mrf.mxu0  ;;  %8099 = vmatpush.bf16.msrb.mxu0 %v10359_v61  ;;  %v6621_v61 = vshrl.u32 %v13170_v47, 16 }
 0x4d0   : > { %v7147_v58 = vpop.f32.mrf.mxu3  ;;  %v13138_v46 = vadd.f32 %v7377_v36, %v7145_v22  ;;  %v10319_v22 = vld [vmem:[%s13937_s8 + $0xa8] sm:$0xff]  ;;  %v6614_v36 = vor.u32 %v6613_v60, %v6609_v13  ;;  %v6595_v60 = vsel %vm2137_vm3, %v6590_v41, %v6594_v2  ;;  %v7064_v13 = vadd.f32 %v7063_v10, %v12920_v21 }
 0x4d1   : > { %v7148_v57 = vadd.f32 %v7147_v58, %v7059_v18  ;;  %7536 = vmatpush.bf16.msrb.mxu2 %v10319_v22  ;;  %v6025_v22 = vunpack.c.l.b16 %v5641_v32  ;;  %v6647_v41 = vshll.u32 %v13164_v1, 16  ;;  %v10367_v10 = vld [vmem:[%s13937_s8 + $0x228] sm:$0xff] }
 0x4d2   : > { %8188 = vmatpush.bf16.msrb.mxu1 %v10367_v10  ;;  %v5644_v10 = vld [vmem:[#allocation3 + $0xc8] sm:$0x1] }
 0x4d4   : > { %v13145_v15 = vpop.f32.mrf.mxu1 }
 0x4d5   : > { %v7065_v54 = vpop.f32.mrf.mxu2  ;;  %7537 = vmatpush.bf16.msrb.mxu2 %v10318_v6  ;;  %v6649_v6 = vrot.slane %v6647_v41, 1 }
 0x4d7   : > { %v7380_v18 = vpop.f32.mrf.mxu0 }
 0x4d8   : > { %v7149_v58 = vpop.f32.mrf.mxu3  ;;  %v13155_v40 = vadd.f32 %v7380_v18, %v7148_v57  ;;  %v6619_v57 = vsel %vm2137_vm3, %v6614_v36, %v6618_v8  ;;  %v13185_v18 = vpack.c.b16 %v5884_v43, %v5884_v43  ;;  %v13187_v36 = vpack.c.b16 %v6025_v22, %v6025_v22  ;;  %v10316_v8 = vld [vmem:[%s13937_s8 + $0x90] sm:$0xff]  ;;  %v10315_v22 = vld [vmem:[%s13937_s8 + $0x88] sm:$0xff] }
 0x4d9   : > { %v7150_v16 = vadd.f32 %v7149_v58, %v7061_v42  ;;  %v6623_v58 = vshll.u32 %v13170_v47, 16  ;;  %v10314_v47 = vld [vmem:[%s13937_s8 + $0x80] sm:$0xff] }
 0x4da   : > { %7419 = vmatmul.bf16.gmra.mxu0 %v12846_v20  ;;  %7107 = vmatmul.bf16.gmra.mxu2 %v6619_v57  ;;  %v10317_v20 = vld [vmem:[%s13937_s8 + $0x98] sm:$0xff]  ;;  %14303 = vst [vmem:[#allocation65_spill] sm:$0xff] %v13185_v18  ;;  %v6652_v57 = vshll.u32 %v13185_v18, 16  ;;  %v6628_v43 = vshll.u32 %v13187_v36, 16 }
 0x4db   : > { %7538 = vmatpush.bf16.msrb.mxu2 %v10317_v20  ;;  %14304 = vst [vmem:[#allocation52_spill] sm:$0xff] %v13187_v36  ;;  %v6645_v20 = vshrl.u32 %v13164_v1, 16 }
 0x4dc   : > { %v13168_v9 = vpop.f32.mrf.mxu1  ;;  %v6654_v36 = vrot.slane %v6652_v57, 1  ;;  %v6630_v11 = vrot.slane %v6628_v43, 1 }
 0x4dd   : > { %7191 = vmatmul.bf16.gmra.mxu3 %v6595_v60  ;;  %v7068_v32 = vpop.f32.mrf.mxu2  ;;  %v6625_v60 = vrot.slane %v6623_v58, 1  ;;  %v6650_v41 = vor.u32 %v6649_v6, %v6645_v20  ;;  %v13217_v6 = vld [vmem:[#allocation3 + $0xc0] sm:$0xff] }
 0x4de   : > { %14306 = vst [vmem:[#allocation36_spill] sm:$0xff] %v13217_v6 }
 0x4df   : > { %7463 = vmatmul.bf16.gmra.mxu1 %v13179_v25  ;;  %v7382_v39 = vpop.f32.mrf.mxu0  ;;  %7539 = vmatpush.bf16.msrb.mxu2 %v10316_v8  ;;  %v6626_v26 = vor.u32 %v6625_v60, %v6621_v61  ;;  %v13233_v61 = vld [vmem:[#allocation3 + $0x30] sm:$0xff] }
 0x4e0   : > { %v7152_v2 = vpop.f32.mrf.mxu3  ;;  %v13183_v42 = vadd.f32 %v7382_v39, %v7150_v16 }
 0x4e1   : > { %v7153_v21 = vadd.f32 %v7152_v2, %v7064_v13  ;;  %v7066_v13 = vadd.f32 %v7065_v54, %v12947_v34  ;;  %v5598_v2 = vld [vmem:[#allocation3 + $0xc8] sm:$0x1]  ;;  %v6631_v57 = vsel %vm2137_vm3, %v6626_v26, %v6630_v11 }
 0x4e2   : > { %14302 = vst [vmem:[#allocation32_spill] sm:$0xff] %v13183_v42  ;;  %v13208_v42 = vld [vmem:[#allocation3 + $0xc0] sm:$0xff]  ;;  %v10350_v34 = vld [vmem:[%s13937_s8 + $0x1a0] sm:$0xff]  ;;  %v5887_v54 = vunpack.c.l.b16 %v5598_v2 }
 0x4e3   : > { %7540 = vmatpush.bf16.msrb.mxu2 %v10315_v22  ;;  %14305 = vst [vmem:[#allocation46_spill] sm:$0xff] %v13208_v42  ;;  %8011 = vmatpush.bf16.msrb.mxu3 %v10350_v34  ;;  %v6683_v43 = vshll.u32 %v13208_v42, 16  ;;  %v6681_v2 = vshrl.u32 %v13208_v42, 16  ;;  %v10348_v34 = vld [vmem:[%s13937_s8 + $0x190] sm:$0xff] }
 0x4e4   : > { %v13196_v16 = vpop.f32.mrf.mxu1  ;;  %v13227_v22 = vpack.c.b16 %v5887_v54, %v5887_v54 }
 0x4e5   : > { %v7070_v8 = vpop.f32.mrf.mxu2 }
 0x4e6   : > { %14307 = vst [vmem:[#allocation45_spill] sm:$0xff] %v13227_v22 }
 0x4e7   : > { %v7385_v39 = vpop.f32.mrf.mxu0  ;;  %7541 = vmatpush.bf16.msrb.mxu2 %v10314_v47  ;;  %v6659_v47 = vshll.u32 %v13217_v6, 16 }
 0x4e8   : > { %v7154_v18 = vpop.f32.mrf.mxu3  ;;  %v13206_v58 = vadd.f32 %v7385_v39, %v7153_v21  ;;  %v6028_v21 = vunpack.c.l.b16 %v5644_v10  ;;  %v6685_v10 = vrot.slane %v6683_v43, 1 }
 0x4e9   : > { %v7155_v31 = vadd.f32 %v7154_v18, %v7066_v13  ;;  %v6655_v18 = vsel %vm2137_vm3, %v6650_v41, %v6654_v36  ;;  %v7069_v36 = vadd.f32 %v7068_v32, %v12971_v55  ;;  %v6688_v55 = vshll.u32 %v13227_v22, 16  ;;  %v5647_v22 = vld [vmem:[#allocation3 + $0xd4] sm:$0x1] }
 0x4ea   : > { %7424 = vmatmul.bf16.gmra.mxu0 %v12899_v50  ;;  %7112 = vmatmul.bf16.gmra.mxu2 %v6655_v18  ;;  %v10349_v50 = vld [vmem:[%s13937_s8 + $0x198] sm:$0xff]  ;;  %v13229_v20 = vpack.c.b16 %v6028_v21, %v6028_v21  ;;  %v6657_v32 = vshrl.u32 %v13217_v6, 16  ;;  %v6661_v54 = vrot.slane %v6659_v47, 1 }
 0x4eb   : > { %8012 = vmatpush.bf16.msrb.mxu3 %v10349_v50  ;;  %v6690_v43 = vrot.slane %v6688_v55, 1  ;;  %v6031_v55 = vunpack.c.l.b16 %v5647_v22 }
 0x4ec   : > { %v13221_v60 = vpop.f32.mrf.mxu1  ;;  %14308 = vst [vmem:[#allocation50_spill] sm:$0xff] %v13229_v20  ;;  %v6664_v21 = vshll.u32 %v13229_v20, 16  ;;  %v6662_v50 = vor.u32 %v6661_v54, %v6657_v32  ;;  %v10346_v20 = vld [vmem:[%s13937_s8 + $0x180] sm:$0xff]  ;;  %v10357_v32 = vld [vmem:[%s13937_s8 + $0x1d8] sm:$0xff] }
 0x4ed   : > { %7196 = vmatmul.bf16.gmra.mxu3 %v6631_v57  ;;  %v7073_v26 = vpop.f32.mrf.mxu2  ;;  %v6686_v57 = vor.u32 %v6685_v10, %v6681_v2  ;;  %v10358_v2 = vld [vmem:[%s13937_s8 + $0x1e0] sm:$0xff]  ;;  %v13269_v54 = vpack.c.b16 %v6031_v55, %v6031_v55 }
 0x4ee   : > { %8100 = vmatpush.bf16.msrb.mxu0 %v10358_v2 }
 0x4ef   : > { %7468 = vmatmul.bf16.gmra.mxu1 %v13233_v61  ;;  %v7387_v11 = vpop.f32.mrf.mxu0  ;;  %8013 = vmatpush.bf16.msrb.mxu3 %v10348_v34  ;;  %v6691_v10 = vsel %vm2137_vm3, %v6686_v57, %v6690_v43  ;;  %14310 = vst [vmem:[#allocation38_spill] sm:$0xff] %v13269_v54 }
 0x4f0   : > { %v7157_v13 = vpop.f32.mrf.mxu3  ;;  %v13236_v39 = vadd.f32 %v7387_v11, %v7155_v31  ;;  %v10347_v31 = vld [vmem:[%s13937_s8 + $0x188] sm:$0xff]  ;;  %v7071_v11 = vadd.f32 %v7070_v8, %v12991_v53 }
 0x4f1   : > { %v7158_v41 = vadd.f32 %v7157_v13, %v7069_v36  ;;  %v6666_v36 = vrot.slane %v6664_v21, 1  ;;  %v13262_v8 = vld [vmem:[#allocation3 + $0xcc] sm:$0xff] }
 0x4f2   : > { %14309 = vst [vmem:[#allocation57_spill] sm:$0xff] %v13262_v8  ;;  %v6695_v21 = vshll.u32 %v13262_v8, 16  ;;  %8101 = vmatpush.bf16.msrb.mxu0 %v10357_v32 }
 0x4f3   : > { %8014 = vmatpush.bf16.msrb.mxu3 %v10347_v31  ;;  %v6667_v53 = vsel %vm2137_vm3, %v6662_v50, %v6666_v36  ;;  %v7074_v31 = vadd.f32 %v7073_v26, %v13018_v35  ;;  %v10366_v36 = vld [vmem:[%s13937_s8 + $0x220] sm:$0xff]  ;;  %v6693_v35 = vshrl.u32 %v13262_v8, 16 }
 0x4f4   : > { %v13245_v18 = vpop.f32.mrf.mxu1  ;;  %v6697_v26 = vrot.slane %v6695_v21, 1  ;;  %8189 = vmatpush.bf16.msrb.mxu1 %v10366_v36 }
 0x4f5   : > { %v7075_v6 = vpop.f32.mrf.mxu2 }
 0x4f6   : > { %v6698_v2 = vor.u32 %v6697_v26, %v6693_v35 }
 0x4f7   : > { %v7390_v13 = vpop.f32.mrf.mxu0  ;;  %8015 = vmatpush.bf16.msrb.mxu3 %v10346_v20 }
 0x4f8   : > { %v7159_v47 = vpop.f32.mrf.mxu3  ;;  %v13251_v42 = vadd.f32 %v7390_v13, %v7158_v41  ;;  %v6700_v13 = vshll.u32 %v13269_v54, 16 }
 0x4f9   : > { %v7160_v34 = vadd.f32 %v7159_v47, %v7071_v11  ;;  %v10356_v11 = vld [vmem:[%s13937_s8 + $0x1d0] sm:$0xff] }
 0x4fa   : > { %7429 = vmatmul.bf16.gmra.mxu0 %v12949_v4  ;;  %7117 = vmatmul.bf16.gmra.mxu2 %v6691_v10  ;;  %v13273_v4 = vld [vmem:[#allocation3 + $0x3c] sm:$0xff]  ;;  %v6702_v10 = vrot.slane %v6700_v13, 1 }
 0x4fb   : > { %8102 = vmatpush.bf16.msrb.mxu0 %v10356_v11 }
 0x4fc   : > { %v13264_v41 = vpop.f32.mrf.mxu1  ;;  %v6703_v36 = vsel %vm2137_vm3, %v6698_v2, %v6702_v10  ;;  %v10540_v10 = vld [vmem:[#allocation3] sm:$0xff] }
 0x4fd   : > { %7201 = vmatmul.bf16.gmra.mxu3 %v6667_v53  ;;  %v7078_v20 = vpop.f32.mrf.mxu2  ;;  %v7076_v53 = vadd.f32 %v7075_v6, %v13041_v62  ;;  %v13301_v62 = vld [vmem:[#allocation3 + $0x18] sm:$0xff] }
 0x4fe   : > { %14311 = vst [vmem:[#allocation37_spill] sm:$0xff] %v13301_v62  ;;  %v7079_v6 = vadd.f32 %v7078_v20, %v13062_v29 }
 0x4ff   : > { %7473 = vmatmul.bf16.gmra.mxu1 %v13273_v4  ;;  %v7392_v22 = vpop.f32.mrf.mxu0 }
 0x500   : > { %v7162_v57 = vpop.f32.mrf.mxu3  ;;  %v13276_v43 = vadd.f32 %v7392_v22, %v7160_v34  ;;  %v10355_v34 = vld [vmem:[%s13937_s8 + $0x1c8] sm:$0xff] }
 0x501   : > { %v7163_v50 = vadd.f32 %v7162_v57, %v7074_v31  ;;  %8103 = vmatpush.bf16.msrb.mxu0 %v10355_v34  ;;  %v10354_v57 = vld [vmem:[%s13937_s8 + $0x1c0] sm:$0xff] }
 0x504   : > { %v13286_v47 = vpop.f32.mrf.mxu1 }
 0x505   : > { %v7080_v32 = vpop.f32.mrf.mxu2  ;;  %8104 = vmatpush.bf16.msrb.mxu0 %v10354_v57 }
 0x506   : > { %v7081_v57 = vadd.f32 %v7080_v32, %v13074_v44  ;;  %v13324_v44 = vld [vmem:[#allocation3 + $0x54] sm:$0xff] }
 0x507   : > { %v7395_v55 = vpop.f32.mrf.mxu0 }
 0x508   : > { %v7164_v31 = vpop.f32.mrf.mxu3  ;;  %v13292_v22 = vadd.f32 %v7395_v55, %v7163_v50  ;;  %v13305_v50 = vld [vmem:[#allocation3 + $0x48] sm:$0xff] }
 0x509   : > { %v7165_v21 = vadd.f32 %v7164_v31, %v7076_v53  ;;  %v7623_v53 = vrot.slane %v10540_v10, 1  ;;  %v14312_v55 = vld [vmem:[#allocation68_spill] sm:$0xff] }
 0x50a   : > { %7434 = vmatmul.bf16.gmra.mxu0 %v12993_v56  ;;  %7542 = vmatmul.bf16.vlgmr.msrb.gmra.mxu2 %v13301_v62  ;;  %v7624_v31 = vrot.slane %v14312_v55, 1 }
 0x50c   : > { %v13299_v11 = vpop.f32.mrf.mxu1 }
 0x50d   : > { %7206 = vmatmul.bf16.gmra.mxu3 %v6703_v36  ;;  %v7083_v26 = vpop.f32.mrf.mxu2 }
 0x50f   : > { %7478 = vmatmul.bf16.gmra.mxu1 %v13305_v50  ;;  %v7397_v35 = vpop.f32.mrf.mxu0 }
 0x510   : > { %v7167_v13 = vpop.f32.mrf.mxu3  ;;  %v13308_v34 = vadd.f32 %v7397_v35, %v7165_v21  ;;  %v7625_v21 = vsel %vm3633_vm9, %v7623_v53, %v7624_v31  ;;  %v10365_v53 = vld [vmem:[%s13937_s8 + $0x218] sm:$0xff] }
 0x511   : > { %v7168_v56 = vadd.f32 %v7167_v13, %v7079_v6  ;;  %v13320_v6 = vld [vmem:[#allocation3 + $0x24] sm:$0xff]  ;;  %v7084_v13 = vadd.f32 %v7083_v26, %v13095_v12  ;;  %8190 = vmatpush.bf16.msrb.mxu1 %v10365_v53 }
 0x512   : > { %14313 = vst [vmem:[#allocation35_spill] sm:$0xff] %v13320_v6 }
 0x514   : > { %v13310_v2 = vpop.f32.mrf.mxu1 }
 0x515   : > { %v7085_v29 = vpop.f32.mrf.mxu2 }
 0x516   : > { %v7086_v12 = vadd.f32 %v7085_v29, %v13114_v19  ;;  %v13344_v19 = vld [vmem:[#allocation3 + $0x30] sm:$0xff]  ;;  %v13348_v29 = vld [vmem:[#allocation3 + $0x60] sm:$0xff] }
 0x517   : > { %v7400_v36 = vpop.f32.mrf.mxu0  ;;  %14314 = vst [vmem:[#allocation55_spill] sm:$0xff] %v13344_v19 }
 0x518   : > { %v7169_v20 = vpop.f32.mrf.mxu3  ;;  %v13314_v54 = vadd.f32 %v7400_v36, %v7168_v56  ;;  %v7626_v36 = vrot.slane %v13101_v27, 1 }
 0x519   : > { %v7170_v8 = vadd.f32 %v7169_v20, %v7081_v57  ;;  %v7627_v57 = vrot.slane %v12551_v52, 1 }
 0x51a   : > { %7439 = vmatmul.bf16.gmra.mxu0 %v13043_v7  ;;  %7547 = vmatmul.bf16.gmra.mxu2 %v13320_v6 }
 0x51c   : > { %v13318_v35 = vpop.f32.mrf.mxu1 }
 0x51d   : > { %8016 = vmatmul.bf16.vlgmr.msrb.gmra.mxu3 %v7625_v21  ;;  %v7088_v56 = vpop.f32.mrf.mxu2 }
 0x51e   : > { %v7089_v27 = vadd.f32 %v7088_v56, %v13129_v59 }
 0x51f   : > { %7483 = vmatmul.bf16.gmra.mxu1 %v13324_v44  ;;  %v7402_v32 = vpop.f32.mrf.mxu0 }
 0x520   : > { %v7172_v10 = vpop.f32.mrf.mxu3  ;;  %v13327_v55 = vadd.f32 %v7402_v32, %v7170_v8  ;;  %v7633_v8 = vrot.slane %v12409_v23, 1  ;;  %v7628_v32 = vsel %vm3633_vm9, %v7626_v36, %v7627_v57 }
 0x521   : > { %v7173_v7 = vadd.f32 %v7172_v10, %v7084_v13  ;;  %v10543_v10 = vld [vmem:[#allocation3 + $0xc] sm:$0xff] }
 0x522   : > { %v7632_v53 = vrot.slane %v10543_v10, 1 }
 0x524   : > { %v13332_v31 = vpop.f32.mrf.mxu1  ;;  %v7634_v62 = vsel %vm3633_vm9, %v7632_v53, %v7633_v8  ;;  %v7642_v53 = vrot.slane %v12440_v0, 1  ;;  %v13370_v0 = vld [vmem:[#allocation3 + $0x6c] sm:$0xff] }
 0x525   : > { %v7090_v20 = vpop.f32.mrf.mxu2 }
 0x526   : > { %v7091_v8 = vadd.f32 %v7090_v20, %v13145_v15 }
 0x527   : > { %v7405_v26 = vpop.f32.mrf.mxu0 }
 0x528   : > { %v7174_v21 = vpop.f32.mrf.mxu3  ;;  %v13337_v6 = vadd.f32 %v7405_v26, %v7173_v7 }
 0x529   : > { %v7175_v13 = vadd.f32 %v7174_v21, %v7086_v12  ;;  %v7636_v21 = vrot.slane %v12613_v30, 1 }
 0x52a   : > { %8105 = vmatmul.bf16.vlgmr.msrb.gmra.mxu0 %v7628_v32  ;;  %7552 = vmatmul.bf16.gmra.mxu2 %v13344_v19 }
 0x52c   : > { %v13342_v52 = vpop.f32.mrf.mxu1 }
 0x52d   : > { %8021 = vmatmul.bf16.gmra.mxu3 %v7634_v62  ;;  %v7093_v7 = vpop.f32.mrf.mxu2  ;;  %v7635_v62 = vrot.slane %v13134_v5, 1 }
 0x52e   : > { %v7094_v15 = vadd.f32 %v7093_v7, %v13168_v9  ;;  %v7645_v9 = vrot.slane %v12661_v48, 1 }
 0x52f   : > { %7488 = vmatmul.bf16.gmra.mxu1 %v13348_v29  ;;  %v7407_v23 = vpop.f32.mrf.mxu0 }
 0x530   : > { %v7177_v57 = vpop.f32.mrf.mxu3  ;;  %v13351_v12 = vadd.f32 %v7407_v23, %v7175_v13  ;;  %v7637_v13 = vsel %vm3633_vm9, %v7635_v62, %v7636_v21  ;;  %v10546_v23 = vld [vmem:[#allocation3 + $0x18] sm:$0xff] }
 0x531   : > { %v7178_v26 = vadd.f32 %v7177_v57, %v7089_v27  ;;  %v7641_v27 = vrot.slane %v10546_v23, 1  ;;  %v10364_v62 = vld [vmem:[%s13937_s8 + $0x210] sm:$0xff] }
 0x532   : > { %14315 = vst [vmem:[#allocation54_spill] sm:$0xff] %v13351_v12  ;;  %v13363_v12 = vld [vmem:[#allocation3 + $0x3c] sm:$0xff]  ;;  %8191 = vmatpush.bf16.msrb.mxu1 %v10364_v62  ;;  %v13389_v62 = vld [vmem:[#allocation3 + $0x48] sm:$0xff] }
 0x533   : > { %v7643_v57 = vsel %vm3633_vm9, %v7641_v27, %v7642_v53 }
 0x534   : > { %v13353_v36 = vpop.f32.mrf.mxu1 }
 0x535   : > { %v7095_v59 = vpop.f32.mrf.mxu2 }
 0x536   : > { %v7096_v7 = vadd.f32 %v7095_v59, %v13196_v16 }
 0x537   : > { %v7410_v32 = vpop.f32.mrf.mxu0 }
 0x538   : > { %v7179_v56 = vpop.f32.mrf.mxu3  ;;  %v13358_v10 = vadd.f32 %v7410_v32, %v7178_v26 }
 0x539   : > { %v7180_v19 = vadd.f32 %v7179_v56, %v7091_v8 }
 0x53a   : > { %8110 = vmatmul.bf16.gmra.mxu0 %v7637_v13  ;;  %7557 = vmatmul.bf16.gmra.mxu2 %v13363_v12  ;;  %v7644_v13 = vrot.slane %v13179_v25, 1 }
 0x53c   : > { %v7454_v30 = vpop.f32.mrf.mxu1 }
 0x53d   : > { %8026 = vmatmul.bf16.gmra.mxu3 %v7643_v57  ;;  %v13367_v5 = vadd.f32 %v7454_v30, %v13048_v24  ;;  %v7098_v26 = vpop.f32.mrf.mxu2  ;;  %v7651_v57 = vrot.slane %v12483_v49, 1  ;;  %v13396_v49 = vld [vmem:[#allocation3 + $0x78] sm:$0xff] }
 0x53e   : > { %v7099_v16 = vadd.f32 %v7098_v26, %v13221_v60  ;;  %v7653_v60 = vrot.slane %v13233_v61, 1 }
 0x53f   : > { %7493 = vmatmul.bf16.gmra.mxu1 %v13370_v0  ;;  %v7412_v20 = vpop.f32.mrf.mxu0 }
 0x540   : > { %v7182_v21 = vpop.f32.mrf.mxu3  ;;  %v13373_v8 = vadd.f32 %v7412_v20, %v7180_v19  ;;  %v10549_v20 = vld [vmem:[#allocation3 + $0x24] sm:$0xff] }
 0x541   : > { %v7183_v32 = vadd.f32 %v7182_v21, %v7094_v15  ;;  %v7646_v15 = vsel %vm3633_vm9, %v7644_v13, %v7645_v9  ;;  %v7650_v21 = vrot.slane %v10549_v20, 1 }
 0x544   : > { %v7456_v56 = vpop.f32.mrf.mxu1 }
 0x545   : > { %v13379_v24 = vadd.f32 %v7456_v56, %v13068_v51  ;;  %v7100_v23 = vpop.f32.mrf.mxu2  ;;  %v7652_v51 = vsel %vm3633_vm9, %v7650_v21, %v7651_v57  ;;  %v7660_v21 = vrot.slane %v12533_v33, 1 }
 0x547   : > { %v7415_v53 = vpop.f32.mrf.mxu0 }
 0x548   : > { %v7184_v19 = vpop.f32.mrf.mxu3  ;;  %v13384_v27 = vadd.f32 %v7415_v53, %v7183_v32 }
 0x549   : > { %v7185_v30 = vadd.f32 %v7184_v19, %v7096_v7  ;;  %v7654_v19 = vrot.slane %v12699_v63, 1 }
 0x54a   : > { %8115 = vmatmul.bf16.gmra.mxu0 %v7646_v15  ;;  %7562 = vmatmul.bf16.gmra.mxu2 %v13389_v62 }
 0x54c   : > { %v7459_v48 = vpop.f32.mrf.mxu1 }
 0x54d   : > { %8031 = vmatmul.bf16.gmra.mxu3 %v7652_v51  ;;  %v13393_v25 = vadd.f32 %v7459_v48, %v13080_v28  ;;  %v7103_v32 = vpop.f32.mrf.mxu2  ;;  %v7101_v28 = vadd.f32 %v7100_v23, %v13245_v18  ;;  %v7655_v51 = vsel %vm3633_vm9, %v7653_v60, %v7654_v19  ;;  %v10552_v48 = vld [vmem:[#allocation3 + $0x30] sm:$0xff] }
 0x54e   : > { %v7104_v18 = vadd.f32 %v7103_v32, %v13264_v41  ;;  %v10363_v19 = vld [vmem:[%s13937_s8 + $0x208] sm:$0xff]  ;;  %v7662_v32 = vrot.slane %v13273_v4, 1 }
 0x54f   : > { %7498 = vmatmul.bf16.gmra.mxu1 %v13396_v49  ;;  %v7417_v59 = vpop.f32.mrf.mxu0 }
 0x550   : > { %v7187_v56 = vpop.f32.mrf.mxu3  ;;  %v13399_v9 = vadd.f32 %v7417_v59, %v7185_v30  ;;  %v13412_v59 = vld [vmem:[#allocation3 + $0x54] sm:$0xff]  ;;  %8192 = vmatpush.bf16.msrb.mxu1 %v10363_v19  ;;  %v14316_v19 = vld [vmem:[#allocation32_spill] sm:$0xff] }
 0x551   : > { %v7188_v7 = vadd.f32 %v7187_v56, %v7099_v16  ;;  %v7659_v16 = vrot.slane %v10552_v48, 1 }
 0x554   : > { %v7461_v53 = vpop.f32.mrf.mxu1 }
 0x555   : > { %v13402_v13 = vadd.f32 %v7461_v53, %v13105_v37  ;;  %v7105_v26 = vpop.f32.mrf.mxu2  ;;  %v7661_v37 = vsel %vm3633_vm9, %v7659_v16, %v7660_v21  ;;  %v10554_v16 = vld [vmem:[#allocation3 + $0x3c] sm:$0xff] }
 0x556   : > { %v7106_v41 = vadd.f32 %v7105_v26, %v13286_v47 }
 0x557   : > { %v7420_v57 = vpop.f32.mrf.mxu0 }
 0x558   : > { %v7189_v15 = vpop.f32.mrf.mxu3  ;;  %v13407_v20 = vadd.f32 %v7420_v57, %v7188_v7 }
 0x559   : > { %v7190_v30 = vadd.f32 %v7189_v15, %v7101_v28 }
 0x55a   : > { %8120 = vmatmul.bf16.gmra.mxu0 %v7655_v51  ;;  %7567 = vmatmul.bf16.gmra.mxu2 %v13412_v59 }
 0x55c   : > { %v7464_v63 = vpop.f32.mrf.mxu1 }
 0x55d   : > { %8036 = vmatmul.bf16.gmra.mxu3 %v7661_v37  ;;  %v13416_v61 = vadd.f32 %v7464_v63, %v13120_v3  ;;  %v7108_v23 = vpop.f32.mrf.mxu2  ;;  %v7663_v3 = vrot.slane %v12740_v14, 1  ;;  %v7668_v37 = vrot.slane %v10554_v16, 1  ;;  %v13436_v63 = vld [vmem:[#allocation3 + $0x60] sm:$0xff]  ;;  %v10556_v16 = vld [vmem:[#allocation3 + $0x48] sm:$0xff] }
 0x55e   : > { %v7109_v47 = vadd.f32 %v7108_v23, %v13299_v11 }
 0x55f   : > { %7503 = vmatmul.bf16.gmra.mxu1 %v13003_v45  ;;  %v7422_v33 = vpop.f32.mrf.mxu0  ;;  %v7664_v48 = vsel %vm3633_vm9, %v7662_v32, %v7663_v3  ;;  %v14317_v3 = vld [vmem:[#allocation74_spill] sm:$0xff]  ;;  %v7671_v32 = vrot.slane %v13305_v50, 1 }
 0x560   : > { %v7192_v56 = vpop.f32.mrf.mxu3  ;;  %v13420_v7 = vadd.f32 %v7422_v33, %v7190_v30  ;;  %v7669_v30 = vrot.slane %v12586_v38, 1 }
 0x561   : > { %v7193_v53 = vadd.f32 %v7192_v56, %v7104_v18 }
 0x564   : > { %v7466_v28 = vpop.f32.mrf.mxu1 }
 0x565   : > { %v13426_v57 = vadd.f32 %v7466_v28, %v13138_v46  ;;  %v7110_v60 = vpop.f32.mrf.mxu2  ;;  %v7670_v46 = vsel %vm3633_vm9, %v7668_v37, %v7669_v30  ;;  %v7677_v37 = vrot.slane %v10556_v16, 1 }
 0x567   : > { %v7425_v45 = vpop.f32.mrf.mxu0 }
 0x568   : > { %v7194_v15 = vpop.f32.mrf.mxu3  ;;  %v13431_v21 = vadd.f32 %v7425_v45, %v7193_v53  ;;  %v7111_v45 = vadd.f32 %v7110_v60, %v13310_v2  ;;  %v14319_v60 = vld [vmem:[#allocation40_spill] sm:$0xff] }
 0x569   : > { %v7195_v51 = vadd.f32 %v7194_v15, %v7106_v41  ;;  %v7672_v41 = vrot.slane %v14317_v3, 1  ;;  %v14318_v15 = vld [vmem:[#allocation24_spill] sm:$0xff] }
 0x56a   : > { %8125 = vmatmul.bf16.gmra.mxu0 %v7664_v48  ;;  %7572 = vmatmul.bf16.gmra.mxu2 %v13436_v63  ;;  %v7678_v30 = vrot.slane %v14318_v15, 1  ;;  %v10362_v3 = vld [vmem:[%s13937_s8 + $0x200] sm:$0xff] }
 0x56b   : > { %v7673_v48 = vsel %vm3633_vm9, %v7671_v32, %v7672_v41  ;;  %8193 = vmatpush.bf16.msrb.mxu1 %v10362_v3  ;;  %v7680_v32 = vrot.slane %v13324_v44, 1 }
 0x56c   : > { %v7469_v14 = vpop.f32.mrf.mxu1 }
 0x56d   : > { %8041 = vmatmul.bf16.gmra.mxu3 %v7670_v46  ;;  %v13440_v4 = vadd.f32 %v7469_v14, %v13155_v40  ;;  %v7113_v26 = vpop.f32.mrf.mxu2  ;;  %v7679_v46 = vsel %vm3633_vm9, %v7677_v37, %v7678_v30 }
 0x56e   : > { %v7114_v2 = vadd.f32 %v7113_v26, %v13318_v35 }
 0x56f   : > { %7508 = vmatmul.bf16.gmra.mxu1 %v13055_v17  ;;  %v7427_v38 = vpop.f32.mrf.mxu0 }
 0x570   : > { %v7197_v18 = vpop.f32.mrf.mxu3  ;;  %v13444_v33 = vadd.f32 %v7427_v38, %v7195_v51 }
 0x571   : > { %v7198_v56 = vadd.f32 %v7197_v18, %v7109_v47  ;;  %v13457_v47 = vld [vmem:[#allocation3 + $0x6c] sm:$0xff] }
 0x574   : > { %v7471_v53 = vpop.f32.mrf.mxu1 }
 0x575   : > { %v13447_v28 = vadd.f32 %v7471_v53, %v14316_v19  ;;  %v7115_v11 = vpop.f32.mrf.mxu2 }
 0x576   : > { %v7116_v35 = vadd.f32 %v7115_v11, %v13332_v31  ;;  %v14322_v11 = vld [vmem:[#allocation47_spill] sm:$0xff] }
 0x577   : > { %v7430_v40 = vpop.f32.mrf.mxu0 }
 0x578   : > { %v7199_v23 = vpop.f32.mrf.mxu3  ;;  %v13452_v17 = vadd.f32 %v7430_v40, %v7198_v56 }
 0x579   : > { %v7200_v51 = vadd.f32 %v7199_v23, %v7111_v45 }
 0x57a   : > { %8130 = vmatmul.bf16.gmra.mxu0 %v7673_v48  ;;  %7577 = vmatmul.bf16.gmra.mxu2 %v13457_v47 }
 0x57c   : > { %v7474_v14 = vpop.f32.mrf.mxu1 }
 0x57d   : > { %8046 = vmatmul.bf16.gmra.mxu3 %v7679_v46  ;;  %v13461_v50 = vadd.f32 %v7474_v14, %v13206_v58  ;;  %v7118_v18 = vpop.f32.mrf.mxu2  ;;  %v14320_v58 = vld [vmem:[#allocation83_spill] sm:$0xff]  ;;  %v10558_v46 = vld [vmem:[#allocation3 + $0x54] sm:$0xff] }
 0x57e   : > { %v7681_v40 = vrot.slane %v14320_v58, 1  ;;  %v7686_v14 = vrot.slane %v10558_v46, 1  ;;  %v7119_v31 = vadd.f32 %v7118_v18, %v13342_v52  ;;  %v7689_v18 = vrot.slane %v13348_v29, 1 }
 0x57f   : > { %7513 = vmatmul.bf16.gmra.mxu1 %v14319_v60  ;;  %v7432_v38 = vpop.f32.mrf.mxu0  ;;  %v13481_v60 = vld [vmem:[#allocation3 + $0x78] sm:$0xff] }
 0x580   : > { %v7202_v56 = vpop.f32.mrf.mxu3  ;;  %v13465_v53 = vadd.f32 %v7432_v38, %v7200_v51  ;;  %v14321_v51 = vld [vmem:[#allocation70_spill] sm:$0xff]  ;;  %v7682_v37 = vsel %vm3633_vm9, %v7680_v32, %v7681_v40 }
 0x581   : > { %v7203_v19 = vadd.f32 %v7202_v56, %v7114_v2  ;;  %v7687_v48 = vrot.slane %v14321_v51, 1 }
 0x584   : > { %v7476_v41 = vpop.f32.mrf.mxu1 }
 0x585   : > { %v13471_v45 = vadd.f32 %v7476_v41, %v13236_v39  ;;  %v7120_v23 = vpop.f32.mrf.mxu2  ;;  %v7688_v39 = vsel %vm3633_vm9, %v7686_v14, %v7687_v48  ;;  %v10560_v14 = vld [vmem:[#allocation3 + $0x60] sm:$0xff] }
 0x586   : > { %v7121_v32 = vadd.f32 %v7120_v23, %v13353_v36 }
 0x587   : > { %v7435_v26 = vpop.f32.mrf.mxu0 }
 0x588   : > { %v7204_v15 = vpop.f32.mrf.mxu3  ;;  %v13476_v30 = vadd.f32 %v7435_v26, %v7203_v19  ;;  %v14323_v26 = vld [vmem:[#allocation27_spill] sm:$0xff] }
 0x589   : > { %v7205_v16 = vadd.f32 %v7204_v15, %v7116_v35 }
 0x58a   : > { %8135 = vmatmul.bf16.gmra.mxu0 %v7682_v37  ;;  %7582 = vmatmul.bf16.gmra.mxu2 %v13481_v60 }
 0x58c   : > { %v7479_v2 = vpop.f32.mrf.mxu1 }
 0x58d   : > { %8051 = vmatmul.bf16.gmra.mxu3 %v7688_v39  ;;  %v13485_v44 = vadd.f32 %v7479_v2, %v13251_v42  ;;  %v7543_v19 = vpop.f32.mrf.mxu2  ;;  %v7690_v42 = vrot.slane %v14323_v26, 1  ;;  %v7695_v39 = vrot.slane %v10560_v14, 1  ;;  %v13508_v2 = vld [vmem:[#allocation3 + $0x84] sm:$0xff]  ;;  %v14328_v14 = vld [vmem:[#allocation46_spill] sm:$0xff] }
 0x58e   : > { %v13492_v58 = vadd.f32 %v7543_v19, %v13367_v5 }
 0x58f   : > { %7518 = vmatmul.bf16.gmra.mxu1 %v14322_v11  ;;  %v7437_v38 = vpop.f32.mrf.mxu0 }
 0x590   : > { %v7207_v56 = vpop.f32.mrf.mxu3  ;;  %v13489_v3 = vadd.f32 %v7437_v38, %v7205_v16  ;;  %v14324_v16 = vld [vmem:[#allocation25_spill] sm:$0xff] }
 0x591   : > { %v7208_v41 = vadd.f32 %v7207_v56, %v7119_v31  ;;  %v7696_v37 = vrot.slane %v14324_v16, 1  ;;  %v14327_v16 = vld [vmem:[#allocation48_spill] sm:$0xff] }
 0x593   : > { %v7697_v36 = vsel %vm3633_vm9, %v7695_v39, %v7696_v37  ;;  %v7704_v37 = vrot.slane %v14327_v16, 1 }
 0x594   : > { %v7481_v40 = vpop.f32.mrf.mxu1 }
 0x595   : > { %v13495_v35 = vadd.f32 %v7481_v40, %v13276_v43  ;;  %v7545_v51 = vpop.f32.mrf.mxu2  ;;  %v7691_v43 = vsel %vm3633_vm9, %v7689_v18, %v7690_v42  ;;  %v14325_v40 = vld [vmem:[#allocation79_spill] sm:$0xff]  ;;  %v14326_v18 = vld [vmem:[#allocation73_spill] sm:$0xff] }
 0x596   : > { %v13504_v5 = vadd.f32 %v7545_v51, %v13379_v24  ;;  %v7699_v26 = vrot.slane %v14325_v40, 1 }
 0x597   : > { %v7440_v52 = vpop.f32.mrf.mxu0 }
 0x598   : > { %v7209_v15 = vpop.f32.mrf.mxu3  ;;  %v13500_v48 = vadd.f32 %v7440_v52, %v7208_v41 }
 0x599   : > { %v7210_v46 = vadd.f32 %v7209_v15, %v7121_v32  ;;  %v7705_v15 = vrot.slane %v14326_v18, 1  ;;  %v14330_v18 = vld [vmem:[#allocation81_spill] sm:$0xff] }
 0x59a   : > { %8140 = vmatmul.bf16.gmra.mxu0 %v7691_v43  ;;  %7587 = vmatmul.bf16.gmra.mxu2 %v13508_v2  ;;  %v13534_v43 = vld [vmem:[#allocation3 + $0x90] sm:$0xff] }
 0x59c   : > { %v7484_v23 = vpop.f32.mrf.mxu1 }
 0x59d   : > { %8056 = vmatmul.bf16.gmra.mxu3 %v7697_v36  ;;  %v13512_v29 = vadd.f32 %v7484_v23, %v13292_v22  ;;  %v7548_v31 = vpop.f32.mrf.mxu2  ;;  %v7698_v22 = vrot.slane %v13370_v0, 1 }
 0x59e   : > { %v13518_v56 = vadd.f32 %v7548_v31, %v13393_v25 }
 0x59f   : > { %7523 = vmatmul.bf16.gmra.mxu1 %v13164_v1  ;;  %v7442_v24 = vpop.f32.mrf.mxu0  ;;  %v7700_v25 = vsel %vm3633_vm9, %v7698_v22, %v7699_v26 }
 0x5a0   : > { %v8017_v11 = vpop.f32.mrf.mxu3  ;;  %v13515_v38 = vadd.f32 %v7442_v24, %v7210_v46 }
 0x5a4   : > { %v7486_v19 = vpop.f32.mrf.mxu1 }
 0x5a5   : > { %v13521_v41 = vadd.f32 %v7486_v19, %v13308_v34  ;;  %v7550_v32 = vpop.f32.mrf.mxu2  ;;  %v7706_v34 = vsel %vm3633_vm9, %v7704_v37, %v7705_v15  ;;  %v14329_v19 = vld [vmem:[#allocation28_spill] sm:$0xff]  ;;  %v7714_v15 = vrot.slane %v14330_v18, 1  ;;  %v14334_v18 = vld [vmem:[#allocation54_spill] sm:$0xff] }
 0x5a6   : > { %v13529_v51 = vadd.f32 %v7550_v32, %v13402_v13  ;;  %v7708_v40 = vrot.slane %v14329_v19, 1 }
 0x5a7   : > { %v8106_v42 = vpop.f32.mrf.mxu0 }
 0x5a8   : > { %v8019_v52 = vpop.f32.mrf.mxu3  ;;  %v13525_v1 = vadd.f32 %v8106_v42, %v8017_v11 }
 0x5aa   : > { %8145 = vmatmul.bf16.gmra.mxu0 %v7700_v25  ;;  %7592 = vmatmul.bf16.gmra.mxu2 %v13534_v43  ;;  %v14331_v25 = vld [vmem:[#allocation20_spill] sm:$0xff] }
 0x5ab   : > { %v7713_v16 = vrot.slane %v14331_v25, 1 }
 0x5ac   : > { %v7489_v46 = vpop.f32.mrf.mxu1 }
 0x5ad   : > { %8061 = vmatmul.bf16.gmra.mxu3 %v7706_v34  ;;  %v13538_v0 = vadd.f32 %v7489_v46, %v13314_v54  ;;  %v7553_v39 = vpop.f32.mrf.mxu2  ;;  %v7707_v54 = vrot.slane %v13396_v49, 1  ;;  %v7715_v34 = vsel %vm3633_vm9, %v7713_v16, %v7714_v15  ;;  %v14333_v49 = vld [vmem:[#allocation37_spill] sm:$0xff] }
 0x5ae   : > { %v13544_v24 = vadd.f32 %v7553_v39, %v13416_v61  ;;  %v13562_v39 = vld [vmem:[#allocation3 + $0x9c] sm:$0xff] }
 0x5af   : > { %7528 = vmatmul.bf16.gmra.mxu1 %v14328_v14  ;;  %v8108_v13 = vpop.f32.mrf.mxu0  ;;  %v7709_v61 = vsel %vm3633_vm9, %v7707_v54, %v7708_v40 }
 0x5b0   : > { %v8022_v36 = vpop.f32.mrf.mxu3  ;;  %v13541_v23 = vadd.f32 %v8108_v13, %v8019_v52  ;;  %v7629_v13 = vrot.slane %v14333_v49, 1 }
 0x5b4   : > { %v7491_v31 = vpop.f32.mrf.mxu1 }
 0x5b5   : > { %v13547_v11 = vadd.f32 %v7491_v31, %v13327_v55  ;;  %v7555_v42 = vpop.f32.mrf.mxu2  ;;  %v14332_v55 = vld [vmem:[#allocation69_spill] sm:$0xff] }
 0x5b6   : > { %v13555_v52 = vadd.f32 %v7555_v42, %v13426_v57  ;;  %v7630_v37 = vrot.slane %v14332_v55, 1 }
 0x5b7   : > { %v8111_v26 = vpop.f32.mrf.mxu0 }
 0x5b8   : > { %v8024_v22 = vpop.f32.mrf.mxu3  ;;  %v13551_v32 = vadd.f32 %v8111_v26, %v8022_v36  ;;  %v7631_v36 = vsel %vm3633_vm9, %v7629_v13, %v7630_v37  ;;  %v10565_v13 = vld [vmem:[#allocation3 + $0x84] sm:$0xff] }
 0x5ba   : > { %8150 = vmatmul.bf16.gmra.mxu0 %v7709_v61  ;;  %7597 = vmatmul.bf16.gmra.mxu2 %v13562_v39  ;;  %v14336_v61 = vld [vmem:[#allocation29_spill] sm:$0xff] }
 0x5bb   : > { %v7717_v25 = vrot.slane %v14336_v61, 1 }
 0x5bc   : > { %v7494_v46 = vpop.f32.mrf.mxu1 }
 0x5bd   : > { %8066 = vmatmul.bf16.gmra.mxu3 %v7715_v34  ;;  %v13566_v57 = vadd.f32 %v7494_v46, %v13337_v6  ;;  %v7558_v19 = vpop.f32.mrf.mxu2  ;;  %v10564_v6 = vld [vmem:[#allocation3 + $0x84] sm:$0xff]  ;;  %v14337_v46 = vld [vmem:[#allocation77_spill] sm:$0xff] }
 0x5be   : > { %v13572_v26 = vadd.f32 %v7558_v19, %v13440_v4  ;;  %v7716_v55 = vrot.slane %v10564_v6, 1  ;;  %v7723_v49 = vrot.slane %v14337_v46, 1  ;;  %v14339_v6 = vld [vmem:[#allocation35_spill] sm:$0xff] }
 0x5bf   : > { %8194 = vmatmul.bf16.vlgmr.msrb.gmra.mxu1 %v7631_v36  ;;  %v8113_v31 = vpop.f32.mrf.mxu0  ;;  %v7722_v36 = vrot.slane %v10565_v13, 1 }
 0x5c0   : > { %v13569_v40 = vadd.f32 %v8113_v31, %v8024_v22  ;;  %v8027_v54 = vpop.f32.mrf.mxu3  ;;  %v7718_v4 = vsel %vm3633_vm9, %v7716_v55, %v7717_v25  ;;  %v14338_v31 = vld [vmem:[#allocation75_spill] sm:$0xff] }
 0x5c1   : > { %v7639_v19 = vrot.slane %v14338_v31, 1  ;;  %v10566_v31 = vld [vmem:[#allocation3 + $0x90] sm:$0xff] }
 0x5c4   : > { %v7496_v42 = vpop.f32.mrf.mxu1 }
 0x5c5   : > { %v13575_v15 = vadd.f32 %v7496_v42, %v14334_v18  ;;  %v7560_v34 = vpop.f32.mrf.mxu2  ;;  %v7724_v18 = vsel %vm3633_vm9, %v7722_v36, %v7723_v49  ;;  %v14342_v49 = vld [vmem:[#allocation31_spill] sm:$0xff] }
 0x5c6   : > { %v13582_v22 = vadd.f32 %v7560_v34, %v13447_v28  ;;  %v7726_v13 = vrot.slane %v14342_v49, 1  ;;  %v14346_v49 = vld [vmem:[#allocation62_spill] sm:$0xff] }
 0x5c7   : > { %14335 = vst [vmem:[#allocation43_spill] sm:$0xff] %v13575_v15  ;;  %v8116_v16 = vpop.f32.mrf.mxu0  ;;  %v7638_v15 = vrot.slane %v14339_v6, 1  ;;  %v7725_v6 = vrot.slane %v10566_v31, 1 }
 0x5c8   : > { %v13578_v37 = vadd.f32 %v8116_v16, %v8027_v54  ;;  %v8029_v42 = vpop.f32.mrf.mxu3  ;;  %v14340_v54 = vld [vmem:[#allocation33_spill] sm:$0xff] }
 0x5c9   : > { %v7640_v28 = vsel %vm3633_vm9, %v7638_v15, %v7639_v19  ;;  %v7727_v15 = vsel %vm3633_vm9, %v7725_v6, %v7726_v13  ;;  %v10567_v19 = vld [vmem:[#allocation3 + $0x90] sm:$0xff] }
 0x5ca   : > { %8155 = vmatmul.bf16.gmra.mxu0 %v7718_v4  ;;  %7602 = vmatmul.bf16.gmra.mxu2 %v14340_v54  ;;  %v7731_v54 = vrot.slane %v10567_v19, 1 }
 0x5cc   : > { %v7499_v61 = vpop.f32.mrf.mxu1 }
 0x5cd   : > { %8071 = vmatmul.bf16.gmra.mxu3 %v7724_v18  ;;  %v13590_v16 = vadd.f32 %v7499_v61, %v13358_v10  ;;  %v14343_v10 = vld [vmem:[#allocation86_spill] sm:$0xff] }
 0x5ce   : > { %v7732_v61 = vrot.slane %v14343_v10, 1 }
 0x5cf   : > { %8199 = vmatmul.bf16.gmra.mxu1 %v7640_v28  ;;  %v8118_v25 = vpop.f32.mrf.mxu0 }
 0x5d0   : > { %v13593_v55 = vadd.f32 %v8118_v25, %v8029_v42  ;;  %v8032_v46 = vpop.f32.mrf.mxu3  ;;  %v14344_v42 = vld [vmem:[#allocation71_spill] sm:$0xff]  ;;  %v7733_v25 = vsel %vm3633_vm9, %v7731_v54, %v7732_v61 }
 0x5d1   : > { %v7648_v28 = vrot.slane %v14344_v42, 1  ;;  %v14347_v61 = vld [vmem:[#allocation39_spill] sm:$0xff] }
 0x5d2   : > { %v7735_v19 = vrot.slane %v14347_v61, 1  ;;  %v10568_v54 = vld [vmem:[#allocation3 + $0x9c] sm:$0xff] }
 0x5d3   : > { %v7734_v42 = vrot.slane %v10568_v54, 1 }
 0x5d4   : > { %v7501_v34 = vpop.f32.mrf.mxu1 }
 0x5d5   : > { %v13596_v4 = vadd.f32 %v7501_v34, %v13373_v8  ;;  %v14345_v34 = vld [vmem:[#allocation55_spill] sm:$0xff] }
 0x5d7   : > { %14341 = vst [vmem:[#allocation44_spill] sm:$0xff] %v13596_v4  ;;  %v8121_v36 = vpop.f32.mrf.mxu0  ;;  %v7647_v4 = vrot.slane %v14345_v34, 1  ;;  %v14348_v34 = vld [vmem:[#allocation87_spill] sm:$0xff] }
 0x5d8   : > { %v13599_v18 = vadd.f32 %v8121_v36, %v8032_v46  ;;  %v8034_v31 = vpop.f32.mrf.mxu3 }
 0x5d9   : > { %v7649_v36 = vsel %vm3633_vm9, %v7647_v4, %v7648_v28  ;;  %v14349_v4 = vld [vmem:[#allocation78_spill] sm:$0xff] }
 0x5da   : > { %8160 = vmatmul.bf16.gmra.mxu0 %v7727_v15  ;;  %7607 = vmatmul.bf16.gmra.mxu2 %v14346_v49  ;;  %v7657_v28 = vrot.slane %v14349_v4, 1  ;;  %v10571_v4 = vld [vmem:[#allocation3 + $0xa8] sm:$0xff] }
 0x5dc   : > { %v7504_v8 = vpop.f32.mrf.mxu1 }
 0x5dd   : > { %8076 = vmatmul.bf16.gmra.mxu3 %v7733_v25  ;;  %v13608_v46 = vadd.f32 %v7504_v8, %v13384_v27  ;;  %v7741_v25 = vrot.slane %v14348_v34, 1  ;;  %v7736_v27 = vsel %vm3633_vm9, %v7734_v42, %v7735_v19  ;;  %v10569_v8 = vld [vmem:[#allocation3 + $0x9c] sm:$0xff]  ;;  %v14351_v42 = vld [vmem:[#allocation56_spill] sm:$0xff] }
 0x5de   : > { %v7740_v49 = vrot.slane %v10569_v8, 1  ;;  %v7744_v34 = vrot.slane %v14351_v42, 1  ;;  %v14352_v8 = vld [vmem:[#allocation84_spill] sm:$0xff] }
 0x5df   : > { %8204 = vmatmul.bf16.gmra.mxu1 %v7649_v36  ;;  %v8123_v13 = vpop.f32.mrf.mxu0 }
 0x5e0   : > { %v13611_v6 = vadd.f32 %v8123_v13, %v8034_v31  ;;  %v7742_v36 = vsel %vm3633_vm9, %v7740_v49, %v7741_v25  ;;  %v7656_v13 = vrot.slane %v13363_v12, 1  ;;  %v7750_v49 = vrot.slane %v14352_v8, 1  ;;  %v10572_v8 = vld [vmem:[#allocation3 + $0xb4] sm:$0xff] }
 0x5e2   : > { %v7658_v61 = vsel %vm3633_vm9, %v7656_v13, %v7657_v28 }
 0x5e4   : > { %v7506_v10 = vpop.f32.mrf.mxu1 }
 0x5e5   : > { %v13614_v15 = vadd.f32 %v7506_v10, %v13399_v9  ;;  %v14350_v9 = vld [vmem:[#allocation36_spill] sm:$0xff] }
 0x5ea   : > { %8165 = vmatmul.bf16.gmra.mxu0 %v7736_v27  ;;  %7612 = vmatmul.bf16.gmra.mxu2 %v14350_v9  ;;  %v10570_v27 = vld [vmem:[#allocation3 + $0xa8] sm:$0xff]  ;;  %v7665_v9 = vrot.slane %v13389_v62, 1 }
 0x5eb   : > { %v7743_v25 = vrot.slane %v10570_v27, 1  ;;  %v14355_v27 = vld [vmem:[#allocation65_spill] sm:$0xff] }
 0x5ec   : > { %v7509_v31 = vpop.f32.mrf.mxu1 }
 0x5ed   : > { %8081 = vmatmul.bf16.gmra.mxu3 %v7742_v36  ;;  %v13624_v10 = vadd.f32 %v7509_v31, %v13407_v20  ;;  %v7745_v12 = vsel %vm3633_vm9, %v7743_v25, %v7744_v34  ;;  %v7749_v36 = vrot.slane %v10571_v4, 1  ;;  %v14353_v20 = vld [vmem:[#allocation26_spill] sm:$0xff]  ;;  %v7753_v25 = vrot.slane %v14355_v27, 1 }
 0x5ee   : > { %v7666_v31 = vrot.slane %v14353_v20, 1  ;;  %v7761_v27 = vrot.slane %v14328_v14, 1  ;;  %v14360_v14 = vld [vmem:[#allocation80_spill] sm:$0xff] }
 0x5ef   : > { %8209 = vmatmul.bf16.gmra.mxu1 %v7658_v61  ;;  %v7751_v28 = vsel %vm3633_vm9, %v7749_v36, %v7750_v49  ;;  %v7752_v49 = vrot.slane %v10572_v8, 1  ;;  %v10573_v36 = vld [vmem:[#allocation3 + $0xb4] sm:$0xff] }
 0x5f0   : > { %v7758_v20 = vrot.slane %v10573_v36, 1 }
 0x5f1   : > { %v7754_v62 = vsel %vm3633_vm9, %v7752_v49, %v7753_v25  ;;  %v14358_v25 = vld [vmem:[#allocation45_spill] sm:$0xff] }
 0x5f2   : > { %v7762_v8 = vrot.slane %v14358_v25, 1 }
 0x5f4   : > { %v7511_v19 = vpop.f32.mrf.mxu1  ;;  %v7763_v49 = vsel %vm3633_vm9, %v7761_v27, %v7762_v8  ;;  %v7701_v27 = vrot.slane %v13481_v60, 1 }
 0x5f5   : > { %v13628_v54 = vadd.f32 %v7511_v19, %v13420_v7  ;;  %v14354_v7 = vld [vmem:[#allocation57_spill] sm:$0xff]  ;;  %v7667_v19 = vsel %vm3633_vm9, %v7665_v9, %v7666_v31  ;;  %v7674_v9 = vrot.slane %v13412_v59, 1 }
 0x5fa   : > { %8170 = vmatmul.bf16.gmra.mxu0 %v7745_v12  ;;  %7617 = vmatmul.bf16.gmra.mxu2 %v14354_v7  ;;  %v14356_v12 = vld [vmem:[#allocation34_spill] sm:$0xff] }
 0x5fb   : > { %v7759_v4 = vrot.slane %v14356_v12, 1  ;;  %v14359_v12 = vld [vmem:[#allocation85_spill] sm:$0xff] }
 0x5fc   : > { %v7514_v13 = vpop.f32.mrf.mxu1  ;;  %v7684_v59 = vrot.slane %v14359_v12, 1 }
 0x5fd   : > { %8086 = vmatmul.bf16.gmra.mxu3 %v7751_v28  ;;  %v13638_v61 = vadd.f32 %v7514_v13, %v13431_v21  ;;  %v14357_v21 = vld [vmem:[#allocation76_spill] sm:$0xff]  ;;  %v7760_v31 = vsel %vm3633_vm9, %v7758_v20, %v7759_v4 }
 0x5fe   : > { %v7675_v28 = vrot.slane %v14357_v21, 1  ;;  %v7693_v21 = vrot.slane %v14360_v14, 1 }
 0x5ff   : > { %8214 = vmatmul.bf16.gmra.mxu1 %v7667_v19 }
 0x600   : > { %v7676_v7 = vsel %vm3633_vm9, %v7674_v9, %v7675_v28 }
 0x604   : > { %v7516_v42 = vpop.f32.mrf.mxu1 }
 0x605   : > { %v13642_v34 = vadd.f32 %v7516_v42, %v13444_v33 }
 0x60a   : > { %8175 = vmatmul.bf16.gmra.mxu0 %v7754_v62 }
 0x60c   : > { %v7519_v13 = vpop.f32.mrf.mxu1 }
 0x60d   : > { %8091 = vmatmul.bf16.gmra.mxu3 %v7760_v31  ;;  %v13651_v33 = vadd.f32 %v7519_v13, %v13452_v17  ;;  %v7683_v17 = vrot.slane %v13436_v63, 1  ;;  %v7692_v31 = vrot.slane %v13457_v47, 1  ;;  %v13684_v47 = vld [vmem:[%s13938_s9] ss:$0 sm:$0xff] }
 0x60f   : > { %8219 = vmatmul.bf16.gmra.mxu1 %v7676_v7  ;;  %v7685_v36 = vsel %vm3633_vm9, %v7683_v17, %v7684_v59  ;;  %v7694_v63 = vsel %vm3633_vm9, %v7692_v31, %v7693_v21  ;;  %v14361_v7 = vld [vmem:[#allocation82_spill] sm:$0xff]  ;;  %v13694_v17 = vpop.f32.mrf.mxu0  ;;  %v13699_v21 = vpop.f32.mrf.mxu3  ;;  %v7710_v31 = vrot.slane %v13508_v2, 1 }
 0x614   : > { %v7521_v19 = vpop.f32.mrf.mxu1 }
 0x615   : > { %v13655_v42 = vadd.f32 %v7521_v19, %v13465_v53  ;;  %v7702_v19 = vrot.slane %v14361_v7, 1 }
 0x61a   : > { %8180 = vmatmul.bf16.gmra.mxu0 %v7763_v49 }
 0x61c   : > { %v7524_v4 = vpop.f32.mrf.mxu1 }
 0x61d   : > { %v13663_v62 = vadd.f32 %v7524_v4, %v13476_v30 }
 0x61f   : > { %8224 = vmatmul.bf16.gmra.mxu1 %v7685_v36  ;;  %v14362_v36 = vld [vmem:[#allocation30_spill] sm:$0xff] }
 0x624   : > { %v7526_v53 = vpop.f32.mrf.mxu1 }
 0x625   : > { %v13667_v20 = vadd.f32 %v7526_v53, %v13489_v3  ;;  %v13697_v53 = vpop.f32.mrf.mxu2 }
 0x62c   : > { %v7529_v28 = vpop.f32.mrf.mxu1 }
 0x62d   : > { %v13672_v13 = vadd.f32 %v7529_v28, %v13500_v48  ;;  %v7703_v48 = vsel %vm3633_vm9, %v7701_v27, %v7702_v19 }
 0x62f   : > { %8229 = vmatmul.bf16.gmra.mxu1 %v7694_v63 }
 0x634   : > { %v7531_v30 = vpop.f32.mrf.mxu1 }
 0x635   : > { %v13676_v9 = vadd.f32 %v7531_v30, %v13515_v38 }
 0x63c   : > { %v8195_v3 = vpop.f32.mrf.mxu1 }
 0x63d   : > { %v8196_v25 = vadd.f32 %v8195_v3, %v13525_v1  ;;  %v13708_v3 = vpop.f32.mrf.mxu0 }
 0x63f   : > { %v8275_v8 = vadd.f32 %v8196_v25, %v13492_v58  ;;  %8234 = vmatmul.bf16.gmra.mxu1 %v7703_v48  ;;  %v7711_v58 = vrot.slane %v14362_v36, 1  ;;  %v13710_v25 = vpop.f32.mrf.mxu2 }
 0x641   : > { %v8311_v38 = vadd.f32 %v13684_v47, %v8275_v8 }
 0x643   : > { %v8343_v49 = vmax.f32 %v8311_v38, 0.0  ;;  %v14363_v38 = vld [vmem:[#allocation18_spill] sm:$0xff] }
 0x644   : > { %v8197_v12 = vpop.f32.mrf.mxu1 }
 0x645   : > { %v8375_v59 = vpack.c.bf16 %v8343_v49, %v8343_v49  ;;  %v8198_v60 = vadd.f32 %v8197_v12, %v13541_v23  ;;  %v7720_v49 = vrot.slane %v14363_v38, 1  ;;  %v13722_v36 = vpop.f32.mrf.mxu0 }
 0x647   : > { %8408 = vst.msk [vmem:[%s12315_s12 + $0x4] sm:$0xf] %vm8407_vm10, %v8375_v59  ;;  %v8276_v1 = vadd.f32 %v8198_v60, %v13504_v5  ;;  %v7712_v5 = vsel %vm3633_vm9, %v7710_v31, %v7711_v58  ;;  %v7719_v60 = vrot.slane %v13534_v43, 1  ;;  %v13725_v58 = vpop.f32.mrf.mxu2 }
 0x649   : > { %v8312_v4 = vadd.f32 %v13684_v47, %v8276_v1 }
 0x64b   : > { %v8344_v14 = vmax.f32 %v8312_v4, 0.0 }
 0x64c   : > { %v8200_v28 = vpop.f32.mrf.mxu1 }
 0x64d   : > { %v8376_v23 = vpack.c.bf16 %v8344_v14, %v8344_v14  ;;  %v8201_v63 = vadd.f32 %v8200_v28, %v13551_v32  ;;  %v13713_v32 = vpop.f32.mrf.mxu3 }
 0x64f   : > { %8409 = vst.msk [vmem:[%s12315_s12 + $0xc] sm:$0xf] %vm8407_vm10, %v8376_v23  ;;  %v8277_v30 = vadd.f32 %v8201_v63, %v13518_v56  ;;  %8239 = vmatmul.bf16.gmra.mxu1 %v7712_v5  ;;  %v13737_v5 = vpop.f32.mrf.mxu0 }
 0x651   : > { %v8313_v7 = vadd.f32 %v13684_v47, %v8277_v30  ;;  %v13739_v30 = vpop.f32.mrf.mxu2 }
 0x653   : > { %v8345_v19 = vmax.f32 %v8313_v7, 0.0 }
 0x654   : > { %v8202_v27 = vpop.f32.mrf.mxu1 }
 0x655   : > { %v8377_v2 = vpack.c.bf16 %v8345_v19, %v8345_v19  ;;  %v8203_v48 = vadd.f32 %v8202_v27, %v13569_v40  ;;  %v7721_v40 = vsel %vm3633_vm9, %v7719_v60, %v7720_v49  ;;  %v13730_v14 = vpop.f32.mrf.mxu3  ;;  %v14364_v19 = vld [vmem:[#allocation19_spill] sm:$0xff] }
 0x656   : > { %v7729_v27 = vrot.slane %v14364_v19, 1 }
 0x657   : > { %8410 = vst.msk [vmem:[%s12315_s12 + $0x14] sm:$0xf] %vm8407_vm10, %v8377_v2  ;;  %v8278_v8 = vadd.f32 %v8203_v48, %v13529_v51 }
 0x659   : > { %v8314_v56 = vadd.f32 %v13684_v47, %v8278_v8  ;;  %v7728_v8 = vrot.slane %v13562_v39, 1 }
 0x65b   : > { %v8346_v12 = vmax.f32 %v8314_v56, 0.0 }
 0x65c   : > { %v8205_v59 = vpop.f32.mrf.mxu1 }
 0x65d   : > { %v8378_v1 = vpack.c.bf16 %v8346_v12, %v8346_v12  ;;  %v8206_v4 = vadd.f32 %v8205_v59, %v13578_v37  ;;  %v13742_v7 = vpop.f32.mrf.mxu3  ;;  %v13752_v12 = vpop.f32.mrf.mxu0 }
 0x65e   : > { %v13754_v59 = vpop.f32.mrf.mxu2 }
 0x65f   : > { %8411 = vst.msk [vmem:[%s12315_s12 + $0x1c] sm:$0xf] %vm8407_vm10, %v8378_v1  ;;  %v8279_v51 = vadd.f32 %v8206_v4, %v13544_v24  ;;  %8244 = vmatmul.bf16.gmra.mxu1 %v7721_v40 }
 0x661   : > { %v8315_v28 = vadd.f32 %v13684_v47, %v8279_v51  ;;  %v14365_v51 = vld [vmem:[#allocation42_spill] sm:$0xff] }
 0x663   : > { %v8347_v31 = vmax.f32 %v8315_v28, 0.0  ;;  %v7738_v28 = vrot.slane %v14365_v51, 1  ;;  %v7569_v51 = vadd.f32 %v13725_v58, %v13485_v44  ;;  %v7571_v44 = vadd.f32 %v13739_v30, %v13495_v35 }
 0x664   : > { %v8207_v43 = vpop.f32.mrf.mxu1  ;;  %v7574_v30 = vadd.f32 %v13754_v59, %v13512_v29 }
 0x665   : > { %v8379_v23 = vpack.c.bf16 %v8347_v31, %v8347_v31  ;;  %v8208_v37 = vadd.f32 %v8207_v43, %v13593_v55  ;;  %v13756_v1 = vpop.f32.mrf.mxu3  ;;  %v8127_v31 = vadd.f32 %v13694_v17, %v13699_v21 }
 0x666   : > { %v13770_v19 = vpop.f32.mrf.mxu2 }
 0x667   : > { %8412 = vst.msk [vmem:[%s12315_s12 + $0x24] sm:$0xf] %vm8407_vm10, %v8379_v23  ;;  %v8280_v63 = vadd.f32 %v8208_v37, %v13555_v52  ;;  %v7730_v52 = vsel %vm3633_vm9, %v7728_v8, %v7729_v27  ;;  %v13766_v23 = vpop.f32.mrf.mxu0  ;;  %v8129_v8 = vadd.f32 %v13708_v3, %v13713_v32  ;;  %v8132_v32 = vadd.f32 %v13722_v36, %v13730_v14 }
 0x669   : > { %v8316_v24 = vadd.f32 %v13684_v47, %v8280_v63  ;;  %v10574_v63 = vld [vmem:[#allocation3 + $0xa8] sm:$0xff] }
 0x66b   : > { %v8348_v2 = vmax.f32 %v8316_v24, 0.0  ;;  %v7737_v24 = vrot.slane %v10574_v63, 1 }
 0x66c   : > { %v8210_v48 = vpop.f32.mrf.mxu1 }
 0x66d   : > { %v8380_v55 = vpack.c.bf16 %v8348_v2, %v8348_v2  ;;  %v8211_v56 = vadd.f32 %v8210_v48, %v13599_v18  ;;  %v8049_v2 = vpop.f32.mrf.mxu3  ;;  %v7739_v48 = vsel %vm3633_vm9, %v7737_v24, %v7738_v28 }
 0x66f   : > { %8413 = vst.msk [vmem:[%s12315_s12 + $0x2c] sm:$0xf] %vm8407_vm10, %v8380_v55  ;;  %v8281_v38 = vadd.f32 %v8211_v56, %v13572_v26  ;;  %8249 = vmatmul.bf16.gmra.mxu1 %v7730_v52 }
 0x671   : > { %v8317_v49 = vadd.f32 %v13684_v47, %v8281_v38  ;;  %v13780_v38 = vpop.f32.mrf.mxu0 }
 0x673   : > { %v8349_v60 = vmax.f32 %v8317_v49, 0.0  ;;  %v13782_v49 = vpop.f32.mrf.mxu2 }
 0x674   : > { %v8212_v39 = vpop.f32.mrf.mxu1 }
 0x675   : > { %v8381_v4 = vpack.c.bf16 %v8349_v60, %v8349_v60  ;;  %v8213_v18 = vadd.f32 %v8212_v39, %v13611_v6  ;;  %v7564_v6 = vadd.f32 %v13697_v53, %v13461_v50  ;;  %v7566_v50 = vadd.f32 %v13710_v25, %v13471_v45  ;;  %v8052_v39 = vpop.f32.mrf.mxu3  ;;  %v10575_v25 = vld [vmem:[#allocation3 + $0xb4] sm:$0xff] }
 0x677   : > { %8414 = vst.msk [vmem:[%s12315_s12 + $0x34] sm:$0xf] %vm8407_vm10, %v8381_v4  ;;  %v8282_v40 = vadd.f32 %v8213_v18, %v13582_v22  ;;  %v14366_v18 = vld [vmem:[#allocation52_spill] sm:$0xff] }
 0x678   : > { %v7747_v3 = vrot.slane %v14366_v18, 1 }
 0x679   : > { %v8318_v26 = vadd.f32 %v13684_v47, %v8282_v40  ;;  %v8143_v63 = vpop.f32.mrf.mxu0 }
 0x67b   : > { %v8350_v43 = vmax.f32 %v8318_v26, 0.0  ;;  %v7746_v26 = vrot.slane %v10575_v25, 1  ;;  %v7580_v24 = vpop.f32.mrf.mxu2 }
 0x67c   : > { %v8215_v37 = vpop.f32.mrf.mxu1 }
 0x67d   : > { %v8382_v27 = vpack.c.bf16 %v8350_v43, %v8350_v43  ;;  %v8216_v22 = vadd.f32 %v8215_v37, %v8127_v31  ;;  %v7748_v43 = vsel %vm3633_vm9, %v7746_v26, %v7747_v3  ;;  %v8054_v14 = vpop.f32.mrf.mxu3  ;;  %v7576_v26 = vadd.f32 %v13770_v19, %v13521_v41 }
 0x67e   : > { %v7579_v19 = vadd.f32 %v13782_v49, %v13538_v0 }
 0x67f   : > { %8415 = vst.msk [vmem:[%s12315_s12 + $0x3c] sm:$0xf] %vm8407_vm10, %v8382_v27  ;;  %v8283_v17 = vadd.f32 %v8216_v22, %v7564_v6  ;;  %8254 = vmatmul.bf16.gmra.mxu1 %v7739_v48  ;;  %v8134_v6 = vadd.f32 %v13737_v5, %v13742_v7  ;;  %v8137_v5 = vadd.f32 %v13752_v12, %v13756_v1 }
 0x680   : > { %v8139_v12 = vadd.f32 %v13766_v23, %v8049_v2  ;;  %v8142_v2 = vadd.f32 %v13780_v38, %v8052_v39  ;;  %v8144_v38 = vadd.f32 %v8143_v63, %v8054_v14 }
 0x681   : > { %v8319_v21 = vadd.f32 %v13684_v47, %v8283_v17 }
 0x683   : > { %v8351_v55 = vmax.f32 %v8319_v21, 0.0  ;;  %v7583_v7 = vpop.f32.mrf.mxu2 }
 0x684   : > { %v8217_v56 = vpop.f32.mrf.mxu1  ;;  %v7584_v63 = vadd.f32 %v7583_v7, %v13566_v57 }
 0x685   : > { %v8383_v53 = vpack.c.bf16 %v8351_v55, %v8351_v55  ;;  %v8218_v52 = vadd.f32 %v8217_v56, %v8129_v8  ;;  %v8146_v8 = vpop.f32.mrf.mxu0  ;;  %v10576_v55 = vld [vmem:[#allocation3 + $0xc0] sm:$0xff] }
 0x686   : > { %v7755_v56 = vrot.slane %v10576_v55, 1 }
 0x687   : > { %8416 = vst.msk [vmem:[%s12315_s12 + $0x44] sm:$0xf] %vm8407_vm10, %v8383_v53  ;;  %v8284_v60 = vadd.f32 %v8218_v52, %v7566_v50  ;;  %v14367_v50 = vld [vmem:[#allocation50_spill] sm:$0xff] }
 0x688   : > { %v7756_v53 = vrot.slane %v14367_v50, 1 }
 0x689   : > { %v8320_v4 = vadd.f32 %v13684_v47, %v8284_v60  ;;  %v8057_v60 = vpop.f32.mrf.mxu3 }
 0x68a   : > { %v7757_v3 = vsel %vm3633_vm9, %v7755_v56, %v7756_v53  ;;  %v7581_v53 = vadd.f32 %v7580_v24, %v13547_v11 }
 0x68b   : > { %v8352_v40 = vmax.f32 %v8320_v4, 0.0  ;;  %v7585_v29 = vpop.f32.mrf.mxu2 }
 0x68c   : > { %v8220_v45 = vpop.f32.mrf.mxu1 }
 0x68d   : > { %v8384_v28 = vpack.c.bf16 %v8352_v40, %v8352_v40  ;;  %v8221_v31 = vadd.f32 %v8220_v45, %v8132_v32  ;;  %v8148_v45 = vpop.f32.mrf.mxu0 }
 0x68f   : > { %8417 = vst.msk [vmem:[%s12315_s12 + $0x4c] sm:$0xf] %vm8407_vm10, %v8384_v28  ;;  %v8285_v37 = vadd.f32 %v8221_v31, %v7569_v51  ;;  %8259 = vmatmul.bf16.gmra.mxu1 %v7748_v43  ;;  %v10577_v43 = vld [vmem:[#allocation3 + $0xcc] sm:$0xff] }
 0x691   : > { %v8321_v36 = vadd.f32 %v13684_v47, %v8285_v37  ;;  %v8059_v28 = vpop.f32.mrf.mxu3  ;;  %v7764_v37 = vrot.slane %v10577_v43, 1 }
 0x693   : > { %v8353_v27 = vmax.f32 %v8321_v36, 0.0  ;;  %v14368_v36 = vld [vmem:[#allocation38_spill] sm:$0xff] }
 0x694   : > { %v8222_v22 = vpop.f32.mrf.mxu1 }
 0x695   : > { %v8385_v58 = vpack.c.bf16 %v8353_v27, %v8353_v27  ;;  %v8223_v48 = vadd.f32 %v8222_v22, %v8134_v6  ;;  %v7765_v6 = vrot.slane %v14368_v36, 1 }
 0x697   : > { %8418 = vst.msk [vmem:[%s12315_s12 + $0x54] sm:$0xf] %vm8407_vm10, %v8385_v58  ;;  %v8286_v17 = vadd.f32 %v8223_v48, %v7571_v44  ;;  %v7766_v41 = vsel %vm3633_vm9, %v7764_v37, %v7765_v6  ;;  %v8151_v48 = vpop.f32.mrf.mxu0 }
 0x699   : > { %v8322_v21 = vadd.f32 %v13684_v47, %v8286_v17  ;;  %v7588_v17 = vpop.f32.mrf.mxu2  ;;  %v8062_v55 = vpop.f32.mrf.mxu3 }
 0x69a   : > { %v8152_v37 = vadd.f32 %v8151_v48, %v8062_v55 }
 0x69b   : > { %v8354_v52 = vmax.f32 %v8322_v21, 0.0 }
 0x69c   : > { %v8225_v35 = vpop.f32.mrf.mxu1 }
 0x69d   : > { %v8386_v4 = vpack.c.bf16 %v8354_v52, %v8354_v52  ;;  %v8226_v18 = vadd.f32 %v8225_v35, %v8137_v5 }
 0x69f   : > { %8419 = vst.msk [vmem:[%s12315_s12 + $0x5c] sm:$0xf] %vm8407_vm10, %v8386_v4  ;;  %v8287_v32 = vadd.f32 %v8226_v18, %v7574_v30  ;;  %8264 = vmatmul.bf16.gmra.mxu1 %v7757_v3  ;;  %v8153_v52 = vpop.f32.mrf.mxu0  ;;  %v8147_v18 = vadd.f32 %v8146_v8, %v8057_v60 }
 0x6a1   : > { %v8323_v40 = vadd.f32 %v13684_v47, %v8287_v32  ;;  %v7590_v35 = vpop.f32.mrf.mxu2  ;;  %v8064_v4 = vpop.f32.mrf.mxu3 }
 0x6a3   : > { %v8355_v1 = vmax.f32 %v8323_v40, 0.0 }
 0x6a4   : > { %v8227_v25 = vpop.f32.mrf.mxu1 }
 0x6a5   : > { %v8387_v59 = vpack.c.bf16 %v8355_v1, %v8355_v1  ;;  %v8228_v51 = vadd.f32 %v8227_v25, %v8139_v12  ;;  %v8149_v25 = vadd.f32 %v8148_v45, %v8059_v28 }
 0x6a7   : > { %8420 = vst.msk [vmem:[%s12315_s12 + $0x64] sm:$0xf] %vm8407_vm10, %v8387_v59  ;;  %v8288_v31 = vadd.f32 %v8228_v51, %v7576_v26  ;;  %v8156_v12 = vpop.f32.mrf.mxu0 }
 0x6a9   : > { %v8324_v23 = vadd.f32 %v13684_v47, %v8288_v31  ;;  %v7593_v1 = vpop.f32.mrf.mxu2  ;;  %v8067_v59 = vpop.f32.mrf.mxu3  ;;  %v14369_v31 = vld [vmem:[#allocation43_spill] sm:$0xff] }
 0x6aa   : > { %v7586_v8 = vadd.f32 %v7585_v29, %v14369_v31 }
 0x6ab   : > { %v8356_v27 = vmax.f32 %v8324_v23, 0.0 }
 0x6ac   : > { %v8230_v22 = vpop.f32.mrf.mxu1 }
 0x6ad   : > { %v8388_v44 = vpack.c.bf16 %v8356_v27, %v8356_v27  ;;  %v8231_v58 = vadd.f32 %v8230_v22, %v8142_v2  ;;  %v7589_v2 = vadd.f32 %v7588_v17, %v13590_v16 }
 0x6af   : > { %8421 = vst.msk [vmem:[%s12315_s12 + $0x6c] sm:$0xf] %vm8407_vm10, %v8388_v44  ;;  %v8289_v21 = vadd.f32 %v8231_v58, %v7579_v19  ;;  %8269 = vmatmul.bf16.gmra.mxu1 %v7766_v41  ;;  %v8158_v6 = vpop.f32.mrf.mxu0  ;;  %v8154_v19 = vadd.f32 %v8153_v52, %v8064_v4 }
 0x6b1   : > { %v8325_v56 = vadd.f32 %v13684_v47, %v8289_v21  ;;  %v7595_v45 = vpop.f32.mrf.mxu2  ;;  %v8069_v22 = vpop.f32.mrf.mxu3  ;;  %v14370_v21 = vld [vmem:[#allocation44_spill] sm:$0xff] }
 0x6b2   : > { %v7591_v48 = vadd.f32 %v7590_v35, %v14370_v21 }
 0x6b3   : > { %v8357_v39 = vmax.f32 %v8325_v56, 0.0 }
 0x6b4   : > { %v8232_v50 = vpop.f32.mrf.mxu1 }
 0x6b5   : > { %v8389_v5 = vpack.c.bf16 %v8357_v39, %v8357_v39  ;;  %v8233_v0 = vadd.f32 %v8232_v50, %v8144_v38 }
 0x6b7   : > { %8422 = vst.msk [vmem:[%s12315_s12 + $0x74] sm:$0xf] %vm8407_vm10, %v8389_v5  ;;  %v8290_v49 = vadd.f32 %v8233_v0, %v7581_v53  ;;  %v8161_v38 = vpop.f32.mrf.mxu0  ;;  %v8157_v53 = vadd.f32 %v8156_v12, %v8067_v59 }
 0x6b9   : > { %v8326_v30 = vadd.f32 %v13684_v47, %v8290_v49  ;;  %v7598_v16 = vpop.f32.mrf.mxu2  ;;  %v8072_v39 = vpop.f32.mrf.mxu3  ;;  %v7594_v49 = vadd.f32 %v7593_v1, %v13608_v46 }
 0x6ba   : > { %v8162_v59 = vadd.f32 %v8161_v38, %v8072_v39 }
 0x6bb   : > { %v8358_v3 = vmax.f32 %v8326_v30, 0.0 }
 0x6bc   : > { %v8235_v32 = vpop.f32.mrf.mxu1 }
 0x6bd   : > { %v8390_v14 = vpack.c.bf16 %v8358_v3, %v8358_v3  ;;  %v8236_v40 = vadd.f32 %v8235_v32, %v8147_v18 }
 0x6bf   : > { %8423 = vst.msk [vmem:[%s12315_s12 + $0x7c] sm:$0xf] %vm8407_vm10, %v8390_v14  ;;  %v8291_v11 = vadd.f32 %v8236_v40, %v7584_v63  ;;  %v8163_v4 = vpop.f32.mrf.mxu0  ;;  %v8159_v63 = vadd.f32 %v8158_v6, %v8069_v22 }
 0x6c1   : > { %v8327_v24 = vadd.f32 %v13684_v47, %v8291_v11  ;;  %v7600_v18 = vpop.f32.mrf.mxu2  ;;  %v8074_v32 = vpop.f32.mrf.mxu3  ;;  %v7596_v11 = vadd.f32 %v7595_v45, %v13614_v15 }
 0x6c3   : > { %v8359_v26 = vmax.f32 %v8327_v24, 0.0 }
 0x6c4   : > { %v8237_v51 = vpop.f32.mrf.mxu1 }
 0x6c5   : > { %v8391_v60 = vpack.c.bf16 %v8359_v26, %v8359_v26  ;;  %v8238_v43 = vadd.f32 %v8237_v51, %v8149_v25 }
 0x6c7   : > { %8424 = vst.msk [vmem:[%s12315_s12 + $0x84] sm:$0xf] %vm8407_vm10, %v8391_v60  ;;  %v8292_v57 = vadd.f32 %v8238_v43, %v7586_v8  ;;  %v8166_v25 = vpop.f32.mrf.mxu0  ;;  %v7599_v60 = vadd.f32 %v7598_v16, %v13624_v10 }
 0x6c9   : > { %v8328_v7 = vadd.f32 %v13684_v47, %v8292_v57  ;;  %v7603_v26 = vpop.f32.mrf.mxu2  ;;  %v8077_v31 = vpop.f32.mrf.mxu3 }
 0x6cb   : > { %v8360_v36 = vmax.f32 %v8328_v7, 0.0 }
 0x6cc   : > { %v8240_v23 = vpop.f32.mrf.mxu1 }
 0x6cd   : > { %v8392_v28 = vpack.c.bf16 %v8360_v36, %v8360_v36  ;;  %v8241_v27 = vadd.f32 %v8240_v23, %v8152_v37  ;;  %v8164_v37 = vadd.f32 %v8163_v4, %v8074_v32 }
 0x6cf   : > { %8425 = vst.msk [vmem:[%s12315_s12 + $0x8c] sm:$0xf] %vm8407_vm10, %v8392_v28  ;;  %v8293_v29 = vadd.f32 %v8241_v27, %v7589_v2  ;;  %v8168_v6 = vpop.f32.mrf.mxu0  ;;  %v7601_v2 = vadd.f32 %v7600_v18, %v13628_v54 }
 0x6d1   : > { %v8329_v41 = vadd.f32 %v13684_v47, %v8293_v29  ;;  %v7605_v45 = vpop.f32.mrf.mxu2  ;;  %v8079_v22 = vpop.f32.mrf.mxu3 }
 0x6d3   : > { %v8361_v44 = vmax.f32 %v8329_v41, 0.0  ;;  %v8167_v41 = vadd.f32 %v8166_v25, %v8077_v31 }
 0x6d4   : > { %v8242_v58 = vpop.f32.mrf.mxu1 }
 0x6d5   : > { %v8393_v55 = vpack.c.bf16 %v8361_v44, %v8361_v44  ;;  %v8243_v56 = vadd.f32 %v8242_v58, %v8154_v19  ;;  %v7604_v58 = vadd.f32 %v7603_v26, %v13638_v61 }
 0x6d7   : > { %8426 = vst.msk [vmem:[%s12315_s12 + $0x94] sm:$0xf] %vm8407_vm10, %v8393_v55  ;;  %v8294_v17 = vadd.f32 %v8243_v56, %v7591_v48  ;;  %v8171_v55 = vpop.f32.mrf.mxu0 }
 0x6d9   : > { %v8330_v50 = vadd.f32 %v13684_v47, %v8294_v17  ;;  %v7608_v54 = vpop.f32.mrf.mxu2  ;;  %v8082_v38 = vpop.f32.mrf.mxu3  ;;  %v8169_v17 = vadd.f32 %v8168_v6, %v8079_v22 }
 0x6da   : > { %v8172_v4 = vadd.f32 %v8171_v55, %v8082_v38  ;;  %v7609_v32 = vadd.f32 %v7608_v54, %v13651_v33 }
 0x6db   : > { %v8362_v5 = vmax.f32 %v8330_v50, 0.0 }
 0x6dc   : > { %v8245_v0 = vpop.f32.mrf.mxu1 }
 0x6dd   : > { %v8394_v52 = vpack.c.bf16 %v8362_v5, %v8362_v5  ;;  %v8246_v30 = vadd.f32 %v8245_v0, %v8157_v53  ;;  %v7606_v53 = vadd.f32 %v7605_v45, %v13642_v34 }
 0x6df   : > { %8427 = vst.msk [vmem:[%s12315_s12 + $0x9c] sm:$0xf] %vm8407_vm10, %v8394_v52  ;;  %v8295_v35 = vadd.f32 %v8246_v30, %v7594_v49  ;;  %v8173_v49 = vpop.f32.mrf.mxu0 }
 0x6e1   : > { %v8331_v3 = vadd.f32 %v13684_v47, %v8295_v35  ;;  %v7610_v52 = vpop.f32.mrf.mxu2  ;;  %v8084_v35 = vpop.f32.mrf.mxu3 }
 0x6e2   : > { %v7611_v26 = vadd.f32 %v7610_v52, %v13655_v42 }
 0x6e3   : > { %v8363_v14 = vmax.f32 %v8331_v3, 0.0 }
 0x6e4   : > { %v8247_v40 = vpop.f32.mrf.mxu1 }
 0x6e5   : > { %v8395_v24 = vpack.c.bf16 %v8363_v14, %v8363_v14  ;;  %v8248_v12 = vadd.f32 %v8247_v40, %v8159_v63 }
 0x6e7   : > { %8428 = vst.msk [vmem:[%s12315_s12 + $0xa4] sm:$0xf] %vm8407_vm10, %v8395_v24  ;;  %v8296_v46 = vadd.f32 %v8248_v12, %v7596_v11  ;;  %v8176_v11 = vpop.f32.mrf.mxu0  ;;  %v8174_v12 = vadd.f32 %v8173_v49, %v8084_v35 }
 0x6e9   : > { %v8332_v1 = vadd.f32 %v13684_v47, %v8296_v46  ;;  %v7613_v24 = vpop.f32.mrf.mxu2 }
 0x6eb   : > { %v8364_v51 = vmax.f32 %v8332_v1, 0.0  ;;  %v8087_v1 = vpop.f32.mrf.mxu3 }
 0x6ec   : > { %v8250_v8 = vpop.f32.mrf.mxu1 }
 0x6ed   : > { %v8396_v43 = vpack.c.bf16 %v8364_v51, %v8364_v51  ;;  %v8251_v57 = vadd.f32 %v8250_v8, %v8162_v59  ;;  %v8177_v8 = vadd.f32 %v8176_v11, %v8087_v1 }
 0x6ef   : > { %8429 = vst.msk [vmem:[%s12315_s12 + $0xac] sm:$0xf] %vm8407_vm10, %v8396_v43  ;;  %v8297_v15 = vadd.f32 %v8251_v57, %v7599_v60  ;;  %v8178_v43 = vpop.f32.mrf.mxu0 }
 0x6f1   : > { %v8333_v7 = vadd.f32 %v13684_v47, %v8297_v15  ;;  %v7614_v15 = vadd.f32 %v7613_v24, %v13663_v62 }
 0x6f3   : > { %v8365_v36 = vmax.f32 %v8333_v7, 0.0  ;;  %v8089_v6 = vpop.f32.mrf.mxu3 }
 0x6f4   : > { %v8252_v23 = vpop.f32.mrf.mxu1 }
 0x6f5   : > { %v8397_v28 = vpack.c.bf16 %v8365_v36, %v8365_v36  ;;  %v8253_v27 = vadd.f32 %v8252_v23, %v8164_v37  ;;  %v7615_v36 = vpop.f32.mrf.mxu2 }
 0x6f7   : > { %8430 = vst.msk [vmem:[%s12315_s12 + $0xb4] sm:$0xf] %vm8407_vm10, %v8397_v28  ;;  %v8298_v10 = vadd.f32 %v8253_v27, %v7601_v2  ;;  %v8179_v2 = vadd.f32 %v8178_v43, %v8089_v6  ;;  %v7616_v27 = vadd.f32 %v7615_v36, %v13667_v20 }
 0x6f9   : > { %v8334_v29 = vadd.f32 %v13684_v47, %v8298_v10 }
 0x6fb   : > { %v8366_v19 = vmax.f32 %v8334_v29, 0.0  ;;  %v8181_v29 = vpop.f32.mrf.mxu0 }
 0x6fc   : > { %v8255_v44 = vpop.f32.mrf.mxu1 }
 0x6fd   : > { %v8398_v21 = vpack.c.bf16 %v8366_v19, %v8366_v19  ;;  %v8256_v48 = vadd.f32 %v8255_v44, %v8167_v41  ;;  %v7618_v41 = vpop.f32.mrf.mxu2  ;;  %v8092_v19 = vpop.f32.mrf.mxu3 }
 0x6fe   : > { %v7619_v55 = vadd.f32 %v7618_v41, %v13672_v13 }
 0x6ff   : > { %8431 = vst.msk [vmem:[%s12315_s12 + $0xbc] sm:$0xf] %vm8407_vm10, %v8398_v21  ;;  %v8299_v56 = vadd.f32 %v8256_v48, %v7604_v58  ;;  %v8182_v58 = vadd.f32 %v8181_v29, %v8092_v19 }
 0x701   : > { %v8335_v16 = vadd.f32 %v13684_v47, %v8299_v56 }
 0x703   : > { %v8367_v39 = vmax.f32 %v8335_v16, 0.0  ;;  %v8183_v38 = vpop.f32.mrf.mxu0 }
 0x704   : > { %v8257_v50 = vpop.f32.mrf.mxu1 }
 0x705   : > { %v8399_v5 = vpack.c.bf16 %v8367_v39, %v8367_v39  ;;  %v8258_v0 = vadd.f32 %v8257_v50, %v8169_v17  ;;  %v7620_v17 = vpop.f32.mrf.mxu2  ;;  %v8094_v39 = vpop.f32.mrf.mxu3 }
 0x706   : > { %v8184_v50 = vadd.f32 %v8183_v38, %v8094_v39  ;;  %v7621_v13 = vadd.f32 %v7620_v17, %v13676_v9 }
 0x707   : > { %8432 = vst.msk [vmem:[%s12315_s12 + $0xc4] sm:$0xf] %vm8407_vm10, %v8399_v5  ;;  %v8300_v61 = vadd.f32 %v8258_v0, %v7606_v53 }
 0x709   : > { %v8336_v30 = vadd.f32 %v13684_v47, %v8300_v61 }
 0x70b   : > { %v8368_v18 = vmax.f32 %v8336_v30, 0.0 }
 0x70c   : > { %v8260_v3 = vpop.f32.mrf.mxu1 }
 0x70d   : > { %v8400_v63 = vpack.c.bf16 %v8368_v18, %v8368_v18  ;;  %v8261_v14 = vadd.f32 %v8260_v3, %v8172_v4 }
 0x70f   : > { %8433 = vst.msk [vmem:[%s12315_s12 + $0xcc] sm:$0xf] %vm8407_vm10, %v8400_v63  ;;  %v8301_v34 = vadd.f32 %v8261_v14, %v7609_v32 }
 0x711   : > { %v8337_v40 = vadd.f32 %v13684_v47, %v8301_v34 }
 0x713   : > { %v8369_v46 = vmax.f32 %v8337_v40, 0.0 }
 0x714   : > { %v8262_v25 = vpop.f32.mrf.mxu1 }
 0x715   : > { %v8401_v59 = vpack.c.bf16 %v8369_v46, %v8369_v46  ;;  %v8263_v51 = vadd.f32 %v8262_v25, %v8174_v12 }
 0x717   : > { %8434 = vst.msk [vmem:[%s12315_s12 + $0xd4] sm:$0xf] %vm8407_vm10, %v8401_v59  ;;  %v8302_v33 = vadd.f32 %v8263_v51, %v7611_v26 }
 0x719   : > { %v8338_v31 = vadd.f32 %v13684_v47, %v8302_v33 }
 0x71b   : > { %v8370_v60 = vmax.f32 %v8338_v31, 0.0 }
 0x71c   : > { %v8265_v57 = vpop.f32.mrf.mxu1 }
 0x71d   : > { %v8402_v7 = vpack.c.bf16 %v8370_v60, %v8370_v60  ;;  %v8266_v37 = vadd.f32 %v8265_v57, %v8177_v8 }
 0x71f   : > { %8435 = vst.msk [vmem:[%s12315_s12 + $0xdc] sm:$0xf] %vm8407_vm10, %v8402_v7  ;;  %v8303_v42 = vadd.f32 %v8266_v37, %v7614_v15 }
 0x721   : > { %v8339_v23 = vadd.f32 %v13684_v47, %v8303_v42 }
 0x723   : > { %v8371_v45 = vmax.f32 %v8339_v23, 0.0 }
 0x724   : > { %v8267_v28 = vpop.f32.mrf.mxu1 }
 0x725   : > { %v8403_v22 = vpack.c.bf16 %v8371_v45, %v8371_v45  ;;  %v8268_v10 = vadd.f32 %v8267_v28, %v8179_v2 }
 0x727   : > { %8436 = vst.msk [vmem:[%s12315_s12 + $0xe4] sm:$0xf] %vm8407_vm10, %v8403_v22  ;;  %v8304_v62 = vadd.f32 %v8268_v10, %v7616_v27 }
 0x729   : > { %v8340_v44 = vadd.f32 %v13684_v47, %v8304_v62 }
 0x72b   : > { %v8372_v21 = vmax.f32 %v8340_v44, 0.0 }
 0x72c   : > { %v8270_v48 = vpop.f32.mrf.mxu1 }
 0x72d   : > { %v8404_v54 = vpack.c.bf16 %v8372_v21, %v8372_v21  ;;  %v8271_v56 = vadd.f32 %v8270_v48, %v8182_v58 }
 0x72f   : > { %8437 = vst.msk [vmem:[%s12315_s12 + $0xec] sm:$0xf] %vm8407_vm10, %v8404_v54  ;;  %v8305_v20 = vadd.f32 %v8271_v56, %v7619_v55 }
 0x731   : > { %v8341_v16 = vadd.f32 %v13684_v47, %v8305_v20 }
 0x733   : > { %v8373_v53 = vmax.f32 %v8341_v16, 0.0 }
 0x734   : > { %v8272_v5 = vpop.f32.mrf.mxu1 }
 0x735   : > { %v8405_v0 = vpack.c.bf16 %v8373_v53, %v8373_v53  ;;  %v8273_v61 = vadd.f32 %v8272_v5, %v8184_v50 }
 0x737   : > { %8438 = vst.msk [vmem:[%s12315_s12 + $0xf4] sm:$0xf] %vm8407_vm10, %v8405_v0  ;;  %v8306_v49 = vadd.f32 %v8273_v61, %v7621_v13 }
 0x739   : > { %v8342_v52 = vadd.f32 %v13684_v47, %v8306_v49 }
 0x73b   : > { %v8374_v30 = vmax.f32 %v8342_v52, 0.0 }
 0x73d   : > { %v8406_v35 = vpack.c.bf16 %v8374_v30, %v8374_v30 }
 0x73f   : > { %8439 = vst.msk [vmem:[%s12315_s12 + $0xfc] sm:$0xf] %vm8407_vm10, %v8406_v35 }
 0x740   : > { %10725 = shalt.err (!%p10722_p11)
}
 0x741   : > { %s10782_s25 = smov 128   ;;  %s10783_s12 = smov 8  }
 0x742   : > { %10401 = dma.vmem_to_hbm [thread:$0]  (%p10921_p5), %s8454_s11, 4096, %s8456_s21, %s8441_s17, %s10782_s25, %s10782_s25, %s10783_s12  }
 0x743 PF: > { %p10428_p12 = scmp.ge.s32.totalorder %s10772_s16, 2  ;;  %s8470_s18 = sand.u32 1, %s10760_s13  }
 0x744   : > { %s8471_s6 = scalar_lea.sflag [#allocation6], %s8470_s18 }
 0x745   : > { %p10418_p13 = pnand %p10428_p12, %p10874_p6 }
 0x747   : > { %p10419_p0 = pneg %p10418_p13 }
 0x749   : > { %10755 = dma.done.wait (%p10419_p0), %s8471_s6, 4096  }
 0x74a   : > { %10757 = vsyncadd (%p10419_p0), %s8471_s6, 4294963200  ;;  %s14371_s29 = sld [smem:[#allocation17_spill]]  ;;  %p25_p3 = scmp.ge.s32.totalorder %s10905_s23, 5  }
 0x74b   : > { %s14372_s13 = smov %s10764_s14  ;;  %s14373_s14 = smov %s10768_s15 }
 0x74c   : > { %s14375_s16 = smov %s10905_s23  ;;  %27 = sbr.rel (!%p25_p3) target bundleno = 11 (0xb), region = 128 }
 0x750   : > { %s14374_s15 = smov %s14371_s29 }
 0x751   :  { %8477 = vsyncpa [#allocation5], 1 }
 0x752   :  { %8479 = vsyncpa [#allocation5 + $0x1], 1 }
 0x753   :  { %8480 = vsyncpa [#allocation8], 1 }
 0x754   :  { %8481 = vsyncpa [#allocation11], 1 }
 0x755   :  { %8482 = vsyncpa [#allocation6], 1 }
 0x756   :  { %8484 = vsyncpa [#allocation6 + $0x1], 1 }

</bundles_post_ra>
